<compile_context>
chip_gen: v7x
topology: tpu7x:2x2x1
jax: 0.10.0
libtpu: 0.0.40
codegen_flags: <defaults>
</compile_context>

<pallas_src>
import functools

import jax
import jax.numpy as jnp
import numpy as np
from jax.experimental import pallas as pl
from jax.experimental.pallas import tpu as pltpu


# ----------------------------------------------------------------------------
# Parameter construction (PyTorch-default-style uniform init, deterministic)
# ----------------------------------------------------------------------------
def _uniform(key, shape, fan_in):
    bound = 1.0 / float(np.sqrt(fan_in))
    return jax.random.uniform(key, shape, jnp.float32, -bound, bound)


def init_cae_params(key, code_bits, width, height):
    imgsize = width * height
    flat = 3 * imgsize // 4
    # conv weights: (Cout, Cin, KH, KW); deconv weights: (Cin, Cout, KH, KW)
    specs = {
        "conv1": (16, 3, 3, 3), "conv2": (16, 16, 3, 3), "conv3": (16, 16, 3, 3),
        "conv4": (16, 16, 3, 3), "conv5": (16, 16, 3, 3), "conv6": (3, 16, 3, 3),
        "deconv1": (3, 16, 3, 3), "deconv2": (16, 16, 3, 3), "deconv3": (16, 16, 3, 3),
        "deconv4": (16, 16, 3, 3), "deconv5": (16, 16, 4, 4), "deconv6": (16, 3, 3, 3),
    }
    params = {}
    keys = jax.random.split(key, 2 * len(specs) + 4)
    ki = 0
    for name, shp in specs.items():
        kh, kw = shp[2], shp[3]
        # PyTorch default: fan_in = weight.shape[1] * KH * KW for both
        # Conv2d (=Cin*K*K) and ConvTranspose2d (=Cout*K*K).
        fan_in = shp[1] * kh * kw
        nbias = shp[1] if name.startswith("deconv") else shp[0]
        params[name + "_w"] = _uniform(keys[ki], shp, fan_in); ki += 1
        params[name + "_b"] = _uniform(keys[ki], (nbias,), fan_in); ki += 1
    params["linear_in_w"] = _uniform(keys[ki], (code_bits, flat), flat); ki += 1
    params["linear_in_b"] = _uniform(keys[ki], (code_bits,), flat); ki += 1
    params["linear_out_w"] = _uniform(keys[ki], (flat, code_bits), code_bits); ki += 1
    params["linear_out_b"] = _uniform(keys[ki], (flat,), code_bits); ki += 1
    return params


# ----------------------------------------------------------------------------
# One-time (init) folding of every layer into (Lstack, Tstack, bias, cfg)
#   per-image 2-D activation layout:  X[h, w*C + c]   (NHWC row-major columns)
#   layer math in-kernel:             Y = act( sum_k (L_k @ X) @ T_k + bias )
# ----------------------------------------------------------------------------
def _conv_operators(w, b, h_in, w_in, stride, pad, transpose):
    w = np.asarray(w, np.float32)
    b = np.asarray(b, np.float32)
    if transpose:
        cin, cout, kh_n, kw_n = w.shape
        h_out = (h_in - 1) * stride - 2 * pad + kh_n
        w_out = (w_in - 1) * stride - 2 * pad + kw_n
    else:
        cout, cin, kh_n, kw_n = w.shape
        h_out = (h_in + 2 * pad - kh_n) // stride + 1
        w_out = (w_in + 2 * pad - kw_n) // stride + 1
    L = np.zeros((kh_n, h_out, h_in), np.float32)
    T = np.zeros((kh_n, w_in * cin, w_out * cout), np.float32)
    for kh in range(kh_n):
        if transpose:
            # ConvTranspose2d:  oh = s*ih - p + kh,  ow = s*iw - p + kw
            for ih in range(h_in):
                oh = stride * ih - pad + kh
                if 0 <= oh < h_out:
                    L[kh, oh, ih] = 1.0
            for kw in range(kw_n):
                for iw in range(w_in):
                    ow = stride * iw - pad + kw
                    if 0 <= ow < w_out:
                        T[kh, iw * cin:(iw + 1) * cin,
                          ow * cout:(ow + 1) * cout] = w[:, :, kh, kw]
        else:
            # Conv2d:  ih = s*oh - p + kh,  iw = s*ow - p + kw
            for oh in range(h_out):
                ih = stride * oh - pad + kh
                if 0 <= ih < h_in:
                    L[kh, oh, ih] = 1.0
            for kw in range(kw_n):
                for ow in range(w_out):
                    iw = stride * ow - pad + kw
                    if 0 <= iw < w_in:
                        T[kh, iw * cin:(iw + 1) * cin,
                          ow * cout:(ow + 1) * cout] = w[:, :, kh, kw].T
    bias = np.tile(b[None, None, :], (h_out, w_out, 1)).reshape(h_out, w_out * cout)
    cfg = (kh_n, h_out, h_in, w_in * cin, w_out * cout)
    return (L.reshape(kh_n * h_out, h_in),
            T.reshape(kh_n * w_in * cin, w_out * cout), bias, cfg)


def _linear_in_operators(w, b, h, w_sp, c):
    """linear_in over the NCHW-flattened conv6 output; the flatten permutation
    is folded into the weight.  Tap k consumes input row k (L = identity rows)."""
    w = np.asarray(w, np.float32)      # (code, h*w*c), input index is NCHW-flat
    b = np.asarray(b, np.float32)
    code = w.shape[0]
    L = np.eye(h, dtype=np.float32)                  # (K*H_out, H_in) = (h, h)
    T = np.zeros((h, w_sp * c, code), np.float32)
    for hh in range(h):
        for ww in range(w_sp):
            for cc in range(c):
                T[hh, ww * c + cc, :] = w[:, cc * h * w_sp + hh * w_sp + ww]
    cfg = (h, 1, h, w_sp * c, code)
    return L, T.reshape(h * w_sp * c, code), b.reshape(1, code), cfg


def _linear_out_operators(w, b, h, w_sp, c):
    """linear_out emitted directly in the NHWC 2-D layout.  Tap k produces
    output row k; row placement is done in-kernel with an iota mask (L unused)."""
    w = np.asarray(w, np.float32)      # (h*w*c, code), output index is NCHW-flat
    b = np.asarray(b, np.float32)
    code = w.shape[1]
    L = np.zeros((h, h), np.float32)   # placeholder, never read by the kernel
    T = np.zeros((h, code, w_sp * c), np.float32)
    bias = np.zeros((h, w_sp * c), np.float32)
    for hh in range(h):
        for ww in range(w_sp):
            for cc in range(c):
                f = cc * h * w_sp + hh * w_sp + ww
                T[hh, :, ww * c + cc] = w[f, :]
                bias[hh, ww * c + cc] = b[f]
    cfg = (h, h, 1, code, w_sp * c)
    return L, T.reshape(h * code, w_sp * c), bias, cfg


def build_cae_operators(params, code_bits, width, height):
    H, W = height, width
    H2, W2 = H // 2, W // 2
    conv_layers = [
        ("conv1", False, H, W, 1, 1, "relu"),
        ("conv2", False, H, W, 2, 1, "relu"),
        ("conv3", False, H2, W2, 1, 1, "relu"),
        ("conv4", False, H2, W2, 1, 1, "relu"),
        ("conv5", False, H2, W2, 1, 1, "relu"),
        ("conv6", False, H2, W2, 1, 1, "relu"),
    ]
    deconv_layers = [
        ("deconv1", True, H2, W2, 1, 1, "relu"),
        ("deconv2", True, H2, W2, 1, 1, "relu"),
        ("deconv3", True, H2, W2, 1, 1, "relu"),
        ("deconv4", True, H2, W2, 1, 1, "relu"),
        ("deconv5", True, H2, W2, 2, 1, "relu"),
        ("deconv6", True, H, W, 1, 1, "sigmoid"),
    ]
    ops, cfgs, acts = [], [], []

    def add(L, T, B, cfg, act):
        ops.extend([jnp.asarray(L, jnp.float32),
                    jnp.asarray(T, jnp.float32),
                    jnp.asarray(B, jnp.float32)])
        cfgs.append(cfg)
        acts.append(act)

    for name, tr, hi, wi, s, p, act in conv_layers:
        add(*_conv_operators(params[name + "_w"], params[name + "_b"],
                             hi, wi, s, p, tr), act)
    add(*_linear_in_operators(params["linear_in_w"], params["linear_in_b"],
                              H2, W2, 3), "sigmoid")
    add(*_linear_out_operators(params["linear_out_w"], params["linear_out_b"],
                               H2, W2, 3), "relu")
    for name, tr, hi, wi, s, p, act in deconv_layers:
        add(*_conv_operators(params[name + "_w"], params[name + "_b"],
                             hi, wi, s, p, tr), act)
    return ops, tuple(cfgs), tuple(acts)


# ----------------------------------------------------------------------------
# The single fused Pallas kernel: the whole CAE forward for one image
# ----------------------------------------------------------------------------
def _cae_kernel(*refs, cfgs, acts):
    x_ref = refs[0]
    out_ref = refs[-1]
    prefs = refs[1:-1]

    h = x_ref[0]                                      # (H, W*3) f32, one image
    for idx, ((K, h_out, h_in, wc_in, wc_out), act) in enumerate(zip(cfgs, acts)):
        l_ref = prefs[3 * idx]
        t_ref = prefs[3 * idx + 1]
        b_ref = prefs[3 * idx + 2]

        xb = h.astype(jnp.bfloat16)                   # bf16 MXU operands
        acc = jnp.zeros((h_out, wc_out), jnp.float32)
        for k in range(K):
            t_k = t_ref[k * wc_in:(k + 1) * wc_in, :].astype(jnp.bfloat16)
            if h_in == 1:
                # single-row input (the code vector): tap k -> output row k
                r = jnp.dot(xb, t_k, preferred_element_type=jnp.float32)
                rows = jax.lax.broadcasted_iota(jnp.int32, (h_out, wc_out), 0)
                acc = acc + jnp.where(rows == k,
                                      jnp.broadcast_to(r, (h_out, wc_out)),
                                      jnp.zeros((h_out, wc_out), jnp.float32))
            else:
                l_k = l_ref[k * h_out:(k + 1) * h_out, :].astype(jnp.bfloat16)
                a = jnp.dot(l_k, xb, preferred_element_type=jnp.float32)
                acc = acc + jnp.dot(a.astype(jnp.bfloat16), t_k,
                                    preferred_element_type=jnp.float32)
        acc = acc + b_ref[...]
        if act == "sigmoid":
            h = 0.5 * (jnp.tanh(0.5 * acc) + 1.0)     # stable sigmoid on the EUP
        else:
            h = jnp.maximum(acc, 0.0)
    out_ref[0] = h


def _full_block_spec(shape):
    nd = len(shape)
    return pl.BlockSpec(shape, lambda b, _nd=nd: (0,) * _nd)


def cae_forward(x_nchw, ops, *, cfgs, acts):
    B, C, H, W = x_nchw.shape
    x2 = jnp.transpose(x_nchw, (0, 2, 3, 1)).reshape(B, H, W * C)  # boundary glue

    h_out, wc_out = cfgs[-1][1], cfgs[-1][4]

    # Advisory cost estimate (lets XLA overlap the boundary transposes).
    flops = 0
    transcendentals = 0
    for (K, ho, hi, wci, wco), act in zip(cfgs, acts):
        if hi == 1:
            flops += K * 2 * wci * wco
        else:
            flops += K * 2 * (ho * hi * wci + ho * wci * wco)
        if act == "sigmoid":
            transcendentals += ho * wco
    bytes_accessed = (x2.size * 4 + B * h_out * wc_out * 4 +
                      sum(int(np.prod(a.shape)) * a.dtype.itemsize for a in ops))
    cost = pl.CostEstimate(flops=int(B * flops),
                           transcendentals=int(B * transcendentals),
                           bytes_accessed=int(bytes_accessed))

    in_specs = [pl.BlockSpec((1, H, W * C), lambda b: (b, 0, 0))]
    in_specs += [_full_block_spec(a.shape) for a in ops]
    out_spec = pl.BlockSpec((1, h_out, wc_out), lambda b: (b, 0, 0))

    y = pl.pallas_call(
        functools.partial(_cae_kernel, cfgs=cfgs, acts=acts),
        grid=(B,),
        in_specs=in_specs,
        out_specs=out_spec,
        out_shape=jax.ShapeDtypeStruct((B, h_out, wc_out), jnp.float32),
        compiler_params=pltpu.CompilerParams(
            dimension_semantics=("parallel",)),       # both TCs on v7x
        cost_estimate=cost,
    )(x2, *ops)

    cout = 3
    y = y.reshape(B, h_out, wc_out // cout, cout)
    return jnp.transpose(y, (0, 3, 1, 2))             # NHWC -> NCHW


# ----------------------------------------------------------------------------
# Pure-JAX (XLA) reference of the PyTorch module, for a correctness check
# ----------------------------------------------------------------------------
def _conv_ref(x, w, b, stride, pad):
    y = jax.lax.conv_general_dilated(
        x, w, window_strides=(stride, stride),
        padding=[(pad, pad), (pad, pad)],
        dimension_numbers=("NCHW", "OIHW", "NCHW"),
        precision=jax.lax.Precision.HIGHEST)
    return y + b.reshape(1, -1, 1, 1)


def _deconv_ref(x, w, b, stride, pad):
    k = w.shape[2]
    w_eq = jnp.transpose(jnp.flip(w, (2, 3)), (1, 0, 2, 3))   # -> OIHW
    y = jax.lax.conv_general_dilated(
        x, w_eq, window_strides=(1, 1),
        padding=[(k - 1 - pad, k - 1 - pad)] * 2,
        lhs_dilation=(stride, stride),
        dimension_numbers=("NCHW", "OIHW", "NCHW"),
        precision=jax.lax.Precision.HIGHEST)
    return y + b.reshape(1, -1, 1, 1)


def cae_reference(params, x, *, width, height):
    p = params
    B = x.shape[0]
    flat = 3 * width * height // 4
    h = x
    for name in ["conv1", "conv2", "conv3", "conv4", "conv5", "conv6"]:
        s = 2 if name == "conv2" else 1
        h = jax.nn.relu(_conv_ref(h, p[name + "_w"], p[name + "_b"], s, 1))
    h = h.reshape(B, flat)
    code = jax.nn.sigmoid(h @ p["linear_in_w"].T + p["linear_in_b"])
    h = jax.nn.relu(code @ p["linear_out_w"].T + p["linear_out_b"])
    h = h.reshape(B, 3, height // 2, width // 2)
    for name in ["deconv1", "deconv2", "deconv3", "deconv4", "deconv5"]:
        s = 2 if name == "deconv5" else 1
        h = jax.nn.relu(_deconv_ref(h, p[name + "_w"], p[name + "_b"], s, 1))
    return jax.nn.sigmoid(_deconv_ref(h, p["deconv6_w"], p["deconv6_b"], 1, 1))


# ----------------------------------------------------------------------------
if __name__ == "__main__":
    CODE_BITS, WIDTH, HEIGHT, BATCH = 64, 16, 16, 2

    key = jax.random.PRNGKey(0)
    pkey, xkey = jax.random.split(key)
    params = init_cae_params(pkey, CODE_BITS, WIDTH, HEIGHT)
    ops, cfgs, acts = build_cae_operators(params, CODE_BITS, WIDTH, HEIGHT)
    x = jax.random.normal(xkey, (BATCH, 3, HEIGHT, WIDTH), jnp.float32)

    fwd = jax.jit(functools.partial(cae_forward, cfgs=cfgs, acts=acts))
    out = jax.block_until_ready(fwd(x, ops))

    assert out.shape == (BATCH, 3, HEIGHT, WIDTH), out.shape
    assert out.dtype == jnp.float32
    assert bool(jnp.all(out >= 0.0)) and bool(jnp.all(out <= 1.0))

    # correctness vs. a pure-JAX reference of the PyTorch module (bf16 MXU
    # operands in the Pallas path -> loose tolerance)
    ref = jax.jit(functools.partial(cae_reference, width=WIDTH,
                                    height=HEIGHT))(params, x)
    max_err = float(jnp.max(jnp.abs(out - ref)))
    assert max_err < 8e-2, f"max abs error vs reference: {max_err}"

    print("KERNEL_OK")
</pallas_src>

<mosaic_0001>
module attributes {stable_mosaic.version = 11 : i64} {
  func.func @_cae_kernel(%arg0: i32, %arg1: memref<1x16x48xf32, #tpu.memory_space<vmem>>, %arg2: memref<48x16xf32, #tpu.memory_space<vmem>>, %arg3: memref<144x256xf32, #tpu.memory_space<vmem>>, %arg4: memref<16x256xf32, #tpu.memory_space<vmem>>, %arg5: memref<24x16xf32, #tpu.memory_space<vmem>>, %arg6: memref<768x128xf32, #tpu.memory_space<vmem>>, %arg7: memref<8x128xf32, #tpu.memory_space<vmem>>, %arg8: memref<24x8xf32, #tpu.memory_space<vmem>>, %arg9: memref<384x128xf32, #tpu.memory_space<vmem>>, %arg10: memref<8x128xf32, #tpu.memory_space<vmem>>, %arg11: memref<24x8xf32, #tpu.memory_space<vmem>>, %arg12: memref<384x128xf32, #tpu.memory_space<vmem>>, %arg13: memref<8x128xf32, #tpu.memory_space<vmem>>, %arg14: memref<24x8xf32, #tpu.memory_space<vmem>>, %arg15: memref<384x128xf32, #tpu.memory_space<vmem>>, %arg16: memref<8x128xf32, #tpu.memory_space<vmem>>, %arg17: memref<24x8xf32, #tpu.memory_space<vmem>>, %arg18: memref<384x24xf32, #tpu.memory_space<vmem>>, %arg19: memref<8x24xf32, #tpu.memory_space<vmem>>, %arg20: memref<8x8xf32, #tpu.memory_space<vmem>>, %arg21: memref<192x64xf32, #tpu.memory_space<vmem>>, %arg22: memref<1x64xf32, #tpu.memory_space<vmem>>, %arg23: memref<8x8xf32, #tpu.memory_space<vmem>>, %arg24: memref<512x24xf32, #tpu.memory_space<vmem>>, %arg25: memref<8x24xf32, #tpu.memory_space<vmem>>, %arg26: memref<24x8xf32, #tpu.memory_space<vmem>>, %arg27: memref<72x128xf32, #tpu.memory_space<vmem>>, %arg28: memref<8x128xf32, #tpu.memory_space<vmem>>, %arg29: memref<24x8xf32, #tpu.memory_space<vmem>>, %arg30: memref<384x128xf32, #tpu.memory_space<vmem>>, %arg31: memref<8x128xf32, #tpu.memory_space<vmem>>, %arg32: memref<24x8xf32, #tpu.memory_space<vmem>>, %arg33: memref<384x128xf32, #tpu.memory_space<vmem>>, %arg34: memref<8x128xf32, #tpu.memory_space<vmem>>, %arg35: memref<24x8xf32, #tpu.memory_space<vmem>>, %arg36: memref<384x128xf32, #tpu.memory_space<vmem>>, %arg37: memref<8x128xf32, #tpu.memory_space<vmem>>, %arg38: memref<64x8xf32, #tpu.memory_space<vmem>>, %arg39: memref<512x256xf32, #tpu.memory_space<vmem>>, %arg40: memref<16x256xf32, #tpu.memory_space<vmem>>, %arg41: memref<48x16xf32, #tpu.memory_space<vmem>>, %arg42: memref<768x48xf32, #tpu.memory_space<vmem>>, %arg43: memref<16x48xf32, #tpu.memory_space<vmem>>, %arg44: memref<1x16x48xf32, #tpu.memory_space<vmem>>) attributes {dimension_semantics = [#tpu.dimension_semantics<parallel>], iteration_bounds = array<i64: 2>, scalar_prefetch = 0 : i64, scratch_operands = 0 : i64, tpu.core_type = #tpu.core_type<tc>, window_params = [{transform_indices = @transform_0, window_bounds = array<i64: 1, 16, 48>}, {pipeline_mode = #tpu.pipeline_mode<synchronous>, transform_indices = @transform_1, window_bounds = array<i64: 48, 16>}, {pipeline_mode = #tpu.pipeline_mode<synchronous>, transform_indices = @transform_2, window_bounds = array<i64: 144, 256>}, {pipeline_mode = #tpu.pipeline_mode<synchronous>, transform_indices = @transform_3, window_bounds = array<i64: 16, 256>}, {pipeline_mode = #tpu.pipeline_mode<synchronous>, transform_indices = @transform_4, window_bounds = array<i64: 24, 16>}, {pipeline_mode = #tpu.pipeline_mode<synchronous>, transform_indices = @transform_5, window_bounds = array<i64: 768, 128>}, {pipeline_mode = #tpu.pipeline_mode<synchronous>, transform_indices = @transform_6, window_bounds = array<i64: 8, 128>}, {pipeline_mode = #tpu.pipeline_mode<synchronous>, transform_indices = @transform_7, window_bounds = array<i64: 24, 8>}, {pipeline_mode = #tpu.pipeline_mode<synchronous>, transform_indices = @transform_8, window_bounds = array<i64: 384, 128>}, {pipeline_mode = #tpu.pipeline_mode<synchronous>, transform_indices = @transform_9, window_bounds = array<i64: 8, 128>}, {pipeline_mode = #tpu.pipeline_mode<synchronous>, transform_indices = @transform_10, window_bounds = array<i64: 24, 8>}, {pipeline_mode = #tpu.pipeline_mode<synchronous>, transform_indices = @transform_11, window_bounds = array<i64: 384, 128>}, {pipeline_mode = #tpu.pipeline_mode<synchronous>, transform_indices = @transform_12, window_bounds = array<i64: 8, 128>}, {pipeline_mode = #tpu.pipeline_mode<synchronous>, transform_indices = @transform_13, window_bounds = array<i64: 24, 8>}, {pipeline_mode = #tpu.pipeline_mode<synchronous>, transform_indices = @transform_14, window_bounds = array<i64: 384, 128>}, {pipeline_mode = #tpu.pipeline_mode<synchronous>, transform_indices = @transform_15, window_bounds = array<i64: 8, 128>}, {pipeline_mode = #tpu.pipeline_mode<synchronous>, transform_indices = @transform_16, window_bounds = array<i64: 24, 8>}, {pipeline_mode = #tpu.pipeline_mode<synchronous>, transform_indices = @transform_17, window_bounds = array<i64: 384, 24>}, {pipeline_mode = #tpu.pipeline_mode<synchronous>, transform_indices = @transform_18, window_bounds = array<i64: 8, 24>}, {pipeline_mode = #tpu.pipeline_mode<synchronous>, transform_indices = @transform_19, window_bounds = array<i64: 8, 8>}, {pipeline_mode = #tpu.pipeline_mode<synchronous>, transform_indices = @transform_20, window_bounds = array<i64: 192, 64>}, {pipeline_mode = #tpu.pipeline_mode<synchronous>, transform_indices = @transform_21, window_bounds = array<i64: 1, 64>}, {pipeline_mode = #tpu.pipeline_mode<synchronous>, transform_indices = @transform_22, window_bounds = array<i64: 8, 8>}, {pipeline_mode = #tpu.pipeline_mode<synchronous>, transform_indices = @transform_23, window_bounds = array<i64: 512, 24>}, {pipeline_mode = #tpu.pipeline_mode<synchronous>, transform_indices = @transform_24, window_bounds = array<i64: 8, 24>}, {pipeline_mode = #tpu.pipeline_mode<synchronous>, transform_indices = @transform_25, window_bounds = array<i64: 24, 8>}, {pipeline_mode = #tpu.pipeline_mode<synchronous>, transform_indices = @transform_26, window_bounds = array<i64: 72, 128>}, {pipeline_mode = #tpu.pipeline_mode<synchronous>, transform_indices = @transform_27, window_bounds = array<i64: 8, 128>}, {pipeline_mode = #tpu.pipeline_mode<synchronous>, transform_indices = @transform_28, window_bounds = array<i64: 24, 8>}, {pipeline_mode = #tpu.pipeline_mode<synchronous>, transform_indices = @transform_29, window_bounds = array<i64: 384, 128>}, {pipeline_mode = #tpu.pipeline_mode<synchronous>, transform_indices = @transform_30, window_bounds = array<i64: 8, 128>}, {pipeline_mode = #tpu.pipeline_mode<synchronous>, transform_indices = @transform_31, window_bounds = array<i64: 24, 8>}, {pipeline_mode = #tpu.pipeline_mode<synchronous>, transform_indices = @transform_32, window_bounds = array<i64: 384, 128>}, {pipeline_mode = #tpu.pipeline_mode<synchronous>, transform_indices = @transform_33, window_bounds = array<i64: 8, 128>}, {pipeline_mode = #tpu.pipeline_mode<synchronous>, transform_indices = @transform_34, window_bounds = array<i64: 24, 8>}, {pipeline_mode = #tpu.pipeline_mode<synchronous>, transform_indices = @transform_35, window_bounds = array<i64: 384, 128>}, {pipeline_mode = #tpu.pipeline_mode<synchronous>, transform_indices = @transform_36, window_bounds = array<i64: 8, 128>}, {pipeline_mode = #tpu.pipeline_mode<synchronous>, transform_indices = @transform_37, window_bounds = array<i64: 64, 8>}, {pipeline_mode = #tpu.pipeline_mode<synchronous>, transform_indices = @transform_38, window_bounds = array<i64: 512, 256>}, {pipeline_mode = #tpu.pipeline_mode<synchronous>, transform_indices = @transform_39, window_bounds = array<i64: 16, 256>}, {pipeline_mode = #tpu.pipeline_mode<synchronous>, transform_indices = @transform_40, window_bounds = array<i64: 48, 16>}, {pipeline_mode = #tpu.pipeline_mode<synchronous>, transform_indices = @transform_41, window_bounds = array<i64: 768, 48>}, {pipeline_mode = #tpu.pipeline_mode<synchronous>, transform_indices = @transform_42, window_bounds = array<i64: 16, 48>}, {transform_indices = @transform_43, window_bounds = array<i64: 1, 16, 48>}]} {
    %c0 = arith.constant 0 : index
    %c0_0 = arith.constant 0 : index
    %c0_1 = arith.constant 0 : index
    %0 = vector.load %arg1[%c0, %c0_0, %c0_1] : memref<1x16x48xf32, #tpu.memory_space<vmem>>, vector<1x16x48xf32>
    %1 = vector.shape_cast %0 : vector<1x16x48xf32> to vector<16x48xf32>
    %2 = arith.truncf %1 : vector<16x48xf32> to vector<16x48xbf16>
    %cst = arith.constant 0.000000e+00 : f32
    %3 = vector.broadcast %cst : f32 to vector<16x256xf32>
    %c0_2 = arith.constant 0 : index
    %c0_3 = arith.constant 0 : index
    %4 = vector.load %arg3[%c0_2, %c0_3] : memref<144x256xf32, #tpu.memory_space<vmem>>, vector<48x256xf32>
    %5 = arith.truncf %4 : vector<48x256xf32> to vector<48x256xbf16>
    %c0_4 = arith.constant 0 : index
    %c0_5 = arith.constant 0 : index
    %6 = vector.load %arg2[%c0_4, %c0_5] : memref<48x16xf32, #tpu.memory_space<vmem>>, vector<16x16xf32>
    %7 = arith.truncf %6 : vector<16x16xf32> to vector<16x16xbf16>
    %cst_6 = arith.constant dense<0.000000e+00> : vector<16x48xf32>
    %8 = tpu.matmul %7, %2, %cst_6 {dimension_numbers = #tpu.dot_dimension_numbers<[1], [0], [0], [1], [0, 0, 1, 1], [], []>} : vector<16x16xbf16>, vector<16x48xbf16>, vector<16x48xf32> -> vector<16x48xf32>
    %9 = arith.truncf %8 : vector<16x48xf32> to vector<16x48xbf16>
    %cst_7 = arith.constant dense<0.000000e+00> : vector<16x256xf32>
    %10 = tpu.matmul %9, %5, %cst_7 {dimension_numbers = #tpu.dot_dimension_numbers<[1], [0], [0], [1], [0, 0, 1, 1], [], []>} : vector<16x48xbf16>, vector<48x256xbf16>, vector<16x256xf32> -> vector<16x256xf32>
    %11 = arith.addf %3, %10 : vector<16x256xf32>
    %c48 = arith.constant 48 : index
    %c0_8 = arith.constant 0 : index
    %12 = vector.load %arg3[%c48, %c0_8] : memref<144x256xf32, #tpu.memory_space<vmem>>, vector<48x256xf32>
    %13 = arith.truncf %12 : vector<48x256xf32> to vector<48x256xbf16>
    %c16 = arith.constant 16 : index
    %c0_9 = arith.constant 0 : index
    %14 = vector.load %arg2[%c16, %c0_9] : memref<48x16xf32, #tpu.memory_space<vmem>>, vector<16x16xf32>
    %15 = arith.truncf %14 : vector<16x16xf32> to vector<16x16xbf16>
    %cst_10 = arith.constant dense<0.000000e+00> : vector<16x48xf32>
    %16 = tpu.matmul %15, %2, %cst_10 {dimension_numbers = #tpu.dot_dimension_numbers<[1], [0], [0], [1], [0, 0, 1, 1], [], []>} : vector<16x16xbf16>, vector<16x48xbf16>, vector<16x48xf32> -> vector<16x48xf32>
    %17 = arith.truncf %16 : vector<16x48xf32> to vector<16x48xbf16>
    %cst_11 = arith.constant dense<0.000000e+00> : vector<16x256xf32>
    %18 = tpu.matmul %17, %13, %cst_11 {dimension_numbers = #tpu.dot_dimension_numbers<[1], [0], [0], [1], [0, 0, 1, 1], [], []>} : vector<16x48xbf16>, vector<48x256xbf16>, vector<16x256xf32> -> vector<16x256xf32>
    %19 = arith.addf %11, %18 : vector<16x256xf32>
    %c96 = arith.constant 96 : index
    %c0_12 = arith.constant 0 : index
    %20 = vector.load %arg3[%c96, %c0_12] : memref<144x256xf32, #tpu.memory_space<vmem>>, vector<48x256xf32>
    %21 = arith.truncf %20 : vector<48x256xf32> to vector<48x256xbf16>
    %c32 = arith.constant 32 : index
    %c0_13 = arith.constant 0 : index
    %22 = vector.load %arg2[%c32, %c0_13] : memref<48x16xf32, #tpu.memory_space<vmem>>, vector<16x16xf32>
    %23 = arith.truncf %22 : vector<16x16xf32> to vector<16x16xbf16>
    %cst_14 = arith.constant dense<0.000000e+00> : vector<16x48xf32>
    %24 = tpu.matmul %23, %2, %cst_14 {dimension_numbers = #tpu.dot_dimension_numbers<[1], [0], [0], [1], [0, 0, 1, 1], [], []>} : vector<16x16xbf16>, vector<16x48xbf16>, vector<16x48xf32> -> vector<16x48xf32>
    %25 = arith.truncf %24 : vector<16x48xf32> to vector<16x48xbf16>
    %cst_15 = arith.constant dense<0.000000e+00> : vector<16x256xf32>
    %26 = tpu.matmul %25, %21, %cst_15 {dimension_numbers = #tpu.dot_dimension_numbers<[1], [0], [0], [1], [0, 0, 1, 1], [], []>} : vector<16x48xbf16>, vector<48x256xbf16>, vector<16x256xf32> -> vector<16x256xf32>
    %27 = arith.addf %19, %26 : vector<16x256xf32>
    %c0_16 = arith.constant 0 : index
    %c0_17 = arith.constant 0 : index
    %28 = vector.load %arg4[%c0_16, %c0_17] : memref<16x256xf32, #tpu.memory_space<vmem>>, vector<16x256xf32>
    %29 = arith.addf %27, %28 : vector<16x256xf32>
    %cst_18 = arith.constant 0.000000e+00 : f32
    %30 = vector.broadcast %cst_18 : f32 to vector<16x256xf32>
    %31 = arith.maximumf %29, %30 : vector<16x256xf32>
    %32 = arith.truncf %31 : vector<16x256xf32> to vector<16x256xbf16>
    %cst_19 = arith.constant 0.000000e+00 : f32
    %33 = vector.broadcast %cst_19 : f32 to vector<8x128xf32>
    %c0_20 = arith.constant 0 : index
    %c0_21 = arith.constant 0 : index
    %34 = vector.load %arg6[%c0_20, %c0_21] : memref<768x128xf32, #tpu.memory_space<vmem>>, vector<256x128xf32>
    %35 = arith.truncf %34 : vector<256x128xf32> to vector<256x128xbf16>
    %c0_22 = arith.constant 0 : index
    %c0_23 = arith.constant 0 : index
    %36 = vector.load %arg5[%c0_22, %c0_23] : memref<24x16xf32, #tpu.memory_space<vmem>>, vector<8x16xf32>
    %37 = arith.truncf %36 : vector<8x16xf32> to vector<8x16xbf16>
    %cst_24 = arith.constant dense<0.000000e+00> : vector<8x256xf32>
    %38 = tpu.matmul %37, %32, %cst_24 {dimension_numbers = #tpu.dot_dimension_numbers<[1], [0], [0], [1], [0, 0, 1, 1], [], []>} : vector<8x16xbf16>, vector<16x256xbf16>, vector<8x256xf32> -> vector<8x256xf32>
    %39 = arith.truncf %38 : vector<8x256xf32> to vector<8x256xbf16>
    %cst_25 = arith.constant dense<0.000000e+00> : vector<8x128xf32>
    %40 = tpu.matmul %39, %35, %cst_25 {dimension_numbers = #tpu.dot_dimension_numbers<[1], [0], [0], [1], [0, 0, 1, 1], [], []>} : vector<8x256xbf16>, vector<256x128xbf16>, vector<8x128xf32> -> vector<8x128xf32>
    %41 = arith.addf %33, %40 : vector<8x128xf32>
    %c256 = arith.constant 256 : index
    %c0_26 = arith.constant 0 : index
    %42 = vector.load %arg6[%c256, %c0_26] : memref<768x128xf32, #tpu.memory_space<vmem>>, vector<256x128xf32>
    %43 = arith.truncf %42 : vector<256x128xf32> to vector<256x128xbf16>
    %c8 = arith.constant 8 : index
    %c0_27 = arith.constant 0 : index
    %44 = vector.load %arg5[%c8, %c0_27] : memref<24x16xf32, #tpu.memory_space<vmem>>, vector<8x16xf32>
    %45 = arith.truncf %44 : vector<8x16xf32> to vector<8x16xbf16>
    %cst_28 = arith.constant dense<0.000000e+00> : vector<8x256xf32>
    %46 = tpu.matmul %45, %32, %cst_28 {dimension_numbers = #tpu.dot_dimension_numbers<[1], [0], [0], [1], [0, 0, 1, 1], [], []>} : vector<8x16xbf16>, vector<16x256xbf16>, vector<8x256xf32> -> vector<8x256xf32>
    %47 = arith.truncf %46 : vector<8x256xf32> to vector<8x256xbf16>
    %cst_29 = arith.constant dense<0.000000e+00> : vector<8x128xf32>
    %48 = tpu.matmul %47, %43, %cst_29 {dimension_numbers = #tpu.dot_dimension_numbers<[1], [0], [0], [1], [0, 0, 1, 1], [], []>} : vector<8x256xbf16>, vector<256x128xbf16>, vector<8x128xf32> -> vector<8x128xf32>
    %49 = arith.addf %41, %48 : vector<8x128xf32>
    %c512 = arith.constant 512 : index
    %c0_30 = arith.constant 0 : index
    %50 = vector.load %arg6[%c512, %c0_30] : memref<768x128xf32, #tpu.memory_space<vmem>>, vector<256x128xf32>
    %51 = arith.truncf %50 : vector<256x128xf32> to vector<256x128xbf16>
    %c16_31 = arith.constant 16 : index
    %c0_32 = arith.constant 0 : index
    %52 = vector.load %arg5[%c16_31, %c0_32] : memref<24x16xf32, #tpu.memory_space<vmem>>, vector<8x16xf32>
    %53 = arith.truncf %52 : vector<8x16xf32> to vector<8x16xbf16>
    %cst_33 = arith.constant dense<0.000000e+00> : vector<8x256xf32>
    %54 = tpu.matmul %53, %32, %cst_33 {dimension_numbers = #tpu.dot_dimension_numbers<[1], [0], [0], [1], [0, 0, 1, 1], [], []>} : vector<8x16xbf16>, vector<16x256xbf16>, vector<8x256xf32> -> vector<8x256xf32>
    %55 = arith.truncf %54 : vector<8x256xf32> to vector<8x256xbf16>
    %cst_34 = arith.constant dense<0.000000e+00> : vector<8x128xf32>
    %56 = tpu.matmul %55, %51, %cst_34 {dimension_numbers = #tpu.dot_dimension_numbers<[1], [0], [0], [1], [0, 0, 1, 1], [], []>} : vector<8x256xbf16>, vector<256x128xbf16>, vector<8x128xf32> -> vector<8x128xf32>
    %57 = arith.addf %49, %56 : vector<8x128xf32>
    %c0_35 = arith.constant 0 : index
    %c0_36 = arith.constant 0 : index
    %58 = vector.load %arg7[%c0_35, %c0_36] : memref<8x128xf32, #tpu.memory_space<vmem>>, vector<8x128xf32>
    %59 = arith.addf %57, %58 : vector<8x128xf32>
    %cst_37 = arith.constant 0.000000e+00 : f32
    %60 = vector.broadcast %cst_37 : f32 to vector<8x128xf32>
    %61 = arith.maximumf %59, %60 : vector<8x128xf32>
    %62 = arith.truncf %61 : vector<8x128xf32> to vector<8x128xbf16>
    %cst_38 = arith.constant 0.000000e+00 : f32
    %63 = vector.broadcast %cst_38 : f32 to vector<8x128xf32>
    %c0_39 = arith.constant 0 : index
    %c0_40 = arith.constant 0 : index
    %64 = vector.load %arg9[%c0_39, %c0_40] : memref<384x128xf32, #tpu.memory_space<vmem>>, vector<128x128xf32>
    %65 = arith.truncf %64 : vector<128x128xf32> to vector<128x128xbf16>
    %c0_41 = arith.constant 0 : index
    %c0_42 = arith.constant 0 : index
    %66 = vector.load %arg8[%c0_41, %c0_42] : memref<24x8xf32, #tpu.memory_space<vmem>>, vector<8x8xf32>
    %67 = arith.truncf %66 : vector<8x8xf32> to vector<8x8xbf16>
    %cst_43 = arith.constant dense<0.000000e+00> : vector<8x128xf32>
    %68 = tpu.matmul %67, %62, %cst_43 {dimension_numbers = #tpu.dot_dimension_numbers<[1], [0], [0], [1], [0, 0, 1, 1], [], []>} : vector<8x8xbf16>, vector<8x128xbf16>, vector<8x128xf32> -> vector<8x128xf32>
    %69 = arith.truncf %68 : vector<8x128xf32> to vector<8x128xbf16>
    %cst_44 = arith.constant dense<0.000000e+00> : vector<8x128xf32>
    %70 = tpu.matmul %69, %65, %cst_44 {dimension_numbers = #tpu.dot_dimension_numbers<[1], [0], [0], [1], [0, 0, 1, 1], [], []>} : vector<8x128xbf16>, vector<128x128xbf16>, vector<8x128xf32> -> vector<8x128xf32>
    %71 = arith.addf %63, %70 : vector<8x128xf32>
    %c128 = arith.constant 128 : index
    %c0_45 = arith.constant 0 : index
    %72 = vector.load %arg9[%c128, %c0_45] : memref<384x128xf32, #tpu.memory_space<vmem>>, vector<128x128xf32>
    %73 = arith.truncf %72 : vector<128x128xf32> to vector<128x128xbf16>
    %c8_46 = arith.constant 8 : index
    %c0_47 = arith.constant 0 : index
    %74 = vector.load %arg8[%c8_46, %c0_47] : memref<24x8xf32, #tpu.memory_space<vmem>>, vector<8x8xf32>
    %75 = arith.truncf %74 : vector<8x8xf32> to vector<8x8xbf16>
    %cst_48 = arith.constant dense<0.000000e+00> : vector<8x128xf32>
    %76 = tpu.matmul %75, %62, %cst_48 {dimension_numbers = #tpu.dot_dimension_numbers<[1], [0], [0], [1], [0, 0, 1, 1], [], []>} : vector<8x8xbf16>, vector<8x128xbf16>, vector<8x128xf32> -> vector<8x128xf32>
    %77 = arith.truncf %76 : vector<8x128xf32> to vector<8x128xbf16>
    %cst_49 = arith.constant dense<0.000000e+00> : vector<8x128xf32>
    %78 = tpu.matmul %77, %73, %cst_49 {dimension_numbers = #tpu.dot_dimension_numbers<[1], [0], [0], [1], [0, 0, 1, 1], [], []>} : vector<8x128xbf16>, vector<128x128xbf16>, vector<8x128xf32> -> vector<8x128xf32>
    %79 = arith.addf %71, %78 : vector<8x128xf32>
    %c256_50 = arith.constant 256 : index
    %c0_51 = arith.constant 0 : index
    %80 = vector.load %arg9[%c256_50, %c0_51] : memref<384x128xf32, #tpu.memory_space<vmem>>, vector<128x128xf32>
    %81 = arith.truncf %80 : vector<128x128xf32> to vector<128x128xbf16>
    %c16_52 = arith.constant 16 : index
    %c0_53 = arith.constant 0 : index
    %82 = vector.load %arg8[%c16_52, %c0_53] : memref<24x8xf32, #tpu.memory_space<vmem>>, vector<8x8xf32>
    %83 = arith.truncf %82 : vector<8x8xf32> to vector<8x8xbf16>
    %cst_54 = arith.constant dense<0.000000e+00> : vector<8x128xf32>
    %84 = tpu.matmul %83, %62, %cst_54 {dimension_numbers = #tpu.dot_dimension_numbers<[1], [0], [0], [1], [0, 0, 1, 1], [], []>} : vector<8x8xbf16>, vector<8x128xbf16>, vector<8x128xf32> -> vector<8x128xf32>
    %85 = arith.truncf %84 : vector<8x128xf32> to vector<8x128xbf16>
    %cst_55 = arith.constant dense<0.000000e+00> : vector<8x128xf32>
    %86 = tpu.matmul %85, %81, %cst_55 {dimension_numbers = #tpu.dot_dimension_numbers<[1], [0], [0], [1], [0, 0, 1, 1], [], []>} : vector<8x128xbf16>, vector<128x128xbf16>, vector<8x128xf32> -> vector<8x128xf32>
    %87 = arith.addf %79, %86 : vector<8x128xf32>
    %c0_56 = arith.constant 0 : index
    %c0_57 = arith.constant 0 : index
    %88 = vector.load %arg10[%c0_56, %c0_57] : memref<8x128xf32, #tpu.memory_space<vmem>>, vector<8x128xf32>
    %89 = arith.addf %87, %88 : vector<8x128xf32>
    %cst_58 = arith.constant 0.000000e+00 : f32
    %90 = vector.broadcast %cst_58 : f32 to vector<8x128xf32>
    %91 = arith.maximumf %89, %90 : vector<8x128xf32>
    %92 = arith.truncf %91 : vector<8x128xf32> to vector<8x128xbf16>
    %cst_59 = arith.constant 0.000000e+00 : f32
    %93 = vector.broadcast %cst_59 : f32 to vector<8x128xf32>
    %c0_60 = arith.constant 0 : index
    %c0_61 = arith.constant 0 : index
    %94 = vector.load %arg12[%c0_60, %c0_61] : memref<384x128xf32, #tpu.memory_space<vmem>>, vector<128x128xf32>
    %95 = arith.truncf %94 : vector<128x128xf32> to vector<128x128xbf16>
    %c0_62 = arith.constant 0 : index
    %c0_63 = arith.constant 0 : index
    %96 = vector.load %arg11[%c0_62, %c0_63] : memref<24x8xf32, #tpu.memory_space<vmem>>, vector<8x8xf32>
    %97 = arith.truncf %96 : vector<8x8xf32> to vector<8x8xbf16>
    %cst_64 = arith.constant dense<0.000000e+00> : vector<8x128xf32>
    %98 = tpu.matmul %97, %92, %cst_64 {dimension_numbers = #tpu.dot_dimension_numbers<[1], [0], [0], [1], [0, 0, 1, 1], [], []>} : vector<8x8xbf16>, vector<8x128xbf16>, vector<8x128xf32> -> vector<8x128xf32>
    %99 = arith.truncf %98 : vector<8x128xf32> to vector<8x128xbf16>
    %cst_65 = arith.constant dense<0.000000e+00> : vector<8x128xf32>
    %100 = tpu.matmul %99, %95, %cst_65 {dimension_numbers = #tpu.dot_dimension_numbers<[1], [0], [0], [1], [0, 0, 1, 1], [], []>} : vector<8x128xbf16>, vector<128x128xbf16>, vector<8x128xf32> -> vector<8x128xf32>
    %101 = arith.addf %93, %100 : vector<8x128xf32>
    %c128_66 = arith.constant 128 : index
    %c0_67 = arith.constant 0 : index
    %102 = vector.load %arg12[%c128_66, %c0_67] : memref<384x128xf32, #tpu.memory_space<vmem>>, vector<128x128xf32>
    %103 = arith.truncf %102 : vector<128x128xf32> to vector<128x128xbf16>
    %c8_68 = arith.constant 8 : index
    %c0_69 = arith.constant 0 : index
    %104 = vector.load %arg11[%c8_68, %c0_69] : memref<24x8xf32, #tpu.memory_space<vmem>>, vector<8x8xf32>
    %105 = arith.truncf %104 : vector<8x8xf32> to vector<8x8xbf16>
    %cst_70 = arith.constant dense<0.000000e+00> : vector<8x128xf32>
    %106 = tpu.matmul %105, %92, %cst_70 {dimension_numbers = #tpu.dot_dimension_numbers<[1], [0], [0], [1], [0, 0, 1, 1], [], []>} : vector<8x8xbf16>, vector<8x128xbf16>, vector<8x128xf32> -> vector<8x128xf32>
    %107 = arith.truncf %106 : vector<8x128xf32> to vector<8x128xbf16>
    %cst_71 = arith.constant dense<0.000000e+00> : vector<8x128xf32>
    %108 = tpu.matmul %107, %103, %cst_71 {dimension_numbers = #tpu.dot_dimension_numbers<[1], [0], [0], [1], [0, 0, 1, 1], [], []>} : vector<8x128xbf16>, vector<128x128xbf16>, vector<8x128xf32> -> vector<8x128xf32>
    %109 = arith.addf %101, %108 : vector<8x128xf32>
    %c256_72 = arith.constant 256 : index
    %c0_73 = arith.constant 0 : index
    %110 = vector.load %arg12[%c256_72, %c0_73] : memref<384x128xf32, #tpu.memory_space<vmem>>, vector<128x128xf32>
    %111 = arith.truncf %110 : vector<128x128xf32> to vector<128x128xbf16>
    %c16_74 = arith.constant 16 : index
    %c0_75 = arith.constant 0 : index
    %112 = vector.load %arg11[%c16_74, %c0_75] : memref<24x8xf32, #tpu.memory_space<vmem>>, vector<8x8xf32>
    %113 = arith.truncf %112 : vector<8x8xf32> to vector<8x8xbf16>
    %cst_76 = arith.constant dense<0.000000e+00> : vector<8x128xf32>
    %114 = tpu.matmul %113, %92, %cst_76 {dimension_numbers = #tpu.dot_dimension_numbers<[1], [0], [0], [1], [0, 0, 1, 1], [], []>} : vector<8x8xbf16>, vector<8x128xbf16>, vector<8x128xf32> -> vector<8x128xf32>
    %115 = arith.truncf %114 : vector<8x128xf32> to vector<8x128xbf16>
    %cst_77 = arith.constant dense<0.000000e+00> : vector<8x128xf32>
    %116 = tpu.matmul %115, %111, %cst_77 {dimension_numbers = #tpu.dot_dimension_numbers<[1], [0], [0], [1], [0, 0, 1, 1], [], []>} : vector<8x128xbf16>, vector<128x128xbf16>, vector<8x128xf32> -> vector<8x128xf32>
    %117 = arith.addf %109, %116 : vector<8x128xf32>
    %c0_78 = arith.constant 0 : index
    %c0_79 = arith.constant 0 : index
    %118 = vector.load %arg13[%c0_78, %c0_79] : memref<8x128xf32, #tpu.memory_space<vmem>>, vector<8x128xf32>
    %119 = arith.addf %117, %118 : vector<8x128xf32>
    %cst_80 = arith.constant 0.000000e+00 : f32
    %120 = vector.broadcast %cst_80 : f32 to vector<8x128xf32>
    %121 = arith.maximumf %119, %120 : vector<8x128xf32>
    %122 = arith.truncf %121 : vector<8x128xf32> to vector<8x128xbf16>
    %cst_81 = arith.constant 0.000000e+00 : f32
    %123 = vector.broadcast %cst_81 : f32 to vector<8x128xf32>
    %c0_82 = arith.constant 0 : index
    %c0_83 = arith.constant 0 : index
    %124 = vector.load %arg15[%c0_82, %c0_83] : memref<384x128xf32, #tpu.memory_space<vmem>>, vector<128x128xf32>
    %125 = arith.truncf %124 : vector<128x128xf32> to vector<128x128xbf16>
    %c0_84 = arith.constant 0 : index
    %c0_85 = arith.constant 0 : index
    %126 = vector.load %arg14[%c0_84, %c0_85] : memref<24x8xf32, #tpu.memory_space<vmem>>, vector<8x8xf32>
    %127 = arith.truncf %126 : vector<8x8xf32> to vector<8x8xbf16>
    %cst_86 = arith.constant dense<0.000000e+00> : vector<8x128xf32>
    %128 = tpu.matmul %127, %122, %cst_86 {dimension_numbers = #tpu.dot_dimension_numbers<[1], [0], [0], [1], [0, 0, 1, 1], [], []>} : vector<8x8xbf16>, vector<8x128xbf16>, vector<8x128xf32> -> vector<8x128xf32>
    %129 = arith.truncf %128 : vector<8x128xf32> to vector<8x128xbf16>
    %cst_87 = arith.constant dense<0.000000e+00> : vector<8x128xf32>
    %130 = tpu.matmul %129, %125, %cst_87 {dimension_numbers = #tpu.dot_dimension_numbers<[1], [0], [0], [1], [0, 0, 1, 1], [], []>} : vector<8x128xbf16>, vector<128x128xbf16>, vector<8x128xf32> -> vector<8x128xf32>
    %131 = arith.addf %123, %130 : vector<8x128xf32>
    %c128_88 = arith.constant 128 : index
    %c0_89 = arith.constant 0 : index
    %132 = vector.load %arg15[%c128_88, %c0_89] : memref<384x128xf32, #tpu.memory_space<vmem>>, vector<128x128xf32>
    %133 = arith.truncf %132 : vector<128x128xf32> to vector<128x128xbf16>
    %c8_90 = arith.constant 8 : index
    %c0_91 = arith.constant 0 : index
    %134 = vector.load %arg14[%c8_90, %c0_91] : memref<24x8xf32, #tpu.memory_space<vmem>>, vector<8x8xf32>
    %135 = arith.truncf %134 : vector<8x8xf32> to vector<8x8xbf16>
    %cst_92 = arith.constant dense<0.000000e+00> : vector<8x128xf32>
    %136 = tpu.matmul %135, %122, %cst_92 {dimension_numbers = #tpu.dot_dimension_numbers<[1], [0], [0], [1], [0, 0, 1, 1], [], []>} : vector<8x8xbf16>, vector<8x128xbf16>, vector<8x128xf32> -> vector<8x128xf32>
    %137 = arith.truncf %136 : vector<8x128xf32> to vector<8x128xbf16>
    %cst_93 = arith.constant dense<0.000000e+00> : vector<8x128xf32>
    %138 = tpu.matmul %137, %133, %cst_93 {dimension_numbers = #tpu.dot_dimension_numbers<[1], [0], [0], [1], [0, 0, 1, 1], [], []>} : vector<8x128xbf16>, vector<128x128xbf16>, vector<8x128xf32> -> vector<8x128xf32>
    %139 = arith.addf %131, %138 : vector<8x128xf32>
    %c256_94 = arith.constant 256 : index
    %c0_95 = arith.constant 0 : index
    %140 = vector.load %arg15[%c256_94, %c0_95] : memref<384x128xf32, #tpu.memory_space<vmem>>, vector<128x128xf32>
    %141 = arith.truncf %140 : vector<128x128xf32> to vector<128x128xbf16>
    %c16_96 = arith.constant 16 : index
    %c0_97 = arith.constant 0 : index
    %142 = vector.load %arg14[%c16_96, %c0_97] : memref<24x8xf32, #tpu.memory_space<vmem>>, vector<8x8xf32>
    %143 = arith.truncf %142 : vector<8x8xf32> to vector<8x8xbf16>
    %cst_98 = arith.constant dense<0.000000e+00> : vector<8x128xf32>
    %144 = tpu.matmul %143, %122, %cst_98 {dimension_numbers = #tpu.dot_dimension_numbers<[1], [0], [0], [1], [0, 0, 1, 1], [], []>} : vector<8x8xbf16>, vector<8x128xbf16>, vector<8x128xf32> -> vector<8x128xf32>
    %145 = arith.truncf %144 : vector<8x128xf32> to vector<8x128xbf16>
    %cst_99 = arith.constant dense<0.000000e+00> : vector<8x128xf32>
    %146 = tpu.matmul %145, %141, %cst_99 {dimension_numbers = #tpu.dot_dimension_numbers<[1], [0], [0], [1], [0, 0, 1, 1], [], []>} : vector<8x128xbf16>, vector<128x128xbf16>, vector<8x128xf32> -> vector<8x128xf32>
    %147 = arith.addf %139, %146 : vector<8x128xf32>
    %c0_100 = arith.constant 0 : index
    %c0_101 = arith.constant 0 : index
    %148 = vector.load %arg16[%c0_100, %c0_101] : memref<8x128xf32, #tpu.memory_space<vmem>>, vector<8x128xf32>
    %149 = arith.addf %147, %148 : vector<8x128xf32>
    %cst_102 = arith.constant 0.000000e+00 : f32
    %150 = vector.broadcast %cst_102 : f32 to vector<8x128xf32>
    %151 = arith.maximumf %149, %150 : vector<8x128xf32>
    %152 = arith.truncf %151 : vector<8x128xf32> to vector<8x128xbf16>
    %cst_103 = arith.constant 0.000000e+00 : f32
    %153 = vector.broadcast %cst_103 : f32 to vector<8x24xf32>
    %c0_104 = arith.constant 0 : index
    %c0_105 = arith.constant 0 : index
    %154 = vector.load %arg18[%c0_104, %c0_105] : memref<384x24xf32, #tpu.memory_space<vmem>>, vector<128x24xf32>
    %155 = arith.truncf %154 : vector<128x24xf32> to vector<128x24xbf16>
    %c0_106 = arith.constant 0 : index
    %c0_107 = arith.constant 0 : index
    %156 = vector.load %arg17[%c0_106, %c0_107] : memref<24x8xf32, #tpu.memory_space<vmem>>, vector<8x8xf32>
    %157 = arith.truncf %156 : vector<8x8xf32> to vector<8x8xbf16>
    %cst_108 = arith.constant dense<0.000000e+00> : vector<8x128xf32>
    %158 = tpu.matmul %157, %152, %cst_108 {dimension_numbers = #tpu.dot_dimension_numbers<[1], [0], [0], [1], [0, 0, 1, 1], [], []>} : vector<8x8xbf16>, vector<8x128xbf16>, vector<8x128xf32> -> vector<8x128xf32>
    %159 = arith.truncf %158 : vector<8x128xf32> to vector<8x128xbf16>
    %cst_109 = arith.constant dense<0.000000e+00> : vector<8x24xf32>
    %160 = tpu.matmul %159, %155, %cst_109 {dimension_numbers = #tpu.dot_dimension_numbers<[1], [0], [0], [1], [0, 0, 1, 1], [], []>} : vector<8x128xbf16>, vector<128x24xbf16>, vector<8x24xf32> -> vector<8x24xf32>
    %161 = arith.addf %153, %160 : vector<8x24xf32>
    %c128_110 = arith.constant 128 : index
    %c0_111 = arith.constant 0 : index
    %162 = vector.load %arg18[%c128_110, %c0_111] : memref<384x24xf32, #tpu.memory_space<vmem>>, vector<128x24xf32>
    %163 = arith.truncf %162 : vector<128x24xf32> to vector<128x24xbf16>
    %c8_112 = arith.constant 8 : index
    %c0_113 = arith.constant 0 : index
    %164 = vector.load %arg17[%c8_112, %c0_113] : memref<24x8xf32, #tpu.memory_space<vmem>>, vector<8x8xf32>
    %165 = arith.truncf %164 : vector<8x8xf32> to vector<8x8xbf16>
    %cst_114 = arith.constant dense<0.000000e+00> : vector<8x128xf32>
    %166 = tpu.matmul %165, %152, %cst_114 {dimension_numbers = #tpu.dot_dimension_numbers<[1], [0], [0], [1], [0, 0, 1, 1], [], []>} : vector<8x8xbf16>, vector<8x128xbf16>, vector<8x128xf32> -> vector<8x128xf32>
    %167 = arith.truncf %166 : vector<8x128xf32> to vector<8x128xbf16>
    %cst_115 = arith.constant dense<0.000000e+00> : vector<8x24xf32>
    %168 = tpu.matmul %167, %163, %cst_115 {dimension_numbers = #tpu.dot_dimension_numbers<[1], [0], [0], [1], [0, 0, 1, 1], [], []>} : vector<8x128xbf16>, vector<128x24xbf16>, vector<8x24xf32> -> vector<8x24xf32>
    %169 = arith.addf %161, %168 : vector<8x24xf32>
    %c256_116 = arith.constant 256 : index
    %c0_117 = arith.constant 0 : index
    %170 = vector.load %arg18[%c256_116, %c0_117] : memref<384x24xf32, #tpu.memory_space<vmem>>, vector<128x24xf32>
    %171 = arith.truncf %170 : vector<128x24xf32> to vector<128x24xbf16>
    %c16_118 = arith.constant 16 : index
    %c0_119 = arith.constant 0 : index
    %172 = vector.load %arg17[%c16_118, %c0_119] : memref<24x8xf32, #tpu.memory_space<vmem>>, vector<8x8xf32>
    %173 = arith.truncf %172 : vector<8x8xf32> to vector<8x8xbf16>
    %cst_120 = arith.constant dense<0.000000e+00> : vector<8x128xf32>
    %174 = tpu.matmul %173, %152, %cst_120 {dimension_numbers = #tpu.dot_dimension_numbers<[1], [0], [0], [1], [0, 0, 1, 1], [], []>} : vector<8x8xbf16>, vector<8x128xbf16>, vector<8x128xf32> -> vector<8x128xf32>
    %175 = arith.truncf %174 : vector<8x128xf32> to vector<8x128xbf16>
    %cst_121 = arith.constant dense<0.000000e+00> : vector<8x24xf32>
    %176 = tpu.matmul %175, %171, %cst_121 {dimension_numbers = #tpu.dot_dimension_numbers<[1], [0], [0], [1], [0, 0, 1, 1], [], []>} : vector<8x128xbf16>, vector<128x24xbf16>, vector<8x24xf32> -> vector<8x24xf32>
    %177 = arith.addf %169, %176 : vector<8x24xf32>
    %c0_122 = arith.constant 0 : index
    %c0_123 = arith.constant 0 : index
    %178 = vector.load %arg19[%c0_122, %c0_123] : memref<8x24xf32, #tpu.memory_space<vmem>>, vector<8x24xf32>
    %179 = arith.addf %177, %178 : vector<8x24xf32>
    %cst_124 = arith.constant 0.000000e+00 : f32
    %180 = vector.broadcast %cst_124 : f32 to vector<8x24xf32>
    %181 = arith.maximumf %179, %180 : vector<8x24xf32>
    %182 = arith.truncf %181 : vector<8x24xf32> to vector<8x24xbf16>
    %cst_125 = arith.constant 0.000000e+00 : f32
    %183 = vector.broadcast %cst_125 : f32 to vector<1x64xf32>
    %c0_126 = arith.constant 0 : index
    %c0_127 = arith.constant 0 : index
    %184 = vector.load %arg21[%c0_126, %c0_127] : memref<192x64xf32, #tpu.memory_space<vmem>>, vector<24x64xf32>
    %185 = arith.truncf %184 : vector<24x64xf32> to vector<24x64xbf16>
    %c0_128 = arith.constant 0 : index
    %c0_129 = arith.constant 0 : index
    %186 = vector.load %arg20[%c0_128, %c0_129] : memref<8x8xf32, #tpu.memory_space<vmem>>, vector<1x8xf32>
    %187 = arith.truncf %186 : vector<1x8xf32> to vector<1x8xbf16>
    %cst_130 = arith.constant dense<0.000000e+00> : vector<1x24xf32>
    %188 = tpu.matmul %187, %182, %cst_130 {dimension_numbers = #tpu.dot_dimension_numbers<[1], [0], [0], [1], [0, 0, 1, 1], [], []>} : vector<1x8xbf16>, vector<8x24xbf16>, vector<1x24xf32> -> vector<1x24xf32>
    %189 = arith.truncf %188 : vector<1x24xf32> to vector<1x24xbf16>
    %cst_131 = arith.constant dense<0.000000e+00> : vector<1x64xf32>
    %190 = tpu.matmul %189, %185, %cst_131 {dimension_numbers = #tpu.dot_dimension_numbers<[1], [0], [0], [1], [0, 0, 1, 1], [], []>} : vector<1x24xbf16>, vector<24x64xbf16>, vector<1x64xf32> -> vector<1x64xf32>
    %191 = arith.addf %183, %190 : vector<1x64xf32>
    %c24 = arith.constant 24 : index
    %c0_132 = arith.constant 0 : index
    %192 = vector.load %arg21[%c24, %c0_132] : memref<192x64xf32, #tpu.memory_space<vmem>>, vector<24x64xf32>
    %193 = arith.truncf %192 : vector<24x64xf32> to vector<24x64xbf16>
    %c1 = arith.constant 1 : index
    %c0_133 = arith.constant 0 : index
    %194 = vector.load %arg20[%c1, %c0_133] : memref<8x8xf32, #tpu.memory_space<vmem>>, vector<1x8xf32>
    %195 = arith.truncf %194 : vector<1x8xf32> to vector<1x8xbf16>
    %cst_134 = arith.constant dense<0.000000e+00> : vector<1x24xf32>
    %196 = tpu.matmul %195, %182, %cst_134 {dimension_numbers = #tpu.dot_dimension_numbers<[1], [0], [0], [1], [0, 0, 1, 1], [], []>} : vector<1x8xbf16>, vector<8x24xbf16>, vector<1x24xf32> -> vector<1x24xf32>
    %197 = arith.truncf %196 : vector<1x24xf32> to vector<1x24xbf16>
    %cst_135 = arith.constant dense<0.000000e+00> : vector<1x64xf32>
    %198 = tpu.matmul %197, %193, %cst_135 {dimension_numbers = #tpu.dot_dimension_numbers<[1], [0], [0], [1], [0, 0, 1, 1], [], []>} : vector<1x24xbf16>, vector<24x64xbf16>, vector<1x64xf32> -> vector<1x64xf32>
    %199 = arith.addf %191, %198 : vector<1x64xf32>
    %c48_136 = arith.constant 48 : index
    %c0_137 = arith.constant 0 : index
    %200 = vector.load %arg21[%c48_136, %c0_137] : memref<192x64xf32, #tpu.memory_space<vmem>>, vector<24x64xf32>
    %201 = arith.truncf %200 : vector<24x64xf32> to vector<24x64xbf16>
    %c2 = arith.constant 2 : index
    %c0_138 = arith.constant 0 : index
    %202 = vector.load %arg20[%c2, %c0_138] : memref<8x8xf32, #tpu.memory_space<vmem>>, vector<1x8xf32>
    %203 = arith.truncf %202 : vector<1x8xf32> to vector<1x8xbf16>
    %cst_139 = arith.constant dense<0.000000e+00> : vector<1x24xf32>
    %204 = tpu.matmul %203, %182, %cst_139 {dimension_numbers = #tpu.dot_dimension_numbers<[1], [0], [0], [1], [0, 0, 1, 1], [], []>} : vector<1x8xbf16>, vector<8x24xbf16>, vector<1x24xf32> -> vector<1x24xf32>
    %205 = arith.truncf %204 : vector<1x24xf32> to vector<1x24xbf16>
    %cst_140 = arith.constant dense<0.000000e+00> : vector<1x64xf32>
    %206 = tpu.matmul %205, %201, %cst_140 {dimension_numbers = #tpu.dot_dimension_numbers<[1], [0], [0], [1], [0, 0, 1, 1], [], []>} : vector<1x24xbf16>, vector<24x64xbf16>, vector<1x64xf32> -> vector<1x64xf32>
    %207 = arith.addf %199, %206 : vector<1x64xf32>
    %c72 = arith.constant 72 : index
    %c0_141 = arith.constant 0 : index
    %208 = vector.load %arg21[%c72, %c0_141] : memref<192x64xf32, #tpu.memory_space<vmem>>, vector<24x64xf32>
    %209 = arith.truncf %208 : vector<24x64xf32> to vector<24x64xbf16>
    %c3 = arith.constant 3 : index
    %c0_142 = arith.constant 0 : index
    %210 = vector.load %arg20[%c3, %c0_142] : memref<8x8xf32, #tpu.memory_space<vmem>>, vector<1x8xf32>
    %211 = arith.truncf %210 : vector<1x8xf32> to vector<1x8xbf16>
    %cst_143 = arith.constant dense<0.000000e+00> : vector<1x24xf32>
    %212 = tpu.matmul %211, %182, %cst_143 {dimension_numbers = #tpu.dot_dimension_numbers<[1], [0], [0], [1], [0, 0, 1, 1], [], []>} : vector<1x8xbf16>, vector<8x24xbf16>, vector<1x24xf32> -> vector<1x24xf32>
    %213 = arith.truncf %212 : vector<1x24xf32> to vector<1x24xbf16>
    %cst_144 = arith.constant dense<0.000000e+00> : vector<1x64xf32>
    %214 = tpu.matmul %213, %209, %cst_144 {dimension_numbers = #tpu.dot_dimension_numbers<[1], [0], [0], [1], [0, 0, 1, 1], [], []>} : vector<1x24xbf16>, vector<24x64xbf16>, vector<1x64xf32> -> vector<1x64xf32>
    %215 = arith.addf %207, %214 : vector<1x64xf32>
    %c96_145 = arith.constant 96 : index
    %c0_146 = arith.constant 0 : index
    %216 = vector.load %arg21[%c96_145, %c0_146] : memref<192x64xf32, #tpu.memory_space<vmem>>, vector<24x64xf32>
    %217 = arith.truncf %216 : vector<24x64xf32> to vector<24x64xbf16>
    %c4 = arith.constant 4 : index
    %c0_147 = arith.constant 0 : index
    %218 = vector.load %arg20[%c4, %c0_147] : memref<8x8xf32, #tpu.memory_space<vmem>>, vector<1x8xf32>
    %219 = arith.truncf %218 : vector<1x8xf32> to vector<1x8xbf16>
    %cst_148 = arith.constant dense<0.000000e+00> : vector<1x24xf32>
    %220 = tpu.matmul %219, %182, %cst_148 {dimension_numbers = #tpu.dot_dimension_numbers<[1], [0], [0], [1], [0, 0, 1, 1], [], []>} : vector<1x8xbf16>, vector<8x24xbf16>, vector<1x24xf32> -> vector<1x24xf32>
    %221 = arith.truncf %220 : vector<1x24xf32> to vector<1x24xbf16>
    %cst_149 = arith.constant dense<0.000000e+00> : vector<1x64xf32>
    %222 = tpu.matmul %221, %217, %cst_149 {dimension_numbers = #tpu.dot_dimension_numbers<[1], [0], [0], [1], [0, 0, 1, 1], [], []>} : vector<1x24xbf16>, vector<24x64xbf16>, vector<1x64xf32> -> vector<1x64xf32>
    %223 = arith.addf %215, %222 : vector<1x64xf32>
    %c120 = arith.constant 120 : index
    %c0_150 = arith.constant 0 : index
    %224 = vector.load %arg21[%c120, %c0_150] : memref<192x64xf32, #tpu.memory_space<vmem>>, vector<24x64xf32>
    %225 = arith.truncf %224 : vector<24x64xf32> to vector<24x64xbf16>
    %c5 = arith.constant 5 : index
    %c0_151 = arith.constant 0 : index
    %226 = vector.load %arg20[%c5, %c0_151] : memref<8x8xf32, #tpu.memory_space<vmem>>, vector<1x8xf32>
    %227 = arith.truncf %226 : vector<1x8xf32> to vector<1x8xbf16>
    %cst_152 = arith.constant dense<0.000000e+00> : vector<1x24xf32>
    %228 = tpu.matmul %227, %182, %cst_152 {dimension_numbers = #tpu.dot_dimension_numbers<[1], [0], [0], [1], [0, 0, 1, 1], [], []>} : vector<1x8xbf16>, vector<8x24xbf16>, vector<1x24xf32> -> vector<1x24xf32>
    %229 = arith.truncf %228 : vector<1x24xf32> to vector<1x24xbf16>
    %cst_153 = arith.constant dense<0.000000e+00> : vector<1x64xf32>
    %230 = tpu.matmul %229, %225, %cst_153 {dimension_numbers = #tpu.dot_dimension_numbers<[1], [0], [0], [1], [0, 0, 1, 1], [], []>} : vector<1x24xbf16>, vector<24x64xbf16>, vector<1x64xf32> -> vector<1x64xf32>
    %231 = arith.addf %223, %230 : vector<1x64xf32>
    %c144 = arith.constant 144 : index
    %c0_154 = arith.constant 0 : index
    %232 = vector.load %arg21[%c144, %c0_154] : memref<192x64xf32, #tpu.memory_space<vmem>>, vector<24x64xf32>
    %233 = arith.truncf %232 : vector<24x64xf32> to vector<24x64xbf16>
    %c6 = arith.constant 6 : index
    %c0_155 = arith.constant 0 : index
    %234 = vector.load %arg20[%c6, %c0_155] : memref<8x8xf32, #tpu.memory_space<vmem>>, vector<1x8xf32>
    %235 = arith.truncf %234 : vector<1x8xf32> to vector<1x8xbf16>
    %cst_156 = arith.constant dense<0.000000e+00> : vector<1x24xf32>
    %236 = tpu.matmul %235, %182, %cst_156 {dimension_numbers = #tpu.dot_dimension_numbers<[1], [0], [0], [1], [0, 0, 1, 1], [], []>} : vector<1x8xbf16>, vector<8x24xbf16>, vector<1x24xf32> -> vector<1x24xf32>
    %237 = arith.truncf %236 : vector<1x24xf32> to vector<1x24xbf16>
    %cst_157 = arith.constant dense<0.000000e+00> : vector<1x64xf32>
    %238 = tpu.matmul %237, %233, %cst_157 {dimension_numbers = #tpu.dot_dimension_numbers<[1], [0], [0], [1], [0, 0, 1, 1], [], []>} : vector<1x24xbf16>, vector<24x64xbf16>, vector<1x64xf32> -> vector<1x64xf32>
    %239 = arith.addf %231, %238 : vector<1x64xf32>
    %c168 = arith.constant 168 : index
    %c0_158 = arith.constant 0 : index
    %240 = vector.load %arg21[%c168, %c0_158] : memref<192x64xf32, #tpu.memory_space<vmem>>, vector<24x64xf32>
    %241 = arith.truncf %240 : vector<24x64xf32> to vector<24x64xbf16>
    %c7 = arith.constant 7 : index
    %c0_159 = arith.constant 0 : index
    %242 = vector.load %arg20[%c7, %c0_159] : memref<8x8xf32, #tpu.memory_space<vmem>>, vector<1x8xf32>
    %243 = arith.truncf %242 : vector<1x8xf32> to vector<1x8xbf16>
    %cst_160 = arith.constant dense<0.000000e+00> : vector<1x24xf32>
    %244 = tpu.matmul %243, %182, %cst_160 {dimension_numbers = #tpu.dot_dimension_numbers<[1], [0], [0], [1], [0, 0, 1, 1], [], []>} : vector<1x8xbf16>, vector<8x24xbf16>, vector<1x24xf32> -> vector<1x24xf32>
    %245 = arith.truncf %244 : vector<1x24xf32> to vector<1x24xbf16>
    %cst_161 = arith.constant dense<0.000000e+00> : vector<1x64xf32>
    %246 = tpu.matmul %245, %241, %cst_161 {dimension_numbers = #tpu.dot_dimension_numbers<[1], [0], [0], [1], [0, 0, 1, 1], [], []>} : vector<1x24xbf16>, vector<24x64xbf16>, vector<1x64xf32> -> vector<1x64xf32>
    %247 = arith.addf %239, %246 : vector<1x64xf32>
    %c0_162 = arith.constant 0 : index
    %c0_163 = arith.constant 0 : index
    %248 = vector.load %arg22[%c0_162, %c0_163] : memref<1x64xf32, #tpu.memory_space<vmem>>, vector<1x64xf32>
    %249 = arith.addf %247, %248 : vector<1x64xf32>
    %cst_164 = arith.constant 5.000000e-01 : f32
    %250 = vector.broadcast %cst_164 : f32 to vector<1x64xf32>
    %251 = arith.mulf %250, %249 : vector<1x64xf32>
    %252 = math.tanh %251 : vector<1x64xf32>
    %cst_165 = arith.constant 1.000000e+00 : f32
    %253 = vector.broadcast %cst_165 : f32 to vector<1x64xf32>
    %254 = arith.addf %252, %253 : vector<1x64xf32>
    %cst_166 = arith.constant 5.000000e-01 : f32
    %255 = vector.broadcast %cst_166 : f32 to vector<1x64xf32>
    %256 = arith.mulf %255, %254 : vector<1x64xf32>
    %257 = arith.truncf %256 : vector<1x64xf32> to vector<1x64xbf16>
    %cst_167 = arith.constant 0.000000e+00 : f32
    %258 = vector.broadcast %cst_167 : f32 to vector<8x24xf32>
    %c0_168 = arith.constant 0 : index
    %c0_169 = arith.constant 0 : index
    %259 = vector.load %arg24[%c0_168, %c0_169] : memref<512x24xf32, #tpu.memory_space<vmem>>, vector<64x24xf32>
    %260 = arith.truncf %259 : vector<64x24xf32> to vector<64x24xbf16>
    %cst_170 = arith.constant dense<0.000000e+00> : vector<1x24xf32>
    %261 = tpu.matmul %257, %260, %cst_170 {dimension_numbers = #tpu.dot_dimension_numbers<[1], [0], [0], [1], [0, 0, 1, 1], [], []>} : vector<1x64xbf16>, vector<64x24xbf16>, vector<1x24xf32> -> vector<1x24xf32>
    %262 = tpu.iota {dimensions = array<i32: 0>} : vector<8x24xi32>
    %c0_i32 = arith.constant 0 : i32
    %263 = vector.broadcast %c0_i32 : i32 to vector<8x24xi32>
    %264 = arith.cmpi eq, %262, %263 : vector<8x24xi32>
    %265 = vector.shape_cast %261 : vector<1x24xf32> to vector<1x24xf32>
    %266 = vector.broadcast %265 : vector<1x24xf32> to vector<8x24xf32>
    %cst_171 = arith.constant 0.000000e+00 : f32
    %267 = vector.broadcast %cst_171 : f32 to vector<8x24xf32>
    %268 = arith.select %264, %266, %267 : vector<8x24xi1>, vector<8x24xf32>
    %269 = arith.addf %258, %268 : vector<8x24xf32>
    %c64 = arith.constant 64 : index
    %c0_172 = arith.constant 0 : index
    %270 = vector.load %arg24[%c64, %c0_172] : memref<512x24xf32, #tpu.memory_space<vmem>>, vector<64x24xf32>
    %271 = arith.truncf %270 : vector<64x24xf32> to vector<64x24xbf16>
    %cst_173 = arith.constant dense<0.000000e+00> : vector<1x24xf32>
    %272 = tpu.matmul %257, %271, %cst_173 {dimension_numbers = #tpu.dot_dimension_numbers<[1], [0], [0], [1], [0, 0, 1, 1], [], []>} : vector<1x64xbf16>, vector<64x24xbf16>, vector<1x24xf32> -> vector<1x24xf32>
    %273 = tpu.iota {dimensions = array<i32: 0>} : vector<8x24xi32>
    %c1_i32 = arith.constant 1 : i32
    %274 = vector.broadcast %c1_i32 : i32 to vector<8x24xi32>
    %275 = arith.cmpi eq, %273, %274 : vector<8x24xi32>
    %276 = vector.shape_cast %272 : vector<1x24xf32> to vector<1x24xf32>
    %277 = vector.broadcast %276 : vector<1x24xf32> to vector<8x24xf32>
    %cst_174 = arith.constant 0.000000e+00 : f32
    %278 = vector.broadcast %cst_174 : f32 to vector<8x24xf32>
    %279 = arith.select %275, %277, %278 : vector<8x24xi1>, vector<8x24xf32>
    %280 = arith.addf %269, %279 : vector<8x24xf32>
    %c128_175 = arith.constant 128 : index
    %c0_176 = arith.constant 0 : index
    %281 = vector.load %arg24[%c128_175, %c0_176] : memref<512x24xf32, #tpu.memory_space<vmem>>, vector<64x24xf32>
    %282 = arith.truncf %281 : vector<64x24xf32> to vector<64x24xbf16>
    %cst_177 = arith.constant dense<0.000000e+00> : vector<1x24xf32>
    %283 = tpu.matmul %257, %282, %cst_177 {dimension_numbers = #tpu.dot_dimension_numbers<[1], [0], [0], [1], [0, 0, 1, 1], [], []>} : vector<1x64xbf16>, vector<64x24xbf16>, vector<1x24xf32> -> vector<1x24xf32>
    %284 = tpu.iota {dimensions = array<i32: 0>} : vector<8x24xi32>
    %c2_i32 = arith.constant 2 : i32
    %285 = vector.broadcast %c2_i32 : i32 to vector<8x24xi32>
    %286 = arith.cmpi eq, %284, %285 : vector<8x24xi32>
    %287 = vector.shape_cast %283 : vector<1x24xf32> to vector<1x24xf32>
    %288 = vector.broadcast %287 : vector<1x24xf32> to vector<8x24xf32>
    %cst_178 = arith.constant 0.000000e+00 : f32
    %289 = vector.broadcast %cst_178 : f32 to vector<8x24xf32>
    %290 = arith.select %286, %288, %289 : vector<8x24xi1>, vector<8x24xf32>
    %291 = arith.addf %280, %290 : vector<8x24xf32>
    %c192 = arith.constant 192 : index
    %c0_179 = arith.constant 0 : index
    %292 = vector.load %arg24[%c192, %c0_179] : memref<512x24xf32, #tpu.memory_space<vmem>>, vector<64x24xf32>
    %293 = arith.truncf %292 : vector<64x24xf32> to vector<64x24xbf16>
    %cst_180 = arith.constant dense<0.000000e+00> : vector<1x24xf32>
    %294 = tpu.matmul %257, %293, %cst_180 {dimension_numbers = #tpu.dot_dimension_numbers<[1], [0], [0], [1], [0, 0, 1, 1], [], []>} : vector<1x64xbf16>, vector<64x24xbf16>, vector<1x24xf32> -> vector<1x24xf32>
    %295 = tpu.iota {dimensions = array<i32: 0>} : vector<8x24xi32>
    %c3_i32 = arith.constant 3 : i32
    %296 = vector.broadcast %c3_i32 : i32 to vector<8x24xi32>
    %297 = arith.cmpi eq, %295, %296 : vector<8x24xi32>
    %298 = vector.shape_cast %294 : vector<1x24xf32> to vector<1x24xf32>
    %299 = vector.broadcast %298 : vector<1x24xf32> to vector<8x24xf32>
    %cst_181 = arith.constant 0.000000e+00 : f32
    %300 = vector.broadcast %cst_181 : f32 to vector<8x24xf32>
    %301 = arith.select %297, %299, %300 : vector<8x24xi1>, vector<8x24xf32>
    %302 = arith.addf %291, %301 : vector<8x24xf32>
    %c256_182 = arith.constant 256 : index
    %c0_183 = arith.constant 0 : index
    %303 = vector.load %arg24[%c256_182, %c0_183] : memref<512x24xf32, #tpu.memory_space<vmem>>, vector<64x24xf32>
    %304 = arith.truncf %303 : vector<64x24xf32> to vector<64x24xbf16>
    %cst_184 = arith.constant dense<0.000000e+00> : vector<1x24xf32>
    %305 = tpu.matmul %257, %304, %cst_184 {dimension_numbers = #tpu.dot_dimension_numbers<[1], [0], [0], [1], [0, 0, 1, 1], [], []>} : vector<1x64xbf16>, vector<64x24xbf16>, vector<1x24xf32> -> vector<1x24xf32>
    %306 = tpu.iota {dimensions = array<i32: 0>} : vector<8x24xi32>
    %c4_i32 = arith.constant 4 : i32
    %307 = vector.broadcast %c4_i32 : i32 to vector<8x24xi32>
    %308 = arith.cmpi eq, %306, %307 : vector<8x24xi32>
    %309 = vector.shape_cast %305 : vector<1x24xf32> to vector<1x24xf32>
    %310 = vector.broadcast %309 : vector<1x24xf32> to vector<8x24xf32>
    %cst_185 = arith.constant 0.000000e+00 : f32
    %311 = vector.broadcast %cst_185 : f32 to vector<8x24xf32>
    %312 = arith.select %308, %310, %311 : vector<8x24xi1>, vector<8x24xf32>
    %313 = arith.addf %302, %312 : vector<8x24xf32>
    %c320 = arith.constant 320 : index
    %c0_186 = arith.constant 0 : index
    %314 = vector.load %arg24[%c320, %c0_186] : memref<512x24xf32, #tpu.memory_space<vmem>>, vector<64x24xf32>
    %315 = arith.truncf %314 : vector<64x24xf32> to vector<64x24xbf16>
    %cst_187 = arith.constant dense<0.000000e+00> : vector<1x24xf32>
    %316 = tpu.matmul %257, %315, %cst_187 {dimension_numbers = #tpu.dot_dimension_numbers<[1], [0], [0], [1], [0, 0, 1, 1], [], []>} : vector<1x64xbf16>, vector<64x24xbf16>, vector<1x24xf32> -> vector<1x24xf32>
    %317 = tpu.iota {dimensions = array<i32: 0>} : vector<8x24xi32>
    %c5_i32 = arith.constant 5 : i32
    %318 = vector.broadcast %c5_i32 : i32 to vector<8x24xi32>
    %319 = arith.cmpi eq, %317, %318 : vector<8x24xi32>
    %320 = vector.shape_cast %316 : vector<1x24xf32> to vector<1x24xf32>
    %321 = vector.broadcast %320 : vector<1x24xf32> to vector<8x24xf32>
    %cst_188 = arith.constant 0.000000e+00 : f32
    %322 = vector.broadcast %cst_188 : f32 to vector<8x24xf32>
    %323 = arith.select %319, %321, %322 : vector<8x24xi1>, vector<8x24xf32>
    %324 = arith.addf %313, %323 : vector<8x24xf32>
    %c384 = arith.constant 384 : index
    %c0_189 = arith.constant 0 : index
    %325 = vector.load %arg24[%c384, %c0_189] : memref<512x24xf32, #tpu.memory_space<vmem>>, vector<64x24xf32>
    %326 = arith.truncf %325 : vector<64x24xf32> to vector<64x24xbf16>
    %cst_190 = arith.constant dense<0.000000e+00> : vector<1x24xf32>
    %327 = tpu.matmul %257, %326, %cst_190 {dimension_numbers = #tpu.dot_dimension_numbers<[1], [0], [0], [1], [0, 0, 1, 1], [], []>} : vector<1x64xbf16>, vector<64x24xbf16>, vector<1x24xf32> -> vector<1x24xf32>
    %328 = tpu.iota {dimensions = array<i32: 0>} : vector<8x24xi32>
    %c6_i32 = arith.constant 6 : i32
    %329 = vector.broadcast %c6_i32 : i32 to vector<8x24xi32>
    %330 = arith.cmpi eq, %328, %329 : vector<8x24xi32>
    %331 = vector.shape_cast %327 : vector<1x24xf32> to vector<1x24xf32>
    %332 = vector.broadcast %331 : vector<1x24xf32> to vector<8x24xf32>
    %cst_191 = arith.constant 0.000000e+00 : f32
    %333 = vector.broadcast %cst_191 : f32 to vector<8x24xf32>
    %334 = arith.select %330, %332, %333 : vector<8x24xi1>, vector<8x24xf32>
    %335 = arith.addf %324, %334 : vector<8x24xf32>
    %c448 = arith.constant 448 : index
    %c0_192 = arith.constant 0 : index
    %336 = vector.load %arg24[%c448, %c0_192] : memref<512x24xf32, #tpu.memory_space<vmem>>, vector<64x24xf32>
    %337 = arith.truncf %336 : vector<64x24xf32> to vector<64x24xbf16>
    %cst_193 = arith.constant dense<0.000000e+00> : vector<1x24xf32>
    %338 = tpu.matmul %257, %337, %cst_193 {dimension_numbers = #tpu.dot_dimension_numbers<[1], [0], [0], [1], [0, 0, 1, 1], [], []>} : vector<1x64xbf16>, vector<64x24xbf16>, vector<1x24xf32> -> vector<1x24xf32>
    %339 = tpu.iota {dimensions = array<i32: 0>} : vector<8x24xi32>
    %c7_i32 = arith.constant 7 : i32
    %340 = vector.broadcast %c7_i32 : i32 to vector<8x24xi32>
    %341 = arith.cmpi eq, %339, %340 : vector<8x24xi32>
    %342 = vector.shape_cast %338 : vector<1x24xf32> to vector<1x24xf32>
    %343 = vector.broadcast %342 : vector<1x24xf32> to vector<8x24xf32>
    %cst_194 = arith.constant 0.000000e+00 : f32
    %344 = vector.broadcast %cst_194 : f32 to vector<8x24xf32>
    %345 = arith.select %341, %343, %344 : vector<8x24xi1>, vector<8x24xf32>
    %346 = arith.addf %335, %345 : vector<8x24xf32>
    %c0_195 = arith.constant 0 : index
    %c0_196 = arith.constant 0 : index
    %347 = vector.load %arg25[%c0_195, %c0_196] : memref<8x24xf32, #tpu.memory_space<vmem>>, vector<8x24xf32>
    %348 = arith.addf %346, %347 : vector<8x24xf32>
    %cst_197 = arith.constant 0.000000e+00 : f32
    %349 = vector.broadcast %cst_197 : f32 to vector<8x24xf32>
    %350 = arith.maximumf %348, %349 : vector<8x24xf32>
    %351 = arith.truncf %350 : vector<8x24xf32> to vector<8x24xbf16>
    %cst_198 = arith.constant 0.000000e+00 : f32
    %352 = vector.broadcast %cst_198 : f32 to vector<8x128xf32>
    %c0_199 = arith.constant 0 : index
    %c0_200 = arith.constant 0 : index
    %353 = vector.load %arg27[%c0_199, %c0_200] : memref<72x128xf32, #tpu.memory_space<vmem>>, vector<24x128xf32>
    %354 = arith.truncf %353 : vector<24x128xf32> to vector<24x128xbf16>
    %c0_201 = arith.constant 0 : index
    %c0_202 = arith.constant 0 : index
    %355 = vector.load %arg26[%c0_201, %c0_202] : memref<24x8xf32, #tpu.memory_space<vmem>>, vector<8x8xf32>
    %356 = arith.truncf %355 : vector<8x8xf32> to vector<8x8xbf16>
    %cst_203 = arith.constant dense<0.000000e+00> : vector<8x24xf32>
    %357 = tpu.matmul %356, %351, %cst_203 {dimension_numbers = #tpu.dot_dimension_numbers<[1], [0], [0], [1], [0, 0, 1, 1], [], []>} : vector<8x8xbf16>, vector<8x24xbf16>, vector<8x24xf32> -> vector<8x24xf32>
    %358 = arith.truncf %357 : vector<8x24xf32> to vector<8x24xbf16>
    %cst_204 = arith.constant dense<0.000000e+00> : vector<8x128xf32>
    %359 = tpu.matmul %358, %354, %cst_204 {dimension_numbers = #tpu.dot_dimension_numbers<[1], [0], [0], [1], [0, 0, 1, 1], [], []>} : vector<8x24xbf16>, vector<24x128xbf16>, vector<8x128xf32> -> vector<8x128xf32>
    %360 = arith.addf %352, %359 : vector<8x128xf32>
    %c24_205 = arith.constant 24 : index
    %c0_206 = arith.constant 0 : index
    %361 = vector.load %arg27[%c24_205, %c0_206] : memref<72x128xf32, #tpu.memory_space<vmem>>, vector<24x128xf32>
    %362 = arith.truncf %361 : vector<24x128xf32> to vector<24x128xbf16>
    %c8_207 = arith.constant 8 : index
    %c0_208 = arith.constant 0 : index
    %363 = vector.load %arg26[%c8_207, %c0_208] : memref<24x8xf32, #tpu.memory_space<vmem>>, vector<8x8xf32>
    %364 = arith.truncf %363 : vector<8x8xf32> to vector<8x8xbf16>
    %cst_209 = arith.constant dense<0.000000e+00> : vector<8x24xf32>
    %365 = tpu.matmul %364, %351, %cst_209 {dimension_numbers = #tpu.dot_dimension_numbers<[1], [0], [0], [1], [0, 0, 1, 1], [], []>} : vector<8x8xbf16>, vector<8x24xbf16>, vector<8x24xf32> -> vector<8x24xf32>
    %366 = arith.truncf %365 : vector<8x24xf32> to vector<8x24xbf16>
    %cst_210 = arith.constant dense<0.000000e+00> : vector<8x128xf32>
    %367 = tpu.matmul %366, %362, %cst_210 {dimension_numbers = #tpu.dot_dimension_numbers<[1], [0], [0], [1], [0, 0, 1, 1], [], []>} : vector<8x24xbf16>, vector<24x128xbf16>, vector<8x128xf32> -> vector<8x128xf32>
    %368 = arith.addf %360, %367 : vector<8x128xf32>
    %c48_211 = arith.constant 48 : index
    %c0_212 = arith.constant 0 : index
    %369 = vector.load %arg27[%c48_211, %c0_212] : memref<72x128xf32, #tpu.memory_space<vmem>>, vector<24x128xf32>
    %370 = arith.truncf %369 : vector<24x128xf32> to vector<24x128xbf16>
    %c16_213 = arith.constant 16 : index
    %c0_214 = arith.constant 0 : index
    %371 = vector.load %arg26[%c16_213, %c0_214] : memref<24x8xf32, #tpu.memory_space<vmem>>, vector<8x8xf32>
    %372 = arith.truncf %371 : vector<8x8xf32> to vector<8x8xbf16>
    %cst_215 = arith.constant dense<0.000000e+00> : vector<8x24xf32>
    %373 = tpu.matmul %372, %351, %cst_215 {dimension_numbers = #tpu.dot_dimension_numbers<[1], [0], [0], [1], [0, 0, 1, 1], [], []>} : vector<8x8xbf16>, vector<8x24xbf16>, vector<8x24xf32> -> vector<8x24xf32>
    %374 = arith.truncf %373 : vector<8x24xf32> to vector<8x24xbf16>
    %cst_216 = arith.constant dense<0.000000e+00> : vector<8x128xf32>
    %375 = tpu.matmul %374, %370, %cst_216 {dimension_numbers = #tpu.dot_dimension_numbers<[1], [0], [0], [1], [0, 0, 1, 1], [], []>} : vector<8x24xbf16>, vector<24x128xbf16>, vector<8x128xf32> -> vector<8x128xf32>
    %376 = arith.addf %368, %375 : vector<8x128xf32>
    %c0_217 = arith.constant 0 : index
    %c0_218 = arith.constant 0 : index
    %377 = vector.load %arg28[%c0_217, %c0_218] : memref<8x128xf32, #tpu.memory_space<vmem>>, vector<8x128xf32>
    %378 = arith.addf %376, %377 : vector<8x128xf32>
    %cst_219 = arith.constant 0.000000e+00 : f32
    %379 = vector.broadcast %cst_219 : f32 to vector<8x128xf32>
    %380 = arith.maximumf %378, %379 : vector<8x128xf32>
    %381 = arith.truncf %380 : vector<8x128xf32> to vector<8x128xbf16>
    %cst_220 = arith.constant 0.000000e+00 : f32
    %382 = vector.broadcast %cst_220 : f32 to vector<8x128xf32>
    %c0_221 = arith.constant 0 : index
    %c0_222 = arith.constant 0 : index
    %383 = vector.load %arg30[%c0_221, %c0_222] : memref<384x128xf32, #tpu.memory_space<vmem>>, vector<128x128xf32>
    %384 = arith.truncf %383 : vector<128x128xf32> to vector<128x128xbf16>
    %c0_223 = arith.constant 0 : index
    %c0_224 = arith.constant 0 : index
    %385 = vector.load %arg29[%c0_223, %c0_224] : memref<24x8xf32, #tpu.memory_space<vmem>>, vector<8x8xf32>
    %386 = arith.truncf %385 : vector<8x8xf32> to vector<8x8xbf16>
    %cst_225 = arith.constant dense<0.000000e+00> : vector<8x128xf32>
    %387 = tpu.matmul %386, %381, %cst_225 {dimension_numbers = #tpu.dot_dimension_numbers<[1], [0], [0], [1], [0, 0, 1, 1], [], []>} : vector<8x8xbf16>, vector<8x128xbf16>, vector<8x128xf32> -> vector<8x128xf32>
    %388 = arith.truncf %387 : vector<8x128xf32> to vector<8x128xbf16>
    %cst_226 = arith.constant dense<0.000000e+00> : vector<8x128xf32>
    %389 = tpu.matmul %388, %384, %cst_226 {dimension_numbers = #tpu.dot_dimension_numbers<[1], [0], [0], [1], [0, 0, 1, 1], [], []>} : vector<8x128xbf16>, vector<128x128xbf16>, vector<8x128xf32> -> vector<8x128xf32>
    %390 = arith.addf %382, %389 : vector<8x128xf32>
    %c128_227 = arith.constant 128 : index
    %c0_228 = arith.constant 0 : index
    %391 = vector.load %arg30[%c128_227, %c0_228] : memref<384x128xf32, #tpu.memory_space<vmem>>, vector<128x128xf32>
    %392 = arith.truncf %391 : vector<128x128xf32> to vector<128x128xbf16>
    %c8_229 = arith.constant 8 : index
    %c0_230 = arith.constant 0 : index
    %393 = vector.load %arg29[%c8_229, %c0_230] : memref<24x8xf32, #tpu.memory_space<vmem>>, vector<8x8xf32>
    %394 = arith.truncf %393 : vector<8x8xf32> to vector<8x8xbf16>
    %cst_231 = arith.constant dense<0.000000e+00> : vector<8x128xf32>
    %395 = tpu.matmul %394, %381, %cst_231 {dimension_numbers = #tpu.dot_dimension_numbers<[1], [0], [0], [1], [0, 0, 1, 1], [], []>} : vector<8x8xbf16>, vector<8x128xbf16>, vector<8x128xf32> -> vector<8x128xf32>
    %396 = arith.truncf %395 : vector<8x128xf32> to vector<8x128xbf16>
    %cst_232 = arith.constant dense<0.000000e+00> : vector<8x128xf32>
    %397 = tpu.matmul %396, %392, %cst_232 {dimension_numbers = #tpu.dot_dimension_numbers<[1], [0], [0], [1], [0, 0, 1, 1], [], []>} : vector<8x128xbf16>, vector<128x128xbf16>, vector<8x128xf32> -> vector<8x128xf32>
    %398 = arith.addf %390, %397 : vector<8x128xf32>
    %c256_233 = arith.constant 256 : index
    %c0_234 = arith.constant 0 : index
    %399 = vector.load %arg30[%c256_233, %c0_234] : memref<384x128xf32, #tpu.memory_space<vmem>>, vector<128x128xf32>
    %400 = arith.truncf %399 : vector<128x128xf32> to vector<128x128xbf16>
    %c16_235 = arith.constant 16 : index
    %c0_236 = arith.constant 0 : index
    %401 = vector.load %arg29[%c16_235, %c0_236] : memref<24x8xf32, #tpu.memory_space<vmem>>, vector<8x8xf32>
    %402 = arith.truncf %401 : vector<8x8xf32> to vector<8x8xbf16>
    %cst_237 = arith.constant dense<0.000000e+00> : vector<8x128xf32>
    %403 = tpu.matmul %402, %381, %cst_237 {dimension_numbers = #tpu.dot_dimension_numbers<[1], [0], [0], [1], [0, 0, 1, 1], [], []>} : vector<8x8xbf16>, vector<8x128xbf16>, vector<8x128xf32> -> vector<8x128xf32>
    %404 = arith.truncf %403 : vector<8x128xf32> to vector<8x128xbf16>
    %cst_238 = arith.constant dense<0.000000e+00> : vector<8x128xf32>
    %405 = tpu.matmul %404, %400, %cst_238 {dimension_numbers = #tpu.dot_dimension_numbers<[1], [0], [0], [1], [0, 0, 1, 1], [], []>} : vector<8x128xbf16>, vector<128x128xbf16>, vector<8x128xf32> -> vector<8x128xf32>
    %406 = arith.addf %398, %405 : vector<8x128xf32>
    %c0_239 = arith.constant 0 : index
    %c0_240 = arith.constant 0 : index
    %407 = vector.load %arg31[%c0_239, %c0_240] : memref<8x128xf32, #tpu.memory_space<vmem>>, vector<8x128xf32>
    %408 = arith.addf %406, %407 : vector<8x128xf32>
    %cst_241 = arith.constant 0.000000e+00 : f32
    %409 = vector.broadcast %cst_241 : f32 to vector<8x128xf32>
    %410 = arith.maximumf %408, %409 : vector<8x128xf32>
    %411 = arith.truncf %410 : vector<8x128xf32> to vector<8x128xbf16>
    %cst_242 = arith.constant 0.000000e+00 : f32
    %412 = vector.broadcast %cst_242 : f32 to vector<8x128xf32>
    %c0_243 = arith.constant 0 : index
    %c0_244 = arith.constant 0 : index
    %413 = vector.load %arg33[%c0_243, %c0_244] : memref<384x128xf32, #tpu.memory_space<vmem>>, vector<128x128xf32>
    %414 = arith.truncf %413 : vector<128x128xf32> to vector<128x128xbf16>
    %c0_245 = arith.constant 0 : index
    %c0_246 = arith.constant 0 : index
    %415 = vector.load %arg32[%c0_245, %c0_246] : memref<24x8xf32, #tpu.memory_space<vmem>>, vector<8x8xf32>
    %416 = arith.truncf %415 : vector<8x8xf32> to vector<8x8xbf16>
    %cst_247 = arith.constant dense<0.000000e+00> : vector<8x128xf32>
    %417 = tpu.matmul %416, %411, %cst_247 {dimension_numbers = #tpu.dot_dimension_numbers<[1], [0], [0], [1], [0, 0, 1, 1], [], []>} : vector<8x8xbf16>, vector<8x128xbf16>, vector<8x128xf32> -> vector<8x128xf32>
    %418 = arith.truncf %417 : vector<8x128xf32> to vector<8x128xbf16>
    %cst_248 = arith.constant dense<0.000000e+00> : vector<8x128xf32>
    %419 = tpu.matmul %418, %414, %cst_248 {dimension_numbers = #tpu.dot_dimension_numbers<[1], [0], [0], [1], [0, 0, 1, 1], [], []>} : vector<8x128xbf16>, vector<128x128xbf16>, vector<8x128xf32> -> vector<8x128xf32>
    %420 = arith.addf %412, %419 : vector<8x128xf32>
    %c128_249 = arith.constant 128 : index
    %c0_250 = arith.constant 0 : index
    %421 = vector.load %arg33[%c128_249, %c0_250] : memref<384x128xf32, #tpu.memory_space<vmem>>, vector<128x128xf32>
    %422 = arith.truncf %421 : vector<128x128xf32> to vector<128x128xbf16>
    %c8_251 = arith.constant 8 : index
    %c0_252 = arith.constant 0 : index
    %423 = vector.load %arg32[%c8_251, %c0_252] : memref<24x8xf32, #tpu.memory_space<vmem>>, vector<8x8xf32>
    %424 = arith.truncf %423 : vector<8x8xf32> to vector<8x8xbf16>
    %cst_253 = arith.constant dense<0.000000e+00> : vector<8x128xf32>
    %425 = tpu.matmul %424, %411, %cst_253 {dimension_numbers = #tpu.dot_dimension_numbers<[1], [0], [0], [1], [0, 0, 1, 1], [], []>} : vector<8x8xbf16>, vector<8x128xbf16>, vector<8x128xf32> -> vector<8x128xf32>
    %426 = arith.truncf %425 : vector<8x128xf32> to vector<8x128xbf16>
    %cst_254 = arith.constant dense<0.000000e+00> : vector<8x128xf32>
    %427 = tpu.matmul %426, %422, %cst_254 {dimension_numbers = #tpu.dot_dimension_numbers<[1], [0], [0], [1], [0, 0, 1, 1], [], []>} : vector<8x128xbf16>, vector<128x128xbf16>, vector<8x128xf32> -> vector<8x128xf32>
    %428 = arith.addf %420, %427 : vector<8x128xf32>
    %c256_255 = arith.constant 256 : index
    %c0_256 = arith.constant 0 : index
    %429 = vector.load %arg33[%c256_255, %c0_256] : memref<384x128xf32, #tpu.memory_space<vmem>>, vector<128x128xf32>
    %430 = arith.truncf %429 : vector<128x128xf32> to vector<128x128xbf16>
    %c16_257 = arith.constant 16 : index
    %c0_258 = arith.constant 0 : index
    %431 = vector.load %arg32[%c16_257, %c0_258] : memref<24x8xf32, #tpu.memory_space<vmem>>, vector<8x8xf32>
    %432 = arith.truncf %431 : vector<8x8xf32> to vector<8x8xbf16>
    %cst_259 = arith.constant dense<0.000000e+00> : vector<8x128xf32>
    %433 = tpu.matmul %432, %411, %cst_259 {dimension_numbers = #tpu.dot_dimension_numbers<[1], [0], [0], [1], [0, 0, 1, 1], [], []>} : vector<8x8xbf16>, vector<8x128xbf16>, vector<8x128xf32> -> vector<8x128xf32>
    %434 = arith.truncf %433 : vector<8x128xf32> to vector<8x128xbf16>
    %cst_260 = arith.constant dense<0.000000e+00> : vector<8x128xf32>
    %435 = tpu.matmul %434, %430, %cst_260 {dimension_numbers = #tpu.dot_dimension_numbers<[1], [0], [0], [1], [0, 0, 1, 1], [], []>} : vector<8x128xbf16>, vector<128x128xbf16>, vector<8x128xf32> -> vector<8x128xf32>
    %436 = arith.addf %428, %435 : vector<8x128xf32>
    %c0_261 = arith.constant 0 : index
    %c0_262 = arith.constant 0 : index
    %437 = vector.load %arg34[%c0_261, %c0_262] : memref<8x128xf32, #tpu.memory_space<vmem>>, vector<8x128xf32>
    %438 = arith.addf %436, %437 : vector<8x128xf32>
    %cst_263 = arith.constant 0.000000e+00 : f32
    %439 = vector.broadcast %cst_263 : f32 to vector<8x128xf32>
    %440 = arith.maximumf %438, %439 : vector<8x128xf32>
    %441 = arith.truncf %440 : vector<8x128xf32> to vector<8x128xbf16>
    %cst_264 = arith.constant 0.000000e+00 : f32
    %442 = vector.broadcast %cst_264 : f32 to vector<8x128xf32>
    %c0_265 = arith.constant 0 : index
    %c0_266 = arith.constant 0 : index
    %443 = vector.load %arg36[%c0_265, %c0_266] : memref<384x128xf32, #tpu.memory_space<vmem>>, vector<128x128xf32>
    %444 = arith.truncf %443 : vector<128x128xf32> to vector<128x128xbf16>
    %c0_267 = arith.constant 0 : index
    %c0_268 = arith.constant 0 : index
    %445 = vector.load %arg35[%c0_267, %c0_268] : memref<24x8xf32, #tpu.memory_space<vmem>>, vector<8x8xf32>
    %446 = arith.truncf %445 : vector<8x8xf32> to vector<8x8xbf16>
    %cst_269 = arith.constant dense<0.000000e+00> : vector<8x128xf32>
    %447 = tpu.matmul %446, %441, %cst_269 {dimension_numbers = #tpu.dot_dimension_numbers<[1], [0], [0], [1], [0, 0, 1, 1], [], []>} : vector<8x8xbf16>, vector<8x128xbf16>, vector<8x128xf32> -> vector<8x128xf32>
    %448 = arith.truncf %447 : vector<8x128xf32> to vector<8x128xbf16>
    %cst_270 = arith.constant dense<0.000000e+00> : vector<8x128xf32>
    %449 = tpu.matmul %448, %444, %cst_270 {dimension_numbers = #tpu.dot_dimension_numbers<[1], [0], [0], [1], [0, 0, 1, 1], [], []>} : vector<8x128xbf16>, vector<128x128xbf16>, vector<8x128xf32> -> vector<8x128xf32>
    %450 = arith.addf %442, %449 : vector<8x128xf32>
    %c128_271 = arith.constant 128 : index
    %c0_272 = arith.constant 0 : index
    %451 = vector.load %arg36[%c128_271, %c0_272] : memref<384x128xf32, #tpu.memory_space<vmem>>, vector<128x128xf32>
    %452 = arith.truncf %451 : vector<128x128xf32> to vector<128x128xbf16>
    %c8_273 = arith.constant 8 : index
    %c0_274 = arith.constant 0 : index
    %453 = vector.load %arg35[%c8_273, %c0_274] : memref<24x8xf32, #tpu.memory_space<vmem>>, vector<8x8xf32>
    %454 = arith.truncf %453 : vector<8x8xf32> to vector<8x8xbf16>
    %cst_275 = arith.constant dense<0.000000e+00> : vector<8x128xf32>
    %455 = tpu.matmul %454, %441, %cst_275 {dimension_numbers = #tpu.dot_dimension_numbers<[1], [0], [0], [1], [0, 0, 1, 1], [], []>} : vector<8x8xbf16>, vector<8x128xbf16>, vector<8x128xf32> -> vector<8x128xf32>
    %456 = arith.truncf %455 : vector<8x128xf32> to vector<8x128xbf16>
    %cst_276 = arith.constant dense<0.000000e+00> : vector<8x128xf32>
    %457 = tpu.matmul %456, %452, %cst_276 {dimension_numbers = #tpu.dot_dimension_numbers<[1], [0], [0], [1], [0, 0, 1, 1], [], []>} : vector<8x128xbf16>, vector<128x128xbf16>, vector<8x128xf32> -> vector<8x128xf32>
    %458 = arith.addf %450, %457 : vector<8x128xf32>
    %c256_277 = arith.constant 256 : index
    %c0_278 = arith.constant 0 : index
    %459 = vector.load %arg36[%c256_277, %c0_278] : memref<384x128xf32, #tpu.memory_space<vmem>>, vector<128x128xf32>
    %460 = arith.truncf %459 : vector<128x128xf32> to vector<128x128xbf16>
    %c16_279 = arith.constant 16 : index
    %c0_280 = arith.constant 0 : index
    %461 = vector.load %arg35[%c16_279, %c0_280] : memref<24x8xf32, #tpu.memory_space<vmem>>, vector<8x8xf32>
    %462 = arith.truncf %461 : vector<8x8xf32> to vector<8x8xbf16>
    %cst_281 = arith.constant dense<0.000000e+00> : vector<8x128xf32>
    %463 = tpu.matmul %462, %441, %cst_281 {dimension_numbers = #tpu.dot_dimension_numbers<[1], [0], [0], [1], [0, 0, 1, 1], [], []>} : vector<8x8xbf16>, vector<8x128xbf16>, vector<8x128xf32> -> vector<8x128xf32>
    %464 = arith.truncf %463 : vector<8x128xf32> to vector<8x128xbf16>
    %cst_282 = arith.constant dense<0.000000e+00> : vector<8x128xf32>
    %465 = tpu.matmul %464, %460, %cst_282 {dimension_numbers = #tpu.dot_dimension_numbers<[1], [0], [0], [1], [0, 0, 1, 1], [], []>} : vector<8x128xbf16>, vector<128x128xbf16>, vector<8x128xf32> -> vector<8x128xf32>
    %466 = arith.addf %458, %465 : vector<8x128xf32>
    %c0_283 = arith.constant 0 : index
    %c0_284 = arith.constant 0 : index
    %467 = vector.load %arg37[%c0_283, %c0_284] : memref<8x128xf32, #tpu.memory_space<vmem>>, vector<8x128xf32>
    %468 = arith.addf %466, %467 : vector<8x128xf32>
    %cst_285 = arith.constant 0.000000e+00 : f32
    %469 = vector.broadcast %cst_285 : f32 to vector<8x128xf32>
    %470 = arith.maximumf %468, %469 : vector<8x128xf32>
    %471 = arith.truncf %470 : vector<8x128xf32> to vector<8x128xbf16>
    %cst_286 = arith.constant 0.000000e+00 : f32
    %472 = vector.broadcast %cst_286 : f32 to vector<16x256xf32>
    %c0_287 = arith.constant 0 : index
    %c0_288 = arith.constant 0 : index
    %473 = vector.load %arg39[%c0_287, %c0_288] : memref<512x256xf32, #tpu.memory_space<vmem>>, vector<128x256xf32>
    %474 = arith.truncf %473 : vector<128x256xf32> to vector<128x256xbf16>
    %c0_289 = arith.constant 0 : index
    %c0_290 = arith.constant 0 : index
    %475 = vector.load %arg38[%c0_289, %c0_290] : memref<64x8xf32, #tpu.memory_space<vmem>>, vector<16x8xf32>
    %476 = arith.truncf %475 : vector<16x8xf32> to vector<16x8xbf16>
    %cst_291 = arith.constant dense<0.000000e+00> : vector<16x128xf32>
    %477 = tpu.matmul %476, %471, %cst_291 {dimension_numbers = #tpu.dot_dimension_numbers<[1], [0], [0], [1], [0, 0, 1, 1], [], []>} : vector<16x8xbf16>, vector<8x128xbf16>, vector<16x128xf32> -> vector<16x128xf32>
    %478 = arith.truncf %477 : vector<16x128xf32> to vector<16x128xbf16>
    %cst_292 = arith.constant dense<0.000000e+00> : vector<16x256xf32>
    %479 = tpu.matmul %478, %474, %cst_292 {dimension_numbers = #tpu.dot_dimension_numbers<[1], [0], [0], [1], [0, 0, 1, 1], [], []>} : vector<16x128xbf16>, vector<128x256xbf16>, vector<16x256xf32> -> vector<16x256xf32>
    %480 = arith.addf %472, %479 : vector<16x256xf32>
    %c128_293 = arith.constant 128 : index
    %c0_294 = arith.constant 0 : index
    %481 = vector.load %arg39[%c128_293, %c0_294] : memref<512x256xf32, #tpu.memory_space<vmem>>, vector<128x256xf32>
    %482 = arith.truncf %481 : vector<128x256xf32> to vector<128x256xbf16>
    %c16_295 = arith.constant 16 : index
    %c0_296 = arith.constant 0 : index
    %483 = vector.load %arg38[%c16_295, %c0_296] : memref<64x8xf32, #tpu.memory_space<vmem>>, vector<16x8xf32>
    %484 = arith.truncf %483 : vector<16x8xf32> to vector<16x8xbf16>
    %cst_297 = arith.constant dense<0.000000e+00> : vector<16x128xf32>
    %485 = tpu.matmul %484, %471, %cst_297 {dimension_numbers = #tpu.dot_dimension_numbers<[1], [0], [0], [1], [0, 0, 1, 1], [], []>} : vector<16x8xbf16>, vector<8x128xbf16>, vector<16x128xf32> -> vector<16x128xf32>
    %486 = arith.truncf %485 : vector<16x128xf32> to vector<16x128xbf16>
    %cst_298 = arith.constant dense<0.000000e+00> : vector<16x256xf32>
    %487 = tpu.matmul %486, %482, %cst_298 {dimension_numbers = #tpu.dot_dimension_numbers<[1], [0], [0], [1], [0, 0, 1, 1], [], []>} : vector<16x128xbf16>, vector<128x256xbf16>, vector<16x256xf32> -> vector<16x256xf32>
    %488 = arith.addf %480, %487 : vector<16x256xf32>
    %c256_299 = arith.constant 256 : index
    %c0_300 = arith.constant 0 : index
    %489 = vector.load %arg39[%c256_299, %c0_300] : memref<512x256xf32, #tpu.memory_space<vmem>>, vector<128x256xf32>
    %490 = arith.truncf %489 : vector<128x256xf32> to vector<128x256xbf16>
    %c32_301 = arith.constant 32 : index
    %c0_302 = arith.constant 0 : index
    %491 = vector.load %arg38[%c32_301, %c0_302] : memref<64x8xf32, #tpu.memory_space<vmem>>, vector<16x8xf32>
    %492 = arith.truncf %491 : vector<16x8xf32> to vector<16x8xbf16>
    %cst_303 = arith.constant dense<0.000000e+00> : vector<16x128xf32>
    %493 = tpu.matmul %492, %471, %cst_303 {dimension_numbers = #tpu.dot_dimension_numbers<[1], [0], [0], [1], [0, 0, 1, 1], [], []>} : vector<16x8xbf16>, vector<8x128xbf16>, vector<16x128xf32> -> vector<16x128xf32>
    %494 = arith.truncf %493 : vector<16x128xf32> to vector<16x128xbf16>
    %cst_304 = arith.constant dense<0.000000e+00> : vector<16x256xf32>
    %495 = tpu.matmul %494, %490, %cst_304 {dimension_numbers = #tpu.dot_dimension_numbers<[1], [0], [0], [1], [0, 0, 1, 1], [], []>} : vector<16x128xbf16>, vector<128x256xbf16>, vector<16x256xf32> -> vector<16x256xf32>
    %496 = arith.addf %488, %495 : vector<16x256xf32>
    %c384_305 = arith.constant 384 : index
    %c0_306 = arith.constant 0 : index
    %497 = vector.load %arg39[%c384_305, %c0_306] : memref<512x256xf32, #tpu.memory_space<vmem>>, vector<128x256xf32>
    %498 = arith.truncf %497 : vector<128x256xf32> to vector<128x256xbf16>
    %c48_307 = arith.constant 48 : index
    %c0_308 = arith.constant 0 : index
    %499 = vector.load %arg38[%c48_307, %c0_308] : memref<64x8xf32, #tpu.memory_space<vmem>>, vector<16x8xf32>
    %500 = arith.truncf %499 : vector<16x8xf32> to vector<16x8xbf16>
    %cst_309 = arith.constant dense<0.000000e+00> : vector<16x128xf32>
    %501 = tpu.matmul %500, %471, %cst_309 {dimension_numbers = #tpu.dot_dimension_numbers<[1], [0], [0], [1], [0, 0, 1, 1], [], []>} : vector<16x8xbf16>, vector<8x128xbf16>, vector<16x128xf32> -> vector<16x128xf32>
    %502 = arith.truncf %501 : vector<16x128xf32> to vector<16x128xbf16>
    %cst_310 = arith.constant dense<0.000000e+00> : vector<16x256xf32>
    %503 = tpu.matmul %502, %498, %cst_310 {dimension_numbers = #tpu.dot_dimension_numbers<[1], [0], [0], [1], [0, 0, 1, 1], [], []>} : vector<16x128xbf16>, vector<128x256xbf16>, vector<16x256xf32> -> vector<16x256xf32>
    %504 = arith.addf %496, %503 : vector<16x256xf32>
    %c0_311 = arith.constant 0 : index
    %c0_312 = arith.constant 0 : index
    %505 = vector.load %arg40[%c0_311, %c0_312] : memref<16x256xf32, #tpu.memory_space<vmem>>, vector<16x256xf32>
    %506 = arith.addf %504, %505 : vector<16x256xf32>
    %cst_313 = arith.constant 0.000000e+00 : f32
    %507 = vector.broadcast %cst_313 : f32 to vector<16x256xf32>
    %508 = arith.maximumf %506, %507 : vector<16x256xf32>
    %509 = arith.truncf %508 : vector<16x256xf32> to vector<16x256xbf16>
    %cst_314 = arith.constant 0.000000e+00 : f32
    %510 = vector.broadcast %cst_314 : f32 to vector<16x48xf32>
    %c0_315 = arith.constant 0 : index
    %c0_316 = arith.constant 0 : index
    %511 = vector.load %arg42[%c0_315, %c0_316] : memref<768x48xf32, #tpu.memory_space<vmem>>, vector<256x48xf32>
    %512 = arith.truncf %511 : vector<256x48xf32> to vector<256x48xbf16>
    %c0_317 = arith.constant 0 : index
    %c0_318 = arith.constant 0 : index
    %513 = vector.load %arg41[%c0_317, %c0_318] : memref<48x16xf32, #tpu.memory_space<vmem>>, vector<16x16xf32>
    %514 = arith.truncf %513 : vector<16x16xf32> to vector<16x16xbf16>
    %cst_319 = arith.constant dense<0.000000e+00> : vector<16x256xf32>
    %515 = tpu.matmul %514, %509, %cst_319 {dimension_numbers = #tpu.dot_dimension_numbers<[1], [0], [0], [1], [0, 0, 1, 1], [], []>} : vector<16x16xbf16>, vector<16x256xbf16>, vector<16x256xf32> -> vector<16x256xf32>
    %516 = arith.truncf %515 : vector<16x256xf32> to vector<16x256xbf16>
    %cst_320 = arith.constant dense<0.000000e+00> : vector<16x48xf32>
    %517 = tpu.matmul %516, %512, %cst_320 {dimension_numbers = #tpu.dot_dimension_numbers<[1], [0], [0], [1], [0, 0, 1, 1], [], []>} : vector<16x256xbf16>, vector<256x48xbf16>, vector<16x48xf32> -> vector<16x48xf32>
    %518 = arith.addf %510, %517 : vector<16x48xf32>
    %c256_321 = arith.constant 256 : index
    %c0_322 = arith.constant 0 : index
    %519 = vector.load %arg42[%c256_321, %c0_322] : memref<768x48xf32, #tpu.memory_space<vmem>>, vector<256x48xf32>
    %520 = arith.truncf %519 : vector<256x48xf32> to vector<256x48xbf16>
    %c16_323 = arith.constant 16 : index
    %c0_324 = arith.constant 0 : index
    %521 = vector.load %arg41[%c16_323, %c0_324] : memref<48x16xf32, #tpu.memory_space<vmem>>, vector<16x16xf32>
    %522 = arith.truncf %521 : vector<16x16xf32> to vector<16x16xbf16>
    %cst_325 = arith.constant dense<0.000000e+00> : vector<16x256xf32>
    %523 = tpu.matmul %522, %509, %cst_325 {dimension_numbers = #tpu.dot_dimension_numbers<[1], [0], [0], [1], [0, 0, 1, 1], [], []>} : vector<16x16xbf16>, vector<16x256xbf16>, vector<16x256xf32> -> vector<16x256xf32>
    %524 = arith.truncf %523 : vector<16x256xf32> to vector<16x256xbf16>
    %cst_326 = arith.constant dense<0.000000e+00> : vector<16x48xf32>
    %525 = tpu.matmul %524, %520, %cst_326 {dimension_numbers = #tpu.dot_dimension_numbers<[1], [0], [0], [1], [0, 0, 1, 1], [], []>} : vector<16x256xbf16>, vector<256x48xbf16>, vector<16x48xf32> -> vector<16x48xf32>
    %526 = arith.addf %518, %525 : vector<16x48xf32>
    %c512_327 = arith.constant 512 : index
    %c0_328 = arith.constant 0 : index
    %527 = vector.load %arg42[%c512_327, %c0_328] : memref<768x48xf32, #tpu.memory_space<vmem>>, vector<256x48xf32>
    %528 = arith.truncf %527 : vector<256x48xf32> to vector<256x48xbf16>
    %c32_329 = arith.constant 32 : index
    %c0_330 = arith.constant 0 : index
    %529 = vector.load %arg41[%c32_329, %c0_330] : memref<48x16xf32, #tpu.memory_space<vmem>>, vector<16x16xf32>
    %530 = arith.truncf %529 : vector<16x16xf32> to vector<16x16xbf16>
    %cst_331 = arith.constant dense<0.000000e+00> : vector<16x256xf32>
    %531 = tpu.matmul %530, %509, %cst_331 {dimension_numbers = #tpu.dot_dimension_numbers<[1], [0], [0], [1], [0, 0, 1, 1], [], []>} : vector<16x16xbf16>, vector<16x256xbf16>, vector<16x256xf32> -> vector<16x256xf32>
    %532 = arith.truncf %531 : vector<16x256xf32> to vector<16x256xbf16>
    %cst_332 = arith.constant dense<0.000000e+00> : vector<16x48xf32>
    %533 = tpu.matmul %532, %528, %cst_332 {dimension_numbers = #tpu.dot_dimension_numbers<[1], [0], [0], [1], [0, 0, 1, 1], [], []>} : vector<16x256xbf16>, vector<256x48xbf16>, vector<16x48xf32> -> vector<16x48xf32>
    %534 = arith.addf %526, %533 : vector<16x48xf32>
    %c0_333 = arith.constant 0 : index
    %c0_334 = arith.constant 0 : index
    %535 = vector.load %arg43[%c0_333, %c0_334] : memref<16x48xf32, #tpu.memory_space<vmem>>, vector<16x48xf32>
    %536 = arith.addf %534, %535 : vector<16x48xf32>
    %cst_335 = arith.constant 5.000000e-01 : f32
    %537 = vector.broadcast %cst_335 : f32 to vector<16x48xf32>
    %538 = arith.mulf %537, %536 : vector<16x48xf32>
    %539 = math.tanh %538 : vector<16x48xf32>
    %cst_336 = arith.constant 1.000000e+00 : f32
    %540 = vector.broadcast %cst_336 : f32 to vector<16x48xf32>
    %541 = arith.addf %539, %540 : vector<16x48xf32>
    %cst_337 = arith.constant 5.000000e-01 : f32
    %542 = vector.broadcast %cst_337 : f32 to vector<16x48xf32>
    %543 = arith.mulf %542, %541 : vector<16x48xf32>
    %c0_338 = arith.constant 0 : index
    %c0_339 = arith.constant 0 : index
    %c0_340 = arith.constant 0 : index
    %544 = vector.load %arg44[%c0_338, %c0_339, %c0_340] : memref<1x16x48xf32, #tpu.memory_space<vmem>>, vector<1x16x48xf32>
    %545 = vector.shape_cast %544 : vector<1x16x48xf32> to vector<16x48xf32>
    %546 = vector.shape_cast %543 : vector<16x48xf32> to vector<1x16x48xf32>
    tpu.vector_store %arg44[%c0_338, %c0_339, %c0_340], %546 {strides = array<i32>} : memref<1x16x48xf32, #tpu.memory_space<vmem>>, vector<1x16x48xf32>,
    return
  }
  func.func @transform_0(%arg0: i32) -> (i32, i32, i32) {
    %c0_i32 = arith.constant 0 : i32
    %c0_i32_0 = arith.constant 0 : i32
    %c0_i32_1 = arith.constant 0 : i32
    return %arg0, %c0_i32, %c0_i32_0 : i32, i32, i32
  }
  func.func @transform_1(%arg0: i32) -> (i32, i32) {
    %c0_i32 = arith.constant 0 : i32
    %c0_i32_0 = arith.constant 0 : i32
    %c0_i32_1 = arith.constant 0 : i32
    return %c0_i32, %c0_i32_0 : i32, i32
  }
  func.func @transform_2(%arg0: i32) -> (i32, i32) {
    %c0_i32 = arith.constant 0 : i32
    %c0_i32_0 = arith.constant 0 : i32
    %c0_i32_1 = arith.constant 0 : i32
    return %c0_i32, %c0_i32_0 : i32, i32
  }
  func.func @transform_3(%arg0: i32) -> (i32, i32) {
    %c0_i32 = arith.constant 0 : i32
    %c0_i32_0 = arith.constant 0 : i32
    %c0_i32_1 = arith.constant 0 : i32
    return %c0_i32, %c0_i32_0 : i32, i32
  }
  func.func @transform_4(%arg0: i32) -> (i32, i32) {
    %c0_i32 = arith.constant 0 : i32
    %c0_i32_0 = arith.constant 0 : i32
    %c0_i32_1 = arith.constant 0 : i32
    return %c0_i32, %c0_i32_0 : i32, i32
  }
  func.func @transform_5(%arg0: i32) -> (i32, i32) {
    %c0_i32 = arith.constant 0 : i32
    %c0_i32_0 = arith.constant 0 : i32
    %c0_i32_1 = arith.constant 0 : i32
    return %c0_i32, %c0_i32_0 : i32, i32
  }
  func.func @transform_6(%arg0: i32) -> (i32, i32) {
    %c0_i32 = arith.constant 0 : i32
    %c0_i32_0 = arith.constant 0 : i32
    %c0_i32_1 = arith.constant 0 : i32
    return %c0_i32, %c0_i32_0 : i32, i32
  }
  func.func @transform_7(%arg0: i32) -> (i32, i32) {
    %c0_i32 = arith.constant 0 : i32
    %c0_i32_0 = arith.constant 0 : i32
    %c0_i32_1 = arith.constant 0 : i32
    return %c0_i32, %c0_i32_0 : i32, i32
  }
  func.func @transform_8(%arg0: i32) -> (i32, i32) {
    %c0_i32 = arith.constant 0 : i32
    %c0_i32_0 = arith.constant 0 : i32
    %c0_i32_1 = arith.constant 0 : i32
    return %c0_i32, %c0_i32_0 : i32, i32
  }
  func.func @transform_9(%arg0: i32) -> (i32, i32) {
    %c0_i32 = arith.constant 0 : i32
    %c0_i32_0 = arith.constant 0 : i32
    %c0_i32_1 = arith.constant 0 : i32
    return %c0_i32, %c0_i32_0 : i32, i32
  }
  func.func @transform_10(%arg0: i32) -> (i32, i32) {
    %c0_i32 = arith.constant 0 : i32
    %c0_i32_0 = arith.constant 0 : i32
    %c0_i32_1 = arith.constant 0 : i32
    return %c0_i32, %c0_i32_0 : i32, i32
  }
  func.func @transform_11(%arg0: i32) -> (i32, i32) {
    %c0_i32 = arith.constant 0 : i32
    %c0_i32_0 = arith.constant 0 : i32
    %c0_i32_1 = arith.constant 0 : i32
    return %c0_i32, %c0_i32_0 : i32, i32
  }
  func.func @transform_12(%arg0: i32) -> (i32, i32) {
    %c0_i32 = arith.constant 0 : i32
    %c0_i32_0 = arith.constant 0 : i32
    %c0_i32_1 = arith.constant 0 : i32
    return %c0_i32, %c0_i32_0 : i32, i32
  }
  func.func @transform_13(%arg0: i32) -> (i32, i32) {
    %c0_i32 = arith.constant 0 : i32
    %c0_i32_0 = arith.constant 0 : i32
    %c0_i32_1 = arith.constant 0 : i32
    return %c0_i32, %c0_i32_0 : i32, i32
  }
  func.func @transform_14(%arg0: i32) -> (i32, i32) {
    %c0_i32 = arith.constant 0 : i32
    %c0_i32_0 = arith.constant 0 : i32
    %c0_i32_1 = arith.constant 0 : i32
    return %c0_i32, %c0_i32_0 : i32, i32
  }
  func.func @transform_15(%arg0: i32) -> (i32, i32) {
    %c0_i32 = arith.constant 0 : i32
    %c0_i32_0 = arith.constant 0 : i32
    %c0_i32_1 = arith.constant 0 : i32
    return %c0_i32, %c0_i32_0 : i32, i32
  }
  func.func @transform_16(%arg0: i32) -> (i32, i32) {
    %c0_i32 = arith.constant 0 : i32
    %c0_i32_0 = arith.constant 0 : i32
    %c0_i32_1 = arith.constant 0 : i32
    return %c0_i32, %c0_i32_0 : i32, i32
  }
  func.func @transform_17(%arg0: i32) -> (i32, i32) {
    %c0_i32 = arith.constant 0 : i32
    %c0_i32_0 = arith.constant 0 : i32
    %c0_i32_1 = arith.constant 0 : i32
    return %c0_i32, %c0_i32_0 : i32, i32
  }
  func.func @transform_18(%arg0: i32) -> (i32, i32) {
    %c0_i32 = arith.constant 0 : i32
    %c0_i32_0 = arith.constant 0 : i32
    %c0_i32_1 = arith.constant 0 : i32
    return %c0_i32, %c0_i32_0 : i32, i32
  }
  func.func @transform_19(%arg0: i32) -> (i32, i32) {
    %c0_i32 = arith.constant 0 : i32
    %c0_i32_0 = arith.constant 0 : i32
    %c0_i32_1 = arith.constant 0 : i32
    return %c0_i32, %c0_i32_0 : i32, i32
  }
  func.func @transform_20(%arg0: i32) -> (i32, i32) {
    %c0_i32 = arith.constant 0 : i32
    %c0_i32_0 = arith.constant 0 : i32
    %c0_i32_1 = arith.constant 0 : i32
    return %c0_i32, %c0_i32_0 : i32, i32
  }
  func.func @transform_21(%arg0: i32) -> (i32, i32) {
    %c0_i32 = arith.constant 0 : i32
    %c0_i32_0 = arith.constant 0 : i32
    %c0_i32_1 = arith.constant 0 : i32
    return %c0_i32, %c0_i32_0 : i32, i32
  }
  func.func @transform_22(%arg0: i32) -> (i32, i32) {
    %c0_i32 = arith.constant 0 : i32
    %c0_i32_0 = arith.constant 0 : i32
    %c0_i32_1 = arith.constant 0 : i32
    return %c0_i32, %c0_i32_0 : i32, i32
  }
  func.func @transform_23(%arg0: i32) -> (i32, i32) {
    %c0_i32 = arith.constant 0 : i32
    %c0_i32_0 = arith.constant 0 : i32
    %c0_i32_1 = arith.constant 0 : i32
    return %c0_i32, %c0_i32_0 : i32, i32
  }
  func.func @transform_24(%arg0: i32) -> (i32, i32) {
    %c0_i32 = arith.constant 0 : i32
    %c0_i32_0 = arith.constant 0 : i32
    %c0_i32_1 = arith.constant 0 : i32
    return %c0_i32, %c0_i32_0 : i32, i32
  }
  func.func @transform_25(%arg0: i32) -> (i32, i32) {
    %c0_i32 = arith.constant 0 : i32
    %c0_i32_0 = arith.constant 0 : i32
    %c0_i32_1 = arith.constant 0 : i32
    return %c0_i32, %c0_i32_0 : i32, i32
  }
  func.func @transform_26(%arg0: i32) -> (i32, i32) {
    %c0_i32 = arith.constant 0 : i32
    %c0_i32_0 = arith.constant 0 : i32
    %c0_i32_1 = arith.constant 0 : i32
    return %c0_i32, %c0_i32_0 : i32, i32
  }
  func.func @transform_27(%arg0: i32) -> (i32, i32) {
    %c0_i32 = arith.constant 0 : i32
    %c0_i32_0 = arith.constant 0 : i32
    %c0_i32_1 = arith.constant 0 : i32
    return %c0_i32, %c0_i32_0 : i32, i32
  }
  func.func @transform_28(%arg0: i32) -> (i32, i32) {
    %c0_i32 = arith.constant 0 : i32
    %c0_i32_0 = arith.constant 0 : i32
    %c0_i32_1 = arith.constant 0 : i32
    return %c0_i32, %c0_i32_0 : i32, i32
  }
  func.func @transform_29(%arg0: i32) -> (i32, i32) {
    %c0_i32 = arith.constant 0 : i32
    %c0_i32_0 = arith.constant 0 : i32
    %c0_i32_1 = arith.constant 0 : i32
    return %c0_i32, %c0_i32_0 : i32, i32
  }
  func.func @transform_30(%arg0: i32) -> (i32, i32) {
    %c0_i32 = arith.constant 0 : i32
    %c0_i32_0 = arith.constant 0 : i32
    %c0_i32_1 = arith.constant 0 : i32
    return %c0_i32, %c0_i32_0 : i32, i32
  }
  func.func @transform_31(%arg0: i32) -> (i32, i32) {
    %c0_i32 = arith.constant 0 : i32
    %c0_i32_0 = arith.constant 0 : i32
    %c0_i32_1 = arith.constant 0 : i32
    return %c0_i32, %c0_i32_0 : i32, i32
  }
  func.func @transform_32(%arg0: i32) -> (i32, i32) {
    %c0_i32 = arith.constant 0 : i32
    %c0_i32_0 = arith.constant 0 : i32
    %c0_i32_1 = arith.constant 0 : i32
    return %c0_i32, %c0_i32_0 : i32, i32
  }
  func.func @transform_33(%arg0: i32) -> (i32, i32) {
    %c0_i32 = arith.constant 0 : i32
    %c0_i32_0 = arith.constant 0 : i32
    %c0_i32_1 = arith.constant 0 : i32
    return %c0_i32, %c0_i32_0 : i32, i32
  }
  func.func @transform_34(%arg0: i32) -> (i32, i32) {
    %c0_i32 = arith.constant 0 : i32
    %c0_i32_0 = arith.constant 0 : i32
    %c0_i32_1 = arith.constant 0 : i32
    return %c0_i32, %c0_i32_0 : i32, i32
  }
  func.func @transform_35(%arg0: i32) -> (i32, i32) {
    %c0_i32 = arith.constant 0 : i32
    %c0_i32_0 = arith.constant 0 : i32
    %c0_i32_1 = arith.constant 0 : i32
    return %c0_i32, %c0_i32_0 : i32, i32
  }
  func.func @transform_36(%arg0: i32) -> (i32, i32) {
    %c0_i32 = arith.constant 0 : i32
    %c0_i32_0 = arith.constant 0 : i32
    %c0_i32_1 = arith.constant 0 : i32
    return %c0_i32, %c0_i32_0 : i32, i32
  }
  func.func @transform_37(%arg0: i32) -> (i32, i32) {
    %c0_i32 = arith.constant 0 : i32
    %c0_i32_0 = arith.constant 0 : i32
    %c0_i32_1 = arith.constant 0 : i32
    return %c0_i32, %c0_i32_0 : i32, i32
  }
  func.func @transform_38(%arg0: i32) -> (i32, i32) {
    %c0_i32 = arith.constant 0 : i32
    %c0_i32_0 = arith.constant 0 : i32
    %c0_i32_1 = arith.constant 0 : i32
    return %c0_i32, %c0_i32_0 : i32, i32
  }
  func.func @transform_39(%arg0: i32) -> (i32, i32) {
    %c0_i32 = arith.constant 0 : i32
    %c0_i32_0 = arith.constant 0 : i32
    %c0_i32_1 = arith.constant 0 : i32
    return %c0_i32, %c0_i32_0 : i32, i32
  }
  func.func @transform_40(%arg0: i32) -> (i32, i32) {
    %c0_i32 = arith.constant 0 : i32
    %c0_i32_0 = arith.constant 0 : i32
    %c0_i32_1 = arith.constant 0 : i32
    return %c0_i32, %c0_i32_0 : i32, i32
  }
  func.func @transform_41(%arg0: i32) -> (i32, i32) {
    %c0_i32 = arith.constant 0 : i32
    %c0_i32_0 = arith.constant 0 : i32
    %c0_i32_1 = arith.constant 0 : i32
    return %c0_i32, %c0_i32_0 : i32, i32
  }
  func.func @transform_42(%arg0: i32) -> (i32, i32) {
    %c0_i32 = arith.constant 0 : i32
    %c0_i32_0 = arith.constant 0 : i32
    %c0_i32_1 = arith.constant 0 : i32
    return %c0_i32, %c0_i32_0 : i32, i32
  }
  func.func @transform_43(%arg0: i32) -> (i32, i32, i32) {
    %c0_i32 = arith.constant 0 : i32
    %c0_i32_0 = arith.constant 0 : i32
    %c0_i32_1 = arith.constant 0 : i32
    return %arg0, %c0_i32, %c0_i32_0 : i32, i32, i32
  }
}

</mosaic_0001>

<bundles_post_ra>
// kernel: cae_forward.1
= control target key start
LH: loop header
LB: loop body
LE: loop exit
PB: predicated region body
PF: predicated region fallthrough
CT: control target
= control target key end

     0   :  { %s9648_s6 = smov 1   ;;  %s9649_s10 = smov 2   ;;  %s11591_s0 = inlined_call_operand.smem [shape: u32[44], index: -1, kind: input, shape index: {}] }
   0x1   :  { %s9722_s5 = sld [smem:[%s11591_s0]]   ;;  %s9650_s14 = smov 3  }
   0x2   :  { %s9727_s9 = sld [smem:[%s11591_s0 + %s9648_s6]]   ;;  %s9651_s18 = smov 4  }
   0x3   :  { %s9732_s13 = sld [smem:[%s11591_s0 + %s9649_s10]]   ;;  %s9652_s22 = smov 5  }
   0x4   :  { %s9737_s17 = sld [smem:[%s11591_s0 + %s9650_s14]]   ;;  %s9653_s26 = smov 6  }
   0x5   :  { %s9742_s21 = sld [smem:[%s11591_s0 + %s9651_s18]]   ;;  %s9654_s30 = smov 7  }
   0x6   :  { %s9747_s25 = sld [smem:[%s11591_s0 + %s9652_s22]]   ;;  %s9655_s4 = smov 8  }
   0x7   :  { %11638 = sst [smem:[#allocation36_spill]] %s9722_s5  ;;  %s9656_s10 = smov 9  }
   0x8   :  { %11639 = sst [smem:[#allocation37_spill]] %s9727_s9  ;;  %s9657_s15 = smov 10  }
   0x9   :  { %s9752_s29 = sld [smem:[%s11591_s0 + %s9653_s26]]   ;;  %s9658_s20 = smov 11  }
   0xa   :  { %11640 = sst [smem:[#allocation38_spill]] %s9737_s17  ;;  %s9659_s26 = smov 12  }
   0xb   :  { %11641 = sst [smem:[#allocation39_spill]] %s9742_s21  ;;  %s9660_s1 = smov 13  }
   0xc   :  { %11642 = sst [smem:[#allocation40_spill]] %s9747_s25  ;;  %s9661_s7 = smov 14  }
   0xd   :  { %s9757_s3 = sld [smem:[%s11591_s0 + %s9654_s30]]   ;;  %s9663_s22 = smov 16  }
   0xe   :  { %s9762_s8 = sld [smem:[%s11591_s0 + %s9655_s4]]   ;;  %s9664_s28 = smov 17  }
   0xf   :  { %s9767_s14 = sld [smem:[%s11591_s0 + %s9656_s10]]  }
  0x10   :  { %s9772_s19 = sld [smem:[%s11591_s0 + %s9657_s15]]   ;;  %s9662_s15 = smov 15  }
  0x11   :  { %s9777_s24 = sld [smem:[%s11591_s0 + %s9658_s20]]  }
  0x12   :  { %s9782_s30 = sld [smem:[%s11591_s0 + %s9659_s26]]  }
  0x13   :  { %11643 = sst [smem:[#allocation41_spill]] %s9757_s3 }
  0x14   :  { %11644 = sst [smem:[#allocation42_spill]] %s9762_s8 }
  0x15   :  { %s9787_s6 = sld [smem:[%s11591_s0 + %s9660_s1]]  }
  0x16   :  { %11645 = sst [smem:[#allocation43_spill]] %s9772_s19 }
  0x17   :  { %11646 = sst [smem:[#allocation44_spill]] %s9777_s24 }
  0x18   :  { %s9792_s12 = sld [smem:[%s11591_s0 + %s9661_s7]]   ;;  %s9665_s7 = smov 18  }
  0x19   :  { %s9797_s20 = sld [smem:[%s11591_s0 + %s9662_s15]]   ;;  %s9666_s15 = smov 19  }
  0x1a   :  { %s9802_s27 = sld [smem:[%s11591_s0 + %s9663_s22]]   ;;  %s9667_s22 = smov 20  }
  0x1b   :  { %11647 = sst [smem:[#allocation45_spill]] %s9787_s6 }
  0x1c   :  { %s9807_s4 = sld [smem:[%s11591_s0 + %s9664_s28]]   ;;  %s9668_s28 = smov 21  }
  0x1d   :  { %s9812_s6 = sld [smem:[%s11591_s0 + %s9665_s7]]   ;;  %s9669_s7 = smov 22  }
  0x1e   :  { %11648 = sst [smem:[#allocation46_spill]] %s9792_s12 }
  0x1f   :  { %s9817_s12 = sld [smem:[%s11591_s0 + %s9666_s15]]   ;;  %s9670_s15 = smov 23  }
  0x20   :  { %11649 = sst [smem:[#allocation47_spill]] %s9802_s27 }
  0x21   :  { %s9822_s27 = sld [smem:[%s11591_s0 + %s9667_s22]]   ;;  %s9671_s22 = smov 24  }
  0x22   :  { %11650 = sst [smem:[#allocation48_spill]] %s9807_s4 }
  0x23   :  { %11651 = sst [smem:[#allocation49_spill]] %s9812_s6 }
  0x24   :  { %s9827_s4 = sld [smem:[%s11591_s0 + %s9668_s28]]   ;;  %s9672_s28 = smov 25  }
  0x25   :  { %s9832_s19 = sld [smem:[%s11591_s0 + %s9669_s7]]   ;;  %s9673_s7 = smov 26  }
  0x26   :  { %s9837_s24 = sld [smem:[%s11591_s0 + %s9670_s15]]   ;;  %s9674_s15 = smov 27  }
  0x27   :  { %11652 = sst [smem:[#allocation50_spill]] %s9822_s27 }
  0x28   :  { %s9842_s27 = sld [smem:[%s11591_s0 + %s9671_s22]]   ;;  %s9675_s22 = smov 28  }
  0x29   :  { %s9852_s3 = sld [smem:[%s11591_s0 + %s9673_s7]]   ;;  %s9677_s7 = smov 30  }
  0x2a   :  { %11653 = sst [smem:[#allocation51_spill]] %s9827_s4 }
  0x2b   :  { %s9847_s4 = sld [smem:[%s11591_s0 + %s9672_s28]]   ;;  %s9676_s28 = smov 29  }
  0x2c   :  { %11654 = sst [smem:[#allocation52_spill]] %s9837_s24 }
  0x2d   :  { %s9857_s24 = sld [smem:[%s11591_s0 + %s9674_s15]]   ;;  %s9678_s15 = smov 31  }
  0x2e   :  { %s9862_s8 = sld [smem:[%s11591_s0 + %s9675_s22]]   ;;  %s9679_s22 = smov 32  }
  0x2f   :  { %11656 = sst [smem:[#allocation54_spill]] %s9852_s3 }
  0x30   :  { %s9872_s21 = sld [smem:[%s11591_s0 + %s9677_s7]]   ;;  %s9681_s7 = smov 34  }
  0x31   :  { %11655 = sst [smem:[#allocation53_spill]] %s9847_s4 }
  0x32   :  { %s9867_s4 = sld [smem:[%s11591_s0 + %s9676_s28]]   ;;  %s9680_s28 = smov 33  }
  0x33   :  { %s9877_s17 = sld [smem:[%s11591_s0 + %s9678_s15]]   ;;  %s9682_s15 = smov 35  }
  0x34   :  { %11657 = sst [smem:[#allocation55_spill]] %s9862_s8 }
  0x35   :  { %s9882_s8 = sld [smem:[%s11591_s0 + %s9679_s22]]   ;;  %s9683_s22 = smov 36  }
  0x36   :  { %s9892_s25 = sld [smem:[%s11591_s0 + %s9681_s7]]   ;;  %s9685_s7 = smov 38  }
  0x37   :  { %s9902_s9 = sld [smem:[%s11591_s0 + %s9683_s22]]   ;;  %s9687_s22 = smov 40  }
  0x38   :  { %11658 = sst [smem:[#allocation56_spill]] %s9867_s4 }
  0x39   :  { %11659 = sst [smem:[#allocation57_spill]] %s9877_s17 }
  0x3a   :  { %s9887_s4 = sld [smem:[%s11591_s0 + %s9680_s28]]   ;;  %s9684_s28 = smov 37  }
  0x3b   :  { %s9897_s17 = sld [smem:[%s11591_s0 + %s9682_s15]]   ;;  %s9686_s15 = smov 39  }
  0x3c   :  { %11660 = sst [smem:[#allocation58_spill]] %s9892_s25 }
  0x3d   :  { %11662 = sst [smem:[#allocation60_spill]] %s9902_s9 }
  0x3e   :  { %s9907_s5 = sld [smem:[%s11591_s0 + %s9684_s28]]   ;;  %s9688_s28 = smov 41  }
  0x3f   :  { %s9912_s25 = sld [smem:[%s11591_s0 + %s9685_s7]]   ;;  %s9689_s7 = smov 42  }
  0x40   :  { %s9922_s9 = sld [smem:[%s11591_s0 + %s9687_s22]]  }
  0x41   :  { %11661 = sst [smem:[#allocation59_spill]] %s9897_s17 }
  0x42   :  { %s9917_s17 = sld [smem:[%s11591_s0 + %s9686_s15]]   ;;  %s9690_s15 = smov 43  }
  0x44   :  { %11663 = sst [smem:[#allocation61_spill]] %s9907_s5 }
  0x45   :  { %11664 = sst [smem:[#allocation62_spill]] %s9912_s25 }
  0x46   :  { %s9927_s5 = sld [smem:[%s11591_s0 + %s9688_s28]]  }
  0x47   :  { %s9932_s25 = sld [smem:[%s11591_s0 + %s9689_s7]]  }
  0x48   :  { %11665 = sst [smem:[#allocation63_spill]] %s9917_s17 }
  0x49   :  { %s9937_s17 = sld [smem:[%s11591_s0 + %s9690_s15]]  }
  0x4a   :  { %92 = vsyncpa [#allocation3], 0 }
  0x4b   :  { %93 = vsyncpa [#allocation5], 0 }
  0x4c   :  { %94 = vsyncpa [#allocation8], 0 }
  0x4d   :  { %95 = vsyncpa [#allocation11], 0 }
  0x4e   :  { %96 = vsyncpa [#allocation14], 0 }
  0x4f   :  { %97 = vsyncpa [#allocation17], 0 }
  0x50   :  { %98 = vsyncpa [#allocation20], 0 }
  0x51   :  { %99 = vsyncpa [#allocation23], 0 }
  0x52   :  { %100 = vsyncpa [#allocation26], 0  ;;  %s9939_s22 = smov 0  }
  0x53 LB: > { %s11666_s3 = sld [smem:[#allocation54_spill]]  ;;  %s11667_s6 = sld [smem:[#allocation49_spill]]  ;;  %s9646_s22 = sphi %s9939_s22, %s106_s22  }
  0x54   : > { %s9691_s0 = smov [#allocation4]   ;;  %s9945_s26 = sadd.s32 4294967295, %s9646_s22  }
  0x55   : > { %s1083_s23 = sshll.u32 %s9691_s0, 4  ;;  %p7491_p0 = scmp.ge.s32.totalorder %s9646_s22, 1  ;;  %s9950_s23 = int_to_ptr.vmem [resolvable:$true] %s1083_s23 }
  0x56   : > { %p1045_p1 = scmp.lt.s32.totalorder %s9646_s22, 3  ;;  %p11616_p2 = scmp.eq.s32.totalorder %s9945_s26, 0 }
  0x57   : > { %s9692_s1 = smov [#allocation7]   ;;  %s9693_s7 = smov [#allocation10]  }
  0x58   : > { %p9952_p3 = pnand %p7491_p0, %p1045_p1  ;;  %s1117_s2 = sshll.u32 %s9692_s1, 4  ;;  %s9958_s2 = int_to_ptr.vmem [resolvable:$true] %s1117_s2 }
  0x59   : > { %s1151_s10 = sshll.u32 %s9693_s7, 4  ;;  %s9694_s15 = smov [#allocation13]   ;;  %s9966_s10 = int_to_ptr.vmem [resolvable:$true] %s1151_s10 }
  0x5a   : > { %s11668_s28 = scalar_select %p9952_p3, 1, 0 }
  0x5b   : > { %p8995_p4 = pneg %p9952_p3  ;;  %s1179_s16 = sshll.u32 %s9694_s15, 4  ;;  %s9968_s16 = int_to_ptr.vmem [resolvable:$true] %s1179_s16 }
  0x5c   : > { %s9156_s18 = scalar_lea.hbm %s9752_s29, 128 }
  0x5d   : > { %p9962_p5 = pnand %p11616_p2, %p8995_p4  ;;  %p9157_p6 = scmp.ne.s32.totalorder %s9752_s29, %s9156_s18 }
  0x5e   : > { %p9163_p10 = scmp.lt.u32.totalorder %s9156_s18, %s9752_s29 }
  0x5f   : > { %p9974_p7 = pneg %p9962_p5 }
  0x61   : > { %p9159_p8 = pnand %p9974_p7, %p9157_p6 }
  0x63   : > { %p9160_p9 = pneg %p9159_p8 }
  0x65   : > { %p9165_p11 = pnand %p9163_p10, %p9160_p9 }
  0x67   : > { %9168 = shalt.err (!%p9165_p11)
}
  0x68   : > { %s9169_s1 = scalar_lea.vmem %s9950_s23, 128  ;;  %p9177_p1 = scmp.lt.s32.totalorder %s9950_s23, %s9950_s23 }
  0x69   : > { %p9170_p12 = scmp.ne.s32.totalorder %s9950_s23, %s9169_s1  ;;  %p9178_p4 = scmp.lt.s32.totalorder %s9169_s1, %s9169_s1 }
  0x6b   : > { %p9172_p13 = pnand %p9170_p12, %p9974_p7  ;;  %p9179_p2 = por %p9178_p4, %p9177_p1 }
  0x6d   : > { %p9173_p0 = pneg %p9172_p13 }
  0x6f   : > { %p9180_p3 = pnand %p9179_p2, %p9173_p0 }
  0x71   : > { %9183 = shalt.err (!%p9180_p3)
}
  0x72   : > { %9001 = dma.hbm_to_vmem [thread:$0]  (!%p9962_p5), %s9752_s29, 128, %s9950_s23, [#allocation5]  }
  0x73   : > { %s9184_s7 = scalar_lea.hbm %s9782_s30, 128 }
  0x74   : > { %p9185_p6 = scmp.ne.s32.totalorder %s9782_s30, %s9184_s7  ;;  %p9191_p10 = scmp.lt.u32.totalorder %s9184_s7, %s9782_s30 }
  0x76   : > { %p9187_p8 = pnand %p9185_p6, %p9974_p7 }
  0x78   : > { %p9188_p9 = pneg %p9187_p8 }
  0x7a   : > { %p9193_p11 = pnand %p9191_p10, %p9188_p9 }
  0x7c   : > { %9196 = shalt.err (!%p9193_p11)
}
  0x7d   : > { %s9197_s15 = scalar_lea.vmem %s9958_s2, 128  ;;  %p9205_p13 = scmp.lt.s32.totalorder %s9958_s2, %s9958_s2 }
  0x7e   : > { %p9198_p2 = scmp.ne.s32.totalorder %s9958_s2, %s9197_s15  ;;  %p9206_p0 = scmp.lt.s32.totalorder %s9197_s15, %s9197_s15 }
  0x80   : > { %p9200_p3 = pnand %p9198_p2, %p9974_p7  ;;  %p9207_p1 = por %p9206_p0, %p9205_p13 }
  0x82   : > { %p9201_p12 = pneg %p9200_p3 }
  0x84   : > { %p9208_p4 = pnand %p9207_p1, %p9201_p12 }
  0x86   : > { %9211 = shalt.err (!%p9208_p4)
}
  0x87   : > { %9007 = dma.hbm_to_vmem [thread:$0]  (!%p9962_p5), %s9782_s30, 128, %s9958_s2, [#allocation8]  }
  0x88   : > { %s9212_s23 = scalar_lea.hbm %s11667_s6, 128 }
  0x89   : > { %p9213_p6 = scmp.ne.s32.totalorder %s11667_s6, %s9212_s23  ;;  %p9219_p10 = scmp.lt.u32.totalorder %s9212_s23, %s11667_s6 }
  0x8b   : > { %p9215_p8 = pnand %p9213_p6, %p9974_p7 }
  0x8d   : > { %p9216_p9 = pneg %p9215_p8 }
  0x8f   : > { %p9221_p11 = pnand %p9219_p10, %p9216_p9 }
  0x91   : > { %9224 = shalt.err (!%p9221_p11)
}
  0x92   : > { %s9225_s18 = scalar_lea.vmem %s9966_s10, 128  ;;  %p9233_p13 = scmp.lt.s32.totalorder %s9966_s10, %s9966_s10 }
  0x93   : > { %p9226_p2 = scmp.ne.s32.totalorder %s9966_s10, %s9225_s18  ;;  %p9234_p0 = scmp.lt.s32.totalorder %s9225_s18, %s9225_s18 }
  0x95   : > { %p9228_p3 = pnand %p9226_p2, %p9974_p7  ;;  %p9235_p1 = por %p9234_p0, %p9233_p13 }
  0x97   : > { %p9229_p12 = pneg %p9228_p3 }
  0x99   : > { %p9236_p4 = pnand %p9235_p1, %p9229_p12 }
  0x9b   : > { %9239 = shalt.err (!%p9236_p4)
}
  0x9c   : > { %9013 = dma.hbm_to_vmem [thread:$0]  (!%p9962_p5), %s11667_s6, 128, %s9966_s10, [#allocation11]  }
  0x9d   : > { %s9240_s2 = scalar_lea.hbm %s9832_s19, 128 }
  0x9e   : > { %p9241_p6 = scmp.ne.s32.totalorder %s9832_s19, %s9240_s2  ;;  %p9247_p10 = scmp.lt.u32.totalorder %s9240_s2, %s9832_s19 }
  0xa0   : > { %p9243_p8 = pnand %p9241_p6, %p9974_p7 }
  0xa2   : > { %p9244_p9 = pneg %p9243_p8 }
  0xa4   : > { %p9249_p11 = pnand %p9247_p10, %p9244_p9 }
  0xa6   : > { %9252 = shalt.err (!%p9249_p11)
}
  0xa7   : > { %s9253_s1 = scalar_lea.vmem %s9968_s16, 128  ;;  %p9261_p13 = scmp.lt.s32.totalorder %s9968_s16, %s9968_s16 }
  0xa8   : > { %p9254_p2 = scmp.ne.s32.totalorder %s9968_s16, %s9253_s1  ;;  %p9262_p0 = scmp.lt.s32.totalorder %s9253_s1, %s9253_s1 }
  0xaa   : > { %p9256_p3 = pnand %p9254_p2, %p9974_p7  ;;  %p9263_p1 = por %p9262_p0, %p9261_p13 }
  0xac   : > { %p9257_p12 = pneg %p9256_p3 }
  0xae   : > { %p9264_p4 = pnand %p9263_p1, %p9257_p12 }
  0xb0   : > { %9267 = shalt.err (!%p9264_p4)
}
  0xb1   : > { %9019 = dma.hbm_to_vmem [thread:$0]  (!%p9962_p5), %s9832_s19, 128, %s9968_s16, [#allocation14]  }
  0xb2   : > { %s9695_s10 = smov [#allocation16]   ;;  %s9268_s15 = scalar_lea.hbm %s11666_s3, 1152 }
  0xb3   : > { %s1206_s7 = sshll.u32 %s9695_s10, 4  ;;  %p9269_p6 = scmp.ne.s32.totalorder %s11666_s3, %s9268_s15  ;;  %s1207_s7 = int_to_ptr.vmem [resolvable:$true] %s1206_s7 }
  0xb4   : > { %p9275_p10 = scmp.lt.u32.totalorder %s9268_s15, %s11666_s3 }
  0xb5   : > { %p9271_p8 = pnand %p9269_p6, %p9974_p7 }
  0xb7   : > { %p9272_p9 = pneg %p9271_p8 }
  0xb9   : > { %p9277_p11 = pnand %p9275_p10, %p9272_p9 }
  0xbb   : > { %9280 = shalt.err (!%p9277_p11)
}
  0xbc   : > { %s9281_s23 = scalar_lea.vmem %s1207_s7, 1152  ;;  %p9289_p13 = scmp.lt.s32.totalorder %s1207_s7, %s1207_s7 }
  0xbd   : > { %p9282_p2 = scmp.ne.s32.totalorder %s1207_s7, %s9281_s23  ;;  %p9290_p0 = scmp.lt.s32.totalorder %s9281_s23, %s9281_s23 }
  0xbf   : > { %p9284_p3 = pnand %p9282_p2, %p9974_p7  ;;  %p9291_p1 = por %p9290_p0, %p9289_p13 }
  0xc1   : > { %p9285_p12 = pneg %p9284_p3 }
  0xc3   : > { %p9292_p4 = pnand %p9291_p1, %p9285_p12 }
  0xc5   : > { %9295 = shalt.err (!%p9292_p4)
}
  0xc6   : > { %s11619_s16 = smov 128   ;;  %s11621_s18 = smov 8  }
  0xc7   : > { %9025 = dma.hbm_to_vmem [thread:$0]  (!%p9962_p5), %s11666_s3, 1152, %s1207_s7, [#allocation17], %s11619_s16, %s11619_s16, %s11621_s18  }
  0xc8   : > { %s9698_s2 = smov [#allocation19]   ;;  %s9699_s10 = smov [#allocation22]  }
  0xc9   : > { %s1237_s1 = sshll.u32 %s9698_s2, 4  ;;  %s1264_s15 = sshll.u32 %s9699_s10, 4  ;;  %s1238_s1 = int_to_ptr.vmem [resolvable:$true] %s1237_s1  ;;  %s10049_s15 = int_to_ptr.vmem [resolvable:$true] %s1264_s15 }
  0xca   : > { %s9296_s23 = scalar_lea.hbm %s9872_s21, 128 }
  0xcb   : > { %p9297_p6 = scmp.ne.s32.totalorder %s9872_s21, %s9296_s23  ;;  %p9303_p10 = scmp.lt.u32.totalorder %s9296_s23, %s9872_s21 }
  0xcd   : > { %p9299_p8 = pnand %p9297_p6, %p9974_p7 }
  0xcf   : > { %p9300_p9 = pneg %p9299_p8 }
  0xd1   : > { %p9305_p11 = pnand %p9303_p10, %p9300_p9 }
  0xd3   : > { %9308 = shalt.err (!%p9305_p11)
}
  0xd4   : > { %s9309_s6 = scalar_lea.vmem %s1238_s1, 128  ;;  %p9317_p13 = scmp.lt.s32.totalorder %s1238_s1, %s1238_s1 }
  0xd5   : > { %p9310_p2 = scmp.ne.s32.totalorder %s1238_s1, %s9309_s6  ;;  %p9318_p0 = scmp.lt.s32.totalorder %s9309_s6, %s9309_s6 }
  0xd7   : > { %p9312_p3 = pnand %p9310_p2, %p9974_p7  ;;  %p9319_p1 = por %p9318_p0, %p9317_p13 }
  0xd9   : > { %p9313_p12 = pneg %p9312_p3 }
  0xdb   : > { %p9320_p4 = pnand %p9319_p1, %p9313_p12 }
  0xdd   : > { %9323 = shalt.err (!%p9320_p4)
}
  0xde   : > { %9031 = dma.hbm_to_vmem [thread:$0]  (!%p9962_p5), %s9872_s21, 128, %s1238_s1, [#allocation20]  }
  0xdf   : > { %s9324_s7 = scalar_lea.hbm %s9887_s4, 128 }
  0xe0   : > { %p9325_p6 = scmp.ne.s32.totalorder %s9887_s4, %s9324_s7  ;;  %p9331_p10 = scmp.lt.u32.totalorder %s9324_s7, %s9887_s4 }
  0xe2   : > { %p9327_p8 = pnand %p9325_p6, %p9974_p7 }
  0xe4   : > { %p9328_p9 = pneg %p9327_p8 }
  0xe6   : > { %p9333_p11 = pnand %p9331_p10, %p9328_p9 }
  0xe8   : > { %9336 = shalt.err (!%p9333_p11)
}
  0xe9   : > { %s9337_s6 = scalar_lea.vmem %s10049_s15, 128  ;;  %p9345_p13 = scmp.lt.s32.totalorder %s10049_s15, %s10049_s15 }
  0xea   : > { %p9338_p2 = scmp.ne.s32.totalorder %s10049_s15, %s9337_s6  ;;  %p9346_p0 = scmp.lt.s32.totalorder %s9337_s6, %s9337_s6 }
  0xec   : > { %p9340_p3 = pnand %p9338_p2, %p9974_p7  ;;  %p9347_p1 = por %p9346_p0, %p9345_p13 }
  0xee   : > { %p9341_p12 = pneg %p9340_p3 }
  0xf0   : > { %p9348_p4 = pnand %p9347_p1, %p9341_p12 }
  0xf2   : > { %9351 = shalt.err (!%p9348_p4)
}
  0xf3   : > { %9037 = dma.hbm_to_vmem [thread:$0]  (!%p9962_p5), %s9887_s4, 128, %s10049_s15, [#allocation23]  }
  0xf4   : > { %s9700_s2 = smov [#allocation2]   ;;  %s9352_s10 = scalar_lea.hbm %s9732_s13, 4608 }
  0xf5   : > { %s1060_s1 = sshll.u32 %s9700_s2, 4  ;;  %p9353_p6 = scmp.ne.s32.totalorder %s9732_s13, %s9352_s10  ;;  %s1061_s1 = int_to_ptr.vmem [resolvable:$true] %s1060_s1 }
  0xf6   : > { %p9359_p10 = scmp.lt.u32.totalorder %s9352_s10, %s9732_s13 }
  0xf7   : > { %p9355_p8 = pnand %p9353_p6, %p9974_p7 }
  0xf9   : > { %p9356_p9 = pneg %p9355_p8 }
  0xfb   : > { %p9361_p11 = pnand %p9359_p10, %p9356_p9 }
  0xfd   : > { %9364 = shalt.err (!%p9361_p11)
}
  0xfe   : > { %s9365_s23 = scalar_lea.vmem %s1061_s1, 4608  ;;  %p9373_p13 = scmp.lt.s32.totalorder %s1061_s1, %s1061_s1 }
  0xff   : > { %p9366_p2 = scmp.ne.s32.totalorder %s1061_s1, %s9365_s23  ;;  %p9374_p0 = scmp.lt.s32.totalorder %s9365_s23, %s9365_s23 }
 0x101   : > { %p9368_p3 = pnand %p9366_p2, %p9974_p7  ;;  %p9375_p1 = por %p9374_p0, %p9373_p13 }
 0x103   : > { %p9369_p12 = pneg %p9368_p3 }
 0x105   : > { %p9376_p4 = pnand %p9375_p1, %p9369_p12 }
 0x107   : > { %9379 = shalt.err (!%p9376_p4)
}
 0x108   : > { %s9701_s15 = smov 256   ;;  %s9702_s7 = smov 16  }
 0x109   : > { %8998 = dma.hbm_to_vmem [thread:$0]  (!%p9962_p5), %s9732_s13, 4608, %s1061_s1, [#allocation3], %s9701_s15, %s9701_s15, %s9702_s7  }
 0x10a   : > { %s9703_s6 = smov [#allocation6]   ;;  %s9704_s10 = smov [#allocation9]  }
 0x10b   : > { %s1100_s2 = sshll.u32 %s9703_s6, 4  ;;  %s1134_s16 = sshll.u32 %s9704_s10, 4  ;;  %s1101_s2 = int_to_ptr.vmem [resolvable:$true] %s1100_s2  ;;  %s1135_s16 = int_to_ptr.vmem [resolvable:$true] %s1134_s16 }
 0x10c   : > { %s9380_s18 = scalar_lea.hbm %s9767_s14, 128 }
 0x10d   : > { %p9381_p6 = scmp.ne.s32.totalorder %s9767_s14, %s9380_s18  ;;  %p9387_p10 = scmp.lt.u32.totalorder %s9380_s18, %s9767_s14 }
 0x10f   : > { %p9383_p8 = pnand %p9381_p6, %p9974_p7 }
 0x111   : > { %p9384_p9 = pneg %p9383_p8 }
 0x113   : > { %p9389_p11 = pnand %p9387_p10, %p9384_p9 }
 0x115   : > { %9392 = shalt.err (!%p9389_p11)
}
 0x116   : > { %s9393_s23 = scalar_lea.vmem %s1101_s2, 128  ;;  %p9401_p13 = scmp.lt.s32.totalorder %s1101_s2, %s1101_s2 }
 0x117   : > { %p9394_p2 = scmp.ne.s32.totalorder %s1101_s2, %s9393_s23  ;;  %p9402_p0 = scmp.lt.s32.totalorder %s9393_s23, %s9393_s23 }
 0x119   : > { %p9396_p3 = pnand %p9394_p2, %p9974_p7  ;;  %p9403_p1 = por %p9402_p0, %p9401_p13 }
 0x11b   : > { %p9397_p12 = pneg %p9396_p3 }
 0x11d   : > { %p9404_p4 = pnand %p9403_p1, %p9397_p12 }
 0x11f   : > { %9407 = shalt.err (!%p9404_p4)
}
 0x120   : > { %9004 = dma.hbm_to_vmem [thread:$0]  (!%p9962_p5), %s9767_s14, 128, %s1101_s2, [#allocation5]  }
 0x121   : > { %s9408_s18 = scalar_lea.hbm %s9797_s20, 128 }
 0x122   : > { %p9409_p6 = scmp.ne.s32.totalorder %s9797_s20, %s9408_s18  ;;  %p9415_p10 = scmp.lt.u32.totalorder %s9408_s18, %s9797_s20 }
 0x124   : > { %p9411_p8 = pnand %p9409_p6, %p9974_p7 }
 0x126   : > { %p9412_p9 = pneg %p9411_p8 }
 0x128   : > { %p9417_p11 = pnand %p9415_p10, %p9412_p9 }
 0x12a   : > { %9420 = shalt.err (!%p9417_p11)
}
 0x12b   : > { %s9421_s1 = scalar_lea.vmem %s1135_s16, 128  ;;  %p9429_p13 = scmp.lt.s32.totalorder %s1135_s16, %s1135_s16 }
 0x12c   : > { %p9422_p2 = scmp.ne.s32.totalorder %s1135_s16, %s9421_s1  ;;  %p9430_p0 = scmp.lt.s32.totalorder %s9421_s1, %s9421_s1 }
 0x12e   : > { %p9424_p3 = pnand %p9422_p2, %p9974_p7  ;;  %p9431_p1 = por %p9430_p0, %p9429_p13 }
 0x130   : > { %p9425_p12 = pneg %p9424_p3 }
 0x132   : > { %p9432_p4 = pnand %p9431_p1, %p9425_p12 }
 0x134   : > { %9435 = shalt.err (!%p9432_p4)
}
 0x135   : > { %9010 = dma.hbm_to_vmem [thread:$0]  (!%p9962_p5), %s9797_s20, 128, %s1135_s16, [#allocation8]  }
 0x136   : > { %s9705_s15 = smov [#allocation12]   ;;  %s9706_s6 = smov [#allocation15]  }
 0x137   : > { %s1162_s7 = sshll.u32 %s9705_s15, 4  ;;  %s1193_s2 = sshll.u32 %s9706_s6, 4  ;;  %s1163_s7 = int_to_ptr.vmem [resolvable:$true] %s1162_s7  ;;  %s1194_s2 = int_to_ptr.vmem [resolvable:$true] %s1193_s2 }
 0x138   : > { %s9436_s10 = scalar_lea.hbm %s9817_s12, 128 }
 0x139   : > { %p9437_p6 = scmp.ne.s32.totalorder %s9817_s12, %s9436_s10  ;;  %p9443_p10 = scmp.lt.u32.totalorder %s9436_s10, %s9817_s12 }
 0x13b   : > { %p9439_p8 = pnand %p9437_p6, %p9974_p7 }
 0x13d   : > { %p9440_p9 = pneg %p9439_p8 }
 0x13f   : > { %p9445_p11 = pnand %p9443_p10, %p9440_p9 }
 0x141   : > { %9448 = shalt.err (!%p9445_p11)
}
 0x142   : > { %s9449_s23 = scalar_lea.vmem %s1163_s7, 128  ;;  %p9457_p13 = scmp.lt.s32.totalorder %s1163_s7, %s1163_s7 }
 0x143   : > { %p9450_p2 = scmp.ne.s32.totalorder %s1163_s7, %s9449_s23  ;;  %p9458_p0 = scmp.lt.s32.totalorder %s9449_s23, %s9449_s23 }
 0x145   : > { %p9452_p3 = pnand %p9450_p2, %p9974_p7  ;;  %p9459_p1 = por %p9458_p0, %p9457_p13 }
 0x147   : > { %p9453_p12 = pneg %p9452_p3 }
 0x149   : > { %p9460_p4 = pnand %p9459_p1, %p9453_p12 }
 0x14b   : > { %9463 = shalt.err (!%p9460_p4)
}
 0x14c   : > { %9016 = dma.hbm_to_vmem [thread:$0]  (!%p9962_p5), %s9817_s12, 128, %s1163_s7, [#allocation11]  }
 0x14d   : > { %s9464_s16 = scalar_lea.hbm %s9842_s27, 128 }
 0x14e   : > { %p9465_p6 = scmp.ne.s32.totalorder %s9842_s27, %s9464_s16  ;;  %p9471_p10 = scmp.lt.u32.totalorder %s9464_s16, %s9842_s27 }
 0x150   : > { %p9467_p8 = pnand %p9465_p6, %p9974_p7 }
 0x152   : > { %p9468_p9 = pneg %p9467_p8 }
 0x154   : > { %p9473_p11 = pnand %p9471_p10, %p9468_p9 }
 0x156   : > { %9476 = shalt.err (!%p9473_p11)
}
 0x157   : > { %s9477_s18 = scalar_lea.vmem %s1194_s2, 128  ;;  %p9485_p13 = scmp.lt.s32.totalorder %s1194_s2, %s1194_s2 }
 0x158   : > { %p9478_p2 = scmp.ne.s32.totalorder %s1194_s2, %s9477_s18  ;;  %p9486_p0 = scmp.lt.s32.totalorder %s9477_s18, %s9477_s18 }
 0x15a   : > { %p9480_p3 = pnand %p9478_p2, %p9974_p7  ;;  %p9487_p1 = por %p9486_p0, %p9485_p13 }
 0x15c   : > { %p9481_p12 = pneg %p9480_p3 }
 0x15e   : > { %p9488_p4 = pnand %p9487_p1, %p9481_p12 }
 0x160   : > { %9491 = shalt.err (!%p9488_p4)
}
 0x161   : > { %9022 = dma.hbm_to_vmem [thread:$0]  (!%p9962_p5), %s9842_s27, 128, %s1194_s2, [#allocation14]  }
 0x162   : > { %s9707_s1 = smov [#allocation18]   ;;  %s9708_s7 = smov [#allocation21]  }
 0x163   : > { %s1220_s15 = sshll.u32 %s9707_s1, 4  ;;  %s1250_s6 = sshll.u32 %s9708_s7, 4  ;;  %s1221_s15 = int_to_ptr.vmem [resolvable:$true] %s1220_s15  ;;  %s1251_s6 = int_to_ptr.vmem [resolvable:$true] %s1250_s6 }
 0x164   : > { %s9492_s10 = scalar_lea.hbm %s9857_s24, 128 }
 0x165   : > { %p9493_p6 = scmp.ne.s32.totalorder %s9857_s24, %s9492_s10  ;;  %p9499_p10 = scmp.lt.u32.totalorder %s9492_s10, %s9857_s24 }
 0x167   : > { %p9495_p8 = pnand %p9493_p6, %p9974_p7 }
 0x169   : > { %p9496_p9 = pneg %p9495_p8 }
 0x16b   : > { %p9501_p11 = pnand %p9499_p10, %p9496_p9 }
 0x16d   : > { %9504 = shalt.err (!%p9501_p11)
}
 0x16e   : > { %s9505_s23 = scalar_lea.vmem %s1221_s15, 128  ;;  %p9513_p13 = scmp.lt.s32.totalorder %s1221_s15, %s1221_s15 }
 0x16f   : > { %p9506_p2 = scmp.ne.s32.totalorder %s1221_s15, %s9505_s23  ;;  %p9514_p0 = scmp.lt.s32.totalorder %s9505_s23, %s9505_s23 }
 0x171   : > { %p9508_p3 = pnand %p9506_p2, %p9974_p7  ;;  %p9515_p1 = por %p9514_p0, %p9513_p13 }
 0x173   : > { %p9509_p12 = pneg %p9508_p3 }
 0x175   : > { %p9516_p4 = pnand %p9515_p1, %p9509_p12 }
 0x177   : > { %9519 = shalt.err (!%p9516_p4)
}
 0x178   : > { %9028 = dma.hbm_to_vmem [thread:$0]  (!%p9962_p5), %s9857_s24, 128, %s1221_s15, [#allocation17]  }
 0x179   : > { %s9520_s2 = scalar_lea.hbm %s9882_s8, 6144 }
 0x17a   : > { %p9521_p6 = scmp.ne.s32.totalorder %s9882_s8, %s9520_s2  ;;  %p9527_p10 = scmp.lt.u32.totalorder %s9520_s2, %s9882_s8 }
 0x17c   : > { %p9523_p8 = pnand %p9521_p6, %p9974_p7 }
 0x17e   : > { %p9524_p9 = pneg %p9523_p8 }
 0x180   : > { %p9529_p11 = pnand %p9527_p10, %p9524_p9 }
 0x182   : > { %9532 = shalt.err (!%p9529_p11)
}
 0x183   : > { %s9533_s16 = scalar_lea.vmem %s1251_s6, 6144  ;;  %p9541_p13 = scmp.lt.s32.totalorder %s1251_s6, %s1251_s6 }
 0x184   : > { %p9534_p2 = scmp.ne.s32.totalorder %s1251_s6, %s9533_s16  ;;  %p9542_p0 = scmp.lt.s32.totalorder %s9533_s16, %s9533_s16 }
 0x186   : > { %p9536_p3 = pnand %p9534_p2, %p9974_p7  ;;  %p9543_p1 = por %p9542_p0, %p9541_p13 }
 0x188   : > { %p9537_p12 = pneg %p9536_p3 }
 0x18a   : > { %p9544_p4 = pnand %p9543_p1, %p9537_p12 }
 0x18c   : > { %9547 = shalt.err (!%p9544_p4)
}
 0x18d   : > { %s11671_s18 = smov 8   ;;  %s11672_s1 = smov 128  }
 0x18e   : > { %s11673_s15 = sld [smem:[#allocation59_spill]]  ;;  %s9709_s7 = smov [#allocation24]  }
 0x18f   : > { %9034 = dma.hbm_to_vmem [thread:$0]  (!%p9962_p5), %s9882_s8, 6144, %s1251_s6, [#allocation20], %s11672_s1, %s11672_s1, %s11671_s18  }
 0x190   : > { %s1277_s10 = sshll.u32 %s9709_s7, 4  ;;  %s9710_s23 = smov [#allocation25]   ;;  %s1278_s10 = int_to_ptr.vmem [resolvable:$true] %s1277_s10 }
 0x191   : > { %s1291_s2 = sshll.u32 %s9710_s23, 4  ;;  %s1292_s2 = int_to_ptr.vmem [resolvable:$true] %s1291_s2 }
 0x194   : > { %s9548_s16 = scalar_lea.hbm %s11673_s15, 6144 }
 0x195   : > { %p9549_p6 = scmp.ne.s32.totalorder %s11673_s15, %s9548_s16  ;;  %p9555_p10 = scmp.lt.u32.totalorder %s9548_s16, %s11673_s15 }
 0x197   : > { %p9551_p8 = pnand %p9549_p6, %p9974_p7 }
 0x199   : > { %p9552_p9 = pneg %p9551_p8 }
 0x19b   : > { %p9557_p11 = pnand %p9555_p10, %p9552_p9 }
 0x19d   : > { %9560 = shalt.err (!%p9557_p11)
}
 0x19e   : > { %s9561_s3 = scalar_lea.vmem %s1278_s10, 6144  ;;  %p9569_p13 = scmp.lt.s32.totalorder %s1278_s10, %s1278_s10 }
 0x19f   : > { %p9562_p2 = scmp.ne.s32.totalorder %s1278_s10, %s9561_s3  ;;  %p9570_p0 = scmp.lt.s32.totalorder %s9561_s3, %s9561_s3 }
 0x1a1   : > { %p9564_p3 = pnand %p9562_p2, %p9974_p7  ;;  %p9571_p1 = por %p9570_p0, %p9569_p13 }
 0x1a3   : > { %p9565_p12 = pneg %p9564_p3 }
 0x1a5   : > { %p9572_p4 = pnand %p9571_p1, %p9565_p12 }
 0x1a7   : > { %9575 = shalt.err (!%p9572_p4)
}
 0x1a8   : > { %s11674_s6 = sld [smem:[#allocation60_spill]] }
 0x1a9   : > { %9040 = dma.hbm_to_vmem [thread:$0]  (!%p9962_p5), %s11673_s15, 6144, %s1278_s10, [#allocation23], %s11672_s1, %s11672_s1, %s11671_s18  }
 0x1ae   : > { %s9576_s7 = scalar_lea.hbm %s11674_s6, 128 }
 0x1af   : > { %p9577_p6 = scmp.ne.s32.totalorder %s11674_s6, %s9576_s7  ;;  %p9583_p10 = scmp.lt.u32.totalorder %s9576_s7, %s11674_s6 }
 0x1b1   : > { %p9579_p8 = pnand %p9577_p6, %p9974_p7 }
 0x1b3   : > { %p9580_p9 = pneg %p9579_p8 }
 0x1b5   : > { %p9585_p11 = pnand %p9583_p10, %p9580_p9 }
 0x1b7   : > { %9588 = shalt.err (!%p9585_p11)
}
 0x1b8   : > { %s9589_s3 = scalar_lea.vmem %s1292_s2, 128  ;;  %p9597_p13 = scmp.lt.s32.totalorder %s1292_s2, %s1292_s2 }
 0x1b9   : > { %p9590_p2 = scmp.ne.s32.totalorder %s1292_s2, %s9589_s3  ;;  %p9598_p0 = scmp.lt.s32.totalorder %s9589_s3, %s9589_s3 }
 0x1bb   : > { %p9592_p3 = pnand %p9590_p2, %p9974_p7  ;;  %p9599_p1 = por %p9598_p0, %p9597_p13 }
 0x1bd   : > { %p9593_p12 = pneg %p9592_p3 }
 0x1bf   : > { %p9600_p4 = pnand %p9599_p1, %p9593_p12 }
 0x1c1   : > { %9603 = shalt.err (!%p9600_p4)
}
 0x1c2   : > { %9043 = dma.hbm_to_vmem [thread:$0]  (!%p9962_p5), %s11674_s6, 128, %s1292_s2, [#allocation26]  }
 0x1c3   : > { %p11675_p6 = scmp.ne.s32.totalorder %s11668_s28, 0 }
 0x1c4   : > { %p11676_p8 = scmp.eq.s32.totalorder (!%p11675_p6), %s9945_s26, 0 }
 0x1c5   : > { %1330 = sbr.rel (%p11675_p6) target bundleno = 9227 (0x240b), region = 192 }
 0x1cc   : > { %9609 = dma.done.wait (%p11676_p8), [#allocation3], 4608   ;;  %p11677_p9 = pmov %p11676_p8 }
 0x1cd   : > { %p11678_p7 = pmov %p11676_p8 }
 0x1ce   : > { %9611 = vsyncadd (%p11677_p9), [#allocation3], 4294962688 }
 0x1cf   : > { %9613 = dma.done.wait (%p11678_p7), [#allocation5], 256   ;;  %p11679_p10 = pmov %p11678_p7 }
 0x1d0   : > { %p11680_p11 = pmov %p11678_p7 }
 0x1d1   : > { %9615 = vsyncadd (%p11679_p10), [#allocation5], 4294967040 }
 0x1d2   : > { %9617 = dma.done.wait (%p11680_p11), [#allocation8], 256   ;;  %p11681_p5 = pmov %p11678_p7 }
 0x1d4   : > { %9619 = vsyncadd (%p11681_p5), [#allocation8], 4294967040  ;;  %p11682_p2 = pmov %p11681_p5 }
 0x1d6   : > { %9621 = dma.done.wait (%p11682_p2), [#allocation11], 256   ;;  %p11683_p3 = pmov %p11682_p2 }
 0x1d7   : > { %p11684_p12 = pmov %p11682_p2 }
 0x1d8   : > { %9623 = vsyncadd (%p11683_p3), [#allocation11], 4294967040 }
 0x1d9   : > { %9625 = dma.done.wait (%p11684_p12), [#allocation14], 256   ;;  %p11685_p13 = pmov %p11682_p2 }
 0x1da   : > { %p11686_p0 = pmov %p11682_p2 }
 0x1db   : > { %9627 = vsyncadd (%p11685_p13), [#allocation14], 4294967040 }
 0x1dc   : > { %9629 = dma.done.wait (%p11686_p0), [#allocation17], 1280   ;;  %p11687_p1 = pmov %p11686_p0 }
 0x1dd   : > { %p11688_p4 = pmov %p11686_p0 }
 0x1de   : > { %9631 = vsyncadd (%p11687_p1), [#allocation17], 4294966016 }
 0x1df   : > { %9633 = dma.done.wait (%p11688_p4), [#allocation20], 6272   ;;  %p11689_p6 = pmov %p11686_p0 }
 0x1e0   : > { %p11690_p8 = pmov %p11686_p0 }
 0x1e1   : > { %9635 = vsyncadd (%p11689_p6), [#allocation20], 4294961024 }
 0x1e2   : > { %9637 = dma.done.wait (%p11690_p8), [#allocation23], 6272   ;;  %p11691_p9 = pmov %p11686_p0 }
 0x1e3   : > { %p11692_p7 = pmov %p11686_p0 }
 0x1e4   : > { %9639 = vsyncadd (%p11691_p9), [#allocation23], 4294961024 }
 0x1e5   : > { %9641 = dma.done.wait (%p11692_p7), [#allocation26], 128   ;;  %p11693_p10 = pmov %p11686_p0 }
 0x1e6   : > { %s11694_s28 = sld [smem:[#allocation36_spill]]  ;;  %s11695_s11 = sld [smem:[#allocation37_spill]]  ;;  %v9711_v0 = vmov 0.0   ;;  %vm9712_vm0 = vmmov 0   ;;  %v1576_v6 = vld [vmem:[#allocation2 + $0x68] sm:$0xff]  ;;  %v1578_v7 = vld [vmem:[#allocation2 + $0x78] sm:$0xff] }
 0x1e7   : > { %9643 = vsyncadd (%p11693_p10), [#allocation26], 4294967168  ;;  %p1494_p11 = scmp.lt.s32.totalorder %s9945_s26, 1  ;;  %8079 = vmatprep.subr.bf16.mxu1 %v9711_v0  ;;  %8081 = vmatprep.mubr.msk.bf16.mxu1 %vm9712_vm0, %v9711_v0  ;;  %v1588_v9 = vpack.c.bf16 %v1578_v7, %v1576_v6  ;;  %v1575_v10 = vld [vmem:[#allocation2 + $0x60] sm:$0xff]  ;;  %v1577_v11 = vld [vmem:[#allocation2 + $0x70] sm:$0xff]  ;;  %vm1529_vm1 = vcmask 130048  }
 0x1e8   : > { %8073 = vmatprep.subr.bf16.mxu0 %v9711_v0  ;;  %8075 = vmatprep.mubr.msk.bf16.mxu0 %vm9712_vm0, %v9711_v0  ;;  %v1580_v12 = vld [vmem:[#allocation2 + $0x88] sm:$0xff]  ;;  %v1587_v13 = vpack.c.bf16 %v1577_v11, %v1575_v10  ;;  %v1582_v14 = vld [vmem:[#allocation2 + $0x98] sm:$0xff]  ;;  %v1579_v19 = vld [vmem:[#allocation2 + $0x80] sm:$0xff]  ;;  %v9713_v28 = vmov 0   ;;  %vm1641_vm2 = vcmask 392192   ;;  %s11696_s1 = sld [smem:[#allocation40_spill]] }
 0x1e9   : > { %s11720_s26 = smov (!%p1494_p11, %s9945_s26), 1  ;;  %v1590_v17 = vpack.c.bf16 %v1582_v14, %v1580_v12  ;;  %v1581_v20 = vld [vmem:[#allocation2 + $0x90] sm:$0xff]  ;;  %v1584_v22 = vld [vmem:[#allocation2 + $0xa8] sm:$0xff]  ;;  %v1586_v23 = vld [vmem:[#allocation2 + $0xb8] sm:$0xff]  ;;  %s11697_s10 = sld [smem:[#allocation38_spill]]  ;;  %vm2307_vm3 = vcmask 1043456  }
 0x1ea   : > { %s11624_s0 = sshll.u32 %s11720_s26, 4  ;;  %v1589_v21 = vpack.c.bf16 %v1581_v20, %v1579_v19  ;;  %v1592_v24 = vpack.c.bf16 %v1586_v23, %v1584_v22  ;;  %v1583_v25 = vld [vmem:[#allocation2 + $0xa0] sm:$0xff]  ;;  %v1585_v26 = vld [vmem:[#allocation2 + $0xb0] sm:$0xff]  ;;  %v1509_v29 = vld [vmem:[#allocation2 + $0x8] sm:$0xff]  ;;  %s11698_s23 = sld [smem:[#allocation39_spill]]  ;;  %vm2303_vm4 = vcmask 64512  }
 0x1eb   : > { %v1591_v27 = vpack.c.bf16 %v1585_v26, %v1583_v25  ;;  %v1511_v30 = vld [vmem:[#allocation2 + $0x18] sm:$0xff]  ;;  %v1508_v31 = vld [vmem:[#allocation2] sm:$0xff]  ;;  %v1510_v33 = vld [vmem:[#allocation2 + $0x10] sm:$0xff]  ;;  %s11699_s2 = sld [smem:[#allocation42_spill]]  ;;  %s11700_s16 = sld [smem:[#allocation41_spill]]  ;;  %vm3736_vm5 = vcmask 195584  }
 0x1ec   : > { %s1498_s18 = scalar_lea.vmem %s11694_s28, %s11624_s0  ;;  %v1593_v3 = vld [vmem:[%s11695_s11 + $0x10] sm:$0xff]  ;;  %v1594_v5 = vld [vmem:[%s11695_s11 + $0x18] sm:$0xff]  ;;  %v1526_v15 = vld [vmem:[%s11695_s11] sm:$0xff]  ;;  %v1521_v32 = vpack.c.bf16 %v1511_v30, %v1509_v29  ;;  %v1520_v36 = vpack.c.bf16 %v1510_v33, %v1508_v31  ;;  %s11701_s7 = sld [smem:[#allocation44_spill]]  ;;  %vm4436_vm6 = vcmask 523264  }
 0x1ed   : > { %v1505_v1 = vld [vmem:[%s1498_s18] sm:$0xff]  ;;  %v1506_v2 = vld [vmem:[%s1498_s18 + $0x8] sm:$0xff]  ;;  %v1595_v8 = vpack.c.bf16 %v1594_v5, %v1593_v3  ;;  %v1515_v35 = vld [vmem:[#allocation2 + $0x38] sm:$0xff]  ;;  %s11702_s3 = sld [smem:[#allocation43_spill]]  ;;  %s11703_s28 = sld [smem:[#allocation46_spill]] }
 0x1ee   : > { %v10225_v4 = vpack.c.bf16 %v1506_v2, %v1505_v1  ;;  %v1527_v16 = vld [vmem:[%s11695_s11 + $0x8] sm:$0xff]  ;;  %v1512_v38 = vld [vmem:[#allocation2 + $0x20] sm:$0xff]  ;;  %v1514_v39 = vld [vmem:[#allocation2 + $0x30] sm:$0xff]  ;;  %s11704_s18 = sld [smem:[#allocation45_spill]]  ;;  %s11705_s0 = sld [smem:[#allocation48_spill]] }
 0x1ef   : > { %v1528_v18 = vpack.c.bf16 %v1527_v16, %v1526_v15  ;;  %v1513_v34 = vld [vmem:[#allocation2 + $0x28] sm:$0xff]  ;;  %v1519_v41 = vld [vmem:[#allocation2 + $0x58] sm:$0xff]  ;;  %v1522_v42 = vpack.c.bf16 %v1514_v39, %v1512_v38  ;;  %v1516_v44 = vld [vmem:[#allocation2 + $0x40] sm:$0xff] }
 0x1f0   : > { %8080 = vmatpush3.bf16.msra.mxu1 %v10225_v4  ;;  %8074 = vmatpush3.bf16.msra.mxu0 %v10225_v4  ;;  %v1523_v37 = vpack.c.bf16 %v1515_v35, %v1513_v34  ;;  %v1517_v40 = vld [vmem:[#allocation2 + $0x48] sm:$0xff]  ;;  %v1518_v45 = vld [vmem:[#allocation2 + $0x50] sm:$0xff]  ;;  %v1752_v57 = vld [vmem:[%s11695_s11 + $0x20] sm:$0xff] }
 0x1f1   : > { %1645 = vmatprep.subr.bf16.mxu1 %v1588_v9  ;;  %1691 = vmatprep.subr.bf16.mxu0 %v1521_v32  ;;  %v1525_v43 = vpack.c.bf16 %v1519_v41, %v1517_v40  ;;  %v1524_v46 = vpack.c.bf16 %v1518_v45, %v1516_v44  ;;  %v1753_v58 = vld [vmem:[%s11695_s11 + $0x28] sm:$0xff]  ;;  %v1737_v61 = vld [vmem:[#allocation2 + $0xd8] sm:$0xff]  ;;  %v1734_v63 = vld [vmem:[#allocation2 + $0xc0] sm:$0xff] }
 0x1f2   : > { %v1754_v59 = vpack.c.bf16 %v1753_v58, %v1752_v57  ;;  %v1735_v60 = vld [vmem:[#allocation2 + $0xc8] sm:$0xff]  ;;  %v1736_v1 = vld [vmem:[#allocation2 + $0xd0] sm:$0xff]  ;;  %v1738_v6 = vld [vmem:[#allocation2 + $0xe0] sm:$0xff] }
 0x1f3   : > { %8082 = vmatmul.mubr.msk.bf16.vlgmr.msra.gmra.mrb[0].mxu1 %vm1529_vm1, %v1595_v8  ;;  %8076 = vmatmul.mubr.msk.bf16.vlgmr.msra.gmra.mrb[0].mxu0 %vm1529_vm1, %v1528_v18  ;;  %v1747_v62 = vpack.c.bf16 %v1737_v61, %v1735_v60  ;;  %v1746_v2 = vpack.c.bf16 %v1736_v1, %v1734_v63  ;;  %v1739_v3 = vld [vmem:[#allocation2 + $0xe8] sm:$0xff]  ;;  %v1740_v7 = vld [vmem:[#allocation2 + $0xf0] sm:$0xff]  ;;  %v1745_v10 = vld [vmem:[#allocation2 + $0x118] sm:$0xff] }
 0x1f4   : > { %1646 = vmatpush1.bf16.msra.mxu1 %v1587_v13  ;;  %1677 = vmatprep.mubr.bf16.mxu1 %v9713_v28  ;;  %v1748_v8 = vpack.c.bf16 %v1740_v7, %v1738_v6  ;;  %v1743_v9 = vld [vmem:[#allocation2 + $0x108] sm:$0xff]  ;;  %v1742_v12 = vld [vmem:[#allocation2 + $0x100] sm:$0xff]  ;;  %v1744_v13 = vld [vmem:[#allocation2 + $0x110] sm:$0xff] }
 0x1f5   : > { %1647 = vmatprep.subr.bf16.mxu1 %v1590_v17  ;;  %1723 = vmatprep.mubr.bf16.mxu0 %v9713_v28  ;;  %v1751_v11 = vpack.c.bf16 %v1745_v10, %v1743_v9  ;;  %v1750_v14 = vpack.c.bf16 %v1744_v13, %v1742_v12  ;;  %v1881_v25 = vld [vmem:[%s11696_s1 + $0x88] sm:$0xff]  ;;  %v1864_v26 = vld [vmem:[%s11696_s1] sm:$0xff]  ;;  %v1882_v30 = vld [vmem:[%s11696_s1 + $0x90] sm:$0xff] }
 0x1f6   : > { %1692 = vmatpush1.bf16.msra.mxu0 %v1520_v36  ;;  %v1865_v29 = vld [vmem:[%s11696_s1 + $0x8] sm:$0xff]  ;;  %v1883_v31 = vld [vmem:[%s11696_s1 + $0x98] sm:$0xff]  ;;  %v1866_v34 = vld [vmem:[%s11696_s1 + $0x10] sm:$0xff] }
 0x1f7   : > { %1693 = vmatprep.subr.bf16.mxu0 %v1523_v37  ;;  %v1896_v32 = vpack.c.bf16 %v1865_v29, %v1864_v26  ;;  %v1905_v33 = vpack.c.bf16 %v1883_v31, %v1882_v30  ;;  %v1867_v35 = vld [vmem:[%s11696_s1 + $0x18] sm:$0xff]  ;;  %v1884_v36 = vld [vmem:[%s11696_s1 + $0xa0] sm:$0xff]  ;;  %v1885_v37 = vld [vmem:[%s11696_s1 + $0xa8] sm:$0xff] }
 0x1f8   : > { %1648 = vmatpush1.bf16.msra.mxu1 %v1589_v21  ;;  %v1897_v38 = vpack.c.bf16 %v1867_v35, %v1866_v34  ;;  %v1906_v39 = vpack.c.bf16 %v1885_v37, %v1884_v36  ;;  %v1868_v40 = vld [vmem:[%s11696_s1 + $0x20] sm:$0xff]  ;;  %v1869_v41 = vld [vmem:[%s11696_s1 + $0x28] sm:$0xff]  ;;  %v1874_v58 = vld [vmem:[%s11696_s1 + $0x50] sm:$0xff] }
 0x1f9   : > { %1649 = vmatprep.subr.bf16.mxu1 %v1592_v24  ;;  %v1880_v24 = vld [vmem:[%s11696_s1 + $0x80] sm:$0xff]  ;;  %v1898_v44 = vpack.c.bf16 %v1869_v41, %v1868_v40  ;;  %v1893_v61 = vld [vmem:[%s11696_s1 + $0xe8] sm:$0xff]  ;;  %v1978_v35 = vld [vmem:[%s11696_s1 + $0x190] sm:$0xff] }
 0x1fa   : > { %1694 = vmatpush1.bf16.msra.mxu0 %v1522_v42  ;;  %v1886_v42 = vld [vmem:[%s11696_s1 + $0xb0] sm:$0xff]  ;;  %v1892_v60 = vld [vmem:[%s11696_s1 + $0xe0] sm:$0xff]  ;;  %v1977_v30 = vld [vmem:[%s11696_s1 + $0x188] sm:$0xff] }
 0x1fb   : > { %1695 = vmatprep.subr.bf16.mxu0 %v1525_v43  ;;  %v1887_v43 = vld [vmem:[%s11696_s1 + $0xb8] sm:$0xff]  ;;  %v1910_v63 = vpack.c.bf16 %v1893_v61, %v1892_v60  ;;  %v1876_v1 = vld [vmem:[%s11696_s1 + $0x60] sm:$0xff]  ;;  %v1961_v34 = vld [vmem:[%s11696_s1 + $0x108] sm:$0xff] }
 0x1fc   : > { %1650 = vmatpush1.bf16.msra.mxu1 %v1591_v27  ;;  %v1904_v27 = vpack.c.bf16 %v1881_v25, %v1880_v24  ;;  %v1907_v45 = vpack.c.bf16 %v1887_v43, %v1886_v42  ;;  %v1979_v36 = vld [vmem:[%s11696_s1 + $0x198] sm:$0xff]  ;;  %v1962_v40 = vld [vmem:[%s11696_s1 + $0x110] sm:$0xff]  ;;  %v1980_v42 = vld [vmem:[%s11696_s1 + $0x1a0] sm:$0xff] }
 0x1fd   : > { %8085 = vmatprep.subr.bf16.mxu1 %v9711_v0  ;;  %v1963_v41 = vld [vmem:[%s11696_s1 + $0x118] sm:$0xff]  ;;  %v1981_v43 = vld [vmem:[%s11696_s1 + $0x1a8] sm:$0xff]  ;;  %v1986_v60 = vld [vmem:[%s11696_s1 + $0x1d0] sm:$0xff] }
 0x1fe   : > { %1696 = vmatpush1.bf16.msra.mxu0 %v1524_v46  ;;  %v1870_v46 = vld [vmem:[%s11696_s1 + $0x30] sm:$0xff]  ;;  %v1987_v61 = vld [vmem:[%s11696_s1 + $0x1d8] sm:$0xff] }
 0x1ff   : > { %1803 = vmatprep.subr.bf16.mxu0 %v1747_v62 }
 0x2c6   : > { %v1633_v47 = vpop.f32.mrb[0].mxu1  ;;  %v1567_v48 = vpop.f32.mrb[0].mxu0 }
 0x2c7   : > { %v8083_v49 = vpop.f32.mrb[1].mxu1  ;;  %v8077_v50 = vpop.f32.mrb[1].mxu0 }
 0x2c8   : > { %v1636_v51 = vpop.f32.mrb[2].mxu1  ;;  %v1570_v52 = vpop.f32.mrb[2].mxu0  ;;  %v1889_v49 = vld [vmem:[%s11696_s1 + $0xc8] sm:$0xff] }
 0x2c9   : > { %v1640_v53 = vpack.c.bf16 %v1636_v51, %v1633_v47  ;;  %v8084_v54 = vpop.f32.mrb[3].mxu1  ;;  %v1574_v55 = vpack.c.bf16 %v1570_v52, %v1567_v48  ;;  %v8078_v56 = vpop.f32.mrb[3].mxu0  ;;  %v1871_v47 = vld [vmem:[%s11696_s1 + $0x38] sm:$0xff]  ;;  %v1888_v48 = vld [vmem:[%s11696_s1 + $0xc0] sm:$0xff] }
 0x2ca   : > { %v1899_v50 = vpack.c.bf16 %v1871_v47, %v1870_v46  ;;  %v1908_v51 = vpack.c.bf16 %v1889_v49, %v1888_v48  ;;  %v1872_v52 = vld [vmem:[%s11696_s1 + $0x40] sm:$0xff]  ;;  %v1890_v54 = vld [vmem:[%s11696_s1 + $0xd0] sm:$0xff]  ;;  %v1965_v47 = vld [vmem:[%s11696_s1 + $0x128] sm:$0xff] }
 0x2cb   : > { %7532 = vmatmul.mubr.msk.bf16.vlgmr.msra.gmra.mrb[4].mxu1 %vm1641_vm2, %v1640_v53  ;;  %7533 = vmatmul.mubr.msk.bf16.vlgmr.msra.gmra.mrb[4].mxu0 %vm1641_vm2, %v1574_v55  ;;  %v1873_v53 = vld [vmem:[%s11696_s1 + $0x48] sm:$0xff]  ;;  %v1891_v55 = vld [vmem:[%s11696_s1 + $0xd8] sm:$0xff]  ;;  %v1964_v46 = vld [vmem:[%s11696_s1 + $0x120] sm:$0xff] }
 0x2cc   : > { %8086 = vmatpush3.bf16.msra.mxu1 %v10225_v4  ;;  %8087 = vmatprep.mubr.msk.bf16.mxu1 %vm9712_vm0, %v9711_v0  ;;  %v1741_v4 = vld [vmem:[#allocation2 + $0xf8] sm:$0xff]  ;;  %v1900_v56 = vpack.c.bf16 %v1873_v53, %v1872_v52  ;;  %v1909_v57 = vpack.c.bf16 %v1891_v55, %v1890_v54  ;;  %v1982_v48 = vld [vmem:[%s11696_s1 + $0x1b0] sm:$0xff]  ;;  %v1984_v54 = vld [vmem:[%s11696_s1 + $0x1c0] sm:$0xff] }
 0x2cd   : > { %1835 = vmatprep.mubr.bf16.mxu0 %v9713_v28  ;;  %1804 = vmatpush1.bf16.msra.mxu0 %v1746_v2  ;;  %v1749_v5 = vpack.c.bf16 %v1741_v4, %v1739_v3  ;;  %v1877_v2 = vld [vmem:[%s11696_s1 + $0x68] sm:$0xff]  ;;  %v1983_v49 = vld [vmem:[%s11696_s1 + $0x1b8] sm:$0xff]  ;;  %v1966_v52 = vld [vmem:[%s11696_s1 + $0x130] sm:$0xff] }
 0x2ce   : > { %v1902_v3 = vpack.c.bf16 %v1877_v2, %v1876_v1  ;;  %v1967_v53 = vld [vmem:[%s11696_s1 + $0x138] sm:$0xff]  ;;  %v1985_v55 = vld [vmem:[%s11696_s1 + $0x1c8] sm:$0xff]  ;;  %v1970_v1 = vld [vmem:[%s11696_s1 + $0x150] sm:$0xff] }
 0x2cf   : > { %1805 = vmatprep.subr.bf16.mxu0 %v1749_v5  ;;  %v1850_v5 = vld [vmem:[%s11697_s10] sm:$0xff]  ;;  %v1971_v2 = vld [vmem:[%s11696_s1 + $0x158] sm:$0xff] }
 0x2d1   : > { %1806 = vmatpush1.bf16.msra.mxu0 %v1748_v8  ;;  %v1851_v8 = vld [vmem:[%s11697_s10 + $0x8] sm:$0xff] }
 0x2d2   : > { %1807 = vmatprep.subr.bf16.mxu0 %v1751_v11  ;;  %v1852_v11 = vld [vmem:[%s11697_s10 + $0x10] sm:$0xff] }
 0x2d3   : > { %8088 = vmatmul.mubr.msk.bf16.vlgmr.msra.gmra.mrb[8].mxu1 %vm1529_vm1, %v1754_v59  ;;  %v1875_v59 = vld [vmem:[%s11696_s1 + $0x58] sm:$0xff] }
 0x2d4   : > { %1949 = vmatprep.mubr.bf16.mxu1 %v9713_v28  ;;  %v1901_v62 = vpack.c.bf16 %v1875_v59, %v1874_v58  ;;  %v1968_v58 = vld [vmem:[%s11696_s1 + $0x140] sm:$0xff]  ;;  %v1969_v59 = vld [vmem:[%s11696_s1 + $0x148] sm:$0xff] }
 0x2d5   : > { %1808 = vmatpush1.bf16.msra.mxu0 %v1750_v14 }
 0x2d6   : > { %7629 = vmatprep.subr.bf16.mxu0 %v1904_v27  ;;  %v1912_v27 = vld [vmem:[%s11698_s23] sm:$0xff] }
 0x39e   : > { %v10247_v15 = vpop.f32.mrb[4].mxu1 }
 0x39f   : > { %v10249_v16 = vpop.f32.mrb[5].mxu1 }
 0x3a0   : > { %v10251_v17 = vpop.f32.mrb[6].mxu1 }
 0x3a1   : > { %v10253_v18 = vpop.f32.mrb[7].mxu1 }
 0x3a6   : > { %v1792_v19 = vpop.f32.mrb[8].mxu1 }
 0x3a7   : > { %v8089_v20 = vpop.f32.mrb[9].mxu1 }
 0x3a8   : > { %v1795_v21 = vpop.f32.mrb[10].mxu1 }
 0x3a9   : > { %v1799_v22 = vpack.c.bf16 %v1795_v21, %v1792_v19  ;;  %v8090_v23 = vpop.f32.mrb[11].mxu1  ;;  %v1853_v19 = vld [vmem:[%s11697_s10 + $0x18] sm:$0xff] }
 0x3ab   : > { %7535 = vmatmul.mubr.msk.bf16.vlgmr.msra.gmra.mrb[4].mxu0 %vm1641_vm2, %v1799_v22 }
 0x3ac   : > { %7630 = vmatpush3.bf16.msra.mxu0 %v1896_v32  ;;  %v2008_v32 = vld [vmem:[%s11698_s23 + $0x8] sm:$0xff] }
 0x3ad   : > { %7631 = vmatprep.subr.bf16.mxu0 %v1905_v33  ;;  %v1960_v33 = vld [vmem:[%s11696_s1 + $0x100] sm:$0xff]  ;;  %v2009_v37 = vpack.c.bf16 %v2008_v32, %v2008_v32  ;;  %v2153_v32 = vld [vmem:[%s11696_s1 + $0x288] sm:$0xff] }
 0x3b0   : > { %7632 = vmatpush3.bf16.msra.mxu0 %v1897_v38  ;;  %v1992_v38 = vpack.c.bf16 %v1961_v34, %v1960_v33 }
 0x3b1   : > { %7633 = vmatprep.subr.bf16.mxu0 %v1906_v39  ;;  %v2001_v39 = vpack.c.bf16 %v1979_v36, %v1978_v35 }
 0x3b4   : > { %7634 = vmatpush3.bf16.msra.mxu0 %v1898_v44  ;;  %v1993_v44 = vpack.c.bf16 %v1963_v41, %v1962_v40  ;;  %v2136_v40 = vld [vmem:[%s11696_s1 + $0x200] sm:$0xff]  ;;  %v2137_v41 = vld [vmem:[%s11696_s1 + $0x208] sm:$0xff] }
 0x3b5   : > { %7635 = vmatprep.subr.bf16.mxu0 %v1907_v45  ;;  %v2002_v45 = vpack.c.bf16 %v1981_v43, %v1980_v42  ;;  %v2154_v42 = vld [vmem:[%s11696_s1 + $0x290] sm:$0xff]  ;;  %v2155_v43 = vld [vmem:[%s11696_s1 + $0x298] sm:$0xff] }
 0x3b8   : > { %7636 = vmatpush3.bf16.msra.mxu0 %v1899_v50  ;;  %v1994_v50 = vpack.c.bf16 %v1965_v47, %v1964_v46  ;;  %v2177_v46 = vpack.c.bf16 %v2155_v43, %v2154_v42  ;;  %v2138_v47 = vld [vmem:[%s11696_s1 + $0x210] sm:$0xff]  ;;  %v2278_v42 = vld [vmem:[%s11699_s2 + $0x8] sm:$0xff] }
 0x3b9   : > { %7637 = vmatprep.subr.bf16.mxu0 %v1908_v51  ;;  %v2003_v51 = vpack.c.bf16 %v1983_v49, %v1982_v48  ;;  %v2139_v48 = vld [vmem:[%s11696_s1 + $0x218] sm:$0xff]  ;;  %v2156_v49 = vld [vmem:[%s11696_s1 + $0x2a0] sm:$0xff]  ;;  %v2279_v43 = vld [vmem:[%s11699_s2 + $0x10] sm:$0xff] }
 0x3bc   : > { %7638 = vmatpush3.bf16.msra.mxu0 %v1900_v56  ;;  %v1995_v56 = vpack.c.bf16 %v1967_v53, %v1966_v52  ;;  %v2140_v52 = vld [vmem:[%s11696_s1 + $0x220] sm:$0xff]  ;;  %v2141_v53 = vld [vmem:[%s11696_s1 + $0x228] sm:$0xff] }
 0x3bd   : > { %7639 = vmatprep.subr.bf16.mxu0 %v1909_v57  ;;  %v2004_v57 = vpack.c.bf16 %v1985_v55, %v1984_v54  ;;  %v2170_v54 = vpack.c.bf16 %v2141_v53, %v2140_v52  ;;  %v2158_v55 = vld [vmem:[%s11696_s1 + $0x2b0] sm:$0xff]  ;;  %v2285_v52 = vld [vmem:[%s11699_s2 + $0x40] sm:$0xff]  ;;  %v2286_v53 = vld [vmem:[%s11699_s2 + $0x48] sm:$0xff] }
 0x3c0   : > { %7640 = vmatpush3.bf16.msra.mxu0 %v1901_v62  ;;  %v1996_v62 = vpack.c.bf16 %v1969_v59, %v1968_v58  ;;  %v2142_v58 = vld [vmem:[%s11696_s1 + $0x230] sm:$0xff]  ;;  %v2143_v59 = vld [vmem:[%s11696_s1 + $0x238] sm:$0xff] }
 0x3c1   : > { %7641 = vmatprep.subr.bf16.mxu0 %v1910_v63  ;;  %v2005_v63 = vpack.c.bf16 %v1987_v61, %v1986_v60  ;;  %v2171_v60 = vpack.c.bf16 %v2143_v59, %v2142_v58  ;;  %v2160_v61 = vld [vmem:[%s11696_s1 + $0x2c0] sm:$0xff]  ;;  %v2290_v59 = vld [vmem:[%s11699_s2 + $0x68] sm:$0xff] }
 0x3c2   : > { %v2289_v58 = vld [vmem:[%s11699_s2 + $0x60] sm:$0xff] }
 0x3c4   : > { %7642 = vmatpush3.bf16.msra.mxu0 %v1902_v3  ;;  %v1988_v3 = vld [vmem:[%s11696_s1 + $0x1e0] sm:$0xff] }
 0x47e   : > { %v1837_v4 = vpop.f32.mrb[4].mxu0 }
 0x47f   : > { %v8911_v6 = vadd.f32 %v1837_v4, %v10247_v15  ;;  %v1839_v7 = vpop.f32.mrb[5].mxu0  ;;  %v1989_v4 = vld [vmem:[%s11696_s1 + $0x1e8] sm:$0xff] }
 0x480   : > { %v8912_v9 = vadd.f32 %v1839_v7, %v10249_v16  ;;  %v1841_v10 = vpop.f32.mrb[6].mxu0  ;;  %v1972_v7 = vld [vmem:[%s11696_s1 + $0x160] sm:$0xff] }
 0x481   : > { %v1854_v12 = vadd.f32 %v8911_v6, %v1850_v5  ;;  %v8913_v13 = vadd.f32 %v1841_v10, %v10251_v17  ;;  %v1843_v14 = vpop.f32.mrb[7].mxu0  ;;  %v1976_v17 = vld [vmem:[%s11696_s1 + $0x180] sm:$0xff]  ;;  %v1997_v5 = vpack.c.bf16 %v1971_v2, %v1970_v1  ;;  %v2006_v6 = vpack.c.bf16 %v1989_v4, %v1988_v3  ;;  %v1991_v10 = vld [vmem:[%s11696_s1 + $0x1f8] sm:$0xff]  ;;  %v2145_v2 = vld [vmem:[%s11696_s1 + $0x248] sm:$0xff] }
 0x482   : > { %v1855_v20 = vadd.f32 %v8912_v9, %v1851_v8  ;;  %v8914_v21 = vadd.f32 %v1843_v14, %v10253_v18  ;;  %v1913_v18 = vpack.c.bf16 %v1912_v27, %v1912_v27  ;;  %v2000_v31 = vpack.c.bf16 %v1977_v30, %v1976_v17  ;;  %v1973_v8 = vld [vmem:[%s11696_s1 + $0x168] sm:$0xff]  ;;  %v1990_v9 = vld [vmem:[%s11696_s1 + $0x1f0] sm:$0xff]  ;;  %v1975_v14 = vld [vmem:[%s11696_s1 + $0x178] sm:$0xff] }
 0x483   : > { %v1856_v22 = vadd.f32 %v8913_v13, %v1852_v11  ;;  %v1858_v15 = vmax.f32 %v1854_v12, 0.0  ;;  %v1998_v11 = vpack.c.bf16 %v1973_v8, %v1972_v7  ;;  %v2007_v12 = vpack.c.bf16 %v1991_v10, %v1990_v9  ;;  %v1974_v13 = vld [vmem:[%s11696_s1 + $0x170] sm:$0xff]  ;;  %v2147_v8 = vld [vmem:[%s11696_s1 + $0x258] sm:$0xff]  ;;  %v2164_v10 = vld [vmem:[%s11696_s1 + $0x2e0] sm:$0xff] }
 0x484   : > { %v1857_v23 = vadd.f32 %v8914_v21, %v1853_v19  ;;  %v1859_v25 = vmax.f32 %v1855_v20, 0.0  ;;  %v1999_v19 = vpack.c.bf16 %v1975_v14, %v1974_v13  ;;  %v1894_v20 = vld [vmem:[%s11696_s1 + $0xf0] sm:$0xff]  ;;  %v1895_v21 = vld [vmem:[%s11696_s1 + $0xf8] sm:$0xff]  ;;  %v2148_v13 = vld [vmem:[%s11696_s1 + $0x260] sm:$0xff] }
 0x485   : > { %v1860_v24 = vmax.f32 %v1856_v22, 0.0  ;;  %v1911_v22 = vpack.c.bf16 %v1895_v21, %v1894_v20  ;;  %v2162_v4 = vld [vmem:[%s11696_s1 + $0x2d0] sm:$0xff]  ;;  %v2149_v14 = vld [vmem:[%s11696_s1 + $0x268] sm:$0xff]  ;;  %v2167_v21 = vld [vmem:[%s11696_s1 + $0x2f8] sm:$0xff] }
 0x486   : > { %v1861_v16 = vmax.f32 %v1857_v23, 0.0  ;;  %v1878_v23 = vld [vmem:[%s11696_s1 + $0x70] sm:$0xff] }
 0x487   : > { %v10292_v26 = vpack.c.bf16 %v1860_v24, %v1858_v15  ;;  %v1879_v15 = vld [vmem:[%s11696_s1 + $0x78] sm:$0xff]  ;;  %7643 = vmatprep.subr.bf16.mxu0 %v1911_v22  ;;  %v2146_v7 = vld [vmem:[%s11696_s1 + $0x250] sm:$0xff] }
 0x488   : > { %v10295_v29 = vpack.c.bf16 %v1861_v16, %v1859_v25  ;;  %v1903_v24 = vpack.c.bf16 %v1879_v15, %v1878_v23  ;;  %v2173_v9 = vpack.c.bf16 %v2147_v8, %v2146_v7  ;;  %v2166_v20 = vld [vmem:[%s11696_s1 + $0x2f0] sm:$0xff]  ;;  %v2151_v15 = vld [vmem:[%s11696_s1 + $0x278] sm:$0xff]  ;;  %v2301_v7 = vld [vmem:[%s11700_s16] sm:$0xff] }
 0x489   : > { %v2183_v22 = vpack.c.bf16 %v2167_v21, %v2166_v20  ;;  %v2150_v23 = vld [vmem:[%s11696_s1 + $0x270] sm:$0xff]  ;;  %v2355_v21 = vld [vmem:[%s11699_s2 + $0x98] sm:$0xff] }
 0x48a   : > { %1917 = vmatprep.subr.bf16.mxu1 %v10295_v29  ;;  %7644 = vmatpush3.bf16.msra.mxu0 %v1903_v24  ;;  %v2175_v24 = vpack.c.bf16 %v2151_v15, %v2150_v23  ;;  %v2354_v20 = vld [vmem:[%s11699_s2 + $0x90] sm:$0xff]  ;;  %v2356_v23 = vld [vmem:[%s11699_s2 + $0xa0] sm:$0xff]  ;;  %v2357_v15 = vld [vmem:[%s11699_s2 + $0xa8] sm:$0xff] }
 0x48b   : > { %1918 = vmatpush1.bf16.msra.mxu1 %v10292_v26  ;;  %8091 = vmatprep.subr.bf16.mxu0 %v9711_v0 }
 0x48c   : > { %2013 = vmatprep.subr.bf16.mxu1 %v10295_v29 }
 0x48e   : > { %7536 = vmatmul.mubr.msk.bf16.vlgmr.msra.gmra.mrb[12].mxu1 %vm1529_vm1, %v1913_v18 }
 0x48f   : > { %2014 = vmatpush1.bf16.msra.mxu1 %v10292_v26  ;;  %2045 = vmatprep.mubr.bf16.mxu1 %v9713_v28 }
 0x490   : > { %7607 = vmatprep.subr.bf16.mxu1 %v2000_v31  ;;  %v2152_v31 = vld [vmem:[%s11696_s1 + $0x280] sm:$0xff] }
 0x496   : > { %7537 = vmatmul.mubr.msk.bf16.vlgmr.msra.gmra.mrb[16].mxu1 %vm1529_vm1, %v2009_v37 }
 0x497   : > { %7608 = vmatpush3.bf16.msra.mxu1 %v1992_v38  ;;  %v2176_v38 = vpack.c.bf16 %v2153_v32, %v2152_v31 }
 0x498   : > { %7609 = vmatprep.subr.bf16.mxu1 %v2001_v39  ;;  %v2184_v39 = vld [vmem:[%s11698_s23 + $0x10] sm:$0xff] }
 0x49b   : > { %7610 = vmatpush3.bf16.msra.mxu1 %v1993_v44  ;;  %v2185_v44 = vpack.c.bf16 %v2184_v39, %v2184_v39 }
 0x49c   : > { %7611 = vmatprep.subr.bf16.mxu1 %v2002_v45  ;;  %v2168_v45 = vpack.c.bf16 %v2137_v41, %v2136_v40  ;;  %v2277_v41 = vld [vmem:[%s11699_s2] sm:$0xff] }
 0x49f   : > { %7612 = vmatpush3.bf16.msra.mxu1 %v1994_v50  ;;  %v2169_v50 = vpack.c.bf16 %v2139_v48, %v2138_v47  ;;  %v2281_v47 = vld [vmem:[%s11699_s2 + $0x20] sm:$0xff]  ;;  %v2282_v48 = vld [vmem:[%s11699_s2 + $0x28] sm:$0xff] }
 0x4a0   : > { %7613 = vmatprep.subr.bf16.mxu1 %v2003_v51 }
 0x4a3   : > { %7614 = vmatpush3.bf16.msra.mxu1 %v1995_v56  ;;  %v2159_v56 = vld [vmem:[%s11696_s1 + $0x2b8] sm:$0xff] }
 0x4a4   : > { %7615 = vmatprep.subr.bf16.mxu1 %v2004_v57  ;;  %v2179_v57 = vpack.c.bf16 %v2159_v56, %v2158_v55  ;;  %v2287_v55 = vld [vmem:[%s11699_s2 + $0x50] sm:$0xff]  ;;  %v2288_v56 = vld [vmem:[%s11699_s2 + $0x58] sm:$0xff] }
 0x4a7   : > { %7616 = vmatpush3.bf16.msra.mxu1 %v1996_v62  ;;  %v2161_v62 = vld [vmem:[%s11696_s1 + $0x2c8] sm:$0xff] }
 0x4a8   : > { %7617 = vmatprep.subr.bf16.mxu1 %v2005_v63  ;;  %v2144_v63 = vld [vmem:[%s11696_s1 + $0x240] sm:$0xff]  ;;  %v2180_v1 = vpack.c.bf16 %v2161_v62, %v2160_v61 }
 0x4a9   : > { %v2172_v3 = vpack.c.bf16 %v2145_v2, %v2144_v63  ;;  %v2273_v2 = vld [vmem:[#allocation4] sm:$0xff] }
 0x4ab   : > { %7618 = vmatpush3.bf16.msra.mxu1 %v1997_v5  ;;  %v2163_v5 = vld [vmem:[%s11696_s1 + $0x2d8] sm:$0xff] }
 0x4ac   : > { %7619 = vmatprep.subr.bf16.mxu1 %v2006_v6  ;;  %v2181_v6 = vpack.c.bf16 %v2163_v5, %v2162_v4 }
 0x4af   : > { %7620 = vmatpush3.bf16.msra.mxu1 %v1998_v11  ;;  %v2165_v11 = vld [vmem:[%s11696_s1 + $0x2e8] sm:$0xff] }
 0x4b0   : > { %7621 = vmatprep.subr.bf16.mxu1 %v2007_v12  ;;  %v2182_v12 = vpack.c.bf16 %v2165_v11, %v2164_v10  ;;  %v2302_v10 = vpack.c.bf16 %v2301_v7, %v2301_v7  ;;  %v2376_v11 = vld [vmem:[%s11700_s16 + $0x8] sm:$0xff] }
 0x4b3   : > { %7622 = vmatpush3.bf16.msra.mxu1 %v1999_v19  ;;  %v2174_v19 = vpack.c.bf16 %v2149_v14, %v2148_v13  ;;  %v2353_v13 = vld [vmem:[%s11699_s2 + $0x88] sm:$0xff]  ;;  %v2377_v14 = vpack.c.bf16 %v2376_v11, %v2376_v11  ;;  %v2516_v11 = vld [vmem:[%s11699_s2 + $0x170] sm:$0xff] }
 0x4b4   : > { %2189 = vmatprep.subr.bf16.mxu1 %v10295_v29 }
 0x561   : > { %v1951_v25 = vpop.f32.mrb[12].mxu1 }
 0x562   : > { %v1953_v16 = vpop.f32.mrb[13].mxu1  ;;  %v1958_v30 = vpack.c.bf16 %v1951_v25, %v1951_v25 }
 0x563   : > { %v1959_v27 = vpack.c.bf16 %v1953_v16, %v1953_v16  ;;  %v1955_v17 = vpop.f32.mrb[14].mxu1 }
 0x564   : > { %v1956_v18 = vpop.f32.mrb[15].mxu1 }
 0x565   : > { %2128 = vmatprep.mubr.bf16.mxu0 %v1959_v27 }
 0x566   : > { %2129 = vmatmul.mubr.bf16.vlgmr.msra.gmra.mrb[8].mxu0 %v1958_v30 }
 0x567   : > { %8093 = vmatprep.mubr.msk.bf16.mxu0 %vm9712_vm0, %v9711_v0 }
 0x569   : > { %v2047_v29 = vpop.f32.mrb[16].mxu1 }
 0x56a   : > { %v2049_v33 = vpop.f32.mrb[17].mxu1  ;;  %v2054_v36 = vpack.c.bf16 %v2047_v29, %v2047_v29 }
 0x56b   : > { %v2055_v34 = vpack.c.bf16 %v2049_v33, %v2049_v33  ;;  %v2051_v35 = vpop.f32.mrb[18].mxu1 }
 0x56c   : > { %v2052_v37 = vpop.f32.mrb[19].mxu1 }
 0x56d   : > { %2088 = vmatprep.mubr.bf16.mxu1 %v2055_v34 }
 0x56e   : > { %2089 = vmatmul.mubr.bf16.vlgmr.msra.gmra.mrb[20].mxu1 %v2054_v36 }
 0x56f   : > { %2190 = vmatpush1.bf16.msra.mxu1 %v10292_v26  ;;  %2221 = vmatprep.mubr.bf16.mxu1 %v9713_v28  ;;  %v2157_v26 = vld [vmem:[%s11696_s1 + $0x2a8] sm:$0xff]  ;;  %s11706_s1 = sld [smem:[#allocation47_spill]] }
 0x570   : > { %7651 = vmatprep.subr.bf16.mxu1 %v2176_v38  ;;  %v2178_v51 = vpack.c.bf16 %v2157_v26, %v2156_v49  ;;  %v2295_v49 = vpack.c.bf16 %v2282_v48, %v2281_v47  ;;  %v2283_v26 = vld [vmem:[%s11699_s2 + $0x30] sm:$0xff] }
 0x576   : > { %7538 = vmatmul.mubr.msk.bf16.vlgmr.msra.gmra.mrb[24].mxu1 %vm1529_vm1, %v2185_v44  ;;  %v2293_v44 = vpack.c.bf16 %v2278_v42, %v2277_v41 }
 0x577   : > { %7652 = vmatpush3.bf16.msra.mxu1 %v2168_v45  ;;  %v2280_v45 = vld [vmem:[%s11699_s2 + $0x18] sm:$0xff] }
 0x578   : > { %7653 = vmatprep.subr.bf16.mxu1 %v2177_v46  ;;  %v2294_v46 = vpack.c.bf16 %v2280_v45, %v2279_v43 }
 0x57b   : > { %7654 = vmatpush3.bf16.msra.mxu1 %v2169_v50  ;;  %v2284_v50 = vld [vmem:[%s11699_s2 + $0x38] sm:$0xff] }
 0x57c   : > { %7655 = vmatprep.subr.bf16.mxu1 %v2178_v51  ;;  %v2296_v51 = vpack.c.bf16 %v2284_v50, %v2283_v26 }
 0x57f   : > { %7656 = vmatpush3.bf16.msra.mxu1 %v2170_v54  ;;  %v2297_v54 = vpack.c.bf16 %v2286_v53, %v2285_v52  ;;  %v2502_v52 = vld [vmem:[%s11699_s2 + $0x100] sm:$0xff]  ;;  %v2503_v53 = vld [vmem:[%s11699_s2 + $0x108] sm:$0xff] }
 0x580   : > { %7657 = vmatprep.subr.bf16.mxu1 %v2179_v57  ;;  %v2298_v57 = vpack.c.bf16 %v2288_v56, %v2287_v55  ;;  %v2518_v55 = vpack.c.bf16 %v2503_v53, %v2502_v52  ;;  %v2504_v56 = vld [vmem:[%s11699_s2 + $0x110] sm:$0xff] }
 0x583   : > { %7658 = vmatpush3.bf16.msra.mxu1 %v2171_v60  ;;  %v2299_v60 = vpack.c.bf16 %v2290_v59, %v2289_v58  ;;  %v2506_v59 = vld [vmem:[%s11699_s2 + $0x120] sm:$0xff] }
 0x584   : > { %7659 = vmatprep.subr.bf16.mxu1 %v2180_v1 }
 0x587   : > { %7660 = vmatpush3.bf16.msra.mxu1 %v2172_v3 }
 0x588   : > { %7661 = vmatprep.subr.bf16.mxu1 %v2181_v6 }
 0x58b   : > { %7662 = vmatpush3.bf16.msra.mxu1 %v2173_v9 }
 0x58c   : > { %7663 = vmatprep.subr.bf16.mxu1 %v2182_v12  ;;  %v2352_v12 = vld [vmem:[%s11699_s2 + $0x80] sm:$0xff] }
 0x58f   : > { %7664 = vmatpush3.bf16.msra.mxu1 %v2174_v19  ;;  %v2368_v19 = vpack.c.bf16 %v2353_v13, %v2352_v12  ;;  %v2517_v12 = vld [vmem:[%s11699_s2 + $0x178] sm:$0xff] }
 0x590   : > { %7665 = vmatprep.subr.bf16.mxu1 %v2183_v22  ;;  %v2369_v22 = vpack.c.bf16 %v2355_v21, %v2354_v20  ;;  %v2525_v13 = vpack.c.bf16 %v2517_v12, %v2516_v11  ;;  %v2697_v11 = vld [vmem:[%s11701_s7 + $0xb8] sm:$0xff] }
 0x593   : > { %7666 = vmatpush3.bf16.msra.mxu1 %v2175_v24  ;;  %v2370_v24 = vpack.c.bf16 %v2357_v15, %v2356_v23 }
 0x594   : > { %8123 = vmatprep.subr.bf16.mxu1 %v9711_v0 }
 0x639   : > { %v7645_v25 = vpop.f32.mrb[8].mxu0 }
 0x63a   : > { %v7646_v16 = vpop.f32.mrb[9].mxu0 }
 0x63b   : > { %v7647_v27 = vadd.f32 %v7646_v16, %v7645_v25  ;;  %v7648_v17 = vpop.f32.mrb[10].mxu0  ;;  %v2358_v25 = vld [vmem:[%s11699_s2 + $0xb0] sm:$0xff]  ;;  %v2359_v16 = vld [vmem:[%s11699_s2 + $0xb8] sm:$0xff] }
 0x63c   : > { %v7649_v30 = vpop.f32.mrb[11].mxu0  ;;  %v2360_v17 = vld [vmem:[%s11699_s2 + $0xc0] sm:$0xff] }
 0x63d   : > { %v2361_v30 = vld [vmem:[%s11699_s2 + $0xc8] sm:$0xff] }
 0x641   : > { %v7623_v18 = vpop.f32.mrb[20].mxu1 }
 0x642   : > { %v7624_v29 = vpop.f32.mrb[21].mxu1 }
 0x643   : > { %v7625_v31 = vadd.f32 %v7624_v29, %v7623_v18  ;;  %v7626_v32 = vpop.f32.mrb[22].mxu1  ;;  %v2372_v18 = vpack.c.bf16 %v2361_v30, %v2360_v17  ;;  %v2362_v29 = vld [vmem:[%s11699_s2 + $0xd0] sm:$0xff] }
 0x644   : > { %v7627_v33 = vpop.f32.mrb[23].mxu1 }
 0x645   : > { %v2131_v34 = vadd.f32 %v7647_v27, %v7625_v31  ;;  %v2371_v27 = vpack.c.bf16 %v2359_v16, %v2358_v25  ;;  %v2363_v31 = vld [vmem:[%s11699_s2 + $0xd8] sm:$0xff]  ;;  %v2291_v33 = vld [vmem:[%s11699_s2 + $0x70] sm:$0xff] }
 0x646   : > { %v2373_v32 = vpack.c.bf16 %v2363_v31, %v2362_v29  ;;  %v2617_v29 = vld [vmem:[%s11701_s7] sm:$0xff]  ;;  %v2618_v31 = vld [vmem:[%s11701_s7 + $0x8] sm:$0xff] }
 0x649   : > { %v2223_v35 = vpop.f32.mrb[24].mxu1 }
 0x64a   : > { %v2225_v36 = vpop.f32.mrb[25].mxu1  ;;  %v2230_v39 = vpack.c.bf16 %v2223_v35, %v2223_v35 }
 0x64b   : > { %v2231_v37 = vpack.c.bf16 %v2225_v36, %v2225_v36  ;;  %v2227_v38 = vpop.f32.mrb[26].mxu1  ;;  %v2364_v36 = vld [vmem:[%s11699_s2 + $0xe0] sm:$0xff] }
 0x64c   : > { %v2228_v40 = vpop.f32.mrb[27].mxu1 }
 0x64d   : > { %2264 = vmatprep.mubr.bf16.mxu1 %v2231_v37  ;;  %v2365_v37 = vld [vmem:[%s11699_s2 + $0xe8] sm:$0xff]  ;;  %v2367_v40 = vld [vmem:[%s11699_s2 + $0xf8] sm:$0xff] }
 0x64e   : > { %2265 = vmatmul.mubr.bf16.vlgmr.msra.gmra.mrb[28].mxu1 %v2230_v39  ;;  %v2374_v38 = vpack.c.bf16 %v2365_v37, %v2364_v36  ;;  %v2366_v39 = vld [vmem:[%s11699_s2 + $0xf0] sm:$0xff]  ;;  %v2621_v36 = vld [vmem:[%s11701_s7 + $0x20] sm:$0xff]  ;;  %v2622_v37 = vld [vmem:[%s11701_s7 + $0x28] sm:$0xff] }
 0x64f   : > { %8139 = vmatprep.mubr.msk.bf16.mxu1 %vm9712_vm0, %v9711_v0  ;;  %8124 = vmatpush3.bf16.msra.mxu1 %v2293_v44  ;;  %v2375_v41 = vpack.c.bf16 %v2367_v40, %v2366_v39  ;;  %v2623_v39 = vld [vmem:[%s11701_s7 + $0x30] sm:$0xff]  ;;  %v2624_v40 = vld [vmem:[%s11701_s7 + $0x38] sm:$0xff] }
 0x650   : > { %8125 = vmatprep.subr.bf16.mxu1 %v9711_v0 }
 0x653   : > { %8126 = vmatpush3.bf16.msra.mxu1 %v2294_v46 }
 0x654   : > { %8127 = vmatprep.subr.bf16.mxu1 %v9711_v0 }
 0x657   : > { %8128 = vmatpush3.bf16.msra.mxu1 %v2295_v49 }
 0x658   : > { %8129 = vmatprep.subr.bf16.mxu1 %v9711_v0 }
 0x65b   : > { %8130 = vmatpush3.bf16.msra.mxu1 %v2296_v51  ;;  %v2526_v51 = vld [vmem:[%s11700_s16 + $0x10] sm:$0xff] }
 0x65c   : > { %8131 = vmatprep.subr.bf16.mxu1 %v9711_v0 }
 0x65f   : > { %8132 = vmatpush3.bf16.msra.mxu1 %v2297_v54  ;;  %v2527_v54 = vpack.c.bf16 %v2526_v51, %v2526_v51  ;;  %v2613_v51 = vld [vmem:[#allocation6] sm:$0xff] }
 0x660   : > { %8133 = vmatprep.subr.bf16.mxu1 %v9711_v0 }
 0x663   : > { %8134 = vmatpush3.bf16.msra.mxu1 %v2298_v57  ;;  %v2505_v57 = vld [vmem:[%s11699_s2 + $0x118] sm:$0xff] }
 0x664   : > { %8135 = vmatprep.subr.bf16.mxu1 %v9711_v0  ;;  %v2519_v58 = vpack.c.bf16 %v2505_v57, %v2504_v56 }
 0x667   : > { %8136 = vmatpush3.bf16.msra.mxu1 %v2299_v60  ;;  %v2507_v60 = vld [vmem:[%s11699_s2 + $0x128] sm:$0xff] }
 0x668   : > { %8137 = vmatprep.subr.bf16.mxu1 %v9711_v0 }
 0x721   : > { %v7667_v61 = vpop.f32.mrb[28].mxu1 }
 0x722   : > { %v7668_v62 = vpop.f32.mrb[29].mxu1 }
 0x723   : > { %v7669_v63 = vadd.f32 %v7668_v62, %v7667_v61  ;;  %v7670_v1 = vpop.f32.mrb[30].mxu1  ;;  %v2520_v61 = vpack.c.bf16 %v2507_v60, %v2506_v59  ;;  %v2508_v62 = vld [vmem:[%s11699_s2 + $0x130] sm:$0xff] }
 0x724   : > { %v7671_v3 = vpop.f32.mrb[31].mxu1 }
 0x725   : > { %v2272_v4 = vadd.f32 %v7669_v63, %v2131_v34  ;;  %v2292_v34 = vld [vmem:[%s11699_s2 + $0x78] sm:$0xff]  ;;  %v2511_v3 = vld [vmem:[%s11699_s2 + $0x148] sm:$0xff] }
 0x726   : > { %v2300_v35 = vpack.c.bf16 %v2292_v34, %v2291_v33  ;;  %v2509_v63 = vld [vmem:[%s11699_s2 + $0x138] sm:$0xff]  ;;  %v2633_v33 = vpack.c.bf16 %v2618_v31, %v2617_v29 }
 0x727   : > { %v2274_v5 = vadd.f32 %v2273_v2, %v2272_v4  ;;  %v2521_v1 = vpack.c.bf16 %v2509_v63, %v2508_v62  ;;  %v2510_v2 = vld [vmem:[%s11699_s2 + $0x140] sm:$0xff]  ;;  %v2620_v34 = vld [vmem:[%s11701_s7 + $0x18] sm:$0xff]  ;;  %v2714_v62 = vld [vmem:[%s11702_s3 + $0x8] sm:$0xff] }
 0x728   : > { %8138 = vmatpush3.bf16.msra.mxu1 %v2300_v35  ;;  %v2522_v4 = vpack.c.bf16 %v2511_v3, %v2510_v2  ;;  %v2690_v63 = vld [vmem:[%s11701_s7 + $0x80] sm:$0xff]  ;;  %v2715_v2 = vpack.c.bf16 %v2714_v62, %v2714_v62  ;;  %v2854_v62 = vld [vmem:[%s11701_s7 + $0x170] sm:$0xff] }
 0x729   : > { %v2275_v6 = vmax.f32 %v2274_v5, 0.0  ;;  %8169 = vmatprep.subr.bf16.mxu1 %v9711_v0  ;;  %v2512_v5 = vld [vmem:[%s11699_s2 + $0x150] sm:$0xff] }
 0x72b   : > { %v2276_v8 = vpack.c.bf16 %v2275_v6, %v2275_v6  ;;  %v2513_v6 = vld [vmem:[%s11699_s2 + $0x158] sm:$0xff] }
 0x72c   : > { %v2523_v7 = vpack.c.bf16 %v2513_v6, %v2512_v5  ;;  %v2693_v5 = vld [vmem:[%s11701_s7 + $0x98] sm:$0xff] }
 0x72d   : > { %v10407_v9 = vsel %vm2307_vm3, %v2276_v8, 0  ;;  %v2514_v8 = vld [vmem:[%s11699_s2 + $0x160] sm:$0xff] }
 0x72e   : > { %8092 = vmatpush3.bf16.msra.mxu0 %v10407_v9 }
 0x72f   : > { %8097 = vmatprep.subr.bf16.mxu0 %v9711_v0 }
 0x731   : > { %8094 = vmatmul.mubr.msk.bf16.vlgmr.msra.gmra.mrb[12].mxu0 %vm2303_vm4, %v2302_v10 }
 0x732   : > { %8098 = vmatpush3.bf16.msra.mxu0 %v10407_v9  ;;  %8099 = vmatprep.mubr.msk.bf16.mxu0 %vm9712_vm0, %v9711_v0 }
 0x733   : > { %8103 = vmatprep.subr.bf16.mxu0 %v9711_v0 }
 0x739   : > { %8100 = vmatmul.mubr.msk.bf16.vlgmr.msra.gmra.mrb[16].mxu0 %vm2303_vm4, %v2377_v14 }
 0x73a   : > { %8104 = vmatpush3.bf16.msra.mxu0 %v2368_v19  ;;  %8119 = vmatprep.mubr.msk.bf16.mxu0 %vm9712_vm0, %v9711_v0 }
 0x73b   : > { %8105 = vmatprep.subr.bf16.mxu0 %v9711_v0 }
 0x73e   : > { %8106 = vmatpush3.bf16.msra.mxu0 %v2369_v22 }
 0x73f   : > { %8107 = vmatprep.subr.bf16.mxu0 %v9711_v0 }
 0x742   : > { %8108 = vmatpush3.bf16.msra.mxu0 %v2370_v24 }
 0x743   : > { %8109 = vmatprep.subr.bf16.mxu0 %v9711_v0 }
 0x746   : > { %8110 = vmatpush3.bf16.msra.mxu0 %v2371_v27 }
 0x747   : > { %8111 = vmatprep.subr.bf16.mxu0 %v9711_v0 }
 0x74a   : > { %8112 = vmatpush3.bf16.msra.mxu0 %v2372_v18 }
 0x74b   : > { %8113 = vmatprep.subr.bf16.mxu0 %v9711_v0 }
 0x74e   : > { %8114 = vmatpush3.bf16.msra.mxu0 %v2373_v32  ;;  %v2619_v32 = vld [vmem:[%s11701_s7 + $0x10] sm:$0xff] }
 0x74f   : > { %8115 = vmatprep.subr.bf16.mxu0 %v9711_v0  ;;  %v2634_v35 = vpack.c.bf16 %v2620_v34, %v2619_v32 }
 0x752   : > { %8116 = vmatpush3.bf16.msra.mxu0 %v2374_v38  ;;  %v2635_v38 = vpack.c.bf16 %v2622_v37, %v2621_v36 }
 0x753   : > { %8117 = vmatprep.subr.bf16.mxu0 %v9711_v0 }
 0x756   : > { %8118 = vmatpush3.bf16.msra.mxu0 %v2375_v41  ;;  %v2636_v41 = vpack.c.bf16 %v2624_v40, %v2623_v39  ;;  %v2864_v40 = vld [vmem:[%s11702_s3 + $0x10] sm:$0xff] }
 0x757   : > { %8143 = vmatprep.subr.bf16.mxu0 %v9711_v0 }
 0x804   : > { %v2345_v42 = vpop.f32.mrb[12].mxu0 }
 0x805   : > { %v2351_v43 = vpack.c.bf16 %v2345_v42, %v2345_v42  ;;  %v8095_v44 = vpop.f32.mrb[13].mxu0  ;;  %v2625_v42 = vld [vmem:[%s11701_s7 + $0x40] sm:$0xff] }
 0x806   : > { %v2348_v45 = vpop.f32.mrb[14].mxu0 }
 0x807   : > { %v8096_v46 = vpop.f32.mrb[15].mxu0  ;;  %8140 = vmatmul.mubr.bf16.vlgmr.msra.gmra.mrb[32].mxu1 %v2351_v43  ;;  %v2626_v43 = vld [vmem:[%s11701_s7 + $0x48] sm:$0xff]  ;;  %v2627_v45 = vld [vmem:[%s11701_s7 + $0x50] sm:$0xff] }
 0x808   : > { %8171 = vmatprep.mubr.msk.bf16.mxu1 %vm9712_vm0, %v9711_v0  ;;  %v2637_v44 = vpack.c.bf16 %v2626_v43, %v2625_v42  ;;  %v2628_v46 = vld [vmem:[%s11701_s7 + $0x58] sm:$0xff]  ;;  %v2841_v42 = vld [vmem:[%s11701_s7 + $0x108] sm:$0xff]  ;;  %v2865_v43 = vpack.c.bf16 %v2864_v40, %v2864_v40  ;;  %v2951_v40 = vld [vmem:[#allocation7] sm:$0xff] }
 0x80c   : > { %v2415_v47 = vpop.f32.mrb[16].mxu0 }
 0x80d   : > { %v2421_v48 = vpack.c.bf16 %v2415_v47, %v2415_v47  ;;  %v8101_v49 = vpop.f32.mrb[17].mxu0  ;;  %v2638_v47 = vpack.c.bf16 %v2628_v46, %v2627_v45  ;;  %v2842_v45 = vld [vmem:[%s11701_s7 + $0x110] sm:$0xff]  ;;  %v2843_v46 = vld [vmem:[%s11701_s7 + $0x118] sm:$0xff] }
 0x80e   : > { %v2418_v26 = vpop.f32.mrb[18].mxu0  ;;  %v2630_v49 = vld [vmem:[%s11701_s7 + $0x68] sm:$0xff] }
 0x80f   : > { %v8102_v50 = vpop.f32.mrb[19].mxu0  ;;  %8120 = vmatmul.mubr.bf16.vlgmr.msra.gmra.mrb[20].mxu0 %v2421_v48  ;;  %v2629_v48 = vld [vmem:[%s11701_s7 + $0x60] sm:$0xff] }
 0x810   : > { %8144 = vmatpush3.bf16.msra.mxu0 %v10407_v9  ;;  %8145 = vmatprep.mubr.msk.bf16.mxu0 %vm9712_vm0, %v9711_v0  ;;  %v2515_v9 = vld [vmem:[%s11699_s2 + $0x168] sm:$0xff]  ;;  %v2639_v26 = vpack.c.bf16 %v2630_v49, %v2629_v48  ;;  %v2844_v48 = vld [vmem:[%s11701_s7 + $0x120] sm:$0xff] }
 0x811   : > { %8149 = vmatprep.subr.bf16.mxu0 %v9711_v0  ;;  %v2524_v10 = vpack.c.bf16 %v2515_v9, %v2514_v8  ;;  %v2695_v8 = vld [vmem:[%s11701_s7 + $0xa8] sm:$0xff] }
 0x812   : > { %v2845_v49 = vld [vmem:[%s11701_s7 + $0x128] sm:$0xff] }
 0x817   : > { %8146 = vmatmul.mubr.msk.bf16.vlgmr.msra.gmra.mrb[24].mxu0 %vm2303_vm4, %v2527_v54 }
 0x818   : > { %8150 = vmatpush3.bf16.msra.mxu0 %v2518_v55  ;;  %8165 = vmatprep.mubr.msk.bf16.mxu0 %vm9712_vm0, %v9711_v0 }
 0x819   : > { %8151 = vmatprep.subr.bf16.mxu0 %v9711_v0 }
 0x81c   : > { %8152 = vmatpush3.bf16.msra.mxu0 %v2519_v58  ;;  %v2641_v58 = vld [vmem:[%s11702_s3] sm:$0xff] }
 0x81d   : > { %8153 = vmatprep.subr.bf16.mxu0 %v9711_v0 }
 0x820   : > { %8154 = vmatpush3.bf16.msra.mxu0 %v2520_v61  ;;  %v2642_v61 = vpack.c.bf16 %v2641_v58, %v2641_v58 }
 0x821   : > { %8155 = vmatprep.subr.bf16.mxu0 %v9711_v0 }
 0x824   : > { %8156 = vmatpush3.bf16.msra.mxu0 %v2521_v1  ;;  %v2691_v1 = vld [vmem:[%s11701_s7 + $0x88] sm:$0xff] }
 0x825   : > { %8157 = vmatprep.subr.bf16.mxu0 %v9711_v0  ;;  %v2706_v3 = vpack.c.bf16 %v2691_v1, %v2690_v63  ;;  %v2855_v63 = vld [vmem:[%s11701_s7 + $0x178] sm:$0xff] }
 0x826   : > { %v2863_v1 = vpack.c.bf16 %v2855_v63, %v2854_v62  ;;  %v3035_v62 = vld [vmem:[%s11703_s28 + $0xb8] sm:$0xff] }
 0x828   : > { %8158 = vmatpush3.bf16.msra.mxu0 %v2522_v4  ;;  %v2692_v4 = vld [vmem:[%s11701_s7 + $0x90] sm:$0xff] }
 0x829   : > { %8159 = vmatprep.subr.bf16.mxu0 %v9711_v0  ;;  %v2707_v6 = vpack.c.bf16 %v2693_v5, %v2692_v4 }
 0x82c   : > { %8160 = vmatpush3.bf16.msra.mxu0 %v2523_v7  ;;  %v2694_v7 = vld [vmem:[%s11701_s7 + $0xa0] sm:$0xff] }
 0x82d   : > { %8161 = vmatprep.subr.bf16.mxu0 %v9711_v0  ;;  %v2708_v9 = vpack.c.bf16 %v2695_v8, %v2694_v7 }
 0x830   : > { %8162 = vmatpush3.bf16.msra.mxu0 %v2524_v10  ;;  %v2696_v10 = vld [vmem:[%s11701_s7 + $0xb0] sm:$0xff] }
 0x831   : > { %8163 = vmatprep.subr.bf16.mxu0 %v9711_v0  ;;  %v2709_v12 = vpack.c.bf16 %v2697_v11, %v2696_v10 }
 0x834   : > { %8164 = vmatpush3.bf16.msra.mxu0 %v2525_v13  ;;  %v2698_v13 = vld [vmem:[%s11701_s7 + $0xc0] sm:$0xff] }
 0x835   : > { %8201 = vmatprep.subr.bf16.mxu0 %v9711_v0 }
 0x8da   : > { %v2496_v14 = vpop.f32.mrb[32].mxu1 }
 0x8db   : > { %v8141_v19 = vpop.f32.mrb[33].mxu1 }
 0x8dc   : > { %v2499_v20 = vpop.f32.mrb[34].mxu1 }
 0x8dd   : > { %v8142_v21 = vpop.f32.mrb[35].mxu1  ;;  %v2700_v20 = vld [vmem:[%s11701_s7 + $0xd0] sm:$0xff] }
 0x8de   : > { %v2701_v21 = vld [vmem:[%s11701_s7 + $0xd8] sm:$0xff] }
 0x8e2   : > { %v2456_v22 = vpop.f32.mrb[20].mxu0 }
 0x8e3   : > { %v2497_v23 = vadd.f32 %v2496_v14, %v2456_v22  ;;  %v8121_v15 = vpop.f32.mrb[21].mxu0  ;;  %v2699_v14 = vld [vmem:[%s11701_s7 + $0xc8] sm:$0xff]  ;;  %v2711_v22 = vpack.c.bf16 %v2701_v21, %v2700_v20  ;;  %v2955_v20 = vld [vmem:[%s11703_s28] sm:$0xff] }
 0x8e4   : > { %v2459_v24 = vpop.f32.mrb[22].mxu0  ;;  %v2710_v19 = vpack.c.bf16 %v2699_v14, %v2698_v13  ;;  %v2632_v15 = vld [vmem:[%s11701_s7 + $0x78] sm:$0xff]  ;;  %v2956_v21 = vld [vmem:[%s11703_s28 + $0x8] sm:$0xff] }
 0x8e5   : > { %v8122_v25 = vpop.f32.mrb[23].mxu0 }
 0x8e6   : > { %v2702_v25 = vld [vmem:[%s11701_s7 + $0xe0] sm:$0xff] }
 0x8ea   : > { %v2565_v16 = vpop.f32.mrb[24].mxu0 }
 0x8eb   : > { %v2571_v27 = vpack.c.bf16 %v2565_v16, %v2565_v16  ;;  %v8147_v17 = vpop.f32.mrb[25].mxu0  ;;  %v2703_v16 = vld [vmem:[%s11701_s7 + $0xe8] sm:$0xff] }
 0x8ec   : > { %v2568_v30 = vpop.f32.mrb[26].mxu0  ;;  %v2704_v17 = vld [vmem:[%s11701_s7 + $0xf0] sm:$0xff] }
 0x8ed   : > { %v8148_v18 = vpop.f32.mrb[27].mxu0  ;;  %8166 = vmatmul.mubr.bf16.vlgmr.msra.gmra.mrb[28].mxu0 %v2571_v27  ;;  %v2712_v27 = vpack.c.bf16 %v2703_v16, %v2702_v25  ;;  %v2705_v30 = vld [vmem:[%s11701_s7 + $0xf8] sm:$0xff]  ;;  %v2959_v25 = vld [vmem:[%s11703_s28 + $0x20] sm:$0xff]  ;;  %v2960_v16 = vld [vmem:[%s11703_s28 + $0x28] sm:$0xff] }
 0x8ee   : > { %8217 = vmatprep.mubr.msk.bf16.mxu0 %vm9712_vm0, %v9711_v0  ;;  %8202 = vmatpush3.bf16.msra.mxu0 %v2633_v33  ;;  %v2713_v18 = vpack.c.bf16 %v2705_v30, %v2704_v17  ;;  %v2961_v17 = vld [vmem:[%s11703_s28 + $0x30] sm:$0xff]  ;;  %v2962_v30 = vld [vmem:[%s11703_s28 + $0x38] sm:$0xff] }
 0x8ef   : > { %8203 = vmatprep.subr.bf16.mxu0 %v9711_v0 }
 0x8f2   : > { %8204 = vmatpush3.bf16.msra.mxu0 %v2634_v35 }
 0x8f3   : > { %8205 = vmatprep.subr.bf16.mxu0 %v9711_v0 }
 0x8f6   : > { %8206 = vmatpush3.bf16.msra.mxu0 %v2635_v38 }
 0x8f7   : > { %8207 = vmatprep.subr.bf16.mxu0 %v9711_v0 }
 0x8fa   : > { %8208 = vmatpush3.bf16.msra.mxu0 %v2636_v41  ;;  %v2840_v41 = vld [vmem:[%s11701_s7 + $0x100] sm:$0xff] }
 0x8fb   : > { %8209 = vmatprep.subr.bf16.mxu0 %v9711_v0 }
 0x8fe   : > { %8210 = vmatpush3.bf16.msra.mxu0 %v2637_v44  ;;  %v2856_v44 = vpack.c.bf16 %v2841_v42, %v2840_v41 }
 0x8ff   : > { %8211 = vmatprep.subr.bf16.mxu0 %v9711_v0 }
 0x902   : > { %8212 = vmatpush3.bf16.msra.mxu0 %v2638_v47  ;;  %v2857_v47 = vpack.c.bf16 %v2843_v46, %v2842_v45 }
 0x903   : > { %8213 = vmatprep.subr.bf16.mxu0 %v9711_v0 }
 0x906   : > { %8214 = vmatpush3.bf16.msra.mxu0 %v2639_v26  ;;  %v2858_v26 = vpack.c.bf16 %v2845_v49, %v2844_v48 }
 0x907   : > { %8215 = vmatprep.subr.bf16.mxu0 %v9711_v0 }
 0x9c0   : > { %v2606_v50 = vpop.f32.mrb[28].mxu0 }
 0x9c1   : > { %v2612_v52 = vadd.f32 %v2606_v50, %v2497_v23  ;;  %v8167_v53 = vpop.f32.mrb[29].mxu0  ;;  %v2631_v23 = vld [vmem:[%s11701_s7 + $0x70] sm:$0xff] }
 0x9c2   : > { %v2609_v54 = vpop.f32.mrb[30].mxu0  ;;  %v2640_v24 = vpack.c.bf16 %v2632_v15, %v2631_v23  ;;  %v2846_v50 = vld [vmem:[%s11701_s7 + $0x130] sm:$0xff]  ;;  %v2848_v53 = vld [vmem:[%s11701_s7 + $0x140] sm:$0xff]  ;;  %v2971_v23 = vpack.c.bf16 %v2956_v21, %v2955_v20  ;;  %v2958_v15 = vld [vmem:[%s11703_s28 + $0x18] sm:$0xff] }
 0x9c3   : > { %v2614_v55 = vadd.f32 %v2613_v51, %v2612_v52  ;;  %v8168_v56 = vpop.f32.mrb[31].mxu0  ;;  %v2847_v51 = vld [vmem:[%s11701_s7 + $0x138] sm:$0xff]  ;;  %v2849_v54 = vld [vmem:[%s11701_s7 + $0x148] sm:$0xff] }
 0x9c4   : > { %8216 = vmatpush3.bf16.msra.mxu0 %v2640_v24  ;;  %v2859_v52 = vpack.c.bf16 %v2847_v51, %v2846_v50  ;;  %v2850_v56 = vld [vmem:[%s11701_s7 + $0x150] sm:$0xff]  ;;  %v3052_v50 = vld [vmem:[%s11704_s18 + $0x8] sm:$0xff]  ;;  %v3028_v51 = vld [vmem:[%s11703_s28 + $0x80] sm:$0xff] }
 0x9c5   : > { %v2615_v57 = vmax.f32 %v2614_v55, 0.0  ;;  %8247 = vmatprep.subr.bf16.mxu0 %v9711_v0  ;;  %v2860_v55 = vpack.c.bf16 %v2849_v54, %v2848_v53  ;;  %v3053_v53 = vpack.c.bf16 %v3052_v50, %v3052_v50  ;;  %v3192_v50 = vld [vmem:[%s11703_s28 + $0x170] sm:$0xff] }
 0x9c7   : > { %v2616_v59 = vpack.c.bf16 %v2615_v57, %v2615_v57  ;;  %v2851_v57 = vld [vmem:[%s11701_s7 + $0x158] sm:$0xff] }
 0x9c8   : > { %v2861_v58 = vpack.c.bf16 %v2851_v57, %v2850_v56  ;;  %v3031_v56 = vld [vmem:[%s11703_s28 + $0x98] sm:$0xff] }
 0x9c9   : > { %v10506_v60 = vsel %vm2307_vm3, %v2616_v59, 0  ;;  %v2852_v59 = vld [vmem:[%s11701_s7 + $0x160] sm:$0xff] }
 0x9ca   : > { %8170 = vmatpush3.bf16.msra.mxu1 %v10506_v60 }
 0x9cb   : > { %8175 = vmatprep.subr.bf16.mxu1 %v9711_v0 }
 0x9cd   : > { %8172 = vmatmul.mubr.msk.bf16.vlgmr.msra.gmra.mrb[36].mxu1 %vm2303_vm4, %v2642_v61 }
 0x9ce   : > { %8176 = vmatpush3.bf16.msra.mxu1 %v10506_v60  ;;  %8177 = vmatprep.mubr.msk.bf16.mxu1 %vm9712_vm0, %v9711_v0 }
 0x9cf   : > { %8181 = vmatprep.subr.bf16.mxu1 %v9711_v0 }
 0x9d5   : > { %8178 = vmatmul.mubr.msk.bf16.vlgmr.msra.gmra.mrb[40].mxu1 %vm2303_vm4, %v2715_v2 }
 0x9d6   : > { %8182 = vmatpush3.bf16.msra.mxu1 %v2706_v3  ;;  %8197 = vmatprep.mubr.msk.bf16.mxu1 %vm9712_vm0, %v9711_v0 }
 0x9d7   : > { %8183 = vmatprep.subr.bf16.mxu1 %v9711_v0 }
 0x9da   : > { %8184 = vmatpush3.bf16.msra.mxu1 %v2707_v6 }
 0x9db   : > { %8185 = vmatprep.subr.bf16.mxu1 %v9711_v0 }
 0x9de   : > { %8186 = vmatpush3.bf16.msra.mxu1 %v2708_v9 }
 0x9df   : > { %8187 = vmatprep.subr.bf16.mxu1 %v9711_v0 }
 0x9e2   : > { %8188 = vmatpush3.bf16.msra.mxu1 %v2709_v12 }
 0x9e3   : > { %8189 = vmatprep.subr.bf16.mxu1 %v9711_v0 }
 0x9e6   : > { %8190 = vmatpush3.bf16.msra.mxu1 %v2710_v19 }
 0x9e7   : > { %8191 = vmatprep.subr.bf16.mxu1 %v9711_v0 }
 0x9ea   : > { %8192 = vmatpush3.bf16.msra.mxu1 %v2711_v22  ;;  %v2957_v22 = vld [vmem:[%s11703_s28 + $0x10] sm:$0xff] }
 0x9eb   : > { %8193 = vmatprep.subr.bf16.mxu1 %v9711_v0  ;;  %v2972_v24 = vpack.c.bf16 %v2958_v15, %v2957_v22 }
 0x9ee   : > { %8194 = vmatpush3.bf16.msra.mxu1 %v2712_v27  ;;  %v2973_v27 = vpack.c.bf16 %v2960_v16, %v2959_v25 }
 0x9ef   : > { %8195 = vmatprep.subr.bf16.mxu1 %v9711_v0 }
 0x9f2   : > { %8196 = vmatpush3.bf16.msra.mxu1 %v2713_v18  ;;  %v2974_v18 = vpack.c.bf16 %v2962_v30, %v2961_v17  ;;  %v3202_v30 = vld [vmem:[%s11704_s18 + $0x10] sm:$0xff] }
 0x9f3   : > { %8221 = vmatprep.subr.bf16.mxu1 %v9711_v0 }
 0xaa0   : > { %v2683_v29 = vpop.f32.mrb[36].mxu1 }
 0xaa1   : > { %v2689_v31 = vpack.c.bf16 %v2683_v29, %v2683_v29  ;;  %v8173_v32 = vpop.f32.mrb[37].mxu1  ;;  %v2963_v29 = vld [vmem:[%s11703_s28 + $0x40] sm:$0xff] }
 0xaa2   : > { %v2686_v33 = vpop.f32.mrb[38].mxu1 }
 0xaa3   : > { %v8174_v34 = vpop.f32.mrb[39].mxu1  ;;  %8218 = vmatmul.mubr.bf16.vlgmr.msra.gmra.mrb[32].mxu0 %v2689_v31  ;;  %v2964_v31 = vld [vmem:[%s11703_s28 + $0x48] sm:$0xff]  ;;  %v2965_v33 = vld [vmem:[%s11703_s28 + $0x50] sm:$0xff] }
 0xaa4   : > { %8249 = vmatprep.mubr.msk.bf16.mxu0 %vm9712_vm0, %v9711_v0  ;;  %v2975_v32 = vpack.c.bf16 %v2964_v31, %v2963_v29  ;;  %v2966_v34 = vld [vmem:[%s11703_s28 + $0x58] sm:$0xff]  ;;  %v3179_v29 = vld [vmem:[%s11703_s28 + $0x108] sm:$0xff]  ;;  %v3203_v31 = vpack.c.bf16 %v3202_v30, %v3202_v30 }
 0xaa5   : > { %v3289_v30 = vld [vmem:[#allocation9] sm:$0xff] }
 0xaa8   : > { %v2753_v35 = vpop.f32.mrb[40].mxu1 }
 0xaa9   : > { %v2759_v36 = vpack.c.bf16 %v2753_v35, %v2753_v35  ;;  %v8179_v37 = vpop.f32.mrb[41].mxu1  ;;  %v2976_v35 = vpack.c.bf16 %v2966_v34, %v2965_v33  ;;  %v3180_v33 = vld [vmem:[%s11703_s28 + $0x110] sm:$0xff]  ;;  %v3181_v34 = vld [vmem:[%s11703_s28 + $0x118] sm:$0xff] }
 0xaaa   : > { %v2756_v38 = vpop.f32.mrb[42].mxu1  ;;  %v2968_v37 = vld [vmem:[%s11703_s28 + $0x68] sm:$0xff] }
 0xaab   : > { %v8180_v39 = vpop.f32.mrb[43].mxu1  ;;  %8198 = vmatmul.mubr.bf16.vlgmr.msra.gmra.mrb[44].mxu1 %v2759_v36  ;;  %v2967_v36 = vld [vmem:[%s11703_s28 + $0x60] sm:$0xff] }
 0xaac   : > { %8222 = vmatpush3.bf16.msra.mxu1 %v10506_v60  ;;  %8223 = vmatprep.mubr.msk.bf16.mxu1 %vm9712_vm0, %v9711_v0  ;;  %v2853_v60 = vld [vmem:[%s11701_s7 + $0x168] sm:$0xff]  ;;  %v2977_v38 = vpack.c.bf16 %v2968_v37, %v2967_v36  ;;  %v3182_v36 = vld [vmem:[%s11703_s28 + $0x120] sm:$0xff] }
 0xaad   : > { %8227 = vmatprep.subr.bf16.mxu1 %v9711_v0  ;;  %v2862_v61 = vpack.c.bf16 %v2853_v60, %v2852_v59  ;;  %v3033_v59 = vld [vmem:[%s11703_s28 + $0xa8] sm:$0xff] }
 0xaae   : > { %v3183_v37 = vld [vmem:[%s11703_s28 + $0x128] sm:$0xff] }
 0xab3   : > { %8224 = vmatmul.mubr.msk.bf16.vlgmr.msra.gmra.mrb[48].mxu1 %vm2303_vm4, %v2865_v43 }
 0xab4   : > { %8228 = vmatpush3.bf16.msra.mxu1 %v2856_v44  ;;  %8243 = vmatprep.mubr.msk.bf16.mxu1 %vm9712_vm0, %v9711_v0 }
 0xab5   : > { %8229 = vmatprep.subr.bf16.mxu1 %v9711_v0 }
 0xab8   : > { %8230 = vmatpush3.bf16.msra.mxu1 %v2857_v47  ;;  %v2979_v47 = vld [vmem:[%s11704_s18] sm:$0xff] }
 0xab9   : > { %8231 = vmatprep.subr.bf16.mxu1 %v9711_v0 }
 0xabc   : > { %8232 = vmatpush3.bf16.msra.mxu1 %v2858_v26  ;;  %v2980_v26 = vpack.c.bf16 %v2979_v47, %v2979_v47 }
 0xabd   : > { %8233 = vmatprep.subr.bf16.mxu1 %v9711_v0 }
 0xac0   : > { %8234 = vmatpush3.bf16.msra.mxu1 %v2859_v52  ;;  %v3029_v52 = vld [vmem:[%s11703_s28 + $0x88] sm:$0xff] }
 0xac1   : > { %8235 = vmatprep.subr.bf16.mxu1 %v9711_v0  ;;  %v3044_v54 = vpack.c.bf16 %v3029_v52, %v3028_v51  ;;  %v3193_v51 = vld [vmem:[%s11703_s28 + $0x178] sm:$0xff] }
 0xac2   : > { %v3201_v52 = vpack.c.bf16 %v3193_v51, %v3192_v50  ;;  %v3373_v50 = vld [vmem:[%s11705_s0 + $0xb8] sm:$0xff] }
 0xac4   : > { %8236 = vmatpush3.bf16.msra.mxu1 %v2860_v55  ;;  %v3030_v55 = vld [vmem:[%s11703_s28 + $0x90] sm:$0xff] }
 0xac5   : > { %8237 = vmatprep.subr.bf16.mxu1 %v9711_v0  ;;  %v3045_v57 = vpack.c.bf16 %v3031_v56, %v3030_v55 }
 0xac8   : > { %8238 = vmatpush3.bf16.msra.mxu1 %v2861_v58  ;;  %v3032_v58 = vld [vmem:[%s11703_s28 + $0xa0] sm:$0xff] }
 0xac9   : > { %8239 = vmatprep.subr.bf16.mxu1 %v9711_v0  ;;  %v3046_v60 = vpack.c.bf16 %v3033_v59, %v3032_v58 }
 0xacc   : > { %8240 = vmatpush3.bf16.msra.mxu1 %v2862_v61  ;;  %v3034_v61 = vld [vmem:[%s11703_s28 + $0xb0] sm:$0xff] }
 0xacd   : > { %8241 = vmatprep.subr.bf16.mxu1 %v9711_v0  ;;  %v3047_v63 = vpack.c.bf16 %v3035_v62, %v3034_v61 }
 0xad0   : > { %8242 = vmatpush3.bf16.msra.mxu1 %v2863_v1  ;;  %v3036_v1 = vld [vmem:[%s11703_s28 + $0xc0] sm:$0xff] }
 0xad1   : > { %8279 = vmatprep.subr.bf16.mxu1 %v9711_v0 }
 0xb76   : > { %v2834_v2 = vpop.f32.mrb[32].mxu0 }
 0xb77   : > { %v8219_v3 = vpop.f32.mrb[33].mxu0 }
 0xb78   : > { %v2837_v4 = vpop.f32.mrb[34].mxu0 }
 0xb79   : > { %v8220_v5 = vpop.f32.mrb[35].mxu0  ;;  %v3038_v4 = vld [vmem:[%s11703_s28 + $0xd0] sm:$0xff] }
 0xb7a   : > { %v3039_v5 = vld [vmem:[%s11703_s28 + $0xd8] sm:$0xff] }
 0xb7e   : > { %v2794_v6 = vpop.f32.mrb[44].mxu1 }
 0xb7f   : > { %v2835_v7 = vadd.f32 %v2834_v2, %v2794_v6  ;;  %v8199_v8 = vpop.f32.mrb[45].mxu1  ;;  %v3037_v2 = vld [vmem:[%s11703_s28 + $0xc8] sm:$0xff]  ;;  %v3049_v6 = vpack.c.bf16 %v3039_v5, %v3038_v4  ;;  %v3293_v4 = vld [vmem:[%s11705_s0] sm:$0xff] }
 0xb80   : > { %v2797_v9 = vpop.f32.mrb[46].mxu1  ;;  %v3048_v3 = vpack.c.bf16 %v3037_v2, %v3036_v1  ;;  %v2970_v8 = vld [vmem:[%s11703_s28 + $0x78] sm:$0xff]  ;;  %v3294_v5 = vld [vmem:[%s11705_s0 + $0x8] sm:$0xff] }
 0xb81   : > { %v8200_v10 = vpop.f32.mrb[47].mxu1 }
 0xb82   : > { %v3040_v10 = vld [vmem:[%s11703_s28 + $0xe0] sm:$0xff] }
 0xb86   : > { %v2903_v11 = vpop.f32.mrb[48].mxu1 }
 0xb87   : > { %v2909_v12 = vpack.c.bf16 %v2903_v11, %v2903_v11  ;;  %v8225_v13 = vpop.f32.mrb[49].mxu1  ;;  %v3041_v11 = vld [vmem:[%s11703_s28 + $0xe8] sm:$0xff] }
 0xb88   : > { %v2906_v14 = vpop.f32.mrb[50].mxu1  ;;  %v3042_v13 = vld [vmem:[%s11703_s28 + $0xf0] sm:$0xff] }
 0xb89   : > { %v8226_v19 = vpop.f32.mrb[51].mxu1  ;;  %8244 = vmatmul.mubr.bf16.vlgmr.msra.gmra.mrb[52].mxu1 %v2909_v12  ;;  %v3050_v12 = vpack.c.bf16 %v3041_v11, %v3040_v10  ;;  %v3043_v14 = vld [vmem:[%s11703_s28 + $0xf8] sm:$0xff]  ;;  %v3297_v10 = vld [vmem:[%s11705_s0 + $0x20] sm:$0xff]  ;;  %v3298_v11 = vld [vmem:[%s11705_s0 + $0x28] sm:$0xff] }
 0xb8a   : > { %8295 = vmatprep.mubr.msk.bf16.mxu1 %vm9712_vm0, %v9711_v0  ;;  %8280 = vmatpush3.bf16.msra.mxu1 %v2971_v23  ;;  %v3051_v19 = vpack.c.bf16 %v3043_v14, %v3042_v13  ;;  %v3299_v13 = vld [vmem:[%s11705_s0 + $0x30] sm:$0xff]  ;;  %v3300_v14 = vld [vmem:[%s11705_s0 + $0x38] sm:$0xff] }
 0xb8b   : > { %8281 = vmatprep.subr.bf16.mxu1 %v9711_v0 }
 0xb8e   : > { %8282 = vmatpush3.bf16.msra.mxu1 %v2972_v24 }
 0xb8f   : > { %8283 = vmatprep.subr.bf16.mxu1 %v9711_v0 }
 0xb92   : > { %8284 = vmatpush3.bf16.msra.mxu1 %v2973_v27 }
 0xb93   : > { %8285 = vmatprep.subr.bf16.mxu1 %v9711_v0 }
 0xb96   : > { %8286 = vmatpush3.bf16.msra.mxu1 %v2974_v18  ;;  %v3178_v18 = vld [vmem:[%s11703_s28 + $0x100] sm:$0xff] }
 0xb97   : > { %8287 = vmatprep.subr.bf16.mxu1 %v9711_v0 }
 0xb9a   : > { %8288 = vmatpush3.bf16.msra.mxu1 %v2975_v32  ;;  %v3194_v32 = vpack.c.bf16 %v3179_v29, %v3178_v18 }
 0xb9b   : > { %8289 = vmatprep.subr.bf16.mxu1 %v9711_v0 }
 0xb9e   : > { %8290 = vmatpush3.bf16.msra.mxu1 %v2976_v35  ;;  %v3195_v35 = vpack.c.bf16 %v3181_v34, %v3180_v33 }
 0xb9f   : > { %8291 = vmatprep.subr.bf16.mxu1 %v9711_v0 }
 0xba2   : > { %8292 = vmatpush3.bf16.msra.mxu1 %v2977_v38  ;;  %v3196_v38 = vpack.c.bf16 %v3183_v37, %v3182_v36 }
 0xba3   : > { %8293 = vmatprep.subr.bf16.mxu1 %v9711_v0 }
 0xc5c   : > { %v2944_v39 = vpop.f32.mrb[52].mxu1 }
 0xc5d   : > { %v2950_v41 = vadd.f32 %v2944_v39, %v2835_v7  ;;  %v8245_v42 = vpop.f32.mrb[53].mxu1  ;;  %v2969_v7 = vld [vmem:[%s11703_s28 + $0x70] sm:$0xff] }
 0xc5e   : > { %v2947_v43 = vpop.f32.mrb[54].mxu1  ;;  %v2978_v9 = vpack.c.bf16 %v2970_v8, %v2969_v7  ;;  %v3184_v39 = vld [vmem:[%s11703_s28 + $0x130] sm:$0xff]  ;;  %v3186_v42 = vld [vmem:[%s11703_s28 + $0x140] sm:$0xff]  ;;  %v3309_v7 = vpack.c.bf16 %v3294_v5, %v3293_v4  ;;  %v3296_v8 = vld [vmem:[%s11705_s0 + $0x18] sm:$0xff] }
 0xc5f   : > { %v2952_v44 = vadd.f32 %v2951_v40, %v2950_v41  ;;  %v8246_v45 = vpop.f32.mrb[55].mxu1  ;;  %v3185_v40 = vld [vmem:[%s11703_s28 + $0x138] sm:$0xff]  ;;  %v3187_v43 = vld [vmem:[%s11703_s28 + $0x148] sm:$0xff] }
 0xc60   : > { %8294 = vmatpush3.bf16.msra.mxu1 %v2978_v9  ;;  %v3197_v41 = vpack.c.bf16 %v3185_v40, %v3184_v39  ;;  %v3188_v45 = vld [vmem:[%s11703_s28 + $0x150] sm:$0xff]  ;;  %v3390_v39 = vld [vmem:[%s11706_s1 + $0x8] sm:$0xff]  ;;  %v3366_v40 = vld [vmem:[%s11705_s0 + $0x80] sm:$0xff] }
 0xc61   : > { %v2953_v46 = vmax.f32 %v2952_v44, 0.0  ;;  %8325 = vmatprep.subr.bf16.mxu1 %v9711_v0  ;;  %v3198_v44 = vpack.c.bf16 %v3187_v43, %v3186_v42  ;;  %v3391_v42 = vpack.c.bf16 %v3390_v39, %v3390_v39  ;;  %v3530_v39 = vld [vmem:[%s11705_s0 + $0x170] sm:$0xff] }
 0xc63   : > { %v2954_v48 = vpack.c.bf16 %v2953_v46, %v2953_v46  ;;  %v3189_v46 = vld [vmem:[%s11703_s28 + $0x158] sm:$0xff] }
 0xc64   : > { %v3199_v47 = vpack.c.bf16 %v3189_v46, %v3188_v45  ;;  %v3369_v45 = vld [vmem:[%s11705_s0 + $0x98] sm:$0xff] }
 0xc65   : > { %v10605_v49 = vsel %vm2307_vm3, %v2954_v48, 0  ;;  %v3190_v48 = vld [vmem:[%s11703_s28 + $0x160] sm:$0xff] }
 0xc66   : > { %8248 = vmatpush3.bf16.msra.mxu0 %v10605_v49 }
 0xc67   : > { %8253 = vmatprep.subr.bf16.mxu0 %v9711_v0 }
 0xc69   : > { %8250 = vmatmul.mubr.msk.bf16.vlgmr.msra.gmra.mrb[36].mxu0 %vm2303_vm4, %v2980_v26 }
 0xc6a   : > { %8254 = vmatpush3.bf16.msra.mxu0 %v10605_v49  ;;  %8255 = vmatprep.mubr.msk.bf16.mxu0 %vm9712_vm0, %v9711_v0 }
 0xc6b   : > { %8259 = vmatprep.subr.bf16.mxu0 %v9711_v0 }
 0xc71   : > { %8256 = vmatmul.mubr.msk.bf16.vlgmr.msra.gmra.mrb[40].mxu0 %vm2303_vm4, %v3053_v53 }
 0xc72   : > { %8260 = vmatpush3.bf16.msra.mxu0 %v3044_v54  ;;  %8275 = vmatprep.mubr.msk.bf16.mxu0 %vm9712_vm0, %v9711_v0 }
 0xc73   : > { %8261 = vmatprep.subr.bf16.mxu0 %v9711_v0 }
 0xc76   : > { %8262 = vmatpush3.bf16.msra.mxu0 %v3045_v57 }
 0xc77   : > { %8263 = vmatprep.subr.bf16.mxu0 %v9711_v0 }
 0xc7a   : > { %8264 = vmatpush3.bf16.msra.mxu0 %v3046_v60 }
 0xc7b   : > { %8265 = vmatprep.subr.bf16.mxu0 %v9711_v0 }
 0xc7e   : > { %8266 = vmatpush3.bf16.msra.mxu0 %v3047_v63 }
 0xc7f   : > { %8267 = vmatprep.subr.bf16.mxu0 %v9711_v0 }
 0xc82   : > { %8268 = vmatpush3.bf16.msra.mxu0 %v3048_v3 }
 0xc83   : > { %8269 = vmatprep.subr.bf16.mxu0 %v9711_v0 }
 0xc86   : > { %8270 = vmatpush3.bf16.msra.mxu0 %v3049_v6  ;;  %v3295_v6 = vld [vmem:[%s11705_s0 + $0x10] sm:$0xff] }
 0xc87   : > { %8271 = vmatprep.subr.bf16.mxu0 %v9711_v0  ;;  %v3310_v9 = vpack.c.bf16 %v3296_v8, %v3295_v6 }
 0xc8a   : > { %8272 = vmatpush3.bf16.msra.mxu0 %v3050_v12  ;;  %v3311_v12 = vpack.c.bf16 %v3298_v11, %v3297_v10 }
 0xc8b   : > { %8273 = vmatprep.subr.bf16.mxu0 %v9711_v0 }
 0xc8e   : > { %8274 = vmatpush3.bf16.msra.mxu0 %v3051_v19  ;;  %v3312_v19 = vpack.c.bf16 %v3300_v14, %v3299_v13  ;;  %v3540_v14 = vld [vmem:[%s11706_s1 + $0x10] sm:$0xff] }
 0xc8f   : > { %8299 = vmatprep.subr.bf16.mxu0 %v9711_v0 }
 0xd3c   : > { %v3021_v20 = vpop.f32.mrb[36].mxu0 }
 0xd3d   : > { %v3027_v21 = vpack.c.bf16 %v3021_v20, %v3021_v20  ;;  %v8251_v22 = vpop.f32.mrb[37].mxu0  ;;  %v3301_v20 = vld [vmem:[%s11705_s0 + $0x40] sm:$0xff] }
 0xd3e   : > { %v3024_v23 = vpop.f32.mrb[38].mxu0 }
 0xd3f   : > { %v8252_v15 = vpop.f32.mrb[39].mxu0  ;;  %8296 = vmatmul.mubr.bf16.vlgmr.msra.gmra.mrb[56].mxu1 %v3027_v21  ;;  %v3302_v21 = vld [vmem:[%s11705_s0 + $0x48] sm:$0xff]  ;;  %v3303_v23 = vld [vmem:[%s11705_s0 + $0x50] sm:$0xff] }
 0xd40   : > { %8327 = vmatprep.mubr.msk.bf16.mxu1 %vm9712_vm0, %v9711_v0  ;;  %v3313_v22 = vpack.c.bf16 %v3302_v21, %v3301_v20  ;;  %v3304_v15 = vld [vmem:[%s11705_s0 + $0x58] sm:$0xff]  ;;  %v3517_v20 = vld [vmem:[%s11705_s0 + $0x108] sm:$0xff]  ;;  %v3541_v21 = vpack.c.bf16 %v3540_v14, %v3540_v14 }
 0xd41   : > { %v4226_v14 = vld [vmem:[#allocation12 + $0x6] sm:$0x1] }
 0xd44   : > { %v3091_v24 = vpop.f32.mrb[40].mxu0 }
 0xd45   : > { %v3097_v25 = vpack.c.bf16 %v3091_v24, %v3091_v24  ;;  %v8257_v16 = vpop.f32.mrb[41].mxu0  ;;  %v3314_v24 = vpack.c.bf16 %v3304_v15, %v3303_v23  ;;  %v3518_v23 = vld [vmem:[%s11705_s0 + $0x110] sm:$0xff]  ;;  %v3519_v15 = vld [vmem:[%s11705_s0 + $0x118] sm:$0xff] }
 0xd46   : > { %v3094_v27 = vpop.f32.mrb[42].mxu0  ;;  %v3306_v16 = vld [vmem:[%s11705_s0 + $0x68] sm:$0xff] }
 0xd47   : > { %v8258_v17 = vpop.f32.mrb[43].mxu0  ;;  %8276 = vmatmul.mubr.bf16.vlgmr.msra.gmra.mrb[44].mxu0 %v3097_v25  ;;  %v3305_v25 = vld [vmem:[%s11705_s0 + $0x60] sm:$0xff] }
 0xd48   : > { %8300 = vmatpush3.bf16.msra.mxu0 %v10605_v49  ;;  %8301 = vmatprep.mubr.msk.bf16.mxu0 %vm9712_vm0, %v9711_v0  ;;  %v3191_v49 = vld [vmem:[%s11703_s28 + $0x168] sm:$0xff]  ;;  %v3315_v27 = vpack.c.bf16 %v3306_v16, %v3305_v25  ;;  %v3520_v25 = vld [vmem:[%s11705_s0 + $0x120] sm:$0xff] }
 0xd49   : > { %8305 = vmatprep.subr.bf16.mxu0 %v9711_v0  ;;  %v3200_v26 = vpack.c.bf16 %v3191_v49, %v3190_v48  ;;  %v3371_v48 = vld [vmem:[%s11705_s0 + $0xa8] sm:$0xff] }
 0xd4a   : > { %v3521_v16 = vld [vmem:[%s11705_s0 + $0x128] sm:$0xff] }
 0xd4f   : > { %8302 = vmatmul.mubr.msk.bf16.vlgmr.msra.gmra.mrb[48].mxu0 %vm2303_vm4, %v3203_v31 }
 0xd50   : > { %8306 = vmatpush3.bf16.msra.mxu0 %v3194_v32  ;;  %8321 = vmatprep.mubr.msk.bf16.mxu0 %vm9712_vm0, %v9711_v0 }
 0xd51   : > { %8307 = vmatprep.subr.bf16.mxu0 %v9711_v0 }
 0xd54   : > { %8308 = vmatpush3.bf16.msra.mxu0 %v3195_v35  ;;  %v3317_v35 = vld [vmem:[%s11706_s1] sm:$0xff]  ;;  %s11708_s1 = sld [smem:[#allocation52_spill]] }
 0xd55   : > { %8309 = vmatprep.subr.bf16.mxu0 %v9711_v0 }
 0xd58   : > { %8310 = vmatpush3.bf16.msra.mxu0 %v3196_v38  ;;  %v3318_v38 = vpack.c.bf16 %v3317_v35, %v3317_v35 }
 0xd59   : > { %8311 = vmatprep.subr.bf16.mxu0 %v9711_v0 }
 0xd5c   : > { %8312 = vmatpush3.bf16.msra.mxu0 %v3197_v41  ;;  %v3367_v41 = vld [vmem:[%s11705_s0 + $0x88] sm:$0xff] }
 0xd5d   : > { %8313 = vmatprep.subr.bf16.mxu0 %v9711_v0  ;;  %v3382_v43 = vpack.c.bf16 %v3367_v41, %v3366_v40  ;;  %v3531_v40 = vld [vmem:[%s11705_s0 + $0x178] sm:$0xff] }
 0xd5e   : > { %v3539_v41 = vpack.c.bf16 %v3531_v40, %v3530_v39 }
 0xd60   : > { %8314 = vmatpush3.bf16.msra.mxu0 %v3198_v44  ;;  %v3368_v44 = vld [vmem:[%s11705_s0 + $0x90] sm:$0xff] }
 0xd61   : > { %8315 = vmatprep.subr.bf16.mxu0 %v9711_v0  ;;  %v3383_v46 = vpack.c.bf16 %v3369_v45, %v3368_v44 }
 0xd64   : > { %8316 = vmatpush3.bf16.msra.mxu0 %v3199_v47  ;;  %v3370_v47 = vld [vmem:[%s11705_s0 + $0xa0] sm:$0xff] }
 0xd65   : > { %8317 = vmatprep.subr.bf16.mxu0 %v9711_v0  ;;  %v3384_v49 = vpack.c.bf16 %v3371_v48, %v3370_v47 }
 0xd68   : > { %8318 = vmatpush3.bf16.msra.mxu0 %v3200_v26  ;;  %v3372_v26 = vld [vmem:[%s11705_s0 + $0xb0] sm:$0xff] }
 0xd69   : > { %8319 = vmatprep.subr.bf16.mxu0 %v9711_v0  ;;  %v3385_v51 = vpack.c.bf16 %v3373_v50, %v3372_v26 }
 0xd6c   : > { %8320 = vmatpush3.bf16.msra.mxu0 %v3201_v52  ;;  %v3374_v52 = vld [vmem:[%s11705_s0 + $0xc0] sm:$0xff] }
 0xd6d   : > { %8357 = vmatprep.subr.bf16.mxu0 %v9711_v0 }
 0xe12   : > { %v3172_v53 = vpop.f32.mrb[56].mxu1 }
 0xe13   : > { %v8297_v54 = vpop.f32.mrb[57].mxu1 }
 0xe14   : > { %v3175_v55 = vpop.f32.mrb[58].mxu1 }
 0xe15   : > { %v8298_v56 = vpop.f32.mrb[59].mxu1  ;;  %v3376_v55 = vld [vmem:[%s11705_s0 + $0xd0] sm:$0xff] }
 0xe16   : > { %v3377_v56 = vld [vmem:[%s11705_s0 + $0xd8] sm:$0xff] }
 0xe1a   : > { %v3132_v57 = vpop.f32.mrb[44].mxu0 }
 0xe1b   : > { %v3173_v58 = vadd.f32 %v3172_v53, %v3132_v57  ;;  %v8277_v59 = vpop.f32.mrb[45].mxu0  ;;  %v3375_v53 = vld [vmem:[%s11705_s0 + $0xc8] sm:$0xff]  ;;  %v3387_v57 = vpack.c.bf16 %v3377_v56, %v3376_v55  ;;  %v3627_v56 = vld [vmem:[#allocation10] sm:$0xff] }
 0xe1c   : > { %v3135_v60 = vpop.f32.mrb[46].mxu0  ;;  %v3386_v54 = vpack.c.bf16 %v3375_v53, %v3374_v52  ;;  %v3308_v59 = vld [vmem:[%s11705_s0 + $0x78] sm:$0xff] }
 0xe1d   : > { %v8278_v61 = vpop.f32.mrb[47].mxu0 }
 0xe1e   : > { %v3378_v61 = vld [vmem:[%s11705_s0 + $0xe0] sm:$0xff] }
 0xe22   : > { %v3241_v62 = vpop.f32.mrb[48].mxu0 }
 0xe23   : > { %v3247_v63 = vpack.c.bf16 %v3241_v62, %v3241_v62  ;;  %v8303_v1 = vpop.f32.mrb[49].mxu0  ;;  %v3379_v62 = vld [vmem:[%s11705_s0 + $0xe8] sm:$0xff] }
 0xe24   : > { %v3244_v2 = vpop.f32.mrb[50].mxu0  ;;  %v3380_v1 = vld [vmem:[%s11705_s0 + $0xf0] sm:$0xff] }
 0xe25   : > { %v8304_v3 = vpop.f32.mrb[51].mxu0  ;;  %8322 = vmatmul.mubr.bf16.vlgmr.msra.gmra.mrb[52].mxu0 %v3247_v63  ;;  %v3388_v63 = vpack.c.bf16 %v3379_v62, %v3378_v61  ;;  %v3381_v2 = vld [vmem:[%s11705_s0 + $0xf8] sm:$0xff] }
 0xe26   : > { %8373 = vmatprep.mubr.msk.bf16.mxu0 %vm9712_vm0, %v9711_v0  ;;  %8358 = vmatpush3.bf16.msra.mxu0 %v3309_v7  ;;  %v3389_v3 = vpack.c.bf16 %v3381_v2, %v3380_v1  ;;  %v3834_v1 = vld [vmem:[#allocation12 + $0x2] sm:$0x1] }
 0xe27   : > { %8359 = vmatprep.subr.bf16.mxu0 %v9711_v0 }
 0xe2a   : > { %8360 = vmatpush3.bf16.msra.mxu0 %v3310_v9 }
 0xe2b   : > { %8361 = vmatprep.subr.bf16.mxu0 %v9711_v0 }
 0xe2e   : > { %8362 = vmatpush3.bf16.msra.mxu0 %v3311_v12 }
 0xe2f   : > { %8363 = vmatprep.subr.bf16.mxu0 %v9711_v0 }
 0xe32   : > { %8364 = vmatpush3.bf16.msra.mxu0 %v3312_v19  ;;  %v3516_v19 = vld [vmem:[%s11705_s0 + $0x100] sm:$0xff] }
 0xe33   : > { %8365 = vmatprep.subr.bf16.mxu0 %v9711_v0 }
 0xe36   : > { %8366 = vmatpush3.bf16.msra.mxu0 %v3313_v22  ;;  %v3532_v22 = vpack.c.bf16 %v3517_v20, %v3516_v19  ;;  %v4227_v19 = vpack.c.bf16 %v4226_v14, %v4226_v14  ;;  %v4324_v20 = vld [vmem:[#allocation12 + $0x7] sm:$0x1] }
 0xe37   : > { %8367 = vmatprep.subr.bf16.mxu0 %v9711_v0 }
 0xe3a   : > { %8368 = vmatpush3.bf16.msra.mxu0 %v3314_v24  ;;  %v3533_v24 = vpack.c.bf16 %v3519_v15, %v3518_v23 }
 0xe3b   : > { %8369 = vmatprep.subr.bf16.mxu0 %v9711_v0 }
 0xe3e   : > { %8370 = vmatpush3.bf16.msra.mxu0 %v3315_v27  ;;  %v3534_v27 = vpack.c.bf16 %v3521_v16, %v3520_v25 }
 0xe3f   : > { %8371 = vmatprep.subr.bf16.mxu0 %v9711_v0 }
 0xef8   : > { %v3282_v17 = vpop.f32.mrb[52].mxu0 }
 0xef9   : > { %v3288_v18 = vadd.f32 %v3282_v17, %v3173_v58  ;;  %v8323_v29 = vpop.f32.mrb[53].mxu0  ;;  %v3307_v58 = vld [vmem:[%s11705_s0 + $0x70] sm:$0xff] }
 0xefa   : > { %v3285_v31 = vpop.f32.mrb[54].mxu0  ;;  %v3316_v60 = vpack.c.bf16 %v3308_v59, %v3307_v58  ;;  %v3522_v17 = vld [vmem:[%s11705_s0 + $0x130] sm:$0xff]  ;;  %v3524_v29 = vld [vmem:[%s11705_s0 + $0x140] sm:$0xff] }
 0xefb   : > { %v3290_v32 = vadd.f32 %v3289_v30, %v3288_v18  ;;  %v8324_v33 = vpop.f32.mrb[55].mxu0  ;;  %v3523_v30 = vld [vmem:[%s11705_s0 + $0x138] sm:$0xff]  ;;  %v3525_v31 = vld [vmem:[%s11705_s0 + $0x148] sm:$0xff] }
 0xefc   : > { %8372 = vmatpush3.bf16.msra.mxu0 %v3316_v60  ;;  %v3535_v18 = vpack.c.bf16 %v3523_v30, %v3522_v17  ;;  %v3526_v33 = vld [vmem:[%s11705_s0 + $0x150] sm:$0xff] }
 0xefd   : > { %v3291_v34 = vmax.f32 %v3290_v32, 0.0  ;;  %8403 = vmatprep.subr.bf16.mxu0 %v9711_v0  ;;  %v3536_v32 = vpack.c.bf16 %v3525_v31, %v3524_v29 }
 0xeff   : > { %v3292_v36 = vpack.c.bf16 %v3291_v34, %v3291_v34  ;;  %v3527_v34 = vld [vmem:[%s11705_s0 + $0x158] sm:$0xff] }
 0xf00   : > { %v3537_v35 = vpack.c.bf16 %v3527_v34, %v3526_v33 }
 0xf01   : > { %v10704_v37 = vsel %vm2307_vm3, %v3292_v36, 0  ;;  %v3528_v36 = vld [vmem:[%s11705_s0 + $0x160] sm:$0xff] }
 0xf02   : > { %8326 = vmatpush3.bf16.msra.mxu1 %v10704_v37 }
 0xf03   : > { %8331 = vmatprep.subr.bf16.mxu1 %v9711_v0 }
 0xf05   : > { %8328 = vmatmul.mubr.msk.bf16.vlgmr.msra.gmra.mrb[60].mxu1 %vm2303_vm4, %v3318_v38 }
 0xf06   : > { %8332 = vmatpush3.bf16.msra.mxu1 %v10704_v37  ;;  %8333 = vmatprep.mubr.msk.bf16.mxu1 %vm9712_vm0, %v9711_v0 }
 0xf07   : > { %8337 = vmatprep.subr.bf16.mxu1 %v9711_v0 }
 0xf0d   : > { %8334 = vmatmul.mubr.msk.bf16.vlgmr.msra.gmra.mrb[64].mxu1 %vm2303_vm4, %v3391_v42 }
 0xf0e   : > { %8338 = vmatpush3.bf16.msra.mxu1 %v3382_v43  ;;  %8353 = vmatprep.mubr.msk.bf16.mxu1 %vm9712_vm0, %v9711_v0 }
 0xf0f   : > { %8339 = vmatprep.subr.bf16.mxu1 %v9711_v0 }
 0xf12   : > { %8340 = vmatpush3.bf16.msra.mxu1 %v3383_v46 }
 0xf13   : > { %8341 = vmatprep.subr.bf16.mxu1 %v9711_v0 }
 0xf16   : > { %8342 = vmatpush3.bf16.msra.mxu1 %v3384_v49 }
 0xf17   : > { %8343 = vmatprep.subr.bf16.mxu1 %v9711_v0 }
 0xf1a   : > { %8344 = vmatpush3.bf16.msra.mxu1 %v3385_v51 }
 0xf1b   : > { %8345 = vmatprep.subr.bf16.mxu1 %v9711_v0 }
 0xf1e   : > { %8346 = vmatpush3.bf16.msra.mxu1 %v3386_v54 }
 0xf1f   : > { %8347 = vmatprep.subr.bf16.mxu1 %v9711_v0 }
 0xf22   : > { %8348 = vmatpush3.bf16.msra.mxu1 %v3387_v57 }
 0xf23   : > { %8349 = vmatprep.subr.bf16.mxu1 %v9711_v0 }
 0xf26   : > { %8350 = vmatpush3.bf16.msra.mxu1 %v3388_v63  ;;  %v3636_v63 = vld [vmem:[#allocation12] sm:$0x1] }
 0xf27   : > { %8351 = vmatprep.subr.bf16.mxu1 %v9711_v0 }
 0xf2a   : > { %8352 = vmatpush3.bf16.msra.mxu1 %v3389_v3 }
 0xf2b   : > { %8377 = vmatprep.subr.bf16.mxu1 %v9711_v0 }
 0xfd8   : > { %v3359_v4 = vpop.f32.mrb[60].mxu1 }
 0xfd9   : > { %v3365_v5 = vpack.c.bf16 %v3359_v4, %v3359_v4  ;;  %v8329_v6 = vpop.f32.mrb[61].mxu1  ;;  %v3637_v4 = vpack.c.bf16 %v3636_v63, %v3636_v63 }
 0xfda   : > { %v3362_v7 = vpop.f32.mrb[62].mxu1  ;;  %v3690_v6 = vld [vmem:[#allocation12 + $0x1] sm:$0x1] }
 0xfdb   : > { %v8330_v8 = vpop.f32.mrb[63].mxu1  ;;  %8374 = vmatmul.mubr.bf16.vlgmr.msra.gmra.mrb[56].mxu0 %v3365_v5  ;;  %v3835_v5 = vpack.c.bf16 %v3834_v1, %v3834_v1  ;;  %v3932_v7 = vld [vmem:[#allocation12 + $0x3] sm:$0x1] }
 0xfdc   : > { %8405 = vmatprep.mubr.msk.bf16.mxu0 %vm9712_vm0, %v9711_v0  ;;  %v3691_v8 = vpack.c.bf16 %v3690_v6, %v3690_v6 }
 0xfe0   : > { %v3429_v9 = vpop.f32.mrb[64].mxu1 }
 0xfe1   : > { %v3435_v10 = vpack.c.bf16 %v3429_v9, %v3429_v9  ;;  %v8335_v11 = vpop.f32.mrb[65].mxu1  ;;  %v3933_v9 = vpack.c.bf16 %v3932_v7, %v3932_v7 }
 0xfe2   : > { %v3432_v12 = vpop.f32.mrb[66].mxu1 }
 0xfe3   : > { %v8336_v13 = vpop.f32.mrb[67].mxu1  ;;  %8354 = vmatmul.mubr.bf16.vlgmr.msra.gmra.mrb[68].mxu1 %v3435_v10  ;;  %v4030_v10 = vld [vmem:[#allocation12 + $0x4] sm:$0x1]  ;;  %v4128_v12 = vld [vmem:[#allocation12 + $0x5] sm:$0x1] }
 0xfe4   : > { %8378 = vmatpush3.bf16.msra.mxu1 %v10704_v37  ;;  %8379 = vmatprep.mubr.msk.bf16.mxu1 %vm9712_vm0, %v9711_v0  ;;  %v3529_v37 = vld [vmem:[%s11705_s0 + $0x168] sm:$0xff]  ;;  %v4031_v11 = vpack.c.bf16 %v4030_v10, %v4030_v10  ;;  %s11707_s0 = sld [smem:[#allocation50_spill]]  ;;  %v4129_v13 = vpack.c.bf16 %v4128_v12, %v4128_v12 }
 0xfe5   : > { %8383 = vmatprep.subr.bf16.mxu1 %v9711_v0  ;;  %v3538_v38 = vpack.c.bf16 %v3529_v37, %v3528_v36 }
 0xfea   : > { %v3686_v23 = vld [vmem:[%s11707_s0 + $0x20] sm:$0xff]  ;;  %v3633_v36 = vld [vmem:[%s11707_s0 + $0x10] sm:$0xff] }
 0xfeb   : > { %8380 = vmatmul.mubr.msk.bf16.vlgmr.msra.gmra.mrb[72].mxu1 %vm2303_vm4, %v3541_v21  ;;  %v4325_v21 = vpack.c.bf16 %v4324_v20, %v4324_v20  ;;  %v3631_v34 = vld [vmem:[%s11707_s0] sm:$0xff] }
 0xfec   : > { %8384 = vmatpush3.bf16.msra.mxu1 %v3532_v22  ;;  %8399 = vmatprep.mubr.msk.bf16.mxu1 %vm9712_vm0, %v9711_v0  ;;  %v3685_v22 = vld [vmem:[%s11707_s0 + $0x18] sm:$0xff]  ;;  %v4025_v7 = vld [vmem:[%s11707_s0 + $0x60] sm:$0xff] }
 0xfed   : > { %8385 = vmatprep.subr.bf16.mxu1 %v9711_v0  ;;  %v3688_v15 = vpack.c.bf16 %v3686_v23, %v3685_v22  ;;  %v4123_v22 = vld [vmem:[%s11707_s0 + $0x78] sm:$0xff]  ;;  %v4124_v23 = vld [vmem:[%s11707_s0 + $0x80] sm:$0xff] }
 0xff0   : > { %8386 = vmatpush3.bf16.msra.mxu1 %v3533_v24  ;;  %v3687_v24 = vld [vmem:[%s11707_s0 + $0x28] sm:$0xff] }
 0xff1   : > { %8387 = vmatprep.subr.bf16.mxu1 %v9711_v0  ;;  %v3689_v25 = vpack.c.bf16 %v3687_v24, %v3687_v24 }
 0xff3   : > { %v3741_v16 = vsel %vm2307_vm3, %v3689_v25, 0  ;;  %v4126_v25 = vpack.c.bf16 %v4124_v23, %v4123_v22 }
 0xff4   : > { %8388 = vmatpush3.bf16.msra.mxu1 %v3534_v27 }
 0xff5   : > { %8389 = vmatprep.subr.bf16.mxu1 %v9711_v0 }
 0xff8   : > { %8390 = vmatpush3.bf16.msra.mxu1 %v3535_v18 }
 0xff9   : > { %8391 = vmatprep.subr.bf16.mxu1 %v9711_v0 }
 0xffc   : > { %8392 = vmatpush3.bf16.msra.mxu1 %v3536_v32 }
 0xffd   : > { %8393 = vmatprep.subr.bf16.mxu1 %v9711_v0 }
0x1000   : > { %8394 = vmatpush3.bf16.msra.mxu1 %v3537_v35  ;;  %v3632_v35 = vld [vmem:[%s11707_s0 + $0x8] sm:$0xff] }
0x1001   : > { %8395 = vmatprep.subr.bf16.mxu1 %v9711_v0 }
0x1004   : > { %8396 = vmatpush3.bf16.msra.mxu1 %v3538_v38  ;;  %v3634_v38 = vpack.c.bf16 %v3632_v35, %v3631_v34 }
0x1005   : > { %8397 = vmatprep.subr.bf16.mxu1 %v9711_v0 }
0x1008   : > { %8398 = vmatpush3.bf16.msra.mxu1 %v3539_v41 }
0x1009   : > { %8431 = vmatprep.subr.bf16.mxu1 %v9711_v0 }
0x10ae   : > { %v3510_v42 = vpop.f32.mrb[56].mxu0 }
0x10af   : > { %v8375_v43 = vpop.f32.mrb[57].mxu0 }
0x10b0   : > { %v3513_v44 = vpop.f32.mrb[58].mxu0 }
0x10b1   : > { %v8376_v45 = vpop.f32.mrb[59].mxu0 }
0x10b6   : > { %v3470_v46 = vpop.f32.mrb[68].mxu1 }
0x10b7   : > { %v3511_v47 = vadd.f32 %v3510_v42, %v3470_v46  ;;  %v8355_v48 = vpop.f32.mrb[69].mxu1  ;;  %v3635_v42 = vpack.c.bf16 %v3633_v36, %v3633_v36 }
0x10b8   : > { %v3473_v49 = vpop.f32.mrb[70].mxu1 }
0x10b9   : > { %v8356_v26 = vpop.f32.mrb[71].mxu1  ;;  %v3787_v48 = vsel %vm2307_vm3, %v3635_v42, 0  ;;  %v3829_v49 = vld [vmem:[%s11707_s0 + $0x30] sm:$0xff] }
0x10ba   : > { %v3830_v26 = vld [vmem:[%s11707_s0 + $0x38] sm:$0xff] }
0x10be   : > { %v3579_v50 = vpop.f32.mrb[72].mxu1 }
0x10bf   : > { %v3585_v51 = vpack.c.bf16 %v3579_v50, %v3579_v50  ;;  %v8381_v52 = vpop.f32.mrb[73].mxu1  ;;  %v3831_v50 = vld [vmem:[%s11707_s0 + $0x40] sm:$0xff] }
0x10c0   : > { %v3582_v53 = vpop.f32.mrb[74].mxu1 }
0x10c1   : > { %v8382_v54 = vpop.f32.mrb[75].mxu1  ;;  %8400 = vmatmul.mubr.bf16.vlgmr.msra.gmra.mrb[76].mxu1 %v3585_v51  ;;  %v3832_v51 = vpack.c.bf16 %v3830_v26, %v3829_v49  ;;  %v4490_v26 = vld [vmem:[%s11708_s1 + $0x48] sm:$0xff] }
0x10c2   : > { %8433 = vmatprep.mubr.msk.bf16.mxu1 %vm9712_vm0, %v9711_v0  ;;  %v3833_v54 = vpack.c.bf16 %v3831_v50, %v3831_v50 }
0x1194   : > { %v3620_v55 = vpop.f32.mrb[76].mxu1 }
0x1195   : > { %v3626_v57 = vadd.f32 %v3620_v55, %v3511_v47  ;;  %v8401_v58 = vpop.f32.mrb[77].mxu1 }
0x1196   : > { %v3623_v59 = vpop.f32.mrb[78].mxu1  ;;  %v3884_v58 = vsel %vm2307_vm3, %v3833_v54, 0 }
0x1197   : > { %v3628_v60 = vadd.f32 %v3627_v56, %v3626_v57  ;;  %v8402_v61 = vpop.f32.mrb[79].mxu1  ;;  %v3927_v59 = vld [vmem:[%s11707_s0 + $0x48] sm:$0xff] }
0x1198   : > { %v3929_v61 = vld [vmem:[%s11707_s0 + $0x58] sm:$0xff] }
0x1199   : > { %v3629_v62 = vmax.f32 %v3628_v60, 0.0  ;;  %v3928_v60 = vld [vmem:[%s11707_s0 + $0x50] sm:$0xff] }
0x119a   : > { %v3930_v63 = vpack.c.bf16 %v3928_v60, %v3927_v59  ;;  %v4493_v59 = vld [vmem:[%s11708_s1 + $0x60] sm:$0xff] }
0x119b   : > { %v3630_v2 = vpack.c.bf16 %v3629_v62, %v3629_v62 }
0x119d   : > { %v3642_v3 = vsel %vm2307_vm3, %v3630_v2, 0  ;;  %v3931_v2 = vpack.c.bf16 %v3929_v61, %v3929_v61  ;;  %v4494_v61 = vld [vmem:[%s11708_s1 + $0x68] sm:$0xff] }
0x119e   : > { %8404 = vmatpush3.bf16.msra.mxu0 %v3642_v3  ;;  %8432 = vmatpush3.bf16.msra.mxu1 %v3642_v3 }
0x119f   : > { %8409 = vmatprep.subr.bf16.mxu0 %v9711_v0  ;;  %8445 = vmatprep.subr.bf16.mxu1 %v9711_v0  ;;  %v3982_v6 = vsel %vm2307_vm3, %v3931_v2, 0  ;;  %v4495_v2 = vld [vmem:[%s11708_s1 + $0x70] sm:$0xff] }
0x11a1   : > { %8406 = vmatmul.mubr.msk.bf16.vlgmr.msra.gmra.mrb[60].mxu0 %vm2303_vm4, %v3637_v4  ;;  %8434 = vmatmul.mubr.msk.bf16.vlgmr.msra.gmra.mrb[80].mxu1 %vm2303_vm4, %v3835_v5 }
0x11a2   : > { %8410 = vmatpush3.bf16.msra.mxu0 %v3642_v3  ;;  %8446 = vmatpush3.bf16.msra.mxu1 %v3642_v3 }
0x11a3   : > { %8411 = vmatprep.mubr.msk.bf16.mxu0 %vm9712_vm0, %v9711_v0  ;;  %8447 = vmatprep.mubr.msk.bf16.mxu1 %vm9712_vm0, %v9711_v0 }
0x11a4   : > { %8459 = vmatprep.subr.bf16.mxu1 %v9711_v0  ;;  %8415 = vmatprep.subr.bf16.mxu0 %v9711_v0 }
0x11a9   : > { %8412 = vmatmul.mubr.msk.bf16.vlgmr.msra.gmra.mrb[64].mxu0 %vm2303_vm4, %v3691_v8  ;;  %8448 = vmatmul.mubr.msk.bf16.vlgmr.msra.gmra.mrb[84].mxu1 %vm2303_vm4, %v3933_v9  ;;  %v4026_v8 = vld [vmem:[%s11707_s0 + $0x68] sm:$0xff]  ;;  %v4027_v9 = vld [vmem:[%s11707_s0 + $0x70] sm:$0xff] }
0x11aa   : > { %8460 = vmatpush3.bf16.msra.mxu1 %v3642_v3  ;;  %8461 = vmatprep.mubr.msk.bf16.mxu1 %vm9712_vm0, %v9711_v0 }
0x11ab   : > { %8473 = vmatprep.subr.bf16.mxu1 %v9711_v0  ;;  %8419 = vmatprep.mubr.msk.bf16.mxu0 %vm9712_vm0, %v9711_v0 }
0x11ac   : > { %8416 = vmatpush3.bf16.msra.mxu0 %v3688_v15  ;;  %v4125_v15 = vld [vmem:[%s11707_s0 + $0x88] sm:$0xff] }
0x11ad   : > { %8417 = vmatprep.subr.bf16.mxu0 %v9711_v0 }
0x11b0   : > { %8418 = vmatpush3.bf16.msra.mxu0 %v3741_v16 }
0x11b1   : > { %8462 = vmatmul.mubr.msk.bf16.vlgmr.msra.gmra.mrb[88].mxu1 %vm2303_vm4, %v4031_v11  ;;  %8423 = vmatprep.subr.bf16.mxu0 %v9711_v0  ;;  %v4028_v11 = vpack.c.bf16 %v4026_v8, %v4025_v7 }
0x11b2   : > { %8474 = vmatpush3.bf16.msra.mxu1 %v3642_v3  ;;  %8475 = vmatprep.mubr.msk.bf16.mxu1 %vm9712_vm0, %v9711_v0 }
0x11b3   : > { %8487 = vmatprep.subr.bf16.mxu1 %v9711_v0 }
0x11b9   : > { %8476 = vmatmul.mubr.msk.bf16.vlgmr.msra.gmra.mrb[92].mxu1 %vm2303_vm4, %v4129_v13  ;;  %v4029_v13 = vpack.c.bf16 %v4027_v9, %v4027_v9 }
0x11ba   : > { %8488 = vmatpush3.bf16.msra.mxu1 %v3642_v3  ;;  %8489 = vmatprep.mubr.msk.bf16.mxu1 %vm9712_vm0, %v9711_v0 }
0x11bb   : > { %8501 = vmatprep.subr.bf16.mxu1 %v9711_v0 }
0x11c1   : > { %8490 = vmatmul.mubr.msk.bf16.vlgmr.msra.gmra.mrb[96].mxu1 %vm2303_vm4, %v4227_v19 }
0x11c2   : > { %8502 = vmatpush3.bf16.msra.mxu1 %v3642_v3  ;;  %8503 = vmatprep.mubr.msk.bf16.mxu1 %vm9712_vm0, %v9711_v0 }
0x11c3   : > { %8515 = vmatprep.subr.bf16.mxu1 %v9711_v0 }
0x11c9   : > { %8504 = vmatmul.mubr.msk.bf16.vlgmr.msra.gmra.mrb[100].mxu1 %vm2303_vm4, %v4325_v21  ;;  %v4080_v21 = vsel %vm2307_vm3, %v4029_v13, 0 }
0x11ca   : > { %8523 = vmatprep.mubr.msk.bf16.mxu1 %vm9712_vm0, %v9711_v0 }
0x1274   : > { %v3678_v27 = vpop.f32.mrb[60].mxu0  ;;  %v3873_v17 = vpop.f32.mrb[80].mxu1 }
0x1275   : > { %v8407_v30 = vpop.f32.mrb[61].mxu0  ;;  %v8435_v18 = vpop.f32.mrb[81].mxu1  ;;  %v3684_v53 = vpack.c.bf16 %v3678_v27, %v3678_v27  ;;  %v3879_v62 = vpack.c.bf16 %v3873_v17, %v3873_v17  ;;  %v4127_v27 = vpack.c.bf16 %v4125_v15, %v4125_v15 }
0x1276   : > { %v3681_v29 = vpop.f32.mrb[62].mxu0  ;;  %v3876_v31 = vpop.f32.mrb[82].mxu1 }
0x1277   : > { %v8408_v32 = vpop.f32.mrb[63].mxu0  ;;  %v8436_v33 = vpop.f32.mrb[83].mxu1  ;;  %v4178_v29 = vsel %vm2307_vm3, %v4127_v27, 0  ;;  %v4221_v31 = vld [vmem:[%s11707_s0 + $0x90] sm:$0xff] }
0x1278   : > { %v4222_v32 = vld [vmem:[%s11707_s0 + $0x98] sm:$0xff]  ;;  %v4223_v33 = vld [vmem:[%s11707_s0 + $0xa0] sm:$0xff] }
0x1279   : > { %v4224_v35 = vpack.c.bf16 %v4222_v32, %v4221_v31  ;;  %v4225_v36 = vpack.c.bf16 %v4223_v33, %v4223_v33 }
0x127c   : > { %v3729_v37 = vpop.f32.mrb[64].mxu0  ;;  %v3971_v39 = vpop.f32.mrb[84].mxu1 }
0x127d   : > { %v3735_v40 = vpack.c.bf16 %v3729_v37, %v3729_v37  ;;  %v8413_v41 = vpop.f32.mrb[65].mxu0  ;;  %v8449_v43 = vpop.f32.mrb[85].mxu1  ;;  %v3977_v10 = vpack.c.bf16 %v3971_v39, %v3971_v39  ;;  %v4276_v37 = vsel %vm2307_vm3, %v4225_v36, 0  ;;  %v4320_v39 = vld [vmem:[%s11707_s0 + $0xb0] sm:$0xff] }
0x127e   : > { %v3732_v44 = vpop.f32.mrb[66].mxu0  ;;  %v3974_v45 = vpop.f32.mrb[86].mxu1 }
0x127f   : > { %v8414_v46 = vpop.f32.mrb[67].mxu0  ;;  %8420 = vmatmul.mubr.msk.bf16.vlgmr.msra.gmra.mrb[68].mxu0 %vm3736_vm5, %v3735_v40  ;;  %v8450_v47 = vpop.f32.mrb[87].mxu1  ;;  %v4321_v40 = vld [vmem:[%s11707_s0 + $0xb8] sm:$0xff] }
0x1280   : > { %8424 = vmatpush3.bf16.msra.mxu0 %v3634_v38  ;;  %8427 = vmatprep.mubr.msk.bf16.mxu0 %vm9712_vm0, %v9711_v0  ;;  %v4319_v38 = vld [vmem:[%s11707_s0 + $0xa8] sm:$0xff]  ;;  %v4323_v43 = vpack.c.bf16 %v4321_v40, %v4321_v40  ;;  %v4424_v46 = vld [vmem:[%s11708_s1] sm:$0xff]  ;;  %s11709_s0 = sld [smem:[#allocation51_spill]] }
0x1281   : > { %8425 = vmatprep.subr.bf16.mxu0 %v9711_v0  ;;  %v4322_v42 = vpack.c.bf16 %v4320_v39, %v4319_v38  ;;  %v4425_v47 = vld [vmem:[%s11708_s1 + $0x8] sm:$0xff] }
0x1282   : > { %v4374_v44 = vsel %vm2307_vm3, %v4323_v43, 0  ;;  %v4432_v49 = vpack.c.bf16 %v4425_v47, %v4424_v46 }
0x1284   : > { %8426 = vmatpush3.bf16.msra.mxu0 %v3787_v48  ;;  %v4069_v52 = vpop.f32.mrb[88].mxu1  ;;  %v4489_v48 = vld [vmem:[%s11708_s1 + $0x40] sm:$0xff]  ;;  %8516 = vmatpush3.bf16.msra.mxu1 %v4432_v49 }
0x1285   : > { %8437 = vmatprep.subr.bf16.mxu0 %v9711_v0  ;;  %v8463_v55 = vpop.f32.mrb[89].mxu1  ;;  %v4075_v24 = vpack.c.bf16 %v4069_v52, %v4069_v52  ;;  %v4497_v50 = vpack.c.bf16 %v4490_v26, %v4489_v48  ;;  %8517 = vmatprep.subr.bf16.mxu1 %v9711_v0  ;;  %v4427_v52 = vld [vmem:[%s11708_s1 + $0x18] sm:$0xff] }
0x1286   : > { %v4072_v56 = vpop.f32.mrb[90].mxu1  ;;  %v4492_v55 = vld [vmem:[%s11708_s1 + $0x58] sm:$0xff]  ;;  %v4417_v43 = vld [vmem:[%s11709_s0] sm:$0x1]  ;;  %s11710_s0 = sld [smem:[#allocation53_spill]] }
0x1287   : > { %8428 = vmatmul.mubr.msk.bf16.vlgmr.msra.gmra.mrb[72].mxu0 %vm3736_vm5, %v3684_v53  ;;  %v8464_v57 = vpop.f32.mrb[91].mxu1  ;;  %v4491_v53 = vld [vmem:[%s11708_s1 + $0x50] sm:$0xff] }
0x1288   : > { %8438 = vmatpush3.bf16.msra.mxu0 %v3832_v51  ;;  %8441 = vmatprep.mubr.msk.bf16.mxu0 %vm9712_vm0, %v9711_v0  ;;  %v4426_v51 = vld [vmem:[%s11708_s1 + $0x10] sm:$0xff]  ;;  %v4498_v56 = vpack.c.bf16 %v4492_v55, %v4491_v53  ;;  %v4428_v57 = vld [vmem:[%s11708_s1 + $0x20] sm:$0xff] }
0x1289   : > { %8439 = vmatprep.subr.bf16.mxu0 %v9711_v0  ;;  %v4433_v54 = vpack.c.bf16 %v4427_v52, %v4426_v51  ;;  %v4549_v52 = vld [vmem:[%s11708_s1 + $0x88] sm:$0xff]  ;;  %v4607_v53 = vld [vmem:[%s11708_s1 + $0xc0] sm:$0xff] }
0x128b   : > { %8518 = vmatpush3.bf16.msra.mxu1 %v4433_v54  ;;  %v4608_v54 = vld [vmem:[%s11708_s1 + $0xc8] sm:$0xff] }
0x128c   : > { %8440 = vmatpush3.bf16.msra.mxu0 %v3884_v58  ;;  %v4167_v1 = vpop.f32.mrb[92].mxu1  ;;  %8519 = vmatprep.subr.bf16.mxu1 %v9711_v0  ;;  %v4429_v58 = vld [vmem:[%s11708_s1 + $0x28] sm:$0xff] }
0x128d   : > { %8451 = vmatprep.subr.bf16.mxu0 %v9711_v0  ;;  %v8477_v3 = vpop.f32.mrb[93].mxu1  ;;  %v4173_v34 = vpack.c.bf16 %v4167_v1, %v4167_v1  ;;  %v4434_v60 = vpack.c.bf16 %v4429_v58, %v4428_v57  ;;  %v4431_v1 = vld [vmem:[%s11708_s1 + $0x38] sm:$0xff]  ;;  %v4615_v57 = vpack.c.bf16 %v4608_v54, %v4607_v53  ;;  %v4550_v58 = vld [vmem:[%s11708_s1 + $0x90] sm:$0xff]  ;;  %v4847_v53 = vld [vmem:[%s11708_s1 + $0x1e0] sm:$0xff] }
0x128e   : > { %v4170_v4 = vpop.f32.mrb[94].mxu1  ;;  %v4848_v54 = vld [vmem:[%s11708_s1 + $0x1e8] sm:$0xff] }
0x128f   : > { %8442 = vmatmul.mubr.msk.bf16.vlgmr.msra.gmra.mrb[76].mxu0 %vm3736_vm5, %v3879_v62  ;;  %v8478_v5 = vpop.f32.mrb[95].mxu1  ;;  %v4499_v62 = vpack.c.bf16 %v4494_v61, %v4493_v59  ;;  %8520 = vmatpush3.bf16.msra.mxu1 %v4434_v60  ;;  %v4496_v4 = vld [vmem:[%s11708_s1 + $0x78] sm:$0xff]  ;;  %v4609_v61 = vld [vmem:[%s11708_s1 + $0xd0] sm:$0xff] }
0x1290   : > { %8452 = vmatpush3.bf16.msra.mxu0 %v3930_v63  ;;  %8455 = vmatprep.mubr.msk.bf16.mxu0 %vm9712_vm0, %v9711_v0  ;;  %v4430_v63 = vld [vmem:[%s11708_s1 + $0x30] sm:$0xff]  ;;  %v4500_v5 = vpack.c.bf16 %v4496_v4, %v4495_v2  ;;  %v4551_v60 = vld [vmem:[%s11708_s1 + $0x98] sm:$0xff]  ;;  %v4552_v2 = vld [vmem:[%s11708_s1 + $0xa0] sm:$0xff] }
0x1291   : > { %8453 = vmatprep.subr.bf16.mxu0 %v9711_v0  ;;  %8521 = vmatprep.subr.bf16.mxu1 %v9711_v0  ;;  %v4435_v3 = vpack.c.bf16 %v4431_v1, %v4430_v63  ;;  %v4557_v63 = vpack.c.bf16 %v4551_v60, %v4550_v58  ;;  %v4611_v4 = vld [vmem:[%s11708_s1 + $0xe0] sm:$0xff]  ;;  %v4791_v58 = vld [vmem:[%s11708_s1 + $0x1b8] sm:$0xff]  ;;  %v4849_v60 = vld [vmem:[%s11708_s1 + $0x1f0] sm:$0xff] }
0x1293   : > { %8522 = vmatpush3.bf16.msra.mxu1 %v4435_v3  ;;  %v4553_v3 = vld [vmem:[%s11708_s1 + $0xa8] sm:$0xff] }
0x1294   : > { %8454 = vmatpush3.bf16.msra.mxu0 %v3982_v6  ;;  %v4265_v12 = vpop.f32.mrb[96].mxu1  ;;  %8539 = vmatprep.subr.bf16.mxu1 %v9711_v0 }
0x1295   : > { %8465 = vmatprep.subr.bf16.mxu0 %v9711_v0  ;;  %v8491_v14 = vpop.f32.mrb[97].mxu1  ;;  %v4271_v41 = vpack.c.bf16 %v4265_v12, %v4265_v12 }
0x1296   : > { %v4268_v19 = vpop.f32.mrb[98].mxu1 }
0x1297   : > { %8456 = vmatmul.mubr.msk.bf16.vlgmr.msra.gmra.mrb[80].mxu0 %vm3736_vm5, %v3977_v10  ;;  %v8492_v20 = vpop.f32.mrb[99].mxu1 }
0x1298   : > { %8466 = vmatpush3.bf16.msra.mxu0 %v4028_v11  ;;  %8469 = vmatprep.mubr.msk.bf16.mxu0 %vm9712_vm0, %v9711_v0 }
0x1299   : > { %8467 = vmatprep.subr.bf16.mxu0 %v9711_v0 }
0x129c   : > { %8468 = vmatpush3.bf16.msra.mxu0 %v4080_v21  ;;  %v4363_v16 = vpop.f32.mrb[100].mxu1 }
0x129d   : > { %8479 = vmatprep.subr.bf16.mxu0 %v9711_v0  ;;  %v8505_v17 = vpop.f32.mrb[101].mxu1  ;;  %v4369_v45 = vpack.c.bf16 %v4363_v16, %v4363_v16 }
0x129e   : > { %v4366_v30 = vpop.f32.mrb[102].mxu1 }
0x129f   : > { %8470 = vmatmul.mubr.msk.bf16.vlgmr.msra.gmra.mrb[84].mxu0 %vm3736_vm5, %v4075_v24  ;;  %v8506_v18 = vpop.f32.mrb[103].mxu1 }
0x12a0   : > { %8480 = vmatpush3.bf16.msra.mxu0 %v4126_v25  ;;  %8483 = vmatprep.mubr.msk.bf16.mxu0 %vm9712_vm0, %v9711_v0 }
0x12a1   : > { %8481 = vmatprep.subr.bf16.mxu0 %v9711_v0 }
0x12a4   : > { %8482 = vmatpush3.bf16.msra.mxu0 %v4178_v29 }
0x12a5   : > { %8493 = vmatprep.subr.bf16.mxu0 %v9711_v0 }
0x12a7   : > { %8484 = vmatmul.mubr.msk.bf16.vlgmr.msra.gmra.mrb[88].mxu0 %vm3736_vm5, %v4173_v34 }
0x12a8   : > { %8494 = vmatpush3.bf16.msra.mxu0 %v4224_v35  ;;  %8497 = vmatprep.mubr.msk.bf16.mxu0 %vm9712_vm0, %v9711_v0 }
0x12a9   : > { %8495 = vmatprep.subr.bf16.mxu0 %v9711_v0 }
0x12ac   : > { %8496 = vmatpush3.bf16.msra.mxu0 %v4276_v37 }
0x12ad   : > { %8507 = vmatprep.subr.bf16.mxu0 %v9711_v0 }
0x12af   : > { %8498 = vmatmul.mubr.msk.bf16.vlgmr.msra.gmra.mrb[92].mxu0 %vm3736_vm5, %v4271_v41 }
0x12b0   : > { %8508 = vmatpush3.bf16.msra.mxu0 %v4322_v42  ;;  %8511 = vmatprep.mubr.msk.bf16.mxu0 %vm9712_vm0, %v9711_v0 }
0x12b1   : > { %8509 = vmatprep.subr.bf16.mxu0 %v9711_v0 }
0x12b4   : > { %8510 = vmatpush3.bf16.msra.mxu0 %v4374_v44 }
0x12b5   : > { %8527 = vmatprep.subr.bf16.mxu0 %v9711_v0 }
0x12b7   : > { %8512 = vmatmul.mubr.msk.bf16.vlgmr.msra.gmra.mrb[96].mxu0 %vm3736_vm5, %v4369_v45 }
0x12b8   : > { %8535 = vmatprep.mubr.msk.bf16.mxu0 %vm9712_vm0, %v9711_v0  ;;  %8528 = vmatpush3.bf16.msra.mxu0 %v4497_v50  ;;  %v4548_v50 = vld [vmem:[%s11708_s1 + $0x80] sm:$0xff] }
0x12b9   : > { %8529 = vmatprep.subr.bf16.mxu0 %v9711_v0 }
0x12bc   : > { %8530 = vmatpush3.bf16.msra.mxu0 %v4498_v56  ;;  %v4556_v56 = vpack.c.bf16 %v4549_v52, %v4548_v50  ;;  %v4789_v52 = vld [vmem:[%s11708_s1 + $0x1a8] sm:$0xff] }
0x12bd   : > { %8531 = vmatprep.subr.bf16.mxu0 %v9711_v0 }
0x12c0   : > { %8532 = vmatpush3.bf16.msra.mxu0 %v4499_v62  ;;  %v4610_v62 = vld [vmem:[%s11708_s1 + $0xd8] sm:$0xff] }
0x12c1   : > { %8533 = vmatprep.subr.bf16.mxu0 %v9711_v0  ;;  %v4616_v1 = vpack.c.bf16 %v4610_v62, %v4609_v61  ;;  %v4850_v61 = vld [vmem:[%s11708_s1 + $0x1f8] sm:$0xff] }
0x12c4   : > { %8534 = vmatpush3.bf16.msra.mxu0 %v4500_v5  ;;  %v4612_v5 = vld [vmem:[%s11708_s1 + $0xe8] sm:$0xff] }
0x12c5   : > { %8551 = vmatprep.subr.bf16.mxu0 %v9711_v0 }
0x1352   : > { %v3777_v6 = vpop.f32.mrb[68].mxu0 }
0x1353   : > { %v8421_v7 = vpop.f32.mrb[69].mxu0 }
0x1354   : > { %v3780_v8 = vpop.f32.mrb[70].mxu0  ;;  %v4617_v7 = vpack.c.bf16 %v4612_v5, %v4611_v4 }
0x1355   : > { %v8422_v9 = vpop.f32.mrb[71].mxu0  ;;  %v4554_v8 = vld [vmem:[%s11708_s1 + $0xb0] sm:$0xff] }
0x1356   : > { %v4555_v9 = vld [vmem:[%s11708_s1 + $0xb8] sm:$0xff] }
0x135a   : > { %v3823_v10 = vpop.f32.mrb[72].mxu0 }
0x135b   : > { %v3824_v11 = vadd.f32 %v3823_v10, %v3777_v6  ;;  %v8429_v12 = vpop.f32.mrb[73].mxu0  ;;  %v4558_v6 = vpack.c.bf16 %v4553_v3, %v4552_v2  ;;  %v4613_v10 = vld [vmem:[%s11708_s1 + $0xf0] sm:$0xff] }
0x135c   : > { %v3826_v13 = vpop.f32.mrb[74].mxu0  ;;  %v4559_v12 = vpack.c.bf16 %v4555_v9, %v4554_v8 }
0x135d   : > { %v8430_v14 = vpop.f32.mrb[75].mxu0 }
0x135e   : > { %v4666_v14 = vld [vmem:[%s11708_s1 + $0x100] sm:$0xff] }
0x1362   : > { %v3920_v19 = vpop.f32.mrb[76].mxu0 }
0x1363   : > { %v3926_v20 = vadd.f32 %v3920_v19, %v3824_v11  ;;  %v8443_v21 = vpop.f32.mrb[77].mxu0  ;;  %v4614_v11 = vld [vmem:[%s11708_s1 + $0xf8] sm:$0xff]  ;;  %v4667_v19 = vld [vmem:[%s11708_s1 + $0x108] sm:$0xff] }
0x1364   : > { %v3923_v22 = vpop.f32.mrb[78].mxu0  ;;  %v4618_v13 = vpack.c.bf16 %v4614_v11, %v4613_v10  ;;  %v4726_v21 = vld [vmem:[%s11708_s1 + $0x148] sm:$0xff] }
0x1365   : > { %v8444_v23 = vpop.f32.mrb[79].mxu0  ;;  %v4674_v22 = vpack.c.bf16 %v4667_v19, %v4666_v14 }
0x136a   : > { %v4018_v15 = vpop.f32.mrb[80].mxu0 }
0x136b   : > { %v4024_v24 = vadd.f32 %v4018_v15, %v3926_v20  ;;  %v8457_v25 = vpop.f32.mrb[81].mxu0  ;;  %v4725_v20 = vld [vmem:[%s11708_s1 + $0x140] sm:$0xff]  ;;  %v4668_v15 = vld [vmem:[%s11708_s1 + $0x110] sm:$0xff] }
0x136c   : > { %v4021_v16 = vpop.f32.mrb[82].mxu0  ;;  %v4733_v23 = vpack.c.bf16 %v4726_v21, %v4725_v20  ;;  %v4727_v25 = vld [vmem:[%s11708_s1 + $0x150] sm:$0xff] }
0x136d   : > { %v8458_v27 = vpop.f32.mrb[83].mxu0  ;;  %v4728_v16 = vld [vmem:[%s11708_s1 + $0x158] sm:$0xff] }
0x1372   : > { %v4116_v17 = vpop.f32.mrb[84].mxu0 }
0x1373   : > { %v4122_v30 = vadd.f32 %v4116_v17, %v4024_v24  ;;  %v8471_v18 = vpop.f32.mrb[85].mxu0  ;;  %v4669_v24 = vld [vmem:[%s11708_s1 + $0x118] sm:$0xff]  ;;  %v4734_v17 = vpack.c.bf16 %v4728_v16, %v4727_v25 }
0x1374   : > { %v4119_v29 = vpop.f32.mrb[86].mxu0  ;;  %v4675_v27 = vpack.c.bf16 %v4669_v24, %v4668_v15  ;;  %v4671_v18 = vld [vmem:[%s11708_s1 + $0x128] sm:$0xff] }
0x1375   : > { %v8472_v31 = vpop.f32.mrb[87].mxu0  ;;  %v4729_v29 = vld [vmem:[%s11708_s1 + $0x160] sm:$0xff] }
0x1376   : > { %v4730_v31 = vld [vmem:[%s11708_s1 + $0x168] sm:$0xff] }
0x137a   : > { %v4214_v32 = vpop.f32.mrb[88].mxu0 }
0x137b   : > { %v4220_v33 = vadd.f32 %v4214_v32, %v4122_v30  ;;  %v8485_v34 = vpop.f32.mrb[89].mxu0  ;;  %v4670_v30 = vld [vmem:[%s11708_s1 + $0x120] sm:$0xff] }
0x137c   : > { %v4217_v35 = vpop.f32.mrb[90].mxu0  ;;  %v4676_v32 = vpack.c.bf16 %v4671_v18, %v4670_v30  ;;  %v4672_v34 = vld [vmem:[%s11708_s1 + $0x130] sm:$0xff] }
0x137d   : > { %v8486_v36 = vpop.f32.mrb[91].mxu0  ;;  %v4673_v35 = vld [vmem:[%s11708_s1 + $0x138] sm:$0xff] }
0x137e   : > { %v4731_v36 = vld [vmem:[%s11708_s1 + $0x170] sm:$0xff] }
0x1382   : > { %v4312_v37 = vpop.f32.mrb[92].mxu0 }
0x1383   : > { %v4318_v38 = vadd.f32 %v4312_v37, %v4220_v33  ;;  %v8499_v39 = vpop.f32.mrb[93].mxu0  ;;  %v4735_v33 = vpack.c.bf16 %v4730_v31, %v4729_v29  ;;  %v4732_v37 = vld [vmem:[%s11708_s1 + $0x178] sm:$0xff] }
0x1384   : > { %v4315_v40 = vpop.f32.mrb[94].mxu0  ;;  %v4736_v39 = vpack.c.bf16 %v4732_v37, %v4731_v36 }
0x1385   : > { %v8500_v41 = vpop.f32.mrb[95].mxu0  ;;  %v4784_v40 = vld [vmem:[%s11708_s1 + $0x180] sm:$0xff] }
0x1386   : > { %v4785_v41 = vld [vmem:[%s11708_s1 + $0x188] sm:$0xff] }
0x138a   : > { %v4410_v42 = vpop.f32.mrb[96].mxu0 }
0x138b   : > { %v4416_v44 = vadd.f32 %v4410_v42, %v4318_v38  ;;  %v8513_v45 = vpop.f32.mrb[97].mxu0  ;;  %v4677_v38 = vpack.c.bf16 %v4673_v35, %v4672_v34  ;;  %v4843_v42 = vld [vmem:[%s11708_s1 + $0x1c0] sm:$0xff] }
0x138c   : > { %v4413_v46 = vpop.f32.mrb[98].mxu0 }
0x138d   : > { %v4418_v47 = vadd.f32 %v4417_v43, %v4416_v44  ;;  %v8514_v48 = vpop.f32.mrb[99].mxu0  ;;  %v4844_v43 = vld [vmem:[%s11708_s1 + $0x1c8] sm:$0xff]  ;;  %v4792_v44 = vpack.c.bf16 %v4785_v41, %v4784_v40  ;;  %v4786_v46 = vld [vmem:[%s11708_s1 + $0x190] sm:$0xff] }
0x138e   : > { %v4851_v45 = vpack.c.bf16 %v4844_v43, %v4843_v42  ;;  %v4845_v48 = vld [vmem:[%s11708_s1 + $0x1d0] sm:$0xff] }
0x138f   : > { %v4419_v49 = vmul.f32 0.5, %v4418_v47  ;;  %v4787_v47 = vld [vmem:[%s11708_s1 + $0x198] sm:$0xff] }
0x1391   : > { %9150 = vtanh.f32 %v4419_v49  ;;  %v4846_v49 = vld [vmem:[%s11708_s1 + $0x1d8] sm:$0xff] }
0x1392   : > { %v4852_v50 = vpack.c.bf16 %v4846_v49, %v4845_v48 }
0x139b   : > { %v9151_v26 = vpop.eup %9150 }
0x139c   : > { %v4421_v51 = vadd.f32 1.0, %v9151_v26  ;;  %v4793_v26 = vpack.c.bf16 %v4787_v47, %v4786_v46 }
0x139e   : > { %v4422_v55 = vmul.f32 0.5, %v4421_v51  ;;  %v4788_v51 = vld [vmem:[%s11708_s1 + $0x1a0] sm:$0xff] }
0x13a0   : > { %v10915_v59 = vpack.c.bf16 %v4422_v55, %v4422_v55  ;;  %v4794_v55 = vpack.c.bf16 %v4789_v52, %v4788_v51 }
0x13a2   : > { %8524 = vmatmul.mubr.msk.bf16.vlgmr.msra.gmra.mrb[104].mxu1 %vm4436_vm6, %v10915_v59  ;;  %8536 = vmatmul.mubr.msk.bf16.vlgmr.msra.gmra.mrb[100].mxu0 %vm4436_vm6, %v10915_v59 }
0x13a3   : > { %8540 = vmatpush3.bf16.msra.mxu1 %v4556_v56  ;;  %8552 = vmatpush3.bf16.msra.mxu0 %v4615_v57  ;;  %v4853_v56 = vpack.c.bf16 %v4848_v54, %v4847_v53  ;;  %v4790_v57 = vld [vmem:[%s11708_s1 + $0x1b0] sm:$0xff]  ;;  %s11712_s1 = sld [smem:[#allocation56_spill]] }
0x13a4   : > { %8541 = vmatprep.subr.bf16.mxu1 %v9711_v0  ;;  %8553 = vmatprep.subr.bf16.mxu0 %v9711_v0  ;;  %v4795_v62 = vpack.c.bf16 %v4791_v58, %v4790_v57  ;;  %v4902_v58 = vld [vmem:[#allocation15] sm:$0xff] }
0x13a5   : > { %8547 = vmatprep.mubr.msk.bf16.mxu1 %vm9712_vm0, %v9711_v0  ;;  %8559 = vmatprep.mubr.msk.bf16.mxu0 %vm9712_vm0, %v9711_v0 }
0x13a7   : > { %8542 = vmatpush3.bf16.msra.mxu1 %v4557_v63  ;;  %8554 = vmatpush3.bf16.msra.mxu0 %v4616_v1  ;;  %v4854_v63 = vpack.c.bf16 %v4850_v61, %v4849_v60  ;;  %v4480_v1 = vlaneseq }
0x13a8   : > { %8543 = vmatprep.subr.bf16.mxu1 %v9711_v0  ;;  %8555 = vmatprep.subr.bf16.mxu0 %v9711_v0 }
0x13a9   : > { %v11016_v2 = vshrl.u32 %v4480_v1, 7  ;;  %v4965_v1 = vld [vmem:[%s11710_s0 + $0x8] sm:$0xff] }
0x13ab   : > { %8544 = vmatpush3.bf16.msra.mxu1 %v4558_v6  ;;  %8556 = vmatpush3.bf16.msra.mxu0 %v4617_v7  ;;  %v11019_v3 = vsub.s32 0, %v11016_v2  ;;  %vm4482_vm7 = vcmp.eq.s32.totalorder %v11016_v2, 0  ;;  %vm4541_vm8 = vcmp.eq.s32.totalorder %v11016_v2, 1  ;;  %vm4600_vm9 = vcmp.eq.s32.totalorder %v11016_v2, 2 }
0x13ac   : > { %8545 = vmatprep.subr.bf16.mxu1 %v9711_v0  ;;  %8557 = vmatprep.subr.bf16.mxu0 %v9711_v0  ;;  %vm4659_vm10 = vcmp.eq.s32.totalorder %v11016_v2, 3  ;;  %vm4718_vm11 = vcmp.eq.s32.totalorder %v11016_v2, 4  ;;  %vm4777_vm12 = vcmp.eq.s32.totalorder %v11016_v2, 5  ;;  %vm4836_vm13 = vcmp.eq.s32.totalorder %v11016_v2, 6 }
0x13ad   : > { %vm4895_vm14 = vcmp.eq.s32.totalorder %v11016_v2, 7 }
0x13af   : > { %8546 = vmatpush3.bf16.msra.mxu1 %v4559_v12  ;;  %8558 = vmatpush3.bf16.msra.mxu0 %v4618_v13 }
0x13b0   : > { %8563 = vmatprep.subr.bf16.mxu1 %v9711_v0  ;;  %8575 = vmatprep.subr.bf16.mxu0 %v9711_v0 }
0x13b2   : > { %8548 = vmatmul.mubr.msk.bf16.vlgmr.msra.gmra.mrb[108].mxu1 %vm4436_vm6, %v10915_v59  ;;  %8560 = vmatmul.mubr.msk.bf16.vlgmr.msra.gmra.mrb[104].mxu0 %vm4436_vm6, %v10915_v59 }
0x13b3   : > { %8564 = vmatpush3.bf16.msra.mxu1 %v4674_v22  ;;  %8576 = vmatpush3.bf16.msra.mxu0 %v4733_v23 }
0x13b4   : > { %8565 = vmatprep.subr.bf16.mxu1 %v9711_v0  ;;  %8577 = vmatprep.subr.bf16.mxu0 %v9711_v0 }
0x13b5   : > { %8571 = vmatprep.mubr.msk.bf16.mxu1 %vm9712_vm0, %v9711_v0  ;;  %8583 = vmatprep.mubr.msk.bf16.mxu0 %vm9712_vm0, %v9711_v0 }
0x13b7   : > { %8566 = vmatpush3.bf16.msra.mxu1 %v4675_v27  ;;  %8578 = vmatpush3.bf16.msra.mxu0 %v4734_v17 }
0x13b8   : > { %8567 = vmatprep.subr.bf16.mxu1 %v9711_v0  ;;  %8579 = vmatprep.subr.bf16.mxu0 %v9711_v0 }
0x13bb   : > { %8568 = vmatpush3.bf16.msra.mxu1 %v4676_v32  ;;  %8580 = vmatpush3.bf16.msra.mxu0 %v4735_v33 }
0x13bc   : > { %8569 = vmatprep.subr.bf16.mxu1 %v9711_v0  ;;  %8581 = vmatprep.subr.bf16.mxu0 %v9711_v0 }
0x13bf   : > { %8570 = vmatpush3.bf16.msra.mxu1 %v4677_v38  ;;  %8582 = vmatpush3.bf16.msra.mxu0 %v4736_v39 }
0x13c0   : > { %8587 = vmatprep.subr.bf16.mxu1 %v9711_v0  ;;  %8599 = vmatprep.subr.bf16.mxu0 %v9711_v0 }
0x13c2   : > { %8572 = vmatmul.mubr.msk.bf16.vlgmr.msra.gmra.mrb[112].mxu1 %vm4436_vm6, %v10915_v59  ;;  %8584 = vmatmul.mubr.msk.bf16.vlgmr.msra.gmra.mrb[108].mxu0 %vm4436_vm6, %v10915_v59 }
0x13c3   : > { %8588 = vmatpush3.bf16.msra.mxu1 %v4792_v44  ;;  %8600 = vmatpush3.bf16.msra.mxu0 %v4851_v45 }
0x13c4   : > { %8589 = vmatprep.subr.bf16.mxu1 %v9711_v0  ;;  %8601 = vmatprep.subr.bf16.mxu0 %v9711_v0 }
0x13c5   : > { %8595 = vmatprep.mubr.msk.bf16.mxu1 %vm9712_vm0, %v9711_v0  ;;  %8607 = vmatprep.mubr.msk.bf16.mxu0 %vm9712_vm0, %v9711_v0 }
0x13c7   : > { %8590 = vmatpush3.bf16.msra.mxu1 %v4793_v26  ;;  %8602 = vmatpush3.bf16.msra.mxu0 %v4852_v50 }
0x13c8   : > { %8591 = vmatprep.subr.bf16.mxu1 %v9711_v0  ;;  %8603 = vmatprep.subr.bf16.mxu0 %v9711_v0 }
0x13cb   : > { %8592 = vmatpush3.bf16.msra.mxu1 %v4794_v55  ;;  %8604 = vmatpush3.bf16.msra.mxu0 %v4853_v56 }
0x13cc   : > { %8593 = vmatprep.subr.bf16.mxu1 %v9711_v0  ;;  %8605 = vmatprep.subr.bf16.mxu0 %v9711_v0 }
0x13cf   : > { %8594 = vmatpush3.bf16.msra.mxu1 %v4795_v62  ;;  %8606 = vmatpush3.bf16.msra.mxu0 %v4854_v63  ;;  %v4911_v63 = vld [vmem:[%s11710_s0] sm:$0xff] }
0x13d0   : > { %8611 = vmatprep.subr.bf16.mxu1 %v9711_v0  ;;  %8617 = vmatprep.subr.bf16.mxu0 %v9711_v0 }
0x13d2   : > { %8596 = vmatmul.mubr.msk.bf16.vlgmr.msra.gmra.mrb[116].mxu1 %vm4436_vm6, %v10915_v59  ;;  %8608 = vmatmul.mubr.msk.bf16.vlgmr.msra.gmra.mrb[112].mxu0 %vm4436_vm6, %v10915_v59 }
0x13d3   : > { %8613 = vmatprep.mubr.msk.bf16.mxu1 %vm9712_vm0, %v9711_v0  ;;  %8619 = vmatprep.mubr.msk.bf16.mxu0 %vm9712_vm0, %v9711_v0 }
0x1475   : > { %v4474_v4 = vpop.f32.mrb[104].mxu1  ;;  %v4535_v5 = vpop.f32.mrb[100].mxu0 }
0x1476   : > { %v4486_v59 = vrot.slane %v4474_v4, %v11019_v3  ;;  %v4545_v6 = vrot.slane %v4535_v5, %v11019_v3  ;;  %v8525_v7 = vpop.f32.mrb[105].mxu1  ;;  %v8537_v8 = vpop.f32.mrb[101].mxu0  ;;  %v4960_v4 = vld [vmem:[#allocation16 + $0x18] sm:$0xff]  ;;  %v4961_v5 = vld [vmem:[#allocation16 + $0x20] sm:$0xff] }
0x1477   : > { %v4477_v9 = vpop.f32.mrb[106].mxu1  ;;  %v4538_v10 = vpop.f32.mrb[102].mxu0  ;;  %v4962_v7 = vld [vmem:[#allocation16 + $0x28] sm:$0xff]  ;;  %v4912_v8 = vpack.c.bf16 %v4911_v63, %v4911_v63 }
0x1478   : > { %v4487_v11 = vsel %vm4482_vm7, %v4486_v59, 0.0  ;;  %v4546_v12 = vsel %vm4541_vm8, %v4545_v6, 0.0  ;;  %v8526_v13 = vpop.f32.mrb[107].mxu1  ;;  %v8538_v14 = vpop.f32.mrb[103].mxu0  ;;  %v4906_v59 = vld [vmem:[#allocation16] sm:$0xff]  ;;  %v4907_v6 = vld [vmem:[#allocation16 + $0x8] sm:$0xff]  ;;  %v4966_v9 = vpack.c.bf16 %v4965_v1, %v4965_v1  ;;  %v4963_v10 = vpack.c.bf16 %v4961_v5, %v4960_v4 }
0x1479   : > { %v4547_v19 = vadd.f32 %v4546_v12, %v4487_v11  ;;  %v4909_v11 = vpack.c.bf16 %v4907_v6, %v4906_v59  ;;  %v4964_v12 = vpack.c.bf16 %v4962_v7, %v4962_v7  ;;  %v4908_v14 = vld [vmem:[#allocation16 + $0x10] sm:$0xff]  ;;  %v5279_v63 = vld [vmem:[%s11712_s1 + $0x88] sm:$0xff]  ;;  %v5205_v1 = vld [vmem:[%s11712_s1] sm:$0xff] }
0x147a   : > { %v5206_v4 = vld [vmem:[%s11712_s1 + $0x8] sm:$0xff] }
0x147b   : > { %v5015_v13 = vsel %vm2307_vm3, %v4964_v12, 0  ;;  %v5221_v7 = vpack.c.bf16 %v5206_v4, %v5205_v1 }
0x1485   : > { %v4594_v20 = vpop.f32.mrb[108].mxu1  ;;  %v4653_v21 = vpop.f32.mrb[104].mxu0 }
0x1486   : > { %v4604_v22 = vrot.slane %v4594_v20, %v11019_v3  ;;  %v4663_v23 = vrot.slane %v4653_v21, %v11019_v3  ;;  %v8549_v15 = vpop.f32.mrb[109].mxu1  ;;  %v8561_v24 = vpop.f32.mrb[105].mxu0 }
0x1487   : > { %v4597_v25 = vpop.f32.mrb[110].mxu1  ;;  %v4656_v16 = vpop.f32.mrb[106].mxu0 }
0x1488   : > { %v4605_v27 = vsel %vm4600_vm9, %v4604_v22, 0.0  ;;  %v8550_v17 = vpop.f32.mrb[111].mxu1  ;;  %v8562_v30 = vpop.f32.mrb[107].mxu0  ;;  %v4664_v29 = vsel %vm4659_vm10, %v4663_v23, 0.0 }
0x1489   : > { %v4606_v18 = vadd.f32 %v4605_v27, %v4547_v19  ;;  %v4910_v19 = vpack.c.bf16 %v4908_v14, %v4908_v14  ;;  %v5283_v14 = vld [vmem:[%s11712_s1 + $0xa8] sm:$0xff] }
0x148b   : > { %v4665_v31 = vadd.f32 %v4664_v29, %v4606_v18  ;;  %v5061_v20 = vsel %vm2307_vm3, %v4910_v19, 0  ;;  %v5108_v18 = vld [vmem:[%s11710_s0 + $0x10] sm:$0xff]  ;;  %s11711_s0 = sld [smem:[#allocation55_spill]]  ;;  %v5209_v19 = vld [vmem:[%s11712_s1 + $0x20] sm:$0xff] }
0x148c   : > { %v5109_v29 = vpack.c.bf16 %v5108_v18, %v5108_v18  ;;  %v5213_v18 = vld [vmem:[%s11712_s1 + $0x40] sm:$0xff] }
0x1495   : > { %v4712_v32 = vpop.f32.mrb[112].mxu1  ;;  %v4771_v33 = vpop.f32.mrb[108].mxu0 }
0x1496   : > { %v4722_v34 = vrot.slane %v4712_v32, %v11019_v3  ;;  %v4781_v35 = vrot.slane %v4771_v33, %v11019_v3  ;;  %v8573_v36 = vpop.f32.mrb[113].mxu1  ;;  %v8585_v37 = vpop.f32.mrb[109].mxu0  ;;  %v5104_v32 = vld [vmem:[#allocation16 + $0x38] sm:$0xff] }
0x1497   : > { %v4715_v38 = vpop.f32.mrb[114].mxu1  ;;  %v4774_v39 = vpop.f32.mrb[110].mxu0 }
0x1498   : > { %v4723_v40 = vsel %vm4718_vm11, %v4722_v34, 0.0  ;;  %v8574_v41 = vpop.f32.mrb[115].mxu1  ;;  %v8586_v42 = vpop.f32.mrb[111].mxu0  ;;  %v4782_v44 = vsel %vm4777_vm12, %v4781_v35, 0.0  ;;  %v5105_v34 = vld [vmem:[#allocation16 + $0x40] sm:$0xff] }
0x1499   : > { %v4724_v43 = vadd.f32 %v4723_v40, %v4665_v31  ;;  %v5103_v31 = vld [vmem:[#allocation16 + $0x30] sm:$0xff]  ;;  %v5107_v35 = vpack.c.bf16 %v5105_v34, %v5105_v34  ;;  %v5289_v34 = vld [vmem:[%s11712_s1 + $0xd8] sm:$0xff] }
0x149a   : > { %v5106_v33 = vpack.c.bf16 %v5104_v32, %v5103_v31 }
0x149b   : > { %v4783_v45 = vadd.f32 %v4782_v44, %v4724_v43  ;;  %v5158_v36 = vsel %vm2307_vm3, %v5107_v35, 0  ;;  %v5215_v35 = vld [vmem:[%s11712_s1 + $0x50] sm:$0xff] }
0x14a5   : > { %v4830_v46 = vpop.f32.mrb[116].mxu1  ;;  %v4889_v47 = vpop.f32.mrb[112].mxu0 }
0x14a6   : > { %v4840_v48 = vrot.slane %v4830_v46, %v11019_v3  ;;  %v4899_v49 = vrot.slane %v4889_v47, %v11019_v3  ;;  %v8597_v26 = vpop.f32.mrb[117].mxu1  ;;  %v8609_v50 = vpop.f32.mrb[113].mxu0 }
0x14a7   : > { %v4833_v51 = vpop.f32.mrb[118].mxu1  ;;  %v4892_v52 = vpop.f32.mrb[114].mxu0 }
0x14a8   : > { %v4841_v53 = vsel %vm4836_vm13, %v4840_v48, 0.0  ;;  %v8598_v54 = vpop.f32.mrb[119].mxu1  ;;  %v8610_v55 = vpop.f32.mrb[115].mxu0  ;;  %v4900_v57 = vsel %vm4895_vm14, %v4899_v49, 0.0  ;;  %v5201_v51 = vld [vmem:[#allocation18] sm:$0xff] }
0x14a9   : > { %v4842_v56 = vadd.f32 %v4841_v53, %v4783_v45 }
0x14ab   : > { %v4901_v60 = vadd.f32 %v4900_v57, %v4842_v56 }
0x14ad   : > { %v4903_v61 = vadd.f32 %v4902_v58, %v4901_v60  ;;  %v5229_v58 = vld [vmem:[%s11711_s0] sm:$0xff]  ;;  %v5302_v60 = vld [vmem:[%s11711_s0 + $0x8] sm:$0xff] }
0x14ae   : > { %v5230_v5 = vpack.c.bf16 %v5229_v58, %v5229_v58  ;;  %v5303_v59 = vpack.c.bf16 %v5302_v60, %v5302_v60 }
0x14af   : > { %v4904_v62 = vmax.f32 %v4903_v61, 0.0  ;;  %v5278_v61 = vld [vmem:[%s11712_s1 + $0x80] sm:$0xff] }
0x14b0   : > { %v5294_v6 = vpack.c.bf16 %v5279_v63, %v5278_v61  ;;  %v5431_v63 = vld [vmem:[%s11712_s1 + $0x118] sm:$0xff] }
0x14b1   : > { %v4905_v3 = vpack.c.bf16 %v4904_v62, %v4904_v62 }
0x14b3   : > { %v4917_v2 = vsel %vm2307_vm3, %v4905_v3, 0 }
0x14b4   : > { %8612 = vmatpush3.bf16.msra.mxu1 %v4917_v2  ;;  %8618 = vmatpush3.bf16.msra.mxu0 %v4917_v2 }
0x14b5   : > { %8623 = vmatprep.subr.bf16.mxu1 %v9711_v0  ;;  %8631 = vmatprep.subr.bf16.mxu0 %v9711_v0 }
0x14b7   : > { %8614 = vmatmul.mubr.msk.bf16.vlgmr.msra.gmra.mrb[120].mxu1 %vm2303_vm4, %v4912_v8  ;;  %8620 = vmatmul.mubr.msk.bf16.vlgmr.msra.gmra.mrb[116].mxu0 %vm2303_vm4, %v4966_v9  ;;  %v5281_v8 = vld [vmem:[%s11712_s1 + $0x98] sm:$0xff]  ;;  %v5207_v9 = vld [vmem:[%s11712_s1 + $0x10] sm:$0xff] }
0x14b8   : > { %8624 = vmatpush3.bf16.msra.mxu1 %v4963_v10  ;;  %8632 = vmatpush3.bf16.msra.mxu0 %v4909_v11  ;;  %v5208_v10 = vld [vmem:[%s11712_s1 + $0x18] sm:$0xff] }
0x14b9   : > { %8625 = vmatprep.subr.bf16.mxu1 %v9711_v0  ;;  %8633 = vmatprep.subr.bf16.mxu0 %v9711_v0  ;;  %v5222_v12 = vpack.c.bf16 %v5208_v10, %v5207_v9  ;;  %v5435_v9 = vld [vmem:[%s11712_s1 + $0x138] sm:$0xff] }
0x14ba   : > { %8627 = vmatprep.mubr.msk.bf16.mxu1 %vm9712_vm0, %v9711_v0  ;;  %8635 = vmatprep.mubr.msk.bf16.mxu0 %vm9712_vm0, %v9711_v0 }
0x14bc   : > { %8626 = vmatpush3.bf16.msra.mxu1 %v5015_v13  ;;  %8634 = vmatpush3.bf16.msra.mxu0 %v5061_v20  ;;  %v5282_v13 = vld [vmem:[%s11712_s1 + $0xa0] sm:$0xff]  ;;  %v5210_v20 = vld [vmem:[%s11712_s1 + $0x28] sm:$0xff] }
0x14bd   : > { %8639 = vmatprep.subr.bf16.mxu1 %v9711_v0  ;;  %8645 = vmatprep.subr.bf16.mxu0 %v9711_v0 }
0x158a   : > { %v4953_v21 = vpop.f32.mrb[120].mxu1  ;;  %v5004_v22 = vpop.f32.mrb[116].mxu0 }
0x158b   : > { %v4959_v23 = vpack.c.bf16 %v4953_v21, %v4953_v21  ;;  %v5010_v15 = vpack.c.bf16 %v5004_v22, %v5004_v22  ;;  %v8621_v24 = vpop.f32.mrb[117].mxu0  ;;  %v8615_v25 = vpop.f32.mrb[121].mxu1  ;;  %v5296_v21 = vpack.c.bf16 %v5283_v14, %v5282_v13  ;;  %v5223_v22 = vpack.c.bf16 %v5210_v20, %v5209_v19  ;;  %v5438_v14 = vld [vmem:[%s11712_s1 + $0x150] sm:$0xff]  ;;  %v5439_v19 = vld [vmem:[%s11712_s1 + $0x158] sm:$0xff] }
0x158c   : > { %v5007_v16 = vpop.f32.mrb[118].mxu0  ;;  %v4956_v27 = vpop.f32.mrb[122].mxu1  ;;  %v5211_v24 = vld [vmem:[%s11712_s1 + $0x30] sm:$0xff]  ;;  %v5212_v25 = vld [vmem:[%s11712_s1 + $0x38] sm:$0xff]  ;;  %v5449_v20 = vpack.c.bf16 %v5439_v19, %v5438_v14 }
0x158d   : > { %v8622_v17 = vpop.f32.mrb[119].mxu0  ;;  %8628 = vmatmul.mubr.msk.bf16.vlgmr.msra.gmra.mrb[124].mxu1 %vm3736_vm5, %v5010_v15  ;;  %8636 = vmatmul.mubr.msk.bf16.vlgmr.msra.gmra.mrb[120].mxu0 %vm3736_vm5, %v4959_v23  ;;  %v8616_v30 = vpop.f32.mrb[123].mxu1  ;;  %v5284_v23 = vld [vmem:[%s11712_s1 + $0xb0] sm:$0xff]  ;;  %v5285_v15 = vld [vmem:[%s11712_s1 + $0xb8] sm:$0xff]  ;;  %v5224_v27 = vpack.c.bf16 %v5212_v25, %v5211_v24 }
0x158e   : > { %8640 = vmatpush3.bf16.msra.mxu1 %v4917_v2  ;;  %8641 = vmatprep.mubr.msk.bf16.mxu1 %vm9712_vm0, %v9711_v0  ;;  %v5280_v2 = vld [vmem:[%s11712_s1 + $0x90] sm:$0xff]  ;;  %v5297_v16 = vpack.c.bf16 %v5285_v15, %v5284_v23  ;;  %v5286_v17 = vld [vmem:[%s11712_s1 + $0xc0] sm:$0xff]  ;;  %v5287_v30 = vld [vmem:[%s11712_s1 + $0xc8] sm:$0xff] }
0x158f   : > { %8649 = vmatprep.mubr.msk.bf16.mxu0 %vm9712_vm0, %v9711_v0  ;;  %8653 = vmatprep.subr.bf16.mxu1 %v9711_v0  ;;  %v5295_v11 = vpack.c.bf16 %v5281_v8, %v5280_v2  ;;  %v5298_v31 = vpack.c.bf16 %v5287_v30, %v5286_v17  ;;  %v5434_v8 = vld [vmem:[%s11712_s1 + $0x130] sm:$0xff]  ;;  %v5443_v24 = vld [vmem:[%s11712_s1 + $0x178] sm:$0xff] }
0x1590   : > { %8646 = vmatpush3.bf16.msra.mxu0 %v5106_v33  ;;  %v5288_v33 = vld [vmem:[%s11712_s1 + $0xd0] sm:$0xff]  ;;  %v5447_v10 = vpack.c.bf16 %v5435_v9, %v5434_v8  ;;  %v5616_v9 = vld [vmem:[#allocation21 + $0x80] sm:$0xff] }
0x1591   : > { %8647 = vmatprep.subr.bf16.mxu0 %v9711_v0  ;;  %v5442_v15 = vld [vmem:[%s11712_s1 + $0x170] sm:$0xff] }
0x1592   : > { %v5451_v25 = vpack.c.bf16 %v5443_v24, %v5442_v15  ;;  %v5619_v14 = vld [vmem:[#allocation21 + $0x98] sm:$0xff] }
0x1593   : > { %v5623_v15 = vld [vmem:[#allocation21 + $0xb8] sm:$0xff] }
0x1594   : > { %8648 = vmatpush3.bf16.msra.mxu0 %v5158_v36  ;;  %v5216_v36 = vld [vmem:[%s11712_s1 + $0x58] sm:$0xff] }
0x1595   : > { %8642 = vmatmul.mubr.msk.bf16.vlgmr.msra.gmra.mrb[128].mxu1 %vm2303_vm4, %v5109_v29  ;;  %8659 = vmatprep.subr.bf16.mxu0 %v9711_v0  ;;  %v5214_v29 = vld [vmem:[%s11712_s1 + $0x48] sm:$0xff] }
0x1596   : > { %8655 = vmatprep.mubr.msk.bf16.mxu1 %vm9712_vm0, %v9711_v0  ;;  %v5225_v32 = vpack.c.bf16 %v5214_v29, %v5213_v18 }
0x1660   : > { %v5051_v37 = vpop.f32.mrb[124].mxu1  ;;  %v5097_v38 = vpop.f32.mrb[120].mxu0 }
0x1661   : > { %v5098_v39 = vadd.f32 %v5097_v38, %v5051_v37  ;;  %v8629_v40 = vpop.f32.mrb[125].mxu1  ;;  %v8637_v41 = vpop.f32.mrb[121].mxu0  ;;  %v5299_v37 = vpack.c.bf16 %v5289_v34, %v5288_v33  ;;  %v5226_v38 = vpack.c.bf16 %v5216_v36, %v5215_v35 }
0x1662   : > { %v5054_v42 = vpop.f32.mrb[126].mxu1  ;;  %v5100_v43 = vpop.f32.mrb[122].mxu0  ;;  %v5291_v40 = vld [vmem:[%s11712_s1 + $0xe8] sm:$0xff]  ;;  %v5217_v41 = vld [vmem:[%s11712_s1 + $0x60] sm:$0xff] }
0x1663   : > { %v8630_v44 = vpop.f32.mrb[127].mxu1  ;;  %v8638_v45 = vpop.f32.mrb[123].mxu0  ;;  %v5218_v42 = vld [vmem:[%s11712_s1 + $0x68] sm:$0xff] }
0x1664   : > { %v5227_v44 = vpack.c.bf16 %v5218_v42, %v5217_v41  ;;  %v5292_v45 = vld [vmem:[%s11712_s1 + $0xf0] sm:$0xff]  ;;  %v5545_v41 = vld [vmem:[#allocation21 + $0x10] sm:$0xff] }
0x1668   : > { %v5147_v46 = vpop.f32.mrb[128].mxu1 }
0x1669   : > { %v5153_v47 = vpack.c.bf16 %v5147_v46, %v5147_v46  ;;  %v8643_v48 = vpop.f32.mrb[129].mxu1  ;;  %v5293_v46 = vld [vmem:[%s11712_s1 + $0xf8] sm:$0xff] }
0x166a   : > { %v5150_v49 = vpop.f32.mrb[130].mxu1  ;;  %v5219_v48 = vld [vmem:[%s11712_s1 + $0x70] sm:$0xff] }
0x166b   : > { %v8644_v26 = vpop.f32.mrb[131].mxu1  ;;  %8650 = vmatmul.mubr.msk.bf16.vlgmr.msra.gmra.mrb[124].mxu0 %vm3736_vm5, %v5153_v47  ;;  %v5301_v47 = vpack.c.bf16 %v5293_v46, %v5292_v45  ;;  %v5220_v49 = vld [vmem:[%s11712_s1 + $0x78] sm:$0xff]  ;;  %v5548_v46 = vld [vmem:[#allocation21 + $0x28] sm:$0xff] }
0x166c   : > { %8661 = vmatprep.mubr.msk.bf16.mxu0 %vm9712_vm0, %v9711_v0  ;;  %v5228_v26 = vpack.c.bf16 %v5220_v49, %v5219_v48  ;;  %v5547_v45 = vld [vmem:[#allocation21 + $0x20] sm:$0xff]  ;;  %v5549_v48 = vld [vmem:[#allocation21 + $0x30] sm:$0xff]  ;;  %v5550_v49 = vld [vmem:[#allocation21 + $0x38] sm:$0xff] }
0x173e   : > { %v5194_v50 = vpop.f32.mrb[124].mxu0 }
0x173f   : > { %v5200_v52 = vadd.f32 %v5194_v50, %v5098_v39  ;;  %v8651_v53 = vpop.f32.mrb[125].mxu0  ;;  %v5290_v39 = vld [vmem:[%s11712_s1 + $0xe0] sm:$0xff] }
0x1740   : > { %v5197_v54 = vpop.f32.mrb[126].mxu0  ;;  %v5300_v43 = vpack.c.bf16 %v5291_v40, %v5290_v39  ;;  %v5428_v50 = vld [vmem:[%s11712_s1 + $0x100] sm:$0xff]  ;;  %v5543_v39 = vld [vmem:[#allocation21] sm:$0xff] }
0x1741   : > { %v5202_v55 = vadd.f32 %v5201_v51, %v5200_v52  ;;  %v8652_v56 = vpop.f32.mrb[127].mxu0  ;;  %v5429_v51 = vld [vmem:[%s11712_s1 + $0x108] sm:$0xff]  ;;  %v5544_v40 = vld [vmem:[#allocation21 + $0x8] sm:$0xff] }
0x1742   : > { %v5444_v58 = vpack.c.bf16 %v5429_v51, %v5428_v50  ;;  %v5559_v42 = vpack.c.bf16 %v5544_v40, %v5543_v39  ;;  %v5551_v50 = vld [vmem:[#allocation21 + $0x40] sm:$0xff]  ;;  %v5552_v51 = vld [vmem:[#allocation21 + $0x48] sm:$0xff] }
0x1743   : > { %v5203_v57 = vmax.f32 %v5202_v55, 0.0 }
0x1745   : > { %v5204_v62 = vpack.c.bf16 %v5203_v57, %v5203_v57 }
0x1747   : > { %v11078_v3 = vsel %vm2307_vm3, %v5204_v62, 0  ;;  %v5430_v62 = vld [vmem:[%s11712_s1 + $0x110] sm:$0xff] }
0x1748   : > { %8654 = vmatpush3.bf16.msra.mxu1 %v11078_v3  ;;  %8660 = vmatpush3.bf16.msra.mxu0 %v11078_v3 }
0x1749   : > { %8665 = vmatprep.subr.bf16.mxu1 %v9711_v0  ;;  %8685 = vmatprep.subr.bf16.mxu0 %v9711_v0 }
0x174b   : > { %8656 = vmatmul.mubr.msk.bf16.vlgmr.msra.gmra.mrb[132].mxu1 %vm2303_vm4, %v5230_v5  ;;  %8662 = vmatmul.mubr.msk.bf16.vlgmr.msra.gmra.mrb[128].mxu0 %vm2303_vm4, %v5303_v59  ;;  %v5452_v5 = vld [vmem:[%s11711_s0 + $0x10] sm:$0xff]  ;;  %v5445_v59 = vpack.c.bf16 %v5431_v63, %v5430_v62  ;;  %s11713_s0 = sld [smem:[#allocation57_spill]] }
0x174c   : > { %8666 = vmatpush3.bf16.msra.mxu1 %v5294_v6  ;;  %8686 = vmatpush3.bf16.msra.mxu0 %v5221_v7  ;;  %v5432_v6 = vld [vmem:[%s11712_s1 + $0x120] sm:$0xff]  ;;  %v5433_v7 = vld [vmem:[%s11712_s1 + $0x128] sm:$0xff]  ;;  %v5453_v2 = vpack.c.bf16 %v5452_v5, %v5452_v5 }
0x174d   : > { %8667 = vmatprep.subr.bf16.mxu1 %v9711_v0  ;;  %8687 = vmatprep.subr.bf16.mxu0 %v9711_v0 }
0x174e   : > { %8681 = vmatprep.mubr.msk.bf16.mxu1 %vm9712_vm0, %v9711_v0  ;;  %8701 = vmatprep.mubr.msk.bf16.mxu0 %vm9712_vm0, %v9711_v0 }
0x1750   : > { %8668 = vmatpush3.bf16.msra.mxu1 %v5295_v11  ;;  %8688 = vmatpush3.bf16.msra.mxu0 %v5222_v12  ;;  %v5436_v11 = vld [vmem:[%s11712_s1 + $0x140] sm:$0xff]  ;;  %v5437_v12 = vld [vmem:[%s11712_s1 + $0x148] sm:$0xff] }
0x1751   : > { %8669 = vmatprep.subr.bf16.mxu1 %v9711_v0  ;;  %8689 = vmatprep.subr.bf16.mxu0 %v9711_v0  ;;  %v5448_v13 = vpack.c.bf16 %v5437_v12, %v5436_v11  ;;  %v5640_v8 = vld [vmem:[%s11713_s0 + $0x8] sm:$0xff] }
0x1752   : > { %v5641_v11 = vpack.c.bf16 %v5640_v8, %v5640_v8  ;;  %v5780_v8 = vld [vmem:[#allocation21 + $0x170] sm:$0xff] }
0x1754   : > { %8670 = vmatpush3.bf16.msra.mxu1 %v5296_v21  ;;  %8690 = vmatpush3.bf16.msra.mxu0 %v5223_v22  ;;  %v5440_v21 = vld [vmem:[%s11712_s1 + $0x160] sm:$0xff]  ;;  %v5441_v22 = vld [vmem:[%s11712_s1 + $0x168] sm:$0xff]  ;;  %s11716_s1 = sld [smem:[#allocation62_spill]] }
0x1755   : > { %8671 = vmatprep.subr.bf16.mxu1 %v9711_v0  ;;  %8691 = vmatprep.subr.bf16.mxu0 %v9711_v0  ;;  %v5450_v23 = vpack.c.bf16 %v5441_v22, %v5440_v21  ;;  %v5621_v21 = vld [vmem:[#allocation21 + $0xa8] sm:$0xff] }
0x1758   : > { %8672 = vmatpush3.bf16.msra.mxu1 %v5297_v16  ;;  %8692 = vmatpush3.bf16.msra.mxu0 %v5224_v27 }
0x1759   : > { %8673 = vmatprep.subr.bf16.mxu1 %v9711_v0  ;;  %8693 = vmatprep.subr.bf16.mxu0 %v9711_v0 }
0x175c   : > { %8674 = vmatpush3.bf16.msra.mxu1 %v5298_v31  ;;  %8694 = vmatpush3.bf16.msra.mxu0 %v5225_v32 }
0x175d   : > { %8675 = vmatprep.subr.bf16.mxu1 %v9711_v0  ;;  %8695 = vmatprep.subr.bf16.mxu0 %v9711_v0 }
0x1760   : > { %8676 = vmatpush3.bf16.msra.mxu1 %v5299_v37  ;;  %8696 = vmatpush3.bf16.msra.mxu0 %v5226_v38 }
0x1761   : > { %8677 = vmatprep.subr.bf16.mxu1 %v9711_v0  ;;  %8697 = vmatprep.subr.bf16.mxu0 %v9711_v0 }
0x1764   : > { %8678 = vmatpush3.bf16.msra.mxu1 %v5300_v43  ;;  %8698 = vmatpush3.bf16.msra.mxu0 %v5227_v44  ;;  %v5546_v43 = vld [vmem:[#allocation21 + $0x18] sm:$0xff] }
0x1765   : > { %8679 = vmatprep.subr.bf16.mxu1 %v9711_v0  ;;  %8699 = vmatprep.subr.bf16.mxu0 %v9711_v0  ;;  %v5560_v44 = vpack.c.bf16 %v5546_v43, %v5545_v41 }
0x1768   : > { %8680 = vmatpush3.bf16.msra.mxu1 %v5301_v47  ;;  %8700 = vmatpush3.bf16.msra.mxu0 %v5228_v26  ;;  %v5561_v47 = vpack.c.bf16 %v5548_v46, %v5547_v45  ;;  %v5562_v26 = vpack.c.bf16 %v5550_v49, %v5549_v48  ;;  %v5790_v49 = vld [vmem:[%s11713_s0 + $0x10] sm:$0xff] }
0x1769   : > { %8705 = vmatprep.subr.bf16.mxu1 %v9711_v0  ;;  %8711 = vmatprep.subr.bf16.mxu0 %v9711_v0 }
0x181e   : > { %v5271_v52 = vpop.f32.mrb[132].mxu1  ;;  %v5341_v53 = vpop.f32.mrb[128].mxu0 }
0x181f   : > { %v5277_v54 = vpack.c.bf16 %v5271_v52, %v5271_v52  ;;  %v5347_v55 = vpack.c.bf16 %v5341_v53, %v5341_v53  ;;  %v8663_v56 = vpop.f32.mrb[129].mxu0  ;;  %v8657_v57 = vpop.f32.mrb[133].mxu1  ;;  %v5563_v52 = vpack.c.bf16 %v5552_v51, %v5551_v50  ;;  %v5553_v53 = vld [vmem:[#allocation21 + $0x50] sm:$0xff]  ;;  %v5767_v50 = vld [vmem:[#allocation21 + $0x108] sm:$0xff]  ;;  %v5791_v51 = vpack.c.bf16 %v5790_v49, %v5790_v49  ;;  %v5877_v49 = vld [vmem:[#allocation22] sm:$0xff] }
0x1820   : > { %v5344_v60 = vpop.f32.mrb[130].mxu0  ;;  %v5274_v61 = vpop.f32.mrb[134].mxu1  ;;  %v5555_v56 = vld [vmem:[#allocation21 + $0x60] sm:$0xff]  ;;  %v5556_v57 = vld [vmem:[#allocation21 + $0x68] sm:$0xff] }
0x1821   : > { %v8664_v1 = vpop.f32.mrb[131].mxu0  ;;  %8682 = vmatmul.mubr.bf16.vlgmr.msra.gmra.mrb[136].mxu1 %v5347_v55  ;;  %8702 = vmatmul.mubr.bf16.vlgmr.msra.gmra.mrb[132].mxu0 %v5277_v54  ;;  %v8658_v4 = vpop.f32.mrb[135].mxu1  ;;  %v5554_v54 = vld [vmem:[#allocation21 + $0x58] sm:$0xff] }
0x1822   : > { %8706 = vmatpush3.bf16.msra.mxu1 %v11078_v3  ;;  %8707 = vmatprep.mubr.msk.bf16.mxu1 %vm9712_vm0, %v9711_v0  ;;  %v5446_v3 = vpack.c.bf16 %v5433_v7, %v5432_v6  ;;  %v5564_v55 = vpack.c.bf16 %v5554_v54, %v5553_v53  ;;  %v5539_v61 = vld [vmem:[#allocation19] sm:$0xff]  ;;  %v5567_v6 = vld [vmem:[%s11713_s0] sm:$0xff]  ;;  %v5768_v53 = vld [vmem:[#allocation21 + $0x110] sm:$0xff]  ;;  %s11714_s0 = sld [smem:[#allocation58_spill]] }
0x1823   : > { %8712 = vmatpush3.bf16.msra.mxu0 %v5444_v58  ;;  %8727 = vmatprep.mubr.msk.bf16.mxu0 %vm9712_vm0, %v9711_v0  ;;  %v5565_v58 = vpack.c.bf16 %v5556_v57, %v5555_v56  ;;  %v5769_v54 = vld [vmem:[#allocation21 + $0x118] sm:$0xff]  ;;  %v5770_v56 = vld [vmem:[#allocation21 + $0x120] sm:$0xff]  ;;  %v5771_v57 = vld [vmem:[#allocation21 + $0x128] sm:$0xff] }
0x1824   : > { %8713 = vmatprep.subr.bf16.mxu0 %v9711_v0  ;;  %8731 = vmatprep.subr.bf16.mxu1 %v9711_v0 }
0x1827   : > { %8714 = vmatpush3.bf16.msra.mxu0 %v5445_v59 }
0x1828   : > { %8715 = vmatprep.subr.bf16.mxu0 %v9711_v0 }
0x1829   : > { %8708 = vmatmul.mubr.msk.bf16.vlgmr.msra.gmra.mrb[140].mxu1 %vm2303_vm4, %v5453_v2 }
0x182a   : > { %8733 = vmatprep.mubr.msk.bf16.mxu1 %vm9712_vm0, %v9711_v0 }
0x182b   : > { %8716 = vmatpush3.bf16.msra.mxu0 %v5446_v3  ;;  %v5568_v3 = vpack.c.bf16 %v5567_v6, %v5567_v6 }
0x182c   : > { %8717 = vmatprep.subr.bf16.mxu0 %v9711_v0 }
0x182f   : > { %8718 = vmatpush3.bf16.msra.mxu0 %v5447_v10  ;;  %v5617_v10 = vld [vmem:[#allocation21 + $0x88] sm:$0xff] }
0x1830   : > { %8719 = vmatprep.subr.bf16.mxu0 %v9711_v0  ;;  %v5632_v12 = vpack.c.bf16 %v5617_v10, %v5616_v9  ;;  %v5781_v9 = vld [vmem:[#allocation21 + $0x178] sm:$0xff] }
0x1831   : > { %v5789_v10 = vpack.c.bf16 %v5781_v9, %v5780_v8  ;;  %v5961_v8 = vld [vmem:[#allocation24 + $0xb8] sm:$0xff] }
0x1833   : > { %8720 = vmatpush3.bf16.msra.mxu0 %v5448_v13  ;;  %v5618_v13 = vld [vmem:[#allocation21 + $0x90] sm:$0xff] }
0x1834   : > { %8721 = vmatprep.subr.bf16.mxu0 %v9711_v0  ;;  %v5633_v19 = vpack.c.bf16 %v5619_v14, %v5618_v13 }
0x1837   : > { %8722 = vmatpush3.bf16.msra.mxu0 %v5449_v20  ;;  %v5620_v20 = vld [vmem:[#allocation21 + $0xa0] sm:$0xff] }
0x1838   : > { %8723 = vmatprep.subr.bf16.mxu0 %v9711_v0  ;;  %v5634_v22 = vpack.c.bf16 %v5621_v21, %v5620_v20 }
0x183b   : > { %8724 = vmatpush3.bf16.msra.mxu0 %v5450_v23  ;;  %v5622_v23 = vld [vmem:[#allocation21 + $0xb0] sm:$0xff] }
0x183c   : > { %8725 = vmatprep.subr.bf16.mxu0 %v9711_v0  ;;  %v5635_v24 = vpack.c.bf16 %v5623_v15, %v5622_v23 }
0x183f   : > { %8726 = vmatpush3.bf16.msra.mxu0 %v5451_v25  ;;  %v5624_v25 = vld [vmem:[#allocation21 + $0xc0] sm:$0xff] }
0x1840   : > { %8763 = vmatprep.subr.bf16.mxu0 %v9711_v0 }
0x18f4   : > { %v5382_v16 = vpop.f32.mrb[136].mxu1  ;;  %v5422_v27 = vpop.f32.mrb[132].mxu0 }
0x18f5   : > { %v5423_v17 = vadd.f32 %v5422_v27, %v5382_v16  ;;  %v8683_v30 = vpop.f32.mrb[137].mxu1  ;;  %v8703_v18 = vpop.f32.mrb[133].mxu0  ;;  %v5625_v16 = vld [vmem:[#allocation21 + $0xc8] sm:$0xff] }
0x18f6   : > { %v5385_v29 = vpop.f32.mrb[138].mxu1  ;;  %v5425_v31 = vpop.f32.mrb[134].mxu0  ;;  %v5636_v27 = vpack.c.bf16 %v5625_v16, %v5624_v25  ;;  %v5627_v30 = vld [vmem:[#allocation21 + $0xd8] sm:$0xff] }
0x18f7   : > { %v8684_v32 = vpop.f32.mrb[139].mxu1  ;;  %v8704_v33 = vpop.f32.mrb[135].mxu0  ;;  %v5557_v29 = vld [vmem:[#allocation21 + $0x70] sm:$0xff]  ;;  %v5558_v31 = vld [vmem:[#allocation21 + $0x78] sm:$0xff] }
0x18f8   : > { %v5566_v32 = vpack.c.bf16 %v5558_v31, %v5557_v29  ;;  %v5628_v33 = vld [vmem:[#allocation21 + $0xe0] sm:$0xff] }
0x18f9   : > { %v5884_v31 = vld [vmem:[#allocation24 + $0x18] sm:$0xff] }
0x18fc   : > { %v5491_v34 = vpop.f32.mrb[140].mxu1 }
0x18fd   : > { %v5497_v35 = vpack.c.bf16 %v5491_v34, %v5491_v34  ;;  %v8709_v36 = vpop.f32.mrb[141].mxu1  ;;  %v5629_v34 = vld [vmem:[#allocation21 + $0xe8] sm:$0xff] }
0x18fe   : > { %v5494_v37 = vpop.f32.mrb[142].mxu1  ;;  %v5630_v36 = vld [vmem:[#allocation21 + $0xf0] sm:$0xff] }
0x18ff   : > { %v8710_v38 = vpop.f32.mrb[143].mxu1  ;;  %8728 = vmatmul.mubr.bf16.vlgmr.msra.gmra.mrb[136].mxu0 %v5497_v35  ;;  %v5638_v35 = vpack.c.bf16 %v5629_v34, %v5628_v33  ;;  %v5631_v37 = vld [vmem:[#allocation21 + $0xf8] sm:$0xff]  ;;  %v5885_v33 = vld [vmem:[#allocation24 + $0x20] sm:$0xff]  ;;  %v5886_v34 = vld [vmem:[#allocation24 + $0x28] sm:$0xff] }
0x1900   : > { %8779 = vmatprep.mubr.msk.bf16.mxu0 %vm9712_vm0, %v9711_v0  ;;  %8764 = vmatpush3.bf16.msra.mxu0 %v5559_v42  ;;  %v5639_v38 = vpack.c.bf16 %v5631_v37, %v5630_v36  ;;  %v5887_v36 = vld [vmem:[#allocation24 + $0x30] sm:$0xff]  ;;  %v5888_v37 = vld [vmem:[#allocation24 + $0x38] sm:$0xff] }
0x1901   : > { %8765 = vmatprep.subr.bf16.mxu0 %v9711_v0 }
0x1904   : > { %8766 = vmatpush3.bf16.msra.mxu0 %v5560_v44 }
0x1905   : > { %8767 = vmatprep.subr.bf16.mxu0 %v9711_v0 }
0x1908   : > { %8768 = vmatpush3.bf16.msra.mxu0 %v5561_v47 }
0x1909   : > { %8769 = vmatprep.subr.bf16.mxu0 %v9711_v0 }
0x190c   : > { %8770 = vmatpush3.bf16.msra.mxu0 %v5562_v26  ;;  %v5766_v26 = vld [vmem:[#allocation21 + $0x100] sm:$0xff] }
0x190d   : > { %8771 = vmatprep.subr.bf16.mxu0 %v9711_v0 }
0x1910   : > { %8772 = vmatpush3.bf16.msra.mxu0 %v5563_v52  ;;  %v5782_v52 = vpack.c.bf16 %v5767_v50, %v5766_v26 }
0x1911   : > { %8773 = vmatprep.subr.bf16.mxu0 %v9711_v0 }
0x1914   : > { %8774 = vmatpush3.bf16.msra.mxu0 %v5564_v55  ;;  %v5783_v55 = vpack.c.bf16 %v5769_v54, %v5768_v53 }
0x1915   : > { %8775 = vmatprep.subr.bf16.mxu0 %v9711_v0 }
0x1918   : > { %8776 = vmatpush3.bf16.msra.mxu0 %v5565_v58  ;;  %v5784_v58 = vpack.c.bf16 %v5771_v57, %v5770_v56 }
0x1919   : > { %8777 = vmatprep.subr.bf16.mxu0 %v9711_v0 }
0x191c   : > { %8778 = vmatpush3.bf16.msra.mxu0 %v5566_v32 }
0x191d   : > { %8809 = vmatprep.subr.bf16.mxu0 %v9711_v0 }
0x19d2   : > { %v5532_v60 = vpop.f32.mrb[136].mxu0 }
0x19d3   : > { %v5538_v62 = vadd.f32 %v5532_v60, %v5423_v17  ;;  %v8729_v63 = vpop.f32.mrb[137].mxu0  ;;  %v5626_v17 = vld [vmem:[#allocation21 + $0xd0] sm:$0xff] }
0x19d4   : > { %v5535_v1 = vpop.f32.mrb[138].mxu0  ;;  %v5637_v18 = vpack.c.bf16 %v5627_v30, %v5626_v17  ;;  %v5772_v60 = vld [vmem:[#allocation21 + $0x130] sm:$0xff]  ;;  %v5774_v63 = vld [vmem:[#allocation21 + $0x140] sm:$0xff]  ;;  %v5881_v17 = vld [vmem:[#allocation24] sm:$0xff] }
0x19d5   : > { %v5540_v4 = vadd.f32 %v5539_v61, %v5538_v62  ;;  %v8730_v5 = vpop.f32.mrb[139].mxu0  ;;  %v5773_v61 = vld [vmem:[#allocation21 + $0x138] sm:$0xff]  ;;  %v5775_v1 = vld [vmem:[#allocation21 + $0x148] sm:$0xff]  ;;  %v5882_v30 = vld [vmem:[#allocation24 + $0x8] sm:$0xff] }
0x19d6   : > { %v5785_v62 = vpack.c.bf16 %v5773_v61, %v5772_v60  ;;  %v5776_v5 = vld [vmem:[#allocation21 + $0x150] sm:$0xff]  ;;  %v5897_v29 = vpack.c.bf16 %v5882_v30, %v5881_v17  ;;  %v5954_v61 = vld [vmem:[#allocation24 + $0x80] sm:$0xff] }
0x19d7   : > { %v5541_v59 = vmax.f32 %v5540_v4, 0.0  ;;  %v5786_v4 = vpack.c.bf16 %v5775_v1, %v5774_v63  ;;  %v5978_v60 = vld [vmem:[%s11714_s0 + $0x8] sm:$0xff] }
0x19d8   : > { %v5979_v63 = vpack.c.bf16 %v5978_v60, %v5978_v60  ;;  %v6118_v60 = vld [vmem:[#allocation24 + $0x170] sm:$0xff] }
0x19d9   : > { %v5542_v7 = vpack.c.bf16 %v5541_v59, %v5541_v59  ;;  %v5777_v59 = vld [vmem:[#allocation21 + $0x158] sm:$0xff] }
0x19da   : > { %v5787_v6 = vpack.c.bf16 %v5777_v59, %v5776_v5  ;;  %v5957_v5 = vld [vmem:[#allocation24 + $0x98] sm:$0xff] }
0x19db   : > { %v11179_v2 = vsel %vm2307_vm3, %v5542_v7, 0  ;;  %v5778_v7 = vld [vmem:[#allocation21 + $0x160] sm:$0xff] }
0x19dc   : > { %8732 = vmatpush3.bf16.msra.mxu1 %v11179_v2 }
0x19dd   : > { %8737 = vmatprep.subr.bf16.mxu1 %v9711_v0 }
0x19df   : > { %8734 = vmatmul.mubr.msk.bf16.vlgmr.msra.gmra.mrb[144].mxu1 %vm2303_vm4, %v5568_v3 }
0x19e0   : > { %8738 = vmatpush3.bf16.msra.mxu1 %v11179_v2  ;;  %8739 = vmatprep.mubr.msk.bf16.mxu1 %vm9712_vm0, %v9711_v0 }
0x19e1   : > { %8743 = vmatprep.subr.bf16.mxu1 %v9711_v0 }
0x19e7   : > { %8740 = vmatmul.mubr.msk.bf16.vlgmr.msra.gmra.mrb[148].mxu1 %vm2303_vm4, %v5641_v11 }
0x19e8   : > { %8744 = vmatpush3.bf16.msra.mxu1 %v5632_v12  ;;  %8759 = vmatprep.mubr.msk.bf16.mxu1 %vm9712_vm0, %v9711_v0 }
0x19e9   : > { %8745 = vmatprep.subr.bf16.mxu1 %v9711_v0 }
0x19ec   : > { %8746 = vmatpush3.bf16.msra.mxu1 %v5633_v19 }
0x19ed   : > { %8747 = vmatprep.subr.bf16.mxu1 %v9711_v0 }
0x19f0   : > { %8748 = vmatpush3.bf16.msra.mxu1 %v5634_v22 }
0x19f1   : > { %8749 = vmatprep.subr.bf16.mxu1 %v9711_v0 }
0x19f4   : > { %8750 = vmatpush3.bf16.msra.mxu1 %v5635_v24 }
0x19f5   : > { %8751 = vmatprep.subr.bf16.mxu1 %v9711_v0 }
0x19f8   : > { %8752 = vmatpush3.bf16.msra.mxu1 %v5636_v27 }
0x19f9   : > { %8753 = vmatprep.subr.bf16.mxu1 %v9711_v0 }
0x19fc   : > { %8754 = vmatpush3.bf16.msra.mxu1 %v5637_v18  ;;  %v5883_v18 = vld [vmem:[#allocation24 + $0x10] sm:$0xff] }
0x19fd   : > { %8755 = vmatprep.subr.bf16.mxu1 %v9711_v0  ;;  %v5898_v32 = vpack.c.bf16 %v5884_v31, %v5883_v18 }
0x1a00   : > { %8756 = vmatpush3.bf16.msra.mxu1 %v5638_v35  ;;  %v5899_v35 = vpack.c.bf16 %v5886_v34, %v5885_v33 }
0x1a01   : > { %8757 = vmatprep.subr.bf16.mxu1 %v9711_v0 }
0x1a04   : > { %8758 = vmatpush3.bf16.msra.mxu1 %v5639_v38  ;;  %v5900_v38 = vpack.c.bf16 %v5888_v37, %v5887_v36  ;;  %v6128_v37 = vld [vmem:[%s11714_s0 + $0x10] sm:$0xff] }
0x1a05   : > { %8783 = vmatprep.subr.bf16.mxu1 %v9711_v0 }
0x1ab2   : > { %v5609_v39 = vpop.f32.mrb[144].mxu1 }
0x1ab3   : > { %v5615_v40 = vpack.c.bf16 %v5609_v39, %v5609_v39  ;;  %v8735_v41 = vpop.f32.mrb[145].mxu1  ;;  %v5889_v39 = vld [vmem:[#allocation24 + $0x40] sm:$0xff] }
0x1ab4   : > { %v5612_v42 = vpop.f32.mrb[146].mxu1 }
0x1ab5   : > { %v8736_v43 = vpop.f32.mrb[147].mxu1  ;;  %8780 = vmatmul.mubr.bf16.vlgmr.msra.gmra.mrb[140].mxu0 %v5615_v40  ;;  %v5890_v40 = vld [vmem:[#allocation24 + $0x48] sm:$0xff]  ;;  %v5891_v42 = vld [vmem:[#allocation24 + $0x50] sm:$0xff] }
0x1ab6   : > { %8811 = vmatprep.mubr.msk.bf16.mxu0 %vm9712_vm0, %v9711_v0  ;;  %v5901_v41 = vpack.c.bf16 %v5890_v40, %v5889_v39  ;;  %v5892_v43 = vld [vmem:[#allocation24 + $0x58] sm:$0xff]  ;;  %v6105_v39 = vld [vmem:[#allocation24 + $0x108] sm:$0xff]  ;;  %v6129_v40 = vpack.c.bf16 %v6128_v37, %v6128_v37 }
0x1aba   : > { %v5679_v44 = vpop.f32.mrb[148].mxu1 }
0x1abb   : > { %v5685_v45 = vpack.c.bf16 %v5679_v44, %v5679_v44  ;;  %v8741_v46 = vpop.f32.mrb[149].mxu1  ;;  %v5902_v44 = vpack.c.bf16 %v5892_v43, %v5891_v42  ;;  %v6106_v42 = vld [vmem:[#allocation24 + $0x110] sm:$0xff]  ;;  %v6107_v43 = vld [vmem:[#allocation24 + $0x118] sm:$0xff] }
0x1abc   : > { %v5682_v47 = vpop.f32.mrb[150].mxu1  ;;  %v5894_v46 = vld [vmem:[#allocation24 + $0x68] sm:$0xff] }
0x1abd   : > { %v8742_v48 = vpop.f32.mrb[151].mxu1  ;;  %8760 = vmatmul.mubr.bf16.vlgmr.msra.gmra.mrb[152].mxu1 %v5685_v45  ;;  %v5893_v45 = vld [vmem:[#allocation24 + $0x60] sm:$0xff] }
0x1abe   : > { %8784 = vmatpush3.bf16.msra.mxu1 %v11179_v2  ;;  %8785 = vmatprep.mubr.msk.bf16.mxu1 %vm9712_vm0, %v9711_v0  ;;  %v5779_v2 = vld [vmem:[#allocation21 + $0x168] sm:$0xff]  ;;  %v5903_v47 = vpack.c.bf16 %v5894_v46, %v5893_v45  ;;  %v6109_v46 = vld [vmem:[#allocation24 + $0x128] sm:$0xff] }
0x1abf   : > { %8789 = vmatprep.subr.bf16.mxu1 %v9711_v0  ;;  %v5788_v3 = vpack.c.bf16 %v5779_v2, %v5778_v7  ;;  %v5959_v7 = vld [vmem:[#allocation24 + $0xa8] sm:$0xff]  ;;  %v6108_v45 = vld [vmem:[#allocation24 + $0x120] sm:$0xff] }
0x1ac5   : > { %8786 = vmatmul.mubr.msk.bf16.vlgmr.msra.gmra.mrb[156].mxu1 %vm2303_vm4, %v5791_v51 }
0x1ac6   : > { %8790 = vmatpush3.bf16.msra.mxu1 %v5782_v52  ;;  %8805 = vmatprep.mubr.msk.bf16.mxu1 %vm9712_vm0, %v9711_v0 }
0x1ac7   : > { %8791 = vmatprep.subr.bf16.mxu1 %v9711_v0 }
0x1aca   : > { %8792 = vmatpush3.bf16.msra.mxu1 %v5783_v55  ;;  %v5905_v55 = vld [vmem:[%s11714_s0] sm:$0xff]  ;;  %s11715_s0 = sld [smem:[#allocation61_spill]] }
0x1acb   : > { %8793 = vmatprep.subr.bf16.mxu1 %v9711_v0 }
0x1ace   : > { %8794 = vmatpush3.bf16.msra.mxu1 %v5784_v58  ;;  %v5906_v58 = vpack.c.bf16 %v5905_v55, %v5905_v55 }
0x1acf   : > { %8795 = vmatprep.subr.bf16.mxu1 %v9711_v0 }
0x1ad0   : > { %v6692_v37 = vld [vmem:[%s11715_s0 + $0x38] sm:$0xff] }
0x1ad2   : > { %8796 = vmatpush3.bf16.msra.mxu1 %v5785_v62  ;;  %v5955_v62 = vld [vmem:[#allocation24 + $0x88] sm:$0xff] }
0x1ad3   : > { %8797 = vmatprep.subr.bf16.mxu1 %v9711_v0  ;;  %v5970_v1 = vpack.c.bf16 %v5955_v62, %v5954_v61  ;;  %v6119_v61 = vld [vmem:[#allocation24 + $0x178] sm:$0xff] }
0x1ad4   : > { %v6127_v62 = vpack.c.bf16 %v6119_v61, %v6118_v60  ;;  %v6337_v60 = vld [vmem:[%s11716_s1 + $0x198] sm:$0xff] }
0x1ad6   : > { %8798 = vmatpush3.bf16.msra.mxu1 %v5786_v4  ;;  %v5956_v4 = vld [vmem:[#allocation24 + $0x90] sm:$0xff] }
0x1ad7   : > { %8799 = vmatprep.subr.bf16.mxu1 %v9711_v0  ;;  %v5971_v59 = vpack.c.bf16 %v5957_v5, %v5956_v4 }
0x1ada   : > { %8800 = vmatpush3.bf16.msra.mxu1 %v5787_v6  ;;  %v5958_v6 = vld [vmem:[#allocation24 + $0xa0] sm:$0xff] }
0x1adb   : > { %8801 = vmatprep.subr.bf16.mxu1 %v9711_v0  ;;  %v5972_v2 = vpack.c.bf16 %v5959_v7, %v5958_v6 }
0x1ade   : > { %8802 = vmatpush3.bf16.msra.mxu1 %v5788_v3  ;;  %v5960_v3 = vld [vmem:[#allocation24 + $0xb0] sm:$0xff] }
0x1adf   : > { %8803 = vmatprep.subr.bf16.mxu1 %v9711_v0  ;;  %v5973_v9 = vpack.c.bf16 %v5961_v8, %v5960_v3 }
0x1ae2   : > { %8804 = vmatpush3.bf16.msra.mxu1 %v5789_v10  ;;  %v5962_v10 = vld [vmem:[#allocation24 + $0xc0] sm:$0xff] }
0x1ae3   : > { %8841 = vmatprep.subr.bf16.mxu1 %v9711_v0 }
0x1b88   : > { %v5760_v11 = vpop.f32.mrb[140].mxu0 }
0x1b89   : > { %v8781_v12 = vpop.f32.mrb[141].mxu0 }
0x1b8a   : > { %v5763_v13 = vpop.f32.mrb[142].mxu0 }
0x1b8b   : > { %v8782_v14 = vpop.f32.mrb[143].mxu0  ;;  %v5964_v13 = vld [vmem:[#allocation24 + $0xd0] sm:$0xff] }
0x1b8c   : > { %v5965_v14 = vld [vmem:[#allocation24 + $0xd8] sm:$0xff] }
0x1b90   : > { %v5720_v19 = vpop.f32.mrb[152].mxu1 }
0x1b91   : > { %v5761_v20 = vadd.f32 %v5760_v11, %v5720_v19  ;;  %v8761_v21 = vpop.f32.mrb[153].mxu1  ;;  %v5963_v11 = vld [vmem:[#allocation24 + $0xc8] sm:$0xff]  ;;  %v5975_v19 = vpack.c.bf16 %v5965_v14, %v5964_v13  ;;  %v6215_v14 = vld [vmem:[#allocation25] sm:$0xff] }
0x1b92   : > { %v5723_v22 = vpop.f32.mrb[154].mxu1  ;;  %v5974_v12 = vpack.c.bf16 %v5963_v11, %v5962_v10  ;;  %v5896_v21 = vld [vmem:[#allocation24 + $0x78] sm:$0xff] }
0x1b93   : > { %v8762_v23 = vpop.f32.mrb[155].mxu1 }
0x1b94   : > { %v5966_v23 = vld [vmem:[#allocation24 + $0xe0] sm:$0xff] }
0x1b98   : > { %v5829_v15 = vpop.f32.mrb[156].mxu1 }
0x1b99   : > { %v5835_v24 = vpack.c.bf16 %v5829_v15, %v5829_v15  ;;  %v8787_v25 = vpop.f32.mrb[157].mxu1  ;;  %v5967_v15 = vld [vmem:[#allocation24 + $0xe8] sm:$0xff] }
0x1b9a   : > { %v5832_v16 = vpop.f32.mrb[158].mxu1  ;;  %v5968_v25 = vld [vmem:[#allocation24 + $0xf0] sm:$0xff] }
0x1b9b   : > { %v8788_v27 = vpop.f32.mrb[159].mxu1  ;;  %8806 = vmatmul.mubr.bf16.vlgmr.msra.gmra.mrb[160].mxu1 %v5835_v24  ;;  %v5976_v24 = vpack.c.bf16 %v5967_v15, %v5966_v23  ;;  %v5969_v16 = vld [vmem:[#allocation24 + $0xf8] sm:$0xff] }
0x1b9c   : > { %8857 = vmatprep.mubr.msk.bf16.mxu1 %vm9712_vm0, %v9711_v0  ;;  %8842 = vmatpush3.bf16.msra.mxu1 %v5897_v29  ;;  %v5977_v27 = vpack.c.bf16 %v5969_v16, %v5968_v25  ;;  %v6268_v25 = vld [vmem:[%s11715_s0 + $0x8] sm:$0xff]  ;;  %v6548_v16 = vld [vmem:[%s11715_s0 + $0x20] sm:$0xff] }
0x1b9d   : > { %8843 = vmatprep.subr.bf16.mxu1 %v9711_v0 }
0x1ba0   : > { %8844 = vmatpush3.bf16.msra.mxu1 %v5898_v32 }
0x1ba1   : > { %8845 = vmatprep.subr.bf16.mxu1 %v9711_v0 }
0x1ba4   : > { %8846 = vmatpush3.bf16.msra.mxu1 %v5899_v35 }
0x1ba5   : > { %8847 = vmatprep.subr.bf16.mxu1 %v9711_v0 }
0x1ba8   : > { %8848 = vmatpush3.bf16.msra.mxu1 %v5900_v38  ;;  %v6104_v38 = vld [vmem:[#allocation24 + $0x100] sm:$0xff] }
0x1ba9   : > { %8849 = vmatprep.subr.bf16.mxu1 %v9711_v0 }
0x1bac   : > { %8850 = vmatpush3.bf16.msra.mxu1 %v5901_v41  ;;  %v6120_v41 = vpack.c.bf16 %v6105_v39, %v6104_v38  ;;  %v6318_v38 = vld [vmem:[%s11716_s1 + $0x100] sm:$0xff]  ;;  %v6320_v39 = vld [vmem:[%s11716_s1 + $0x110] sm:$0xff] }
0x1bad   : > { %8851 = vmatprep.subr.bf16.mxu1 %v9711_v0 }
0x1bb0   : > { %8852 = vmatpush3.bf16.msra.mxu1 %v5902_v44  ;;  %v6121_v44 = vpack.c.bf16 %v6107_v43, %v6106_v42 }
0x1bb1   : > { %8853 = vmatprep.subr.bf16.mxu1 %v9711_v0 }
0x1bb4   : > { %8854 = vmatpush3.bf16.msra.mxu1 %v5903_v47  ;;  %v6122_v47 = vpack.c.bf16 %v6109_v46, %v6108_v45  ;;  %v6322_v46 = vld [vmem:[%s11716_s1 + $0x120] sm:$0xff] }
0x1bb5   : > { %8855 = vmatprep.subr.bf16.mxu1 %v9711_v0 }
0x1c6e   : > { %v5870_v48 = vpop.f32.mrb[160].mxu1 }
0x1c6f   : > { %v5876_v26 = vadd.f32 %v5870_v48, %v5761_v20  ;;  %v8807_v50 = vpop.f32.mrb[161].mxu1  ;;  %v5895_v20 = vld [vmem:[#allocation24 + $0x70] sm:$0xff] }
0x1c70   : > { %v5873_v51 = vpop.f32.mrb[162].mxu1  ;;  %v5904_v22 = vpack.c.bf16 %v5896_v21, %v5895_v20  ;;  %v6110_v48 = vld [vmem:[#allocation24 + $0x130] sm:$0xff]  ;;  %v6112_v50 = vld [vmem:[#allocation24 + $0x140] sm:$0xff] }
0x1c71   : > { %v5878_v52 = vadd.f32 %v5877_v49, %v5876_v26  ;;  %v8808_v53 = vpop.f32.mrb[163].mxu1  ;;  %v6111_v49 = vld [vmem:[#allocation24 + $0x138] sm:$0xff]  ;;  %v6113_v51 = vld [vmem:[#allocation24 + $0x148] sm:$0xff] }
0x1c72   : > { %8856 = vmatpush3.bf16.msra.mxu1 %v5904_v22  ;;  %v6123_v26 = vpack.c.bf16 %v6111_v49, %v6110_v48  ;;  %v6114_v53 = vld [vmem:[#allocation24 + $0x150] sm:$0xff]  ;;  %v6327_v48 = vld [vmem:[%s11716_s1 + $0x148] sm:$0xff]  ;;  %v6329_v49 = vld [vmem:[%s11716_s1 + $0x158] sm:$0xff] }
0x1c73   : > { %v5879_v54 = vmax.f32 %v5878_v52, 0.0  ;;  %8887 = vmatprep.subr.bf16.mxu1 %v9711_v0  ;;  %v6124_v52 = vpack.c.bf16 %v6113_v51, %v6112_v50  ;;  %v6326_v50 = vld [vmem:[%s11716_s1 + $0x140] sm:$0xff]  ;;  %v6328_v51 = vld [vmem:[%s11716_s1 + $0x150] sm:$0xff] }
0x1c75   : > { %v5880_v56 = vpack.c.bf16 %v5879_v54, %v5879_v54  ;;  %v6115_v54 = vld [vmem:[#allocation24 + $0x158] sm:$0xff] }
0x1c76   : > { %v6125_v55 = vpack.c.bf16 %v6115_v54, %v6114_v53  ;;  %v6333_v53 = vld [vmem:[%s11716_s1 + $0x178] sm:$0xff]  ;;  %v6354_v54 = vpack.c.bf16 %v6328_v51, %v6326_v50  ;;  %v6228_v51 = vld [vmem:[%s11716_s1 + $0x48] sm:$0xff] }
0x1c77   : > { %v11230_v57 = vsel %vm2307_vm3, %v5880_v56, 0  ;;  %v6116_v56 = vld [vmem:[#allocation24 + $0x160] sm:$0xff] }
0x1c78   : > { %8810 = vmatpush3.bf16.msra.mxu0 %v11230_v57 }
0x1c79   : > { %8815 = vmatprep.subr.bf16.mxu0 %v9711_v0 }
0x1c7b   : > { %8812 = vmatmul.mubr.msk.bf16.vlgmr.msra.gmra.mrb[144].mxu0 %vm2303_vm4, %v5906_v58 }
0x1c7c   : > { %8816 = vmatpush3.bf16.msra.mxu0 %v11230_v57  ;;  %8817 = vmatprep.mubr.msk.bf16.mxu0 %vm9712_vm0, %v9711_v0 }
0x1c7d   : > { %8821 = vmatprep.subr.bf16.mxu0 %v9711_v0 }
0x1c83   : > { %8818 = vmatmul.mubr.msk.bf16.vlgmr.msra.gmra.mrb[148].mxu0 %vm2303_vm4, %v5979_v63 }
0x1c84   : > { %8822 = vmatpush3.bf16.msra.mxu0 %v5970_v1  ;;  %8837 = vmatprep.mubr.msk.bf16.mxu0 %vm9712_vm0, %v9711_v0 }
0x1c85   : > { %8823 = vmatprep.subr.bf16.mxu0 %v9711_v0 }
0x1c88   : > { %8824 = vmatpush3.bf16.msra.mxu0 %v5971_v59 }
0x1c89   : > { %8825 = vmatprep.subr.bf16.mxu0 %v9711_v0 }
0x1c8c   : > { %8826 = vmatpush3.bf16.msra.mxu0 %v5972_v2 }
0x1c8d   : > { %8827 = vmatprep.subr.bf16.mxu0 %v9711_v0 }
0x1c90   : > { %8828 = vmatpush3.bf16.msra.mxu0 %v5973_v9 }
0x1c91   : > { %8829 = vmatprep.subr.bf16.mxu0 %v9711_v0 }
0x1c94   : > { %8830 = vmatpush3.bf16.msra.mxu0 %v5974_v12 }
0x1c95   : > { %8831 = vmatprep.subr.bf16.mxu0 %v9711_v0 }
0x1c98   : > { %8832 = vmatpush3.bf16.msra.mxu0 %v5975_v19 }
0x1c99   : > { %8833 = vmatprep.subr.bf16.mxu0 %v9711_v0 }
0x1c9c   : > { %8834 = vmatpush3.bf16.msra.mxu0 %v5976_v24  ;;  %v6267_v24 = vld [vmem:[%s11715_s0] sm:$0xff] }
0x1c9d   : > { %8835 = vmatprep.subr.bf16.mxu0 %v9711_v0 }
0x1ca0   : > { %8836 = vmatpush3.bf16.msra.mxu0 %v5977_v27  ;;  %v6549_v27 = vld [vmem:[%s11715_s0 + $0x28] sm:$0xff] }
0x1ca1   : > { %8861 = vmatprep.subr.bf16.mxu0 %v9711_v0 }
0x1d4e   : > { %v5947_v17 = vpop.f32.mrb[144].mxu0 }
0x1d4f   : > { %v5953_v30 = vpack.c.bf16 %v5947_v17, %v5947_v17  ;;  %v8813_v18 = vpop.f32.mrb[145].mxu0 }
0x1d50   : > { %v5950_v29 = vpop.f32.mrb[146].mxu0  ;;  %v6269_v18 = vpack.c.bf16 %v6268_v25, %v6267_v24  ;;  %v6222_v24 = vld [vmem:[%s11716_s1 + $0x18] sm:$0xff] }
0x1d51   : > { %v8814_v31 = vpop.f32.mrb[147].mxu0  ;;  %8858 = vmatmul.mubr.bf16.vlgmr.msra.gmra.mrb[164].mxu1 %v5953_v30  ;;  %v6550_v29 = vpack.c.bf16 %v6549_v27, %v6548_v16 }
0x1d52   : > { %8889 = vmatprep.mubr.msk.bf16.mxu1 %vm9712_vm0, %v9711_v0  ;;  %v6319_v31 = vld [vmem:[%s11716_s1 + $0x108] sm:$0xff] }
0x1d56   : > { %v6017_v32 = vpop.f32.mrb[148].mxu0 }
0x1d57   : > { %v6023_v33 = vpack.c.bf16 %v6017_v32, %v6017_v32  ;;  %v8819_v34 = vpop.f32.mrb[149].mxu0  ;;  %v6321_v32 = vld [vmem:[%s11716_s1 + $0x118] sm:$0xff] }
0x1d58   : > { %v6020_v35 = vpop.f32.mrb[150].mxu0  ;;  %v6366_v34 = vld [vmem:[%s11715_s0 + $0x10] sm:$0xff] }
0x1d59   : > { %v8820_v36 = vpop.f32.mrb[151].mxu0  ;;  %8838 = vmatmul.mubr.bf16.vlgmr.msra.gmra.mrb[152].mxu0 %v6023_v33  ;;  %v6351_v33 = vpack.c.bf16 %v6321_v32, %v6319_v31  ;;  %v6367_v35 = vld [vmem:[%s11715_s0 + $0x18] sm:$0xff] }
0x1d5a   : > { %8862 = vmatpush3.bf16.msra.mxu0 %v11230_v57  ;;  %8863 = vmatprep.mubr.msk.bf16.mxu0 %vm9712_vm0, %v9711_v0  ;;  %v6117_v57 = vld [vmem:[#allocation24 + $0x168] sm:$0xff]  ;;  %v6691_v36 = vld [vmem:[%s11715_s0 + $0x30] sm:$0xff]  ;;  %v6368_v42 = vpack.c.bf16 %v6367_v35, %v6366_v34  ;;  %v6219_v35 = vld [vmem:[%s11716_s1] sm:$0xff]  ;;  %s11717_s0 = sld [smem:[#allocation63_spill]] }
0x1d5b   : > { %8867 = vmatprep.subr.bf16.mxu0 %v9711_v0  ;;  %v6126_v58 = vpack.c.bf16 %v6117_v57, %v6116_v56  ;;  %v6693_v43 = vpack.c.bf16 %v6692_v37, %v6691_v36  ;;  %v6330_v56 = vld [vmem:[%s11716_s1 + $0x160] sm:$0xff]  ;;  %v6332_v57 = vld [vmem:[%s11716_s1 + $0x170] sm:$0xff] }
0x1d5c   : > { %v6356_v61 = vpack.c.bf16 %v6332_v57, %v6330_v56  ;;  %v6221_v36 = vld [vmem:[%s11716_s1 + $0x10] sm:$0xff]  ;;  %v6232_v57 = vld [vmem:[%s11716_s1 + $0x68] sm:$0xff] }
0x1d5d   : > { %v6229_v56 = vld [vmem:[%s11716_s1 + $0x50] sm:$0xff] }
0x1d61   : > { %8864 = vmatmul.mubr.msk.bf16.vlgmr.msra.gmra.mrb[156].mxu0 %vm2303_vm4, %v6129_v40  ;;  %v6323_v40 = vld [vmem:[%s11716_s1 + $0x128] sm:$0xff] }
0x1d62   : > { %8868 = vmatpush3.bf16.msra.mxu0 %v6120_v41  ;;  %8883 = vmatprep.mubr.msk.bf16.mxu0 %vm9712_vm0, %v9711_v0  ;;  %v6325_v41 = vld [vmem:[%s11716_s1 + $0x138] sm:$0xff] }
0x1d63   : > { %8869 = vmatprep.subr.bf16.mxu0 %v9711_v0  ;;  %v6353_v45 = vpack.c.bf16 %v6325_v41, %v6323_v40 }
0x1d66   : > { %8870 = vmatpush3.bf16.msra.mxu0 %v6121_v44  ;;  %v6350_v44 = vpack.c.bf16 %v6320_v39, %v6318_v38  ;;  %v6224_v38 = vld [vmem:[%s11716_s1 + $0x28] sm:$0xff]  ;;  %v6226_v39 = vld [vmem:[%s11716_s1 + $0x38] sm:$0xff] }
0x1d67   : > { %8871 = vmatprep.subr.bf16.mxu0 %v9711_v0 }
0x1d6a   : > { %8872 = vmatpush3.bf16.msra.mxu0 %v6122_v47  ;;  %v6324_v47 = vld [vmem:[%s11716_s1 + $0x130] sm:$0xff] }
0x1d6b   : > { %8873 = vmatprep.subr.bf16.mxu0 %v9711_v0 }
0x1d6e   : > { %8874 = vmatpush3.bf16.msra.mxu0 %v6123_v26  ;;  %v6355_v26 = vpack.c.bf16 %v6329_v49, %v6327_v48  ;;  %v6254_v48 = vpack.c.bf16 %v6226_v39, %v6224_v38  ;;  %v6223_v49 = vld [vmem:[%s11716_s1 + $0x20] sm:$0xff]  ;;  %v6505_v38 = vld [vmem:[%s11716_s1 + $0x228] sm:$0xff]  ;;  %v6507_v39 = vld [vmem:[%s11716_s1 + $0x238] sm:$0xff] }
0x1d6f   : > { %8875 = vmatprep.subr.bf16.mxu0 %v9711_v0 }
0x1d72   : > { %8876 = vmatpush3.bf16.msra.mxu0 %v6124_v52  ;;  %v6331_v52 = vld [vmem:[%s11716_s1 + $0x168] sm:$0xff] }
0x1d73   : > { %8877 = vmatprep.subr.bf16.mxu0 %v9711_v0 }
0x1d76   : > { %8878 = vmatpush3.bf16.msra.mxu0 %v6125_v55  ;;  %v6357_v55 = vpack.c.bf16 %v6333_v53, %v6331_v52  ;;  %v6230_v52 = vld [vmem:[%s11716_s1 + $0x58] sm:$0xff] }
0x1d77   : > { %8879 = vmatprep.subr.bf16.mxu0 %v9711_v0 }
0x1d7a   : > { %8880 = vmatpush3.bf16.msra.mxu0 %v6126_v58  ;;  %v6335_v58 = vld [vmem:[%s11716_s1 + $0x188] sm:$0xff] }
0x1d7b   : > { %8881 = vmatprep.subr.bf16.mxu0 %v9711_v0 }
0x1d7e   : > { %8882 = vmatpush3.bf16.msra.mxu0 %v6127_v62  ;;  %v6359_v62 = vpack.c.bf16 %v6337_v60, %v6335_v58  ;;  %v6234_v58 = vld [vmem:[%s11716_s1 + $0x78] sm:$0xff] }
0x1d7f   : > { %8899 = vmatprep.subr.bf16.mxu0 %v9711_v0 }
0x1e24   : > { %v6098_v63 = vpop.f32.mrb[164].mxu1 }
0x1e25   : > { %v8859_v1 = vpop.f32.mrb[165].mxu1 }
0x1e26   : > { %v6101_v4 = vpop.f32.mrb[166].mxu1  ;;  %v6336_v1 = vld [vmem:[%s11716_s1 + $0x190] sm:$0xff] }
0x1e27   : > { %v8860_v5 = vpop.f32.mrb[167].mxu1 }
0x1e28   : > { %v6339_v5 = vld [vmem:[%s11716_s1 + $0x1a8] sm:$0xff] }
0x1e2c   : > { %v6058_v59 = vpop.f32.mrb[152].mxu0 }
0x1e2d   : > { %v6099_v6 = vadd.f32 %v6098_v63, %v6058_v59  ;;  %v8839_v7 = vpop.f32.mrb[153].mxu0  ;;  %v6334_v63 = vld [vmem:[%s11716_s1 + $0x180] sm:$0xff]  ;;  %v6341_v59 = vld [vmem:[%s11716_s1 + $0x1b8] sm:$0xff] }
0x1e2e   : > { %v6061_v2 = vpop.f32.mrb[154].mxu0  ;;  %v6358_v4 = vpack.c.bf16 %v6336_v1, %v6334_v63  ;;  %v6338_v7 = vld [vmem:[%s11716_s1 + $0x1a0] sm:$0xff]  ;;  %v6233_v63 = vld [vmem:[%s11716_s1 + $0x70] sm:$0xff]  ;;  %v6236_v1 = vld [vmem:[%s11716_s1 + $0x88] sm:$0xff] }
0x1e2f   : > { %v8840_v3 = vpop.f32.mrb[155].mxu0  ;;  %v6340_v2 = vld [vmem:[%s11716_s1 + $0x1b0] sm:$0xff] }
0x1e30   : > { %v6360_v3 = vpack.c.bf16 %v6340_v2, %v6338_v7  ;;  %v6237_v7 = vld [vmem:[%s11716_s1 + $0x90] sm:$0xff]  ;;  %v6240_v2 = vld [vmem:[%s11716_s1 + $0xa8] sm:$0xff] }
0x1e34   : > { %v6167_v8 = vpop.f32.mrb[156].mxu0 }
0x1e35   : > { %v6173_v9 = vpack.c.bf16 %v6167_v8, %v6167_v8  ;;  %v8865_v10 = vpop.f32.mrb[157].mxu0  ;;  %v6343_v8 = vld [vmem:[%s11716_s1 + $0x1c8] sm:$0xff] }
0x1e36   : > { %v6170_v11 = vpop.f32.mrb[158].mxu0 }
0x1e37   : > { %v8866_v12 = vpop.f32.mrb[159].mxu0  ;;  %8884 = vmatmul.mubr.bf16.vlgmr.msra.gmra.mrb[160].mxu0 %v6173_v9  ;;  %v6345_v9 = vld [vmem:[%s11716_s1 + $0x1d8] sm:$0xff]  ;;  %v6342_v11 = vld [vmem:[%s11716_s1 + $0x1c0] sm:$0xff] }
0x1e38   : > { %8901 = vmatprep.mubr.msk.bf16.mxu0 %vm9712_vm0, %v9711_v0  ;;  %v6363_v10 = vpack.c.bf16 %v6345_v9, %v6343_v8  ;;  %v6344_v12 = vld [vmem:[%s11716_s1 + $0x1d0] sm:$0xff] }
0x1f0a   : > { %v6208_v13 = vpop.f32.mrb[160].mxu0 }
0x1f0b   : > { %v6214_v19 = vadd.f32 %v6208_v13, %v6099_v6  ;;  %v8885_v20 = vpop.f32.mrb[161].mxu0  ;;  %v6361_v6 = vpack.c.bf16 %v6341_v59, %v6339_v5  ;;  %v6362_v13 = vpack.c.bf16 %v6344_v12, %v6342_v11  ;;  %v6241_v11 = vld [vmem:[%s11716_s1 + $0xb0] sm:$0xff]  ;;  %v6244_v12 = vld [vmem:[%s11716_s1 + $0xc8] sm:$0xff] }
0x1f0c   : > { %v6211_v21 = vpop.f32.mrb[162].mxu0 }
0x1f0d   : > { %v6216_v22 = vadd.f32 %v6215_v14, %v6214_v19  ;;  %v8886_v23 = vpop.f32.mrb[163].mxu0  ;;  %v6347_v14 = vld [vmem:[%s11716_s1 + $0x1e8] sm:$0xff]  ;;  %v6349_v19 = vld [vmem:[%s11716_s1 + $0x1f8] sm:$0xff]  ;;  %v6346_v21 = vld [vmem:[%s11716_s1 + $0x1e0] sm:$0xff] }
0x1f0e   : > { %v6365_v20 = vpack.c.bf16 %v6349_v19, %v6347_v14 }
0x1f0f   : > { %v6217_v15 = vmax.f32 %v6216_v22, 0.0  ;;  %v6348_v22 = vld [vmem:[%s11716_s1 + $0x1f0] sm:$0xff] }
0x1f10   : > { %v6364_v23 = vpack.c.bf16 %v6348_v22, %v6346_v21  ;;  %v6245_v21 = vld [vmem:[%s11716_s1 + $0xd0] sm:$0xff]  ;;  %v6248_v22 = vld [vmem:[%s11716_s1 + $0xe8] sm:$0xff] }
0x1f11   : > { %v6218_v17 = vpack.c.bf16 %v6217_v15, %v6217_v15  ;;  %v6220_v15 = vld [vmem:[%s11716_s1 + $0x8] sm:$0xff] }
0x1f12   : > { %v6252_v25 = vpack.c.bf16 %v6222_v24, %v6220_v15 }
0x1f13   : > { %v6274_v30 = vsel %vm2307_vm3, %v6218_v17, 0 }
0x1f14   : > { %8888 = vmatpush3.bf16.msra.mxu1 %v6274_v30  ;;  %8900 = vmatpush3.bf16.msra.mxu0 %v6274_v30 }
0x1f15   : > { %8893 = vmatprep.subr.bf16.mxu1 %v9711_v0  ;;  %8905 = vmatprep.subr.bf16.mxu0 %v9711_v0 }
0x1f17   : > { %8890 = vmatmul.mubr.msk.bf16.vlgmr.msra.gmra.mrb[168].mxu1 %vm2303_vm4, %v6269_v18  ;;  %8902 = vmatmul.mubr.msk.bf16.vlgmr.msra.gmra.mrb[164].mxu0 %vm2303_vm4, %v6550_v29 }
0x1f18   : > { %8894 = vmatpush3.bf16.msra.mxu1 %v6274_v30  ;;  %8906 = vmatpush3.bf16.msra.mxu0 %v6274_v30 }
0x1f19   : > { %8895 = vmatprep.mubr.msk.bf16.mxu1 %vm9712_vm0, %v9711_v0  ;;  %8907 = vmatprep.mubr.msk.bf16.mxu0 %vm9712_vm0, %v9711_v0  ;;  %v6352_v0 = vpack.c.bf16 %v6324_v47, %v6322_v46 }
0x1f1a   : > { %6414 = vmatprep.subr.bf16.mxu1 %v6351_v33 }
0x1f1f   : > { %8896 = vmatmul.mubr.msk.bf16.vlgmr.msra.gmra.mrb[172].mxu1 %vm2303_vm4, %v6368_v42  ;;  %8908 = vmatmul.mubr.msk.bf16.vlgmr.msra.gmra.mrb[168].mxu0 %vm2303_vm4, %v6693_v43 }
0x1f20   : > { %6415 = vmatpush1.bf16.msra.mxu1 %v6350_v44  ;;  %6446 = vmatprep.mubr.bf16.mxu1 %v9713_v28  ;;  %v6251_v44 = vpack.c.bf16 %v6221_v36, %v6219_v35  ;;  %v6500_v36 = vld [vmem:[%s11716_s1 + $0x200] sm:$0xff] }
0x1f21   : > { %6416 = vmatprep.subr.bf16.mxu1 %v6353_v45  ;;  %6886 = vmatprep.mubr.bf16.mxu0 %v9713_v28 }
0x1f24   : > { %6417 = vmatpush1.bf16.msra.mxu1 %v6352_v0  ;;  %v6225_v0 = vld [vmem:[%s11716_s1 + $0x30] sm:$0xff] }
0x1f25   : > { %6418 = vmatprep.subr.bf16.mxu1 %v6355_v26  ;;  %v6253_v53 = vpack.c.bf16 %v6225_v0, %v6223_v49  ;;  %v6508_v0 = vld [vmem:[%s11716_s1 + $0x240] sm:$0xff] }
0x1f28   : > { %6419 = vmatpush1.bf16.msra.mxu1 %v6354_v54  ;;  %v6256_v54 = vpack.c.bf16 %v6230_v52, %v6228_v51  ;;  %v6513_v51 = vld [vmem:[%s11716_s1 + $0x268] sm:$0xff]  ;;  %v6515_v52 = vld [vmem:[%s11716_s1 + $0x278] sm:$0xff] }
0x1f29   : > { %6420 = vmatprep.subr.bf16.mxu1 %v6357_v55  ;;  %v6227_v55 = vld [vmem:[%s11716_s1 + $0x40] sm:$0xff] }
0x1f2a   : > { %v6255_v60 = vpack.c.bf16 %v6229_v56, %v6227_v55  ;;  %v6519_v55 = vld [vmem:[%s11716_s1 + $0x298] sm:$0xff] }
0x1f2c   : > { %6421 = vmatpush1.bf16.msra.mxu1 %v6356_v61  ;;  %v6258_v61 = vpack.c.bf16 %v6234_v58, %v6232_v57  ;;  %v6516_v58 = vld [vmem:[%s11716_s1 + $0x280] sm:$0xff] }
0x1f2d   : > { %6422 = vmatprep.subr.bf16.mxu1 %v6359_v62  ;;  %v6231_v62 = vld [vmem:[%s11716_s1 + $0x60] sm:$0xff] }
0x1f2e   : > { %v6257_v5 = vpack.c.bf16 %v6233_v63, %v6231_v62  ;;  %v6523_v62 = vld [vmem:[%s11716_s1 + $0x2b8] sm:$0xff] }
0x1f30   : > { %6423 = vmatpush1.bf16.msra.mxu1 %v6358_v4  ;;  %v6238_v4 = vld [vmem:[%s11716_s1 + $0x98] sm:$0xff] }
0x1f31   : > { %6424 = vmatprep.subr.bf16.mxu1 %v6361_v6  ;;  %v6260_v59 = vpack.c.bf16 %v6238_v4, %v6236_v1  ;;  %v6235_v6 = vld [vmem:[%s11716_s1 + $0x80] sm:$0xff] }
0x1f32   : > { %v6259_v8 = vpack.c.bf16 %v6237_v7, %v6235_v6  ;;  %v6520_v4 = vld [vmem:[%s11716_s1 + $0x2a0] sm:$0xff]  ;;  %v6527_v6 = vld [vmem:[%s11716_s1 + $0x2d8] sm:$0xff] }
0x1f34   : > { %6425 = vmatpush1.bf16.msra.mxu1 %v6360_v3  ;;  %v6242_v3 = vld [vmem:[%s11716_s1 + $0xb8] sm:$0xff] }
0x1f35   : > { %6426 = vmatprep.subr.bf16.mxu1 %v6363_v10  ;;  %v6262_v9 = vpack.c.bf16 %v6242_v3, %v6240_v2  ;;  %v6239_v10 = vld [vmem:[%s11716_s1 + $0xa0] sm:$0xff] }
0x1f36   : > { %v6261_v14 = vpack.c.bf16 %v6241_v11, %v6239_v10  ;;  %v6524_v3 = vld [vmem:[%s11716_s1 + $0x2c0] sm:$0xff]  ;;  %v6531_v10 = vld [vmem:[%s11716_s1 + $0x2f8] sm:$0xff] }
0x1f38   : > { %6427 = vmatpush1.bf16.msra.mxu1 %v6362_v13  ;;  %v6246_v13 = vld [vmem:[%s11716_s1 + $0xd8] sm:$0xff] }
0x1f39   : > { %6428 = vmatprep.subr.bf16.mxu1 %v6365_v20  ;;  %v6264_v19 = vpack.c.bf16 %v6246_v13, %v6244_v12  ;;  %v6243_v20 = vld [vmem:[%s11716_s1 + $0xc0] sm:$0xff] }
0x1f3a   : > { %v6263_v15 = vpack.c.bf16 %v6245_v21, %v6243_v20  ;;  %v6528_v13 = vld [vmem:[%s11716_s1 + $0x2e0] sm:$0xff]  ;;  %v6646_v20 = vld [vmem:[%s11716_s1 + $0x318] sm:$0xff] }
0x1f3c   : > { %6429 = vmatpush1.bf16.msra.mxu1 %v6364_v23  ;;  %v6250_v23 = vld [vmem:[%s11716_s1 + $0xf8] sm:$0xff] }
0x1f3d   : > { %6457 = vmatprep.subr.bf16.mxu1 %v6252_v25  ;;  %v6266_v24 = vpack.c.bf16 %v6250_v23, %v6248_v22  ;;  %v6247_v25 = vld [vmem:[%s11716_s1 + $0xe0] sm:$0xff] }
0x1f3e   : > { %v6643_v23 = vld [vmem:[%s11716_s1 + $0x300] sm:$0xff] }
0x1fea   : > { %v11327_v16 = vpop.f32.mrb[168].mxu1  ;;  %v11329_v27 = vpop.f32.mrb[164].mxu0 }
0x1feb   : > { %v8891_v17 = vpop.f32.mrb[169].mxu1  ;;  %v8903_v30 = vpop.f32.mrb[165].mxu0 }
0x1fec   : > { %v11331_v18 = vpop.f32.mrb[170].mxu1  ;;  %v11333_v29 = vpop.f32.mrb[166].mxu0  ;;  %v6249_v17 = vld [vmem:[%s11716_s1 + $0xf0] sm:$0xff]  ;;  %v6501_v30 = vld [vmem:[%s11716_s1 + $0x208] sm:$0xff] }
0x1fed   : > { %v6317_v31 = vpack.c.bf16 %v11331_v18, %v11327_v16  ;;  %v8892_v32 = vpop.f32.mrb[171].mxu1  ;;  %v6595_v33 = vpack.c.bf16 %v11333_v29, %v11329_v27  ;;  %v8904_v34 = vpop.f32.mrb[167].mxu0  ;;  %v6539_v18 = vpack.c.bf16 %v6515_v52, %v6513_v51  ;;  %v6664_v51 = vld [vmem:[%s11716_s1 + $0x3a8] sm:$0xff]  ;;  %v6666_v52 = vld [vmem:[%s11716_s1 + $0x3b8] sm:$0xff] }
0x1fee   : > { %v6503_v32 = vld [vmem:[%s11716_s1 + $0x218] sm:$0xff]  ;;  %v6265_v34 = vpack.c.bf16 %v6249_v17, %v6247_v25 }
0x1fef   : > { %v6533_v35 = vpack.c.bf16 %v6503_v32, %v6501_v30  ;;  %v6650_v25 = vld [vmem:[%s11716_s1 + $0x338] sm:$0xff]  ;;  %v6647_v32 = vld [vmem:[%s11716_s1 + $0x320] sm:$0xff] }
0x1ff2   : > { %v6406_v37 = vpop.f32.mrb[172].mxu1  ;;  %v11343_v40 = vpop.f32.mrb[168].mxu0 }
0x1ff3   : > { %v8897_v41 = vpop.f32.mrb[173].mxu1  ;;  %v8909_v42 = vpop.f32.mrb[169].mxu0 }
0x1ff4   : > { %v6409_v43 = vpop.f32.mrb[174].mxu1  ;;  %v11345_v45 = vpop.f32.mrb[170].mxu0  ;;  %v6535_v42 = vpack.c.bf16 %v6507_v39, %v6505_v38  ;;  %v6651_v39 = vld [vmem:[%s11716_s1 + $0x340] sm:$0xff] }
0x1ff5   : > { %v6413_v46 = vpack.c.bf16 %v6409_v43, %v6406_v37  ;;  %v8898_v47 = vpop.f32.mrb[175].mxu1  ;;  %v6738_v26 = vpack.c.bf16 %v11345_v45, %v11343_v40  ;;  %v8910_v50 = vpop.f32.mrb[171].mxu0  ;;  %v6502_v37 = vld [vmem:[%s11716_s1 + $0x210] sm:$0xff]  ;;  %v6504_v43 = vld [vmem:[%s11716_s1 + $0x220] sm:$0xff] }
0x1ff6   : > { %v6532_v41 = vpack.c.bf16 %v6502_v37, %v6500_v36  ;;  %v6511_v47 = vld [vmem:[%s11716_s1 + $0x258] sm:$0xff]  ;;  %v6510_v50 = vld [vmem:[%s11716_s1 + $0x250] sm:$0xff] }
0x1ff7   : > { %6447 = vmatmul.mubr.bf16.vlgmr.msra.gmra.mrb[176].mxu1 %v6413_v46  ;;  %v6509_v46 = vld [vmem:[%s11716_s1 + $0x248] sm:$0xff]  ;;  %v6536_v16 = vpack.c.bf16 %v6510_v50, %v6508_v0  ;;  %v6654_v36 = vld [vmem:[%s11716_s1 + $0x358] sm:$0xff]  ;;  %v6659_v0 = vld [vmem:[%s11716_s1 + $0x380] sm:$0xff] }
0x1ff8   : > { %6458 = vmatpush1.bf16.msra.mxu1 %v6251_v44  ;;  %6489 = vmatprep.mubr.bf16.mxu1 %v9713_v28  ;;  %v6506_v44 = vld [vmem:[%s11716_s1 + $0x230] sm:$0xff]  ;;  %v6537_v49 = vpack.c.bf16 %v6511_v47, %v6509_v46  ;;  %v6660_v46 = vld [vmem:[%s11716_s1 + $0x388] sm:$0xff]  ;;  %v6662_v47 = vld [vmem:[%s11716_s1 + $0x398] sm:$0xff] }
0x1ff9   : > { %6459 = vmatprep.subr.bf16.mxu1 %v6254_v48  ;;  %v6534_v48 = vpack.c.bf16 %v6506_v44, %v6504_v43  ;;  %v6658_v43 = vld [vmem:[%s11716_s1 + $0x378] sm:$0xff]  ;;  %v6657_v44 = vld [vmem:[%s11716_s1 + $0x370] sm:$0xff] }
0x1ffa   : > { %v6661_v50 = vld [vmem:[%s11716_s1 + $0x390] sm:$0xff] }
0x1ffc   : > { %6460 = vmatpush1.bf16.msra.mxu1 %v6253_v53  ;;  %v6514_v53 = vld [vmem:[%s11716_s1 + $0x270] sm:$0xff] }
0x1ffd   : > { %6461 = vmatprep.subr.bf16.mxu1 %v6256_v54  ;;  %v6517_v54 = vld [vmem:[%s11716_s1 + $0x288] sm:$0xff] }
0x1ffe   : > { %v6541_v57 = vpack.c.bf16 %v6519_v55, %v6517_v54  ;;  %v6668_v54 = vld [vmem:[%s11716_s1 + $0x3c8] sm:$0xff]  ;;  %v6670_v55 = vld [vmem:[%s11716_s1 + $0x3d8] sm:$0xff] }
0x2000   : > { %6462 = vmatpush1.bf16.msra.mxu1 %v6255_v60  ;;  %v6518_v60 = vld [vmem:[%s11716_s1 + $0x290] sm:$0xff] }
0x2001   : > { %6463 = vmatprep.subr.bf16.mxu1 %v6258_v61  ;;  %v6521_v61 = vld [vmem:[%s11716_s1 + $0x2a8] sm:$0xff]  ;;  %v6540_v63 = vpack.c.bf16 %v6518_v60, %v6516_v58  ;;  %v6667_v58 = vld [vmem:[%s11716_s1 + $0x3c0] sm:$0xff]  ;;  %v6669_v60 = vld [vmem:[%s11716_s1 + $0x3d0] sm:$0xff] }
0x2002   : > { %v6543_v1 = vpack.c.bf16 %v6523_v62, %v6521_v61  ;;  %v6672_v61 = vld [vmem:[%s11716_s1 + $0x3e8] sm:$0xff]  ;;  %v6674_v62 = vld [vmem:[%s11716_s1 + $0x3f8] sm:$0xff] }
0x2004   : > { %6464 = vmatpush1.bf16.msra.mxu1 %v6257_v5  ;;  %v6522_v5 = vld [vmem:[%s11716_s1 + $0x2b0] sm:$0xff] }
0x2005   : > { %6465 = vmatprep.subr.bf16.mxu1 %v6260_v59  ;;  %v6525_v59 = vld [vmem:[%s11716_s1 + $0x2c8] sm:$0xff]  ;;  %v6542_v7 = vpack.c.bf16 %v6522_v5, %v6520_v4  ;;  %v6671_v4 = vld [vmem:[%s11716_s1 + $0x3e0] sm:$0xff]  ;;  %v6673_v5 = vld [vmem:[%s11716_s1 + $0x3f0] sm:$0xff] }
0x2006   : > { %v6545_v2 = vpack.c.bf16 %v6527_v6, %v6525_v59  ;;  %v6689_v59 = vpack.c.bf16 %v6673_v5, %v6671_v4  ;;  %v6786_v6 = vld [vmem:[%s11717_s0] sm:$0xff]  ;;  %v6928_v5 = vld [vmem:[%s9927_s5 + $0x1e8] sm:$0xff] }
0x2007   : > { %v6927_v4 = vld [vmem:[%s9927_s5 + $0x1e0] sm:$0xff] }
0x2008   : > { %6466 = vmatpush1.bf16.msra.mxu1 %v6259_v8  ;;  %v6526_v8 = vld [vmem:[%s11716_s1 + $0x2d0] sm:$0xff] }
0x2009   : > { %6467 = vmatprep.subr.bf16.mxu1 %v6262_v9  ;;  %v6529_v9 = vld [vmem:[%s11716_s1 + $0x2e8] sm:$0xff]  ;;  %v6544_v11 = vpack.c.bf16 %v6526_v8, %v6524_v3  ;;  %v6788_v3 = vld [vmem:[%s11717_s0 + $0x10] sm:$0xff] }
0x200a   : > { %v6547_v12 = vpack.c.bf16 %v6531_v10, %v6529_v9  ;;  %v6789_v10 = vld [vmem:[%s11717_s0 + $0x18] sm:$0xff] }
0x200c   : > { %6468 = vmatpush1.bf16.msra.mxu1 %v6261_v14  ;;  %v6530_v14 = vld [vmem:[%s11716_s1 + $0x2f0] sm:$0xff] }
0x200d   : > { %6469 = vmatprep.subr.bf16.mxu1 %v6264_v19  ;;  %v6644_v19 = vld [vmem:[%s11716_s1 + $0x308] sm:$0xff]  ;;  %v6546_v21 = vpack.c.bf16 %v6530_v14, %v6528_v13 }
0x200e   : > { %v6676_v22 = vpack.c.bf16 %v6646_v20, %v6644_v19 }
0x2010   : > { %6470 = vmatpush1.bf16.msra.mxu1 %v6263_v15  ;;  %v6645_v15 = vld [vmem:[%s11716_s1 + $0x310] sm:$0xff] }
0x2011   : > { %6471 = vmatprep.subr.bf16.mxu1 %v6266_v24  ;;  %v6648_v24 = vld [vmem:[%s11716_s1 + $0x328] sm:$0xff]  ;;  %v6675_v17 = vpack.c.bf16 %v6645_v15, %v6643_v23 }
0x2012   : > { %v6678_v30 = vpack.c.bf16 %v6650_v25, %v6648_v24  ;;  %v6849_v23 = vld [vmem:[%s9922_s9 + $0x8] sm:$0xff]  ;;  %v6915_v24 = vld [vmem:[%s9927_s5 + $0x180] sm:$0xff] }
0x2013   : > { %v6916_v25 = vld [vmem:[%s9927_s5 + $0x188] sm:$0xff] }
0x2014   : > { %6472 = vmatpush1.bf16.msra.mxu1 %v6265_v34  ;;  %v6649_v34 = vld [vmem:[%s11716_s1 + $0x330] sm:$0xff] }
0x2015   : > { %6596 = vmatprep.subr.bf16.mxu1 %v6533_v35  ;;  %v6652_v35 = vld [vmem:[%s11716_s1 + $0x348] sm:$0xff]  ;;  %v6677_v37 = vpack.c.bf16 %v6649_v34, %v6647_v32  ;;  %v6947_v32 = vld [vmem:[%s9922_s9 + $0x10] sm:$0xff]  ;;  %v6948_v34 = vld [vmem:[%s9922_s9 + $0x18] sm:$0xff] }
0x2016   : > { %v6680_v38 = vpack.c.bf16 %v6654_v36, %v6652_v35  ;;  %v6899_v35 = vld [vmem:[%s9927_s5 + $0x100] sm:$0xff]  ;;  %v6900_v36 = vld [vmem:[%s9927_s5 + $0x108] sm:$0xff] }
0x2017   : > { %6490 = vmatmul.mubr.bf16.vlgmr.msra.gmra.mrb[176].mxu1 %v6317_v31  ;;  %v6512_v31 = vld [vmem:[%s11716_s1 + $0x260] sm:$0xff] }
0x2018   : > { %6597 = vmatpush1.bf16.msra.mxu1 %v6532_v41  ;;  %6628 = vmatprep.mubr.bf16.mxu1 %v9713_v28  ;;  %v6538_v56 = vpack.c.bf16 %v6514_v53, %v6512_v31  ;;  %v6653_v41 = vld [vmem:[%s11716_s1 + $0x350] sm:$0xff]  ;;  %v6663_v31 = vld [vmem:[%s11716_s1 + $0x3a0] sm:$0xff] }
0x2019   : > { %6598 = vmatprep.subr.bf16.mxu1 %v6535_v42  ;;  %v6656_v42 = vld [vmem:[%s11716_s1 + $0x368] sm:$0xff]  ;;  %v6679_v27 = vpack.c.bf16 %v6653_v41, %v6651_v39  ;;  %v6665_v53 = vld [vmem:[%s11716_s1 + $0x3b0] sm:$0xff]  ;;  %v6949_v39 = vpack.c.bf16 %v6948_v34, %v6947_v32  ;;  %v6931_v41 = vpack.c.bf16 %v6900_v36, %v6899_v35  ;;  %v6819_v35 = vld [vmem:[%s9927_s5 + $0x98] sm:$0xff] }
0x201a   : > { %v6682_v29 = vpack.c.bf16 %v6658_v43, %v6656_v42  ;;  %v6901_v43 = vld [vmem:[%s9927_s5 + $0x110] sm:$0xff] }
0x201b   : > { %v6818_v34 = vld [vmem:[%s9927_s5 + $0x90] sm:$0xff] }
0x201c   : > { %6599 = vmatpush1.bf16.msra.mxu1 %v6534_v48 }
0x201d   : > { %6600 = vmatprep.subr.bf16.mxu1 %v6537_v49  ;;  %v6684_v49 = vpack.c.bf16 %v6662_v47, %v6660_v46  ;;  %v6903_v47 = vld [vmem:[%s9927_s5 + $0x120] sm:$0xff] }
0x2020   : > { %6601 = vmatpush1.bf16.msra.mxu1 %v6536_v16  ;;  %v6683_v16 = vpack.c.bf16 %v6661_v50, %v6659_v0  ;;  %v6922_v0 = vld [vmem:[%s9927_s5 + $0x1b8] sm:$0xff] }
0x2021   : > { %6602 = vmatprep.subr.bf16.mxu1 %v6539_v18  ;;  %v6686_v18 = vpack.c.bf16 %v6666_v52, %v6664_v51  ;;  %v6905_v52 = vld [vmem:[%s9927_s5 + $0x130] sm:$0xff] }
0x2024   : > { %6603 = vmatpush1.bf16.msra.mxu1 %v6538_v56  ;;  %v6685_v56 = vpack.c.bf16 %v6665_v53, %v6663_v31  ;;  %v6924_v31 = vld [vmem:[%s9927_s5 + $0x1c8] sm:$0xff] }
0x2025   : > { %6604 = vmatprep.subr.bf16.mxu1 %v6541_v57  ;;  %v6688_v57 = vpack.c.bf16 %v6670_v55, %v6668_v54  ;;  %v6907_v55 = vld [vmem:[%s9927_s5 + $0x140] sm:$0xff] }
0x2028   : > { %6605 = vmatpush1.bf16.msra.mxu1 %v6540_v63  ;;  %v6687_v63 = vpack.c.bf16 %v6669_v60, %v6667_v58  ;;  %v6925_v58 = vld [vmem:[%s9927_s5 + $0x1d0] sm:$0xff]  ;;  %v6926_v60 = vld [vmem:[%s9927_s5 + $0x1d8] sm:$0xff] }
0x2029   : > { %6606 = vmatprep.subr.bf16.mxu1 %v6543_v1  ;;  %v6690_v1 = vpack.c.bf16 %v6674_v62, %v6672_v61  ;;  %v6944_v61 = vpack.c.bf16 %v6926_v60, %v6925_v58  ;;  %v6909_v62 = vld [vmem:[%s9927_s5 + $0x150] sm:$0xff] }
0x202c   : > { %6607 = vmatpush1.bf16.msra.mxu1 %v6542_v7  ;;  %v6787_v7 = vld [vmem:[%s11717_s0 + $0x8] sm:$0xff]  ;;  %s11718_s0 = sshll.u32 %s11720_s26, 4 }
0x202d   : > { %6608 = vmatprep.subr.bf16.mxu1 %v6545_v2 }
0x2030   : > { %6609 = vmatpush1.bf16.msra.mxu1 %v6544_v11 }
0x2031   : > { %6610 = vmatprep.subr.bf16.mxu1 %v6547_v12 }
0x2034   : > { %6611 = vmatpush1.bf16.msra.mxu1 %v6546_v21 }
0x2035   : > { %6739 = vmatprep.subr.bf16.mxu1 %v6676_v22  ;;  %v6848_v22 = vld [vmem:[%s9922_s9] sm:$0xff] }
0x2037   : > { %6629 = vmatmul.mubr.bf16.vlgmr.msra.gmra.mrb[176].mxu1 %v6595_v33  ;;  %v6655_v33 = vld [vmem:[%s11716_s1 + $0x360] sm:$0xff]  ;;  %s1503_s1 = scalar_lea.vmem %s9937_s17, %s11718_s0 }
0x2038   : > { %6740 = vmatpush1.bf16.msra.mxu1 %v6675_v17  ;;  %6771 = vmatprep.mubr.bf16.mxu1 %v9713_v28  ;;  %v6681_v48 = vpack.c.bf16 %v6657_v44, %v6655_v33  ;;  %v6850_v17 = vpack.c.bf16 %v6849_v23, %v6848_v22  ;;  %v6920_v33 = vld [vmem:[%s9927_s5 + $0x1a8] sm:$0xff] }
0x2039   : > { %6741 = vmatprep.subr.bf16.mxu1 %v6678_v30  ;;  %v6939_v30 = vpack.c.bf16 %v6916_v25, %v6915_v24 }
0x203c   : > { %6742 = vmatpush1.bf16.msra.mxu1 %v6677_v37  ;;  %v6917_v37 = vld [vmem:[%s9927_s5 + $0x190] sm:$0xff] }
0x203d   : > { %6743 = vmatprep.subr.bf16.mxu1 %v6680_v38  ;;  %v6918_v38 = vld [vmem:[%s9927_s5 + $0x198] sm:$0xff] }
0x203e   : > { %v6940_v42 = vpack.c.bf16 %v6918_v38, %v6917_v37 }
0x2040   : > { %6744 = vmatpush1.bf16.msra.mxu1 %v6679_v27  ;;  %v6902_v27 = vld [vmem:[%s9927_s5 + $0x118] sm:$0xff] }
0x2041   : > { %6745 = vmatprep.subr.bf16.mxu1 %v6682_v29  ;;  %v6919_v29 = vld [vmem:[%s9927_s5 + $0x1a0] sm:$0xff]  ;;  %v6932_v44 = vpack.c.bf16 %v6902_v27, %v6901_v43  ;;  %v6803_v43 = vld [vmem:[%s9927_s5 + $0x18] sm:$0xff] }
0x2042   : > { %v6941_v46 = vpack.c.bf16 %v6920_v33, %v6919_v29  ;;  %v6820_v27 = vld [vmem:[%s9927_s5 + $0xa0] sm:$0xff]  ;;  %v6821_v29 = vld [vmem:[%s9927_s5 + $0xa8] sm:$0xff] }
0x2044   : > { %6746 = vmatpush1.bf16.msra.mxu1 %v6681_v48  ;;  %v6904_v48 = vld [vmem:[%s9927_s5 + $0x128] sm:$0xff] }
0x2045   : > { %6747 = vmatprep.subr.bf16.mxu1 %v6684_v49  ;;  %v6921_v49 = vld [vmem:[%s9927_s5 + $0x1b0] sm:$0xff]  ;;  %v6933_v50 = vpack.c.bf16 %v6904_v48, %v6903_v47  ;;  %v6805_v47 = vld [vmem:[%s9927_s5 + $0x28] sm:$0xff] }
0x2046   : > { %v6942_v51 = vpack.c.bf16 %v6922_v0, %v6921_v49  ;;  %v6822_v48 = vld [vmem:[%s9927_s5 + $0xb0] sm:$0xff]  ;;  %v6823_v49 = vld [vmem:[%s9927_s5 + $0xb8] sm:$0xff] }
0x2048   : > { %6748 = vmatpush1.bf16.msra.mxu1 %v6683_v16  ;;  %v6906_v16 = vld [vmem:[%s9927_s5 + $0x138] sm:$0xff] }
0x2049   : > { %6749 = vmatprep.subr.bf16.mxu1 %v6686_v18  ;;  %v6923_v18 = vld [vmem:[%s9927_s5 + $0x1c0] sm:$0xff]  ;;  %v6934_v53 = vpack.c.bf16 %v6906_v16, %v6905_v52  ;;  %v6807_v52 = vld [vmem:[%s9927_s5 + $0x38] sm:$0xff] }
0x204a   : > { %v6943_v54 = vpack.c.bf16 %v6924_v31, %v6923_v18  ;;  %v6824_v16 = vld [vmem:[%s9927_s5 + $0xc0] sm:$0xff]  ;;  %v6825_v18 = vld [vmem:[%s9927_s5 + $0xc8] sm:$0xff] }
0x204c   : > { %6750 = vmatpush1.bf16.msra.mxu1 %v6685_v56  ;;  %v6908_v56 = vld [vmem:[%s9927_s5 + $0x148] sm:$0xff] }
0x204d   : > { %6751 = vmatprep.subr.bf16.mxu1 %v6688_v57  ;;  %v6935_v57 = vpack.c.bf16 %v6908_v56, %v6907_v55  ;;  %v6809_v55 = vld [vmem:[%s9927_s5 + $0x48] sm:$0xff]  ;;  %v6826_v56 = vld [vmem:[%s9927_s5 + $0xd0] sm:$0xff] }
0x2050   : > { %6752 = vmatpush1.bf16.msra.mxu1 %v6687_v63  ;;  %v6910_v63 = vld [vmem:[%s9927_s5 + $0x158] sm:$0xff] }
0x2051   : > { %6753 = vmatprep.subr.bf16.mxu1 %v6690_v1  ;;  %v6936_v1 = vpack.c.bf16 %v6910_v63, %v6909_v62  ;;  %v6811_v62 = vld [vmem:[%s9927_s5 + $0x58] sm:$0xff]  ;;  %v6828_v63 = vld [vmem:[%s9927_s5 + $0xe0] sm:$0xff] }
0x2054   : > { %6754 = vmatpush1.bf16.msra.mxu1 %v6689_v59  ;;  %v6945_v59 = vpack.c.bf16 %v6928_v5, %v6927_v4 }
0x2057   : > { %6772 = vmatmul.mubr.bf16.vlgmr.msra.gmra.mrb[176].mxu1 %v6738_v26 }
0x212a   : > { %v6773_v2 = vpop.f32.mrb[176].mxu1 }
0x212b   : > { %v6790_v8 = vadd.f32 %v6786_v6, %v6773_v2  ;;  %v6775_v9 = vpop.f32.mrb[177].mxu1  ;;  %v6911_v6 = vld [vmem:[%s9927_s5 + $0x160] sm:$0xff] }
0x212c   : > { %v6791_v11 = vadd.f32 %v6787_v7, %v6775_v9  ;;  %v6777_v12 = vpop.f32.mrb[178].mxu1  ;;  %v6912_v7 = vld [vmem:[%s9927_s5 + $0x168] sm:$0xff] }
0x212d   : > { %v6792_v13 = vadd.f32 %v6788_v3, %v6777_v12  ;;  %v6779_v14 = vpop.f32.mrb[179].mxu1  ;;  %v6794_v20 = vmax.f32 %v6790_v8, 0.0  ;;  %v6937_v2 = vpack.c.bf16 %v6912_v7, %v6911_v6  ;;  %v6929_v3 = vld [vmem:[%s9927_s5 + $0x1f0] sm:$0xff]  ;;  %v6930_v8 = vld [vmem:[%s9927_s5 + $0x1f8] sm:$0xff]  ;;  %v6813_v6 = vld [vmem:[%s9927_s5 + $0x68] sm:$0xff] }
0x212e   : > { %v6793_v19 = vadd.f32 %v6789_v10, %v6779_v14  ;;  %v6795_v40 = vmax.f32 %v6791_v11, 0.0  ;;  %v6946_v9 = vpack.c.bf16 %v6930_v8, %v6929_v3  ;;  %v6913_v10 = vld [vmem:[%s9927_s5 + $0x170] sm:$0xff]  ;;  %v6914_v11 = vld [vmem:[%s9927_s5 + $0x178] sm:$0xff]  ;;  %v6817_v14 = vld [vmem:[%s9927_s5 + $0x88] sm:$0xff] }
0x212f   : > { %v6796_v21 = vmax.f32 %v6792_v13, 0.0  ;;  %v6938_v12 = vpack.c.bf16 %v6914_v11, %v6913_v10  ;;  %v6816_v13 = vld [vmem:[%s9927_s5 + $0x80] sm:$0xff]  ;;  %v6830_v7 = vld [vmem:[%s9927_s5 + $0xf0] sm:$0xff]  ;;  %v6815_v10 = vld [vmem:[%s9927_s5 + $0x78] sm:$0xff] }
0x2130   : > { %v6797_v45 = vmax.f32 %v6793_v19, 0.0  ;;  %v6840_v19 = vpack.c.bf16 %v6817_v14, %v6816_v13  ;;  %v7129_v13 = vld [vmem:[%s9922_s9 + $0x28] sm:$0xff] }
0x2131   : > { %v11455_v26 = vpack.c.bf16 %v6796_v21, %v6794_v20 }
0x2132   : > { %v11459_v15 = vpack.c.bf16 %v6797_v45, %v6795_v40 }
0x2134   : > { %6854 = vmatprep.subr.bf16.mxu0 %v11459_v15 }
0x2135   : > { %6855 = vmatpush1.bf16.msra.mxu0 %v11455_v26 }
0x2136   : > { %6953 = vmatprep.subr.bf16.mxu0 %v11459_v15 }
0x2138   : > { %7594 = vmatmul.mubr.msk.bf16.vlgmr.msra.gmra.mrb[172].mxu0 %vm1529_vm1, %v6850_v17  ;;  %v6800_v17 = vld [vmem:[%s9927_s5] sm:$0xff] }
0x2139   : > { %6954 = vmatpush1.bf16.msra.mxu0 %v11455_v26  ;;  %6985 = vmatprep.mubr.bf16.mxu0 %v9713_v28 }
0x213a   : > { %8007 = vmatprep.subr.bf16.mxu0 %v6939_v30  ;;  %v6801_v30 = vld [vmem:[%s9927_s5 + $0x8] sm:$0xff] }
0x2140   : > { %7595 = vmatmul.mubr.msk.bf16.vlgmr.msra.gmra.mrb[176].mxu0 %vm1529_vm1, %v6949_v39  ;;  %v6832_v39 = vpack.c.bf16 %v6801_v30, %v6800_v17  ;;  %v7101_v17 = vld [vmem:[%s9927_s5 + $0x2a8] sm:$0xff] }
0x2141   : > { %8008 = vmatpush3.bf16.msra.mxu0 %v6931_v41  ;;  %v6841_v41 = vpack.c.bf16 %v6819_v35, %v6818_v34  ;;  %v7084_v34 = vld [vmem:[%s9927_s5 + $0x220] sm:$0xff]  ;;  %v7085_v35 = vld [vmem:[%s9927_s5 + $0x228] sm:$0xff] }
0x2142   : > { %8009 = vmatprep.subr.bf16.mxu0 %v6940_v42  ;;  %v6802_v42 = vld [vmem:[%s9927_s5 + $0x10] sm:$0xff] }
0x2143   : > { %v6833_v33 = vpack.c.bf16 %v6803_v43, %v6802_v42  ;;  %v7087_v42 = vld [vmem:[%s9927_s5 + $0x238] sm:$0xff]  ;;  %v7104_v43 = vld [vmem:[%s9927_s5 + $0x2c0] sm:$0xff] }
0x2145   : > { %8010 = vmatpush3.bf16.msra.mxu0 %v6932_v44  ;;  %v6842_v44 = vpack.c.bf16 %v6821_v29, %v6820_v27  ;;  %v7105_v27 = vld [vmem:[%s9927_s5 + $0x2c8] sm:$0xff] }
0x2146   : > { %8011 = vmatprep.subr.bf16.mxu0 %v6941_v46  ;;  %v6804_v46 = vld [vmem:[%s9927_s5 + $0x20] sm:$0xff] }
0x2147   : > { %v6834_v0 = vpack.c.bf16 %v6805_v47, %v6804_v46  ;;  %v7089_v46 = vld [vmem:[%s9927_s5 + $0x248] sm:$0xff] }
0x2149   : > { %8012 = vmatpush3.bf16.msra.mxu0 %v6933_v50  ;;  %v6843_v50 = vpack.c.bf16 %v6823_v49, %v6822_v48  ;;  %v7106_v48 = vld [vmem:[%s9927_s5 + $0x2d0] sm:$0xff]  ;;  %v7107_v49 = vld [vmem:[%s9927_s5 + $0x2d8] sm:$0xff] }
0x214a   : > { %8013 = vmatprep.subr.bf16.mxu0 %v6942_v51  ;;  %v6806_v51 = vld [vmem:[%s9927_s5 + $0x30] sm:$0xff] }
0x214b   : > { %v6835_v31 = vpack.c.bf16 %v6807_v52, %v6806_v51  ;;  %v7091_v51 = vld [vmem:[%s9927_s5 + $0x258] sm:$0xff] }
0x214d   : > { %8014 = vmatpush3.bf16.msra.mxu0 %v6934_v53  ;;  %v6844_v53 = vpack.c.bf16 %v6825_v18, %v6824_v16  ;;  %v7108_v16 = vld [vmem:[%s9927_s5 + $0x2e0] sm:$0xff]  ;;  %v7109_v18 = vld [vmem:[%s9927_s5 + $0x2e8] sm:$0xff] }
0x214e   : > { %8015 = vmatprep.subr.bf16.mxu0 %v6943_v54  ;;  %v6808_v54 = vld [vmem:[%s9927_s5 + $0x40] sm:$0xff] }
0x214f   : > { %v6836_v58 = vpack.c.bf16 %v6809_v55, %v6808_v54  ;;  %v7093_v54 = vld [vmem:[%s9927_s5 + $0x268] sm:$0xff] }
0x2151   : > { %8016 = vmatpush3.bf16.msra.mxu0 %v6935_v57  ;;  %v6827_v57 = vld [vmem:[%s9927_s5 + $0xd8] sm:$0xff] }
0x2152   : > { %8017 = vmatprep.subr.bf16.mxu0 %v6944_v61  ;;  %v6845_v60 = vpack.c.bf16 %v6827_v57, %v6826_v56  ;;  %v6810_v61 = vld [vmem:[%s9927_s5 + $0x50] sm:$0xff]  ;;  %v7111_v57 = vld [vmem:[%s9927_s5 + $0x2f8] sm:$0xff] }
0x2153   : > { %v6837_v4 = vpack.c.bf16 %v6811_v62, %v6810_v61  ;;  %v7110_v56 = vld [vmem:[%s9927_s5 + $0x2f0] sm:$0xff]  ;;  %v7095_v61 = vld [vmem:[%s9927_s5 + $0x278] sm:$0xff] }
0x2155   : > { %8018 = vmatpush3.bf16.msra.mxu0 %v6936_v1  ;;  %v6829_v1 = vld [vmem:[%s9927_s5 + $0xe8] sm:$0xff] }
0x2156   : > { %8019 = vmatprep.subr.bf16.mxu0 %v6945_v59  ;;  %v6846_v5 = vpack.c.bf16 %v6829_v1, %v6828_v63  ;;  %v6812_v59 = vld [vmem:[%s9927_s5 + $0x60] sm:$0xff] }
0x2157   : > { %v6838_v3 = vpack.c.bf16 %v6813_v6, %v6812_v59 }
0x2159   : > { %8020 = vmatpush3.bf16.msra.mxu0 %v6937_v2  ;;  %v6831_v2 = vld [vmem:[%s9927_s5 + $0xf8] sm:$0xff] }
0x215a   : > { %8021 = vmatprep.subr.bf16.mxu0 %v6946_v9  ;;  %v6847_v8 = vpack.c.bf16 %v6831_v2, %v6830_v7  ;;  %v6814_v9 = vld [vmem:[%s9927_s5 + $0x70] sm:$0xff] }
0x215b   : > { %v6839_v11 = vpack.c.bf16 %v6815_v10, %v6814_v9 }
0x215d   : > { %8022 = vmatpush3.bf16.msra.mxu0 %v6938_v12  ;;  %v7128_v12 = vld [vmem:[%s9922_s9 + $0x20] sm:$0xff] }
0x215e   : > { %8029 = vmatprep.subr.bf16.mxu0 %v6840_v19  ;;  %v7130_v14 = vpack.c.bf16 %v7129_v13, %v7128_v12  ;;  %v7096_v19 = vld [vmem:[%s9927_s5 + $0x280] sm:$0xff] }
0x220b   : > { %v11504_v20 = vpop.f32.mrb[172].mxu0 }
0x220c   : > { %v6890_v21 = vpop.f32.mrb[173].mxu0 }
0x220d   : > { %v11506_v40 = vpop.f32.mrb[174].mxu0 }
0x220e   : > { %v6897_v45 = vpack.c.bf16 %v11506_v40, %v11504_v20  ;;  %v6894_v22 = vpop.f32.mrb[175].mxu0  ;;  %v7081_v20 = vld [vmem:[%s9927_s5 + $0x208] sm:$0xff]  ;;  %v7098_v40 = vld [vmem:[%s9927_s5 + $0x290] sm:$0xff] }
0x220f   : > { %v6898_v23 = vpack.c.bf16 %v6894_v22, %v6890_v21  ;;  %v7097_v21 = vld [vmem:[%s9927_s5 + $0x288] sm:$0xff] }
0x2210   : > { %v7120_v22 = vpack.c.bf16 %v7097_v21, %v7096_v19 }
0x2213   : > { %v6987_v24 = vpop.f32.mrb[176].mxu0 }
0x2214   : > { %v6989_v25 = vpop.f32.mrb[177].mxu0 }
0x2215   : > { %v6991_v32 = vpop.f32.mrb[178].mxu0 }
0x2216   : > { %v6996_v36 = vpack.c.bf16 %v6991_v32, %v6987_v24  ;;  %v6993_v37 = vpop.f32.mrb[179].mxu0  ;;  %v7083_v24 = vld [vmem:[%s9927_s5 + $0x218] sm:$0xff] }
0x2217   : > { %v6997_v38 = vpack.c.bf16 %v6993_v37, %v6989_v25  ;;  %v7100_v25 = vld [vmem:[%s9927_s5 + $0x2a0] sm:$0xff]  ;;  %v7103_v37 = vld [vmem:[%s9927_s5 + $0x2b8] sm:$0xff] }
0x2218   : > { %v7122_v32 = vpack.c.bf16 %v7101_v17, %v7100_v25  ;;  %v7223_v17 = vld [vmem:[%s9932_s25 + $0x8] sm:$0xff] }
0x2219   : > { %7030 = vmatprep.mubr.bf16.mxu0 %v6997_v38  ;;  %v7114_v38 = vpack.c.bf16 %v7085_v35, %v7084_v34 }
0x221a   : > { %7031 = vmatmul.mubr.bf16.vlgmr.msra.gmra.mrb[180].mxu0 %v6996_v36  ;;  %v7102_v36 = vld [vmem:[%s9927_s5 + $0x2b0] sm:$0xff] }
0x221b   : > { %8030 = vmatpush3.bf16.msra.mxu0 %v6832_v39  ;;  %7071 = vmatprep.mubr.bf16.mxu0 %v6898_v23  ;;  %v7082_v23 = vld [vmem:[%s9927_s5 + $0x210] sm:$0xff]  ;;  %v7123_v39 = vpack.c.bf16 %v7103_v37, %v7102_v36 }
0x221c   : > { %8031 = vmatprep.subr.bf16.mxu0 %v6841_v41  ;;  %v7113_v30 = vpack.c.bf16 %v7083_v24, %v7082_v23  ;;  %v7086_v41 = vld [vmem:[%s9927_s5 + $0x230] sm:$0xff] }
0x221d   : > { %v7115_v29 = vpack.c.bf16 %v7087_v42, %v7086_v41 }
0x221f   : > { %8032 = vmatpush3.bf16.msra.mxu0 %v6833_v33  ;;  %v7124_v33 = vpack.c.bf16 %v7105_v27, %v7104_v43 }
0x2220   : > { %8033 = vmatprep.subr.bf16.mxu0 %v6842_v44  ;;  %v7088_v44 = vld [vmem:[%s9927_s5 + $0x240] sm:$0xff] }
0x2221   : > { %v7116_v47 = vpack.c.bf16 %v7089_v46, %v7088_v44 }
0x2223   : > { %8034 = vmatpush3.bf16.msra.mxu0 %v6834_v0  ;;  %v7125_v0 = vpack.c.bf16 %v7107_v49, %v7106_v48 }
0x2224   : > { %8035 = vmatprep.subr.bf16.mxu0 %v6843_v50  ;;  %v7090_v50 = vld [vmem:[%s9927_s5 + $0x250] sm:$0xff] }
0x2225   : > { %v7117_v52 = vpack.c.bf16 %v7091_v51, %v7090_v50 }
0x2227   : > { %8036 = vmatpush3.bf16.msra.mxu0 %v6835_v31  ;;  %v7126_v31 = vpack.c.bf16 %v7109_v18, %v7108_v16 }
0x2228   : > { %8037 = vmatprep.subr.bf16.mxu0 %v6844_v53  ;;  %v7092_v53 = vld [vmem:[%s9927_s5 + $0x260] sm:$0xff] }
0x2229   : > { %v7118_v55 = vpack.c.bf16 %v7093_v54, %v7092_v53 }
0x222b   : > { %8038 = vmatpush3.bf16.msra.mxu0 %v6836_v58  ;;  %v7127_v58 = vpack.c.bf16 %v7111_v57, %v7110_v56 }
0x222c   : > { %8039 = vmatprep.subr.bf16.mxu0 %v6845_v60  ;;  %v7094_v60 = vld [vmem:[%s9927_s5 + $0x270] sm:$0xff] }
0x222d   : > { %v7119_v62 = vpack.c.bf16 %v7095_v61, %v7094_v60 }
0x222f   : > { %8040 = vmatpush3.bf16.msra.mxu0 %v6837_v4 }
0x2230   : > { %8041 = vmatprep.subr.bf16.mxu0 %v6846_v5 }
0x2233   : > { %8042 = vmatpush3.bf16.msra.mxu0 %v6838_v3 }
0x2234   : > { %8043 = vmatprep.subr.bf16.mxu0 %v6847_v8 }
0x2237   : > { %8044 = vmatpush3.bf16.msra.mxu0 %v6839_v11 }
0x2238   : > { %7134 = vmatprep.subr.bf16.mxu0 %v11459_v15  ;;  %v7080_v15 = vld [vmem:[%s9927_s5 + $0x200] sm:$0xff] }
0x223a   : > { %7072 = vmatmul.mubr.bf16.vlgmr.msra.gmra.mrb[184].mxu0 %v6897_v45  ;;  %v7112_v45 = vpack.c.bf16 %v7081_v20, %v7080_v15 }
0x223b   : > { %7135 = vmatpush1.bf16.msra.mxu0 %v11455_v26  ;;  %7166 = vmatprep.mubr.bf16.mxu0 %v9713_v28  ;;  %v7099_v26 = vld [vmem:[%s9927_s5 + $0x298] sm:$0xff] }
0x223c   : > { %v7121_v28 = vpack.c.bf16 %v7099_v26, %v7098_v40  ;;  %8051 = vmatprep.subr.bf16.mxu0 %v7120_v22 }
0x2242   : > { %7596 = vmatmul.mubr.msk.bf16.vlgmr.msra.gmra.mrb[188].mxu0 %vm1529_vm1, %v7130_v14 }
0x2243   : > { %8052 = vmatpush3.bf16.msra.mxu0 %v7112_v45 }
0x2244   : > { %8053 = vmatprep.subr.bf16.mxu0 %v7121_v28  ;;  %v7222_v28 = vld [vmem:[%s9932_s25] sm:$0xff] }
0x2247   : > { %8054 = vmatpush3.bf16.msra.mxu0 %v7113_v30 }
0x2248   : > { %8055 = vmatprep.subr.bf16.mxu0 %v7122_v32 }
0x224b   : > { %8056 = vmatpush3.bf16.msra.mxu0 %v7114_v38 }
0x224c   : > { %8057 = vmatprep.subr.bf16.mxu0 %v7123_v39 }
0x224f   : > { %8058 = vmatpush3.bf16.msra.mxu0 %v7115_v29 }
0x2250   : > { %8059 = vmatprep.subr.bf16.mxu0 %v7124_v33 }
0x2253   : > { %8060 = vmatpush3.bf16.msra.mxu0 %v7116_v47 }
0x2254   : > { %8061 = vmatprep.subr.bf16.mxu0 %v7125_v0 }
0x2257   : > { %8062 = vmatpush3.bf16.msra.mxu0 %v7117_v52 }
0x2258   : > { %8063 = vmatprep.subr.bf16.mxu0 %v7126_v31 }
0x225b   : > { %8064 = vmatpush3.bf16.msra.mxu0 %v7118_v55 }
0x225c   : > { %8065 = vmatprep.subr.bf16.mxu0 %v7127_v58 }
0x225f   : > { %8066 = vmatpush3.bf16.msra.mxu0 %v7119_v62 }
0x22ed   : > { %v8023_v63 = vpop.f32.mrb[180].mxu0 }
0x22ee   : > { %v8024_v1 = vpop.f32.mrb[181].mxu0 }
0x22ef   : > { %v8025_v4 = vadd.f32 %v8024_v1, %v8023_v63  ;;  %v8026_v5 = vpop.f32.mrb[182].mxu0 }
0x22f0   : > { %v8027_v59 = vpop.f32.mrb[183].mxu0 }
0x22f1   : > { %v8028_v6 = vadd.f32 %v8027_v59, %v8026_v5 }
0x230d   : > { %v8045_v7 = vpop.f32.mrb[184].mxu0 }
0x230e   : > { %v8046_v2 = vpop.f32.mrb[185].mxu0 }
0x230f   : > { %v8047_v3 = vadd.f32 %v8046_v2, %v8045_v7  ;;  %v8048_v8 = vpop.f32.mrb[186].mxu0 }
0x2310   : > { %v8049_v9 = vpop.f32.mrb[187].mxu0 }
0x2311   : > { %v7074_v10 = vadd.f32 %v8047_v3, %v8025_v4  ;;  %v8050_v11 = vadd.f32 %v8049_v9, %v8048_v8 }
0x2313   : > { %v7077_v12 = vadd.f32 %v8050_v11, %v8028_v6 }
0x2315   : > { %v7168_v13 = vpop.f32.mrb[188].mxu0 }
0x2316   : > { %v7170_v14 = vpop.f32.mrb[189].mxu0 }
0x2317   : > { %v7172_v19 = vpop.f32.mrb[190].mxu0 }
0x2318   : > { %v7177_v21 = vpack.c.bf16 %v7172_v19, %v7168_v13  ;;  %v7174_v15 = vpop.f32.mrb[191].mxu0 }
0x2319   : > { %v7178_v22 = vpack.c.bf16 %v7174_v15, %v7170_v14 }
0x231b   : > { %7211 = vmatprep.mubr.bf16.mxu0 %v7178_v22 }
0x231c   : > { %7212 = vmatmul.mubr.bf16.vlgmr.msra.gmra.mrb[192].mxu0 %v7177_v21 }
0x23ef   : > { %v8067_v20 = vpop.f32.mrb[192].mxu0 }
0x23f0   : > { %v8068_v40 = vpop.f32.mrb[193].mxu0 }
0x23f1   : > { %v8069_v26 = vadd.f32 %v8068_v40, %v8067_v20  ;;  %v8070_v45 = vpop.f32.mrb[194].mxu0 }
0x23f2   : > { %v8071_v23 = vpop.f32.mrb[195].mxu0 }
0x23f3   : > { %v7220_v24 = vadd.f32 %v8069_v26, %v7074_v10  ;;  %v8072_v25 = vadd.f32 %v8071_v23, %v8070_v45 }
0x23f5   : > { %v7224_v30 = vadd.f32 %v7222_v28, %v7220_v24  ;;  %v7221_v32 = vadd.f32 %v8072_v25, %v7077_v12 }
0x23f7   : > { %v7226_v34 = vmul.f32 0.5, %v7224_v30  ;;  %v7225_v35 = vadd.f32 %v7223_v17, %v7221_v32 }
0x23f9   : > { %9152 = vtanh.f32 %v7226_v34  ;;  %v7227_v36 = vmul.f32 0.5, %v7225_v35 }
0x23fb   : > { %9154 = vtanh.f32 %v7227_v36 }
0x2403   : > { %v9153_v37 = vpop.eup %9152 }
0x2404   : > { %v7230_v38 = vadd.f32 1.0, %v9153_v37 }
0x2405   : > { %v9155_v39 = vpop.eup %9154 }
0x2406   : > { %v7232_v41 = vmul.f32 0.5, %v7230_v38  ;;  %v7231_v42 = vadd.f32 1.0, %v9155_v39 }
0x2408   : > { %7234 = vst.msk [vmem:[%s1503_s1] sm:$0xff] %vm1641_vm2, %v7232_v41  ;;  %v7233_v43 = vmul.f32 0.5, %v7231_v42 }
0x240a   : > { %7235 = vst.msk [vmem:[%s1503_s1 + $0x8] sm:$0xff] %vm1641_vm2, %v7233_v43 }
0x240b PF: > { %s106_s22 = sadd.s32 1, %s9646_s22  }
0x240c   : > { %p103_p5 = scmp.ge.s32.totalorder %s106_s22, 4  }
0x240e   :  { %105 = sbr.rel (!%p103_p5) target bundleno = 83 (0x53), region = 330 }
0x2415   :  { %7257 = vsyncpa [#allocation3], 1 }
0x2416   :  { %7259 = vsyncpa [#allocation3 + $0x1], 1 }
0x2417   :  { %7260 = vsyncpa [#allocation5], 1 }
0x2418   :  { %7261 = vsyncpa [#allocation8], 1 }
0x2419   :  { %7262 = vsyncpa [#allocation11], 1 }
0x241a   :  { %7263 = vsyncpa [#allocation14], 1 }
0x241b   :  { %7264 = vsyncpa [#allocation17], 1 }
0x241c   :  { %7265 = vsyncpa [#allocation20], 1 }
0x241d   :  { %7266 = vsyncpa [#allocation23], 1 }
0x241e   :  { %7267 = vsyncpa [#allocation26], 1 }

</bundles_post_ra>
